<compile_context>
chip_gen: v7x
topology: tpu7x:2x2x1
jax: 0.10.0
libtpu: 0.0.40
codegen_flags: <defaults>
</compile_context>

<pallas_src>
import math

import jax
import jax.numpy as jnp
import numpy as np
from jax.experimental import pallas as pl
from jax.experimental.pallas import tpu as pltpu

IMAGE_SIZE = 16
COLOR_DIM = 4
STYLE_DIM = 8


# ---------------------------------------------------------------------------
# Fused kernel: conv0 -> [down convs] -> last conv -> fc1 -> fc2 -> fc3
# Activation layout inside the kernel: (H*W, N*C), columns ordered (n, c).
# ---------------------------------------------------------------------------
def _make_kernel(num_down):
    def kernel(*refs):
        f32 = jnp.float32
        p0_ref, bw0_ref, b0_ref = refs[0], refs[1], refs[2]
        rest = refs[3:]

        def conv_block(a, s_ref, w_ref):
            # out = sum_t (S_t @ A) @ blockdiag_N(W_t)
            acc = None
            for t in range(s_ref.shape[0]):
                gathered = jnp.dot(s_ref[t], a, preferred_element_type=f32)
                term = jnp.dot(gathered, w_ref[t], preferred_element_type=f32)
                acc = term if acc is None else acc + term
            return acc

        # conv0 (k7, s1, reflection pad 3) + ReLU; patches built outside.
        a = jnp.dot(p0_ref[...], bw0_ref[...], preferred_element_type=f32)
        a = jnp.maximum(a + b0_ref[...], 0.0)

        # downsampling convs (k4, s2, reflection pad 1) + ReLU
        for i in range(num_down):
            s_ref, w_ref, b_ref = rest[3 * i], rest[3 * i + 1], rest[3 * i + 2]
            a = jnp.maximum(conv_block(a, s_ref, w_ref) + b_ref[...], 0.0)
        rest = rest[3 * num_down:]

        # last conv (k4, s2, reflection pad 1), no bias, no ReLU
        feat = conv_block(a, rest[0], rest[1])          # (Hk*Wk, N*C_last)

        f1_ref, fb1_ref, f2_ref, fb2_ref, f3_ref, fb3_ref, out_ref = rest[2:9]

        # fc1 over the NCHW flatten: contract channels per spatial position.
        h = None
        for q in range(feat.shape[0]):
            term = jnp.dot(feat[q:q + 1, :], f1_ref[q], preferred_element_type=f32)
            h = term if h is None else h + term
        h = h + fb1_ref[...]
        # TODO(synk): Dropout(0.5) == identity (eval mode).
        h = jnp.dot(h, f2_ref[...], preferred_element_type=f32) + fb2_ref[...]
        out = jnp.dot(h, f3_ref[...], preferred_element_type=f32) + fb3_ref[...]
        out_ref[...] = out.astype(out_ref.dtype)

    return kernel


# ---------------------------------------------------------------------------
# One-time parameter preparation (all layout work hoisted out of the forward)
# ---------------------------------------------------------------------------
def _block_diag(w, n):
    r, c = w.shape
    out = jnp.zeros((n * r, n * c), w.dtype)
    for i in range(n):
        out = out.at[i * r:(i + 1) * r, i * c:(i + 1) * c].set(w)
    return out


def _reflect(i, size, pad):
    j = i - pad
    if j < 0:
        j = -j
    if j > size - 1:
        j = 2 * (size - 1) - j
    return j


def _make_select(h_in, k, stride, pad):
    """(k*k, Ho*Wo, Hin*Win) 0/1 matrices folding reflection pad + stride."""
    h_out = (h_in + 2 * pad - k) // stride + 1
    s = np.zeros((k * k, h_out * h_out, h_in * h_in), np.float32)
    for kh in range(k):
        for kw in range(k):
            t = kh * k + kw
            for ho in range(h_out):
                for wo in range(h_out):
                    hh = _reflect(stride * ho + kh, h_in, pad)
                    ww = _reflect(stride * wo + kw, h_in, pad)
                    s[t, ho * h_out + wo, hh * h_in + ww] = 1.0
    return jnp.asarray(s)


def _stack_conv_weights(w, n):
    """w: (Cout, Cin, k, k) -> (k*k, n*Cin, n*Cout), block-diag over batch."""
    k = w.shape[-1]
    mats = [_block_diag(w[:, :, kh, kw].T, n) for kh in range(k) for kw in range(k)]
    return jnp.stack(mats, axis=0)


def _conv0_patches(x, k, pad):
    """im2col of the reflection-padded input; rows (h,w), cols (n, c, kh, kw)."""
    xp = jnp.pad(x, ((0, 0), (0, 0), (pad, pad), (pad, pad)), mode="reflect")
    n, c, hp, wp = xp.shape
    ho, wo = hp - k + 1, wp - k + 1
    cols = [xp[:, :, kh:kh + ho, kw:kw + wo] for kh in range(k) for kw in range(k)]
    p = jnp.stack(cols, axis=2)                 # (N, C, k*k, Ho, Wo)
    p = p.transpose(3, 4, 0, 1, 2)              # (Ho, Wo, N, C, k*k)
    return p.reshape(ho * wo, n * c * k * k)


def init_params(key):
    conv_dim = 16
    conv_repeat = int(math.log(IMAGE_SIZE, 2)) - 2
    keys = jax.random.split(key, 16)
    ki = iter(range(16))

    def rnd(k, shape, scale=0.05):
        return scale * jax.random.normal(k, shape, dtype=jnp.float32)

    params = {}
    params["conv0_w"] = rnd(keys[next(ki)], (conv_dim, COLOR_DIM, 7, 7))
    params["conv0_b"] = rnd(keys[next(ki)], (conv_dim,))
    curr = conv_dim
    for i in range(conv_repeat):
        params[f"down{i}_w"] = rnd(keys[next(ki)], (curr * 2, curr, 4, 4))
        params[f"down{i}_b"] = rnd(keys[next(ki)], (curr * 2,))
        curr *= 2
    params["last_w"] = rnd(keys[next(ki)], (curr * 2, curr, 4, 4))
    curr *= 2
    k_size = IMAGE_SIZE // (2 ** (conv_repeat + 1))
    fc_in = curr * k_size * k_size                     # 128 * 2 * 2 = 512
    params["fc1_w"] = rnd(keys[next(ki)], (256, fc_in))
    params["fc1_b"] = rnd(keys[next(ki)], (256,))
    params["fc2_w"] = rnd(keys[next(ki)], (256, 256))
    params["fc2_b"] = rnd(keys[next(ki)], (256,))
    params["fc3_w"] = rnd(keys[next(ki)], (STYLE_DIM, 256))
    params["fc3_b"] = rnd(keys[next(ki)], (STYLE_DIM,))
    return params


def build_forward(params, batch):
    n = batch
    conv_repeat = int(math.log(IMAGE_SIZE, 2)) - 2

    # conv0: block-diag (over batch) weight, rows ordered (ci, kh, kw).
    w0 = params["conv0_w"]
    co0, ci0, k0, _ = w0.shape
    w0_2d = w0.reshape(co0, ci0 * k0 * k0).T
    args = [_block_diag(w0_2d, n), jnp.tile(params["conv0_b"], n)[None, :]]

    # downsampling convs
    h_in = IMAGE_SIZE
    for i in range(conv_repeat):
        args += [_make_select(h_in, 4, 2, 1),
                 _stack_conv_weights(params[f"down{i}_w"], n),
                 jnp.tile(params[f"down{i}_b"], n)[None, :]]
        h_in //= 2

    # last conv (no bias)
    args += [_make_select(h_in, 4, 2, 1),
             _stack_conv_weights(params["last_w"], n)]
    h_in //= 2
    hw_last = h_in * h_in
    c_last = params["last_w"].shape[0]

    # fc head; fc1 columns permuted once so the torch NCHW flatten is preserved.
    w1 = params["fc1_w"]                                       # (256, c_last*hw_last)
    w1p = w1.T.reshape(c_last, hw_last, w1.shape[0]).transpose(1, 0, 2)
    f1 = jnp.stack([_block_diag(w1p[q], n) for q in range(hw_last)], axis=0)
    args += [f1, jnp.tile(params["fc1_b"], n)[None, :],
             _block_diag(params["fc2_w"].T, n),
             jnp.tile(params["fc2_b"], n)[None, :],
             _block_diag(params["fc3_w"].T, n),
             jnp.tile(params["fc3_b"], n)[None, :]]
    args = tuple(args)

    kernel = _make_kernel(conv_repeat)
    vmem_spec = pl.BlockSpec(memory_space=pltpu.MemorySpace.VMEM)
    static_bytes = sum(int(a.size) * 4 for a in args)

    def forward(x):
        p0 = _conv0_patches(x, k0, (k0 - 1) // 2)
        inputs = (p0,) + args
        out = pl.pallas_call(
            kernel,
            out_shape=jax.ShapeDtypeStruct((1, n * STYLE_DIM), jnp.float32),
            in_specs=[vmem_spec] * len(inputs),
            out_specs=vmem_spec,
            compiler_params=pltpu.CompilerParams(
                vmem_limit_bytes=48 * 1024 * 1024),
            cost_estimate=pl.CostEstimate(
                flops=40_000_000, transcendentals=0,
                bytes_accessed=static_bytes + int(p0.size) * 4 + n * STYLE_DIM * 4),
        )(*inputs)
        return out.reshape(n, STYLE_DIM)

    return forward


# ---------------------------------------------------------------------------
# Pure-JAX reference (same math as the PyTorch module) for a correctness check
# ---------------------------------------------------------------------------
def reference_forward(x, params):
    hi = jax.lax.Precision.HIGHEST

    def conv(h, w, b, stride, pad, relu):
        hp = jnp.pad(h, ((0, 0), (0, 0), (pad, pad), (pad, pad)), mode="reflect")
        y = jax.lax.conv_general_dilated(
            hp, w, (stride, stride), "VALID",
            dimension_numbers=("NCHW", "OIHW", "NCHW"), precision=hi)
        if b is not None:
            y = y + b[None, :, None, None]
        return jnp.maximum(y, 0.0) if relu else y

    conv_repeat = int(math.log(IMAGE_SIZE, 2)) - 2
    h = conv(x, params["conv0_w"], params["conv0_b"], 1, 3, True)
    for i in range(conv_repeat):
        h = conv(h, params[f"down{i}_w"], params[f"down{i}_b"], 2, 1, True)
    h = conv(h, params["last_w"], None, 2, 1, False)
    f = h.reshape(h.shape[0], -1)
    f = jnp.dot(f, params["fc1_w"].T, precision=hi) + params["fc1_b"]
    f = jnp.dot(f, params["fc2_w"].T, precision=hi) + params["fc2_b"]
    return jnp.dot(f, params["fc3_w"].T, precision=hi) + params["fc3_b"]


if __name__ == "__main__":
    key = jax.random.PRNGKey(0)
    kp, kx = jax.random.split(key)
    params = init_params(kp)
    x = jax.random.normal(kx, (2, COLOR_DIM, IMAGE_SIZE, IMAGE_SIZE),
                          dtype=jnp.float32)

    fwd = jax.jit(build_forward(params, batch=x.shape[0]))
    style = fwd(x)
    jax.block_until_ready(style)
    assert style.shape == (2, STYLE_DIM), style.shape
    assert style.dtype == jnp.float32

    ref = reference_forward(x, params)
    err = float(jnp.max(jnp.abs(style - ref)))
    assert err < 5e-3, f"kernel/reference mismatch: max abs err = {err}"
    print("KERNEL_OK")
</pallas_src>

<mosaic_0001>
module attributes {stable_mosaic.version = 11 : i64} {
  func.func @kernel(%arg0: memref<256x392xf32, #tpu.memory_space<vmem>>, %arg1: memref<392x32xf32, #tpu.memory_space<vmem>>, %arg2: memref<1x32xf32, #tpu.memory_space<vmem>>, %arg3: memref<16x64x256xf32, #tpu.memory_space<vmem>>, %arg4: memref<16x32x64xf32, #tpu.memory_space<vmem>>, %arg5: memref<1x64xf32, #tpu.memory_space<vmem>>, %arg6: memref<16x16x64xf32, #tpu.memory_space<vmem>>, %arg7: memref<16x64x128xf32, #tpu.memory_space<vmem>>, %arg8: memref<1x128xf32, #tpu.memory_space<vmem>>, %arg9: memref<16x4x16xf32, #tpu.memory_space<vmem>>, %arg10: memref<16x128x256xf32, #tpu.memory_space<vmem>>, %arg11: memref<4x256x512xf32, #tpu.memory_space<vmem>>, %arg12: memref<1x512xf32, #tpu.memory_space<vmem>>, %arg13: memref<512x512xf32, #tpu.memory_space<vmem>>, %arg14: memref<1x512xf32, #tpu.memory_space<vmem>>, %arg15: memref<512x16xf32, #tpu.memory_space<vmem>>, %arg16: memref<1x16xf32, #tpu.memory_space<vmem>>, %arg17: memref<1x16xf32, #tpu.memory_space<vmem>>) attributes {dimension_semantics = [], scalar_prefetch = 0 : i64, scratch_operands = 0 : i64, tpu.core_type = #tpu.core_type<tc>} {
    %c0 = arith.constant 0 : index
    %c0_0 = arith.constant 0 : index
    %0 = vector.load %arg0[%c0, %c0_0] : memref<256x392xf32, #tpu.memory_space<vmem>>, vector<256x392xf32>
    %c0_1 = arith.constant 0 : index
    %c0_2 = arith.constant 0 : index
    %1 = vector.load %arg1[%c0_1, %c0_2] : memref<392x32xf32, #tpu.memory_space<vmem>>, vector<392x32xf32>
    %cst = arith.constant dense<0.000000e+00> : vector<256x32xf32>
    %2 = tpu.matmul %0, %1, %cst {dimension_numbers = #tpu.dot_dimension_numbers<[1], [0], [0], [1], [0, 0, 1, 1], [], []>} : vector<256x392xf32>, vector<392x32xf32>, vector<256x32xf32> -> vector<256x32xf32>
    %c0_3 = arith.constant 0 : index
    %c0_4 = arith.constant 0 : index
    %3 = vector.load %arg2[%c0_3, %c0_4] : memref<1x32xf32, #tpu.memory_space<vmem>>, vector<1x32xf32>
    %4 = vector.broadcast %3 : vector<1x32xf32> to vector<256x32xf32>
    %5 = arith.addf %2, %4 : vector<256x32xf32>
    %cst_5 = arith.constant 0.000000e+00 : f32
    %6 = vector.broadcast %cst_5 : f32 to vector<256x32xf32>
    %7 = arith.maximumf %5, %6 : vector<256x32xf32>
    %c0_6 = arith.constant 0 : index
    %c0_7 = arith.constant 0 : index
    %c0_8 = arith.constant 0 : index
    %8 = vector.load %arg3[%c0_6, %c0_7, %c0_8] : memref<16x64x256xf32, #tpu.memory_space<vmem>>, vector<1x64x256xf32>
    %9 = vector.shape_cast %8 : vector<1x64x256xf32> to vector<64x256xf32>
    %cst_9 = arith.constant dense<0.000000e+00> : vector<64x32xf32>
    %10 = tpu.matmul %9, %7, %cst_9 {dimension_numbers = #tpu.dot_dimension_numbers<[1], [0], [0], [1], [0, 0, 1, 1], [], []>} : vector<64x256xf32>, vector<256x32xf32>, vector<64x32xf32> -> vector<64x32xf32>
    %c0_10 = arith.constant 0 : index
    %c0_11 = arith.constant 0 : index
    %c0_12 = arith.constant 0 : index
    %11 = vector.load %arg4[%c0_10, %c0_11, %c0_12] : memref<16x32x64xf32, #tpu.memory_space<vmem>>, vector<1x32x64xf32>
    %12 = vector.shape_cast %11 : vector<1x32x64xf32> to vector<32x64xf32>
    %cst_13 = arith.constant dense<0.000000e+00> : vector<64x64xf32>
    %13 = tpu.matmul %10, %12, %cst_13 {dimension_numbers = #tpu.dot_dimension_numbers<[1], [0], [0], [1], [0, 0, 1, 1], [], []>} : vector<64x32xf32>, vector<32x64xf32>, vector<64x64xf32> -> vector<64x64xf32>
    %c1 = arith.constant 1 : index
    %c0_14 = arith.constant 0 : index
    %c0_15 = arith.constant 0 : index
    %14 = vector.load %arg3[%c1, %c0_14, %c0_15] : memref<16x64x256xf32, #tpu.memory_space<vmem>>, vector<1x64x256xf32>
    %15 = vector.shape_cast %14 : vector<1x64x256xf32> to vector<64x256xf32>
    %cst_16 = arith.constant dense<0.000000e+00> : vector<64x32xf32>
    %16 = tpu.matmul %15, %7, %cst_16 {dimension_numbers = #tpu.dot_dimension_numbers<[1], [0], [0], [1], [0, 0, 1, 1], [], []>} : vector<64x256xf32>, vector<256x32xf32>, vector<64x32xf32> -> vector<64x32xf32>
    %c1_17 = arith.constant 1 : index
    %c0_18 = arith.constant 0 : index
    %c0_19 = arith.constant 0 : index
    %17 = vector.load %arg4[%c1_17, %c0_18, %c0_19] : memref<16x32x64xf32, #tpu.memory_space<vmem>>, vector<1x32x64xf32>
    %18 = vector.shape_cast %17 : vector<1x32x64xf32> to vector<32x64xf32>
    %cst_20 = arith.constant dense<0.000000e+00> : vector<64x64xf32>
    %19 = tpu.matmul %16, %18, %cst_20 {dimension_numbers = #tpu.dot_dimension_numbers<[1], [0], [0], [1], [0, 0, 1, 1], [], []>} : vector<64x32xf32>, vector<32x64xf32>, vector<64x64xf32> -> vector<64x64xf32>
    %20 = arith.addf %13, %19 : vector<64x64xf32>
    %c2 = arith.constant 2 : index
    %c0_21 = arith.constant 0 : index
    %c0_22 = arith.constant 0 : index
    %21 = vector.load %arg3[%c2, %c0_21, %c0_22] : memref<16x64x256xf32, #tpu.memory_space<vmem>>, vector<1x64x256xf32>
    %22 = vector.shape_cast %21 : vector<1x64x256xf32> to vector<64x256xf32>
    %cst_23 = arith.constant dense<0.000000e+00> : vector<64x32xf32>
    %23 = tpu.matmul %22, %7, %cst_23 {dimension_numbers = #tpu.dot_dimension_numbers<[1], [0], [0], [1], [0, 0, 1, 1], [], []>} : vector<64x256xf32>, vector<256x32xf32>, vector<64x32xf32> -> vector<64x32xf32>
    %c2_24 = arith.constant 2 : index
    %c0_25 = arith.constant 0 : index
    %c0_26 = arith.constant 0 : index
    %24 = vector.load %arg4[%c2_24, %c0_25, %c0_26] : memref<16x32x64xf32, #tpu.memory_space<vmem>>, vector<1x32x64xf32>
    %25 = vector.shape_cast %24 : vector<1x32x64xf32> to vector<32x64xf32>
    %cst_27 = arith.constant dense<0.000000e+00> : vector<64x64xf32>
    %26 = tpu.matmul %23, %25, %cst_27 {dimension_numbers = #tpu.dot_dimension_numbers<[1], [0], [0], [1], [0, 0, 1, 1], [], []>} : vector<64x32xf32>, vector<32x64xf32>, vector<64x64xf32> -> vector<64x64xf32>
    %27 = arith.addf %20, %26 : vector<64x64xf32>
    %c3 = arith.constant 3 : index
    %c0_28 = arith.constant 0 : index
    %c0_29 = arith.constant 0 : index
    %28 = vector.load %arg3[%c3, %c0_28, %c0_29] : memref<16x64x256xf32, #tpu.memory_space<vmem>>, vector<1x64x256xf32>
    %29 = vector.shape_cast %28 : vector<1x64x256xf32> to vector<64x256xf32>
    %cst_30 = arith.constant dense<0.000000e+00> : vector<64x32xf32>
    %30 = tpu.matmul %29, %7, %cst_30 {dimension_numbers = #tpu.dot_dimension_numbers<[1], [0], [0], [1], [0, 0, 1, 1], [], []>} : vector<64x256xf32>, vector<256x32xf32>, vector<64x32xf32> -> vector<64x32xf32>
    %c3_31 = arith.constant 3 : index
    %c0_32 = arith.constant 0 : index
    %c0_33 = arith.constant 0 : index
    %31 = vector.load %arg4[%c3_31, %c0_32, %c0_33] : memref<16x32x64xf32, #tpu.memory_space<vmem>>, vector<1x32x64xf32>
    %32 = vector.shape_cast %31 : vector<1x32x64xf32> to vector<32x64xf32>
    %cst_34 = arith.constant dense<0.000000e+00> : vector<64x64xf32>
    %33 = tpu.matmul %30, %32, %cst_34 {dimension_numbers = #tpu.dot_dimension_numbers<[1], [0], [0], [1], [0, 0, 1, 1], [], []>} : vector<64x32xf32>, vector<32x64xf32>, vector<64x64xf32> -> vector<64x64xf32>
    %34 = arith.addf %27, %33 : vector<64x64xf32>
    %c4 = arith.constant 4 : index
    %c0_35 = arith.constant 0 : index
    %c0_36 = arith.constant 0 : index
    %35 = vector.load %arg3[%c4, %c0_35, %c0_36] : memref<16x64x256xf32, #tpu.memory_space<vmem>>, vector<1x64x256xf32>
    %36 = vector.shape_cast %35 : vector<1x64x256xf32> to vector<64x256xf32>
    %cst_37 = arith.constant dense<0.000000e+00> : vector<64x32xf32>
    %37 = tpu.matmul %36, %7, %cst_37 {dimension_numbers = #tpu.dot_dimension_numbers<[1], [0], [0], [1], [0, 0, 1, 1], [], []>} : vector<64x256xf32>, vector<256x32xf32>, vector<64x32xf32> -> vector<64x32xf32>
    %c4_38 = arith.constant 4 : index
    %c0_39 = arith.constant 0 : index
    %c0_40 = arith.constant 0 : index
    %38 = vector.load %arg4[%c4_38, %c0_39, %c0_40] : memref<16x32x64xf32, #tpu.memory_space<vmem>>, vector<1x32x64xf32>
    %39 = vector.shape_cast %38 : vector<1x32x64xf32> to vector<32x64xf32>
    %cst_41 = arith.constant dense<0.000000e+00> : vector<64x64xf32>
    %40 = tpu.matmul %37, %39, %cst_41 {dimension_numbers = #tpu.dot_dimension_numbers<[1], [0], [0], [1], [0, 0, 1, 1], [], []>} : vector<64x32xf32>, vector<32x64xf32>, vector<64x64xf32> -> vector<64x64xf32>
    %41 = arith.addf %34, %40 : vector<64x64xf32>
    %c5 = arith.constant 5 : index
    %c0_42 = arith.constant 0 : index
    %c0_43 = arith.constant 0 : index
    %42 = vector.load %arg3[%c5, %c0_42, %c0_43] : memref<16x64x256xf32, #tpu.memory_space<vmem>>, vector<1x64x256xf32>
    %43 = vector.shape_cast %42 : vector<1x64x256xf32> to vector<64x256xf32>
    %cst_44 = arith.constant dense<0.000000e+00> : vector<64x32xf32>
    %44 = tpu.matmul %43, %7, %cst_44 {dimension_numbers = #tpu.dot_dimension_numbers<[1], [0], [0], [1], [0, 0, 1, 1], [], []>} : vector<64x256xf32>, vector<256x32xf32>, vector<64x32xf32> -> vector<64x32xf32>
    %c5_45 = arith.constant 5 : index
    %c0_46 = arith.constant 0 : index
    %c0_47 = arith.constant 0 : index
    %45 = vector.load %arg4[%c5_45, %c0_46, %c0_47] : memref<16x32x64xf32, #tpu.memory_space<vmem>>, vector<1x32x64xf32>
    %46 = vector.shape_cast %45 : vector<1x32x64xf32> to vector<32x64xf32>
    %cst_48 = arith.constant dense<0.000000e+00> : vector<64x64xf32>
    %47 = tpu.matmul %44, %46, %cst_48 {dimension_numbers = #tpu.dot_dimension_numbers<[1], [0], [0], [1], [0, 0, 1, 1], [], []>} : vector<64x32xf32>, vector<32x64xf32>, vector<64x64xf32> -> vector<64x64xf32>
    %48 = arith.addf %41, %47 : vector<64x64xf32>
    %c6 = arith.constant 6 : index
    %c0_49 = arith.constant 0 : index
    %c0_50 = arith.constant 0 : index
    %49 = vector.load %arg3[%c6, %c0_49, %c0_50] : memref<16x64x256xf32, #tpu.memory_space<vmem>>, vector<1x64x256xf32>
    %50 = vector.shape_cast %49 : vector<1x64x256xf32> to vector<64x256xf32>
    %cst_51 = arith.constant dense<0.000000e+00> : vector<64x32xf32>
    %51 = tpu.matmul %50, %7, %cst_51 {dimension_numbers = #tpu.dot_dimension_numbers<[1], [0], [0], [1], [0, 0, 1, 1], [], []>} : vector<64x256xf32>, vector<256x32xf32>, vector<64x32xf32> -> vector<64x32xf32>
    %c6_52 = arith.constant 6 : index
    %c0_53 = arith.constant 0 : index
    %c0_54 = arith.constant 0 : index
    %52 = vector.load %arg4[%c6_52, %c0_53, %c0_54] : memref<16x32x64xf32, #tpu.memory_space<vmem>>, vector<1x32x64xf32>
    %53 = vector.shape_cast %52 : vector<1x32x64xf32> to vector<32x64xf32>
    %cst_55 = arith.constant dense<0.000000e+00> : vector<64x64xf32>
    %54 = tpu.matmul %51, %53, %cst_55 {dimension_numbers = #tpu.dot_dimension_numbers<[1], [0], [0], [1], [0, 0, 1, 1], [], []>} : vector<64x32xf32>, vector<32x64xf32>, vector<64x64xf32> -> vector<64x64xf32>
    %55 = arith.addf %48, %54 : vector<64x64xf32>
    %c7 = arith.constant 7 : index
    %c0_56 = arith.constant 0 : index
    %c0_57 = arith.constant 0 : index
    %56 = vector.load %arg3[%c7, %c0_56, %c0_57] : memref<16x64x256xf32, #tpu.memory_space<vmem>>, vector<1x64x256xf32>
    %57 = vector.shape_cast %56 : vector<1x64x256xf32> to vector<64x256xf32>
    %cst_58 = arith.constant dense<0.000000e+00> : vector<64x32xf32>
    %58 = tpu.matmul %57, %7, %cst_58 {dimension_numbers = #tpu.dot_dimension_numbers<[1], [0], [0], [1], [0, 0, 1, 1], [], []>} : vector<64x256xf32>, vector<256x32xf32>, vector<64x32xf32> -> vector<64x32xf32>
    %c7_59 = arith.constant 7 : index
    %c0_60 = arith.constant 0 : index
    %c0_61 = arith.constant 0 : index
    %59 = vector.load %arg4[%c7_59, %c0_60, %c0_61] : memref<16x32x64xf32, #tpu.memory_space<vmem>>, vector<1x32x64xf32>
    %60 = vector.shape_cast %59 : vector<1x32x64xf32> to vector<32x64xf32>
    %cst_62 = arith.constant dense<0.000000e+00> : vector<64x64xf32>
    %61 = tpu.matmul %58, %60, %cst_62 {dimension_numbers = #tpu.dot_dimension_numbers<[1], [0], [0], [1], [0, 0, 1, 1], [], []>} : vector<64x32xf32>, vector<32x64xf32>, vector<64x64xf32> -> vector<64x64xf32>
    %62 = arith.addf %55, %61 : vector<64x64xf32>
    %c8 = arith.constant 8 : index
    %c0_63 = arith.constant 0 : index
    %c0_64 = arith.constant 0 : index
    %63 = vector.load %arg3[%c8, %c0_63, %c0_64] : memref<16x64x256xf32, #tpu.memory_space<vmem>>, vector<1x64x256xf32>
    %64 = vector.shape_cast %63 : vector<1x64x256xf32> to vector<64x256xf32>
    %cst_65 = arith.constant dense<0.000000e+00> : vector<64x32xf32>
    %65 = tpu.matmul %64, %7, %cst_65 {dimension_numbers = #tpu.dot_dimension_numbers<[1], [0], [0], [1], [0, 0, 1, 1], [], []>} : vector<64x256xf32>, vector<256x32xf32>, vector<64x32xf32> -> vector<64x32xf32>
    %c8_66 = arith.constant 8 : index
    %c0_67 = arith.constant 0 : index
    %c0_68 = arith.constant 0 : index
    %66 = vector.load %arg4[%c8_66, %c0_67, %c0_68] : memref<16x32x64xf32, #tpu.memory_space<vmem>>, vector<1x32x64xf32>
    %67 = vector.shape_cast %66 : vector<1x32x64xf32> to vector<32x64xf32>
    %cst_69 = arith.constant dense<0.000000e+00> : vector<64x64xf32>
    %68 = tpu.matmul %65, %67, %cst_69 {dimension_numbers = #tpu.dot_dimension_numbers<[1], [0], [0], [1], [0, 0, 1, 1], [], []>} : vector<64x32xf32>, vector<32x64xf32>, vector<64x64xf32> -> vector<64x64xf32>
    %69 = arith.addf %62, %68 : vector<64x64xf32>
    %c9 = arith.constant 9 : index
    %c0_70 = arith.constant 0 : index
    %c0_71 = arith.constant 0 : index
    %70 = vector.load %arg3[%c9, %c0_70, %c0_71] : memref<16x64x256xf32, #tpu.memory_space<vmem>>, vector<1x64x256xf32>
    %71 = vector.shape_cast %70 : vector<1x64x256xf32> to vector<64x256xf32>
    %cst_72 = arith.constant dense<0.000000e+00> : vector<64x32xf32>
    %72 = tpu.matmul %71, %7, %cst_72 {dimension_numbers = #tpu.dot_dimension_numbers<[1], [0], [0], [1], [0, 0, 1, 1], [], []>} : vector<64x256xf32>, vector<256x32xf32>, vector<64x32xf32> -> vector<64x32xf32>
    %c9_73 = arith.constant 9 : index
    %c0_74 = arith.constant 0 : index
    %c0_75 = arith.constant 0 : index
    %73 = vector.load %arg4[%c9_73, %c0_74, %c0_75] : memref<16x32x64xf32, #tpu.memory_space<vmem>>, vector<1x32x64xf32>
    %74 = vector.shape_cast %73 : vector<1x32x64xf32> to vector<32x64xf32>
    %cst_76 = arith.constant dense<0.000000e+00> : vector<64x64xf32>
    %75 = tpu.matmul %72, %74, %cst_76 {dimension_numbers = #tpu.dot_dimension_numbers<[1], [0], [0], [1], [0, 0, 1, 1], [], []>} : vector<64x32xf32>, vector<32x64xf32>, vector<64x64xf32> -> vector<64x64xf32>
    %76 = arith.addf %69, %75 : vector<64x64xf32>
    %c10 = arith.constant 10 : index
    %c0_77 = arith.constant 0 : index
    %c0_78 = arith.constant 0 : index
    %77 = vector.load %arg3[%c10, %c0_77, %c0_78] : memref<16x64x256xf32, #tpu.memory_space<vmem>>, vector<1x64x256xf32>
    %78 = vector.shape_cast %77 : vector<1x64x256xf32> to vector<64x256xf32>
    %cst_79 = arith.constant dense<0.000000e+00> : vector<64x32xf32>
    %79 = tpu.matmul %78, %7, %cst_79 {dimension_numbers = #tpu.dot_dimension_numbers<[1], [0], [0], [1], [0, 0, 1, 1], [], []>} : vector<64x256xf32>, vector<256x32xf32>, vector<64x32xf32> -> vector<64x32xf32>
    %c10_80 = arith.constant 10 : index
    %c0_81 = arith.constant 0 : index
    %c0_82 = arith.constant 0 : index
    %80 = vector.load %arg4[%c10_80, %c0_81, %c0_82] : memref<16x32x64xf32, #tpu.memory_space<vmem>>, vector<1x32x64xf32>
    %81 = vector.shape_cast %80 : vector<1x32x64xf32> to vector<32x64xf32>
    %cst_83 = arith.constant dense<0.000000e+00> : vector<64x64xf32>
    %82 = tpu.matmul %79, %81, %cst_83 {dimension_numbers = #tpu.dot_dimension_numbers<[1], [0], [0], [1], [0, 0, 1, 1], [], []>} : vector<64x32xf32>, vector<32x64xf32>, vector<64x64xf32> -> vector<64x64xf32>
    %83 = arith.addf %76, %82 : vector<64x64xf32>
    %c11 = arith.constant 11 : index
    %c0_84 = arith.constant 0 : index
    %c0_85 = arith.constant 0 : index
    %84 = vector.load %arg3[%c11, %c0_84, %c0_85] : memref<16x64x256xf32, #tpu.memory_space<vmem>>, vector<1x64x256xf32>
    %85 = vector.shape_cast %84 : vector<1x64x256xf32> to vector<64x256xf32>
    %cst_86 = arith.constant dense<0.000000e+00> : vector<64x32xf32>
    %86 = tpu.matmul %85, %7, %cst_86 {dimension_numbers = #tpu.dot_dimension_numbers<[1], [0], [0], [1], [0, 0, 1, 1], [], []>} : vector<64x256xf32>, vector<256x32xf32>, vector<64x32xf32> -> vector<64x32xf32>
    %c11_87 = arith.constant 11 : index
    %c0_88 = arith.constant 0 : index
    %c0_89 = arith.constant 0 : index
    %87 = vector.load %arg4[%c11_87, %c0_88, %c0_89] : memref<16x32x64xf32, #tpu.memory_space<vmem>>, vector<1x32x64xf32>
    %88 = vector.shape_cast %87 : vector<1x32x64xf32> to vector<32x64xf32>
    %cst_90 = arith.constant dense<0.000000e+00> : vector<64x64xf32>
    %89 = tpu.matmul %86, %88, %cst_90 {dimension_numbers = #tpu.dot_dimension_numbers<[1], [0], [0], [1], [0, 0, 1, 1], [], []>} : vector<64x32xf32>, vector<32x64xf32>, vector<64x64xf32> -> vector<64x64xf32>
    %90 = arith.addf %83, %89 : vector<64x64xf32>
    %c12 = arith.constant 12 : index
    %c0_91 = arith.constant 0 : index
    %c0_92 = arith.constant 0 : index
    %91 = vector.load %arg3[%c12, %c0_91, %c0_92] : memref<16x64x256xf32, #tpu.memory_space<vmem>>, vector<1x64x256xf32>
    %92 = vector.shape_cast %91 : vector<1x64x256xf32> to vector<64x256xf32>
    %cst_93 = arith.constant dense<0.000000e+00> : vector<64x32xf32>
    %93 = tpu.matmul %92, %7, %cst_93 {dimension_numbers = #tpu.dot_dimension_numbers<[1], [0], [0], [1], [0, 0, 1, 1], [], []>} : vector<64x256xf32>, vector<256x32xf32>, vector<64x32xf32> -> vector<64x32xf32>
    %c12_94 = arith.constant 12 : index
    %c0_95 = arith.constant 0 : index
    %c0_96 = arith.constant 0 : index
    %94 = vector.load %arg4[%c12_94, %c0_95, %c0_96] : memref<16x32x64xf32, #tpu.memory_space<vmem>>, vector<1x32x64xf32>
    %95 = vector.shape_cast %94 : vector<1x32x64xf32> to vector<32x64xf32>
    %cst_97 = arith.constant dense<0.000000e+00> : vector<64x64xf32>
    %96 = tpu.matmul %93, %95, %cst_97 {dimension_numbers = #tpu.dot_dimension_numbers<[1], [0], [0], [1], [0, 0, 1, 1], [], []>} : vector<64x32xf32>, vector<32x64xf32>, vector<64x64xf32> -> vector<64x64xf32>
    %97 = arith.addf %90, %96 : vector<64x64xf32>
    %c13 = arith.constant 13 : index
    %c0_98 = arith.constant 0 : index
    %c0_99 = arith.constant 0 : index
    %98 = vector.load %arg3[%c13, %c0_98, %c0_99] : memref<16x64x256xf32, #tpu.memory_space<vmem>>, vector<1x64x256xf32>
    %99 = vector.shape_cast %98 : vector<1x64x256xf32> to vector<64x256xf32>
    %cst_100 = arith.constant dense<0.000000e+00> : vector<64x32xf32>
    %100 = tpu.matmul %99, %7, %cst_100 {dimension_numbers = #tpu.dot_dimension_numbers<[1], [0], [0], [1], [0, 0, 1, 1], [], []>} : vector<64x256xf32>, vector<256x32xf32>, vector<64x32xf32> -> vector<64x32xf32>
    %c13_101 = arith.constant 13 : index
    %c0_102 = arith.constant 0 : index
    %c0_103 = arith.constant 0 : index
    %101 = vector.load %arg4[%c13_101, %c0_102, %c0_103] : memref<16x32x64xf32, #tpu.memory_space<vmem>>, vector<1x32x64xf32>
    %102 = vector.shape_cast %101 : vector<1x32x64xf32> to vector<32x64xf32>
    %cst_104 = arith.constant dense<0.000000e+00> : vector<64x64xf32>
    %103 = tpu.matmul %100, %102, %cst_104 {dimension_numbers = #tpu.dot_dimension_numbers<[1], [0], [0], [1], [0, 0, 1, 1], [], []>} : vector<64x32xf32>, vector<32x64xf32>, vector<64x64xf32> -> vector<64x64xf32>
    %104 = arith.addf %97, %103 : vector<64x64xf32>
    %c14 = arith.constant 14 : index
    %c0_105 = arith.constant 0 : index
    %c0_106 = arith.constant 0 : index
    %105 = vector.load %arg3[%c14, %c0_105, %c0_106] : memref<16x64x256xf32, #tpu.memory_space<vmem>>, vector<1x64x256xf32>
    %106 = vector.shape_cast %105 : vector<1x64x256xf32> to vector<64x256xf32>
    %cst_107 = arith.constant dense<0.000000e+00> : vector<64x32xf32>
    %107 = tpu.matmul %106, %7, %cst_107 {dimension_numbers = #tpu.dot_dimension_numbers<[1], [0], [0], [1], [0, 0, 1, 1], [], []>} : vector<64x256xf32>, vector<256x32xf32>, vector<64x32xf32> -> vector<64x32xf32>
    %c14_108 = arith.constant 14 : index
    %c0_109 = arith.constant 0 : index
    %c0_110 = arith.constant 0 : index
    %108 = vector.load %arg4[%c14_108, %c0_109, %c0_110] : memref<16x32x64xf32, #tpu.memory_space<vmem>>, vector<1x32x64xf32>
    %109 = vector.shape_cast %108 : vector<1x32x64xf32> to vector<32x64xf32>
    %cst_111 = arith.constant dense<0.000000e+00> : vector<64x64xf32>
    %110 = tpu.matmul %107, %109, %cst_111 {dimension_numbers = #tpu.dot_dimension_numbers<[1], [0], [0], [1], [0, 0, 1, 1], [], []>} : vector<64x32xf32>, vector<32x64xf32>, vector<64x64xf32> -> vector<64x64xf32>
    %111 = arith.addf %104, %110 : vector<64x64xf32>
    %c15 = arith.constant 15 : index
    %c0_112 = arith.constant 0 : index
    %c0_113 = arith.constant 0 : index
    %112 = vector.load %arg3[%c15, %c0_112, %c0_113] : memref<16x64x256xf32, #tpu.memory_space<vmem>>, vector<1x64x256xf32>
    %113 = vector.shape_cast %112 : vector<1x64x256xf32> to vector<64x256xf32>
    %cst_114 = arith.constant dense<0.000000e+00> : vector<64x32xf32>
    %114 = tpu.matmul %113, %7, %cst_114 {dimension_numbers = #tpu.dot_dimension_numbers<[1], [0], [0], [1], [0, 0, 1, 1], [], []>} : vector<64x256xf32>, vector<256x32xf32>, vector<64x32xf32> -> vector<64x32xf32>
    %c15_115 = arith.constant 15 : index
    %c0_116 = arith.constant 0 : index
    %c0_117 = arith.constant 0 : index
    %115 = vector.load %arg4[%c15_115, %c0_116, %c0_117] : memref<16x32x64xf32, #tpu.memory_space<vmem>>, vector<1x32x64xf32>
    %116 = vector.shape_cast %115 : vector<1x32x64xf32> to vector<32x64xf32>
    %cst_118 = arith.constant dense<0.000000e+00> : vector<64x64xf32>
    %117 = tpu.matmul %114, %116, %cst_118 {dimension_numbers = #tpu.dot_dimension_numbers<[1], [0], [0], [1], [0, 0, 1, 1], [], []>} : vector<64x32xf32>, vector<32x64xf32>, vector<64x64xf32> -> vector<64x64xf32>
    %118 = arith.addf %111, %117 : vector<64x64xf32>
    %c0_119 = arith.constant 0 : index
    %c0_120 = arith.constant 0 : index
    %119 = vector.load %arg5[%c0_119, %c0_120] : memref<1x64xf32, #tpu.memory_space<vmem>>, vector<1x64xf32>
    %120 = vector.broadcast %119 : vector<1x64xf32> to vector<64x64xf32>
    %121 = arith.addf %118, %120 : vector<64x64xf32>
    %cst_121 = arith.constant 0.000000e+00 : f32
    %122 = vector.broadcast %cst_121 : f32 to vector<64x64xf32>
    %123 = arith.maximumf %121, %122 : vector<64x64xf32>
    %c0_122 = arith.constant 0 : index
    %c0_123 = arith.constant 0 : index
    %c0_124 = arith.constant 0 : index
    %124 = vector.load %arg6[%c0_122, %c0_123, %c0_124] : memref<16x16x64xf32, #tpu.memory_space<vmem>>, vector<1x16x64xf32>
    %125 = vector.shape_cast %124 : vector<1x16x64xf32> to vector<16x64xf32>
    %cst_125 = arith.constant dense<0.000000e+00> : vector<16x64xf32>
    %126 = tpu.matmul %125, %123, %cst_125 {dimension_numbers = #tpu.dot_dimension_numbers<[1], [0], [0], [1], [0, 0, 1, 1], [], []>} : vector<16x64xf32>, vector<64x64xf32>, vector<16x64xf32> -> vector<16x64xf32>
    %c0_126 = arith.constant 0 : index
    %c0_127 = arith.constant 0 : index
    %c0_128 = arith.constant 0 : index
    %127 = vector.load %arg7[%c0_126, %c0_127, %c0_128] : memref<16x64x128xf32, #tpu.memory_space<vmem>>, vector<1x64x128xf32>
    %128 = vector.shape_cast %127 : vector<1x64x128xf32> to vector<64x128xf32>
    %cst_129 = arith.constant dense<0.000000e+00> : vector<16x128xf32>
    %129 = tpu.matmul %126, %128, %cst_129 {dimension_numbers = #tpu.dot_dimension_numbers<[1], [0], [0], [1], [0, 0, 1, 1], [], []>} : vector<16x64xf32>, vector<64x128xf32>, vector<16x128xf32> -> vector<16x128xf32>
    %c1_130 = arith.constant 1 : index
    %c0_131 = arith.constant 0 : index
    %c0_132 = arith.constant 0 : index
    %130 = vector.load %arg6[%c1_130, %c0_131, %c0_132] : memref<16x16x64xf32, #tpu.memory_space<vmem>>, vector<1x16x64xf32>
    %131 = vector.shape_cast %130 : vector<1x16x64xf32> to vector<16x64xf32>
    %cst_133 = arith.constant dense<0.000000e+00> : vector<16x64xf32>
    %132 = tpu.matmul %131, %123, %cst_133 {dimension_numbers = #tpu.dot_dimension_numbers<[1], [0], [0], [1], [0, 0, 1, 1], [], []>} : vector<16x64xf32>, vector<64x64xf32>, vector<16x64xf32> -> vector<16x64xf32>
    %c1_134 = arith.constant 1 : index
    %c0_135 = arith.constant 0 : index
    %c0_136 = arith.constant 0 : index
    %133 = vector.load %arg7[%c1_134, %c0_135, %c0_136] : memref<16x64x128xf32, #tpu.memory_space<vmem>>, vector<1x64x128xf32>
    %134 = vector.shape_cast %133 : vector<1x64x128xf32> to vector<64x128xf32>
    %cst_137 = arith.constant dense<0.000000e+00> : vector<16x128xf32>
    %135 = tpu.matmul %132, %134, %cst_137 {dimension_numbers = #tpu.dot_dimension_numbers<[1], [0], [0], [1], [0, 0, 1, 1], [], []>} : vector<16x64xf32>, vector<64x128xf32>, vector<16x128xf32> -> vector<16x128xf32>
    %136 = arith.addf %129, %135 : vector<16x128xf32>
    %c2_138 = arith.constant 2 : index
    %c0_139 = arith.constant 0 : index
    %c0_140 = arith.constant 0 : index
    %137 = vector.load %arg6[%c2_138, %c0_139, %c0_140] : memref<16x16x64xf32, #tpu.memory_space<vmem>>, vector<1x16x64xf32>
    %138 = vector.shape_cast %137 : vector<1x16x64xf32> to vector<16x64xf32>
    %cst_141 = arith.constant dense<0.000000e+00> : vector<16x64xf32>
    %139 = tpu.matmul %138, %123, %cst_141 {dimension_numbers = #tpu.dot_dimension_numbers<[1], [0], [0], [1], [0, 0, 1, 1], [], []>} : vector<16x64xf32>, vector<64x64xf32>, vector<16x64xf32> -> vector<16x64xf32>
    %c2_142 = arith.constant 2 : index
    %c0_143 = arith.constant 0 : index
    %c0_144 = arith.constant 0 : index
    %140 = vector.load %arg7[%c2_142, %c0_143, %c0_144] : memref<16x64x128xf32, #tpu.memory_space<vmem>>, vector<1x64x128xf32>
    %141 = vector.shape_cast %140 : vector<1x64x128xf32> to vector<64x128xf32>
    %cst_145 = arith.constant dense<0.000000e+00> : vector<16x128xf32>
    %142 = tpu.matmul %139, %141, %cst_145 {dimension_numbers = #tpu.dot_dimension_numbers<[1], [0], [0], [1], [0, 0, 1, 1], [], []>} : vector<16x64xf32>, vector<64x128xf32>, vector<16x128xf32> -> vector<16x128xf32>
    %143 = arith.addf %136, %142 : vector<16x128xf32>
    %c3_146 = arith.constant 3 : index
    %c0_147 = arith.constant 0 : index
    %c0_148 = arith.constant 0 : index
    %144 = vector.load %arg6[%c3_146, %c0_147, %c0_148] : memref<16x16x64xf32, #tpu.memory_space<vmem>>, vector<1x16x64xf32>
    %145 = vector.shape_cast %144 : vector<1x16x64xf32> to vector<16x64xf32>
    %cst_149 = arith.constant dense<0.000000e+00> : vector<16x64xf32>
    %146 = tpu.matmul %145, %123, %cst_149 {dimension_numbers = #tpu.dot_dimension_numbers<[1], [0], [0], [1], [0, 0, 1, 1], [], []>} : vector<16x64xf32>, vector<64x64xf32>, vector<16x64xf32> -> vector<16x64xf32>
    %c3_150 = arith.constant 3 : index
    %c0_151 = arith.constant 0 : index
    %c0_152 = arith.constant 0 : index
    %147 = vector.load %arg7[%c3_150, %c0_151, %c0_152] : memref<16x64x128xf32, #tpu.memory_space<vmem>>, vector<1x64x128xf32>
    %148 = vector.shape_cast %147 : vector<1x64x128xf32> to vector<64x128xf32>
    %cst_153 = arith.constant dense<0.000000e+00> : vector<16x128xf32>
    %149 = tpu.matmul %146, %148, %cst_153 {dimension_numbers = #tpu.dot_dimension_numbers<[1], [0], [0], [1], [0, 0, 1, 1], [], []>} : vector<16x64xf32>, vector<64x128xf32>, vector<16x128xf32> -> vector<16x128xf32>
    %150 = arith.addf %143, %149 : vector<16x128xf32>
    %c4_154 = arith.constant 4 : index
    %c0_155 = arith.constant 0 : index
    %c0_156 = arith.constant 0 : index
    %151 = vector.load %arg6[%c4_154, %c0_155, %c0_156] : memref<16x16x64xf32, #tpu.memory_space<vmem>>, vector<1x16x64xf32>
    %152 = vector.shape_cast %151 : vector<1x16x64xf32> to vector<16x64xf32>
    %cst_157 = arith.constant dense<0.000000e+00> : vector<16x64xf32>
    %153 = tpu.matmul %152, %123, %cst_157 {dimension_numbers = #tpu.dot_dimension_numbers<[1], [0], [0], [1], [0, 0, 1, 1], [], []>} : vector<16x64xf32>, vector<64x64xf32>, vector<16x64xf32> -> vector<16x64xf32>
    %c4_158 = arith.constant 4 : index
    %c0_159 = arith.constant 0 : index
    %c0_160 = arith.constant 0 : index
    %154 = vector.load %arg7[%c4_158, %c0_159, %c0_160] : memref<16x64x128xf32, #tpu.memory_space<vmem>>, vector<1x64x128xf32>
    %155 = vector.shape_cast %154 : vector<1x64x128xf32> to vector<64x128xf32>
    %cst_161 = arith.constant dense<0.000000e+00> : vector<16x128xf32>
    %156 = tpu.matmul %153, %155, %cst_161 {dimension_numbers = #tpu.dot_dimension_numbers<[1], [0], [0], [1], [0, 0, 1, 1], [], []>} : vector<16x64xf32>, vector<64x128xf32>, vector<16x128xf32> -> vector<16x128xf32>
    %157 = arith.addf %150, %156 : vector<16x128xf32>
    %c5_162 = arith.constant 5 : index
    %c0_163 = arith.constant 0 : index
    %c0_164 = arith.constant 0 : index
    %158 = vector.load %arg6[%c5_162, %c0_163, %c0_164] : memref<16x16x64xf32, #tpu.memory_space<vmem>>, vector<1x16x64xf32>
    %159 = vector.shape_cast %158 : vector<1x16x64xf32> to vector<16x64xf32>
    %cst_165 = arith.constant dense<0.000000e+00> : vector<16x64xf32>
    %160 = tpu.matmul %159, %123, %cst_165 {dimension_numbers = #tpu.dot_dimension_numbers<[1], [0], [0], [1], [0, 0, 1, 1], [], []>} : vector<16x64xf32>, vector<64x64xf32>, vector<16x64xf32> -> vector<16x64xf32>
    %c5_166 = arith.constant 5 : index
    %c0_167 = arith.constant 0 : index
    %c0_168 = arith.constant 0 : index
    %161 = vector.load %arg7[%c5_166, %c0_167, %c0_168] : memref<16x64x128xf32, #tpu.memory_space<vmem>>, vector<1x64x128xf32>
    %162 = vector.shape_cast %161 : vector<1x64x128xf32> to vector<64x128xf32>
    %cst_169 = arith.constant dense<0.000000e+00> : vector<16x128xf32>
    %163 = tpu.matmul %160, %162, %cst_169 {dimension_numbers = #tpu.dot_dimension_numbers<[1], [0], [0], [1], [0, 0, 1, 1], [], []>} : vector<16x64xf32>, vector<64x128xf32>, vector<16x128xf32> -> vector<16x128xf32>
    %164 = arith.addf %157, %163 : vector<16x128xf32>
    %c6_170 = arith.constant 6 : index
    %c0_171 = arith.constant 0 : index
    %c0_172 = arith.constant 0 : index
    %165 = vector.load %arg6[%c6_170, %c0_171, %c0_172] : memref<16x16x64xf32, #tpu.memory_space<vmem>>, vector<1x16x64xf32>
    %166 = vector.shape_cast %165 : vector<1x16x64xf32> to vector<16x64xf32>
    %cst_173 = arith.constant dense<0.000000e+00> : vector<16x64xf32>
    %167 = tpu.matmul %166, %123, %cst_173 {dimension_numbers = #tpu.dot_dimension_numbers<[1], [0], [0], [1], [0, 0, 1, 1], [], []>} : vector<16x64xf32>, vector<64x64xf32>, vector<16x64xf32> -> vector<16x64xf32>
    %c6_174 = arith.constant 6 : index
    %c0_175 = arith.constant 0 : index
    %c0_176 = arith.constant 0 : index
    %168 = vector.load %arg7[%c6_174, %c0_175, %c0_176] : memref<16x64x128xf32, #tpu.memory_space<vmem>>, vector<1x64x128xf32>
    %169 = vector.shape_cast %168 : vector<1x64x128xf32> to vector<64x128xf32>
    %cst_177 = arith.constant dense<0.000000e+00> : vector<16x128xf32>
    %170 = tpu.matmul %167, %169, %cst_177 {dimension_numbers = #tpu.dot_dimension_numbers<[1], [0], [0], [1], [0, 0, 1, 1], [], []>} : vector<16x64xf32>, vector<64x128xf32>, vector<16x128xf32> -> vector<16x128xf32>
    %171 = arith.addf %164, %170 : vector<16x128xf32>
    %c7_178 = arith.constant 7 : index
    %c0_179 = arith.constant 0 : index
    %c0_180 = arith.constant 0 : index
    %172 = vector.load %arg6[%c7_178, %c0_179, %c0_180] : memref<16x16x64xf32, #tpu.memory_space<vmem>>, vector<1x16x64xf32>
    %173 = vector.shape_cast %172 : vector<1x16x64xf32> to vector<16x64xf32>
    %cst_181 = arith.constant dense<0.000000e+00> : vector<16x64xf32>
    %174 = tpu.matmul %173, %123, %cst_181 {dimension_numbers = #tpu.dot_dimension_numbers<[1], [0], [0], [1], [0, 0, 1, 1], [], []>} : vector<16x64xf32>, vector<64x64xf32>, vector<16x64xf32> -> vector<16x64xf32>
    %c7_182 = arith.constant 7 : index
    %c0_183 = arith.constant 0 : index
    %c0_184 = arith.constant 0 : index
    %175 = vector.load %arg7[%c7_182, %c0_183, %c0_184] : memref<16x64x128xf32, #tpu.memory_space<vmem>>, vector<1x64x128xf32>
    %176 = vector.shape_cast %175 : vector<1x64x128xf32> to vector<64x128xf32>
    %cst_185 = arith.constant dense<0.000000e+00> : vector<16x128xf32>
    %177 = tpu.matmul %174, %176, %cst_185 {dimension_numbers = #tpu.dot_dimension_numbers<[1], [0], [0], [1], [0, 0, 1, 1], [], []>} : vector<16x64xf32>, vector<64x128xf32>, vector<16x128xf32> -> vector<16x128xf32>
    %178 = arith.addf %171, %177 : vector<16x128xf32>
    %c8_186 = arith.constant 8 : index
    %c0_187 = arith.constant 0 : index
    %c0_188 = arith.constant 0 : index
    %179 = vector.load %arg6[%c8_186, %c0_187, %c0_188] : memref<16x16x64xf32, #tpu.memory_space<vmem>>, vector<1x16x64xf32>
    %180 = vector.shape_cast %179 : vector<1x16x64xf32> to vector<16x64xf32>
    %cst_189 = arith.constant dense<0.000000e+00> : vector<16x64xf32>
    %181 = tpu.matmul %180, %123, %cst_189 {dimension_numbers = #tpu.dot_dimension_numbers<[1], [0], [0], [1], [0, 0, 1, 1], [], []>} : vector<16x64xf32>, vector<64x64xf32>, vector<16x64xf32> -> vector<16x64xf32>
    %c8_190 = arith.constant 8 : index
    %c0_191 = arith.constant 0 : index
    %c0_192 = arith.constant 0 : index
    %182 = vector.load %arg7[%c8_190, %c0_191, %c0_192] : memref<16x64x128xf32, #tpu.memory_space<vmem>>, vector<1x64x128xf32>
    %183 = vector.shape_cast %182 : vector<1x64x128xf32> to vector<64x128xf32>
    %cst_193 = arith.constant dense<0.000000e+00> : vector<16x128xf32>
    %184 = tpu.matmul %181, %183, %cst_193 {dimension_numbers = #tpu.dot_dimension_numbers<[1], [0], [0], [1], [0, 0, 1, 1], [], []>} : vector<16x64xf32>, vector<64x128xf32>, vector<16x128xf32> -> vector<16x128xf32>
    %185 = arith.addf %178, %184 : vector<16x128xf32>
    %c9_194 = arith.constant 9 : index
    %c0_195 = arith.constant 0 : index
    %c0_196 = arith.constant 0 : index
    %186 = vector.load %arg6[%c9_194, %c0_195, %c0_196] : memref<16x16x64xf32, #tpu.memory_space<vmem>>, vector<1x16x64xf32>
    %187 = vector.shape_cast %186 : vector<1x16x64xf32> to vector<16x64xf32>
    %cst_197 = arith.constant dense<0.000000e+00> : vector<16x64xf32>
    %188 = tpu.matmul %187, %123, %cst_197 {dimension_numbers = #tpu.dot_dimension_numbers<[1], [0], [0], [1], [0, 0, 1, 1], [], []>} : vector<16x64xf32>, vector<64x64xf32>, vector<16x64xf32> -> vector<16x64xf32>
    %c9_198 = arith.constant 9 : index
    %c0_199 = arith.constant 0 : index
    %c0_200 = arith.constant 0 : index
    %189 = vector.load %arg7[%c9_198, %c0_199, %c0_200] : memref<16x64x128xf32, #tpu.memory_space<vmem>>, vector<1x64x128xf32>
    %190 = vector.shape_cast %189 : vector<1x64x128xf32> to vector<64x128xf32>
    %cst_201 = arith.constant dense<0.000000e+00> : vector<16x128xf32>
    %191 = tpu.matmul %188, %190, %cst_201 {dimension_numbers = #tpu.dot_dimension_numbers<[1], [0], [0], [1], [0, 0, 1, 1], [], []>} : vector<16x64xf32>, vector<64x128xf32>, vector<16x128xf32> -> vector<16x128xf32>
    %192 = arith.addf %185, %191 : vector<16x128xf32>
    %c10_202 = arith.constant 10 : index
    %c0_203 = arith.constant 0 : index
    %c0_204 = arith.constant 0 : index
    %193 = vector.load %arg6[%c10_202, %c0_203, %c0_204] : memref<16x16x64xf32, #tpu.memory_space<vmem>>, vector<1x16x64xf32>
    %194 = vector.shape_cast %193 : vector<1x16x64xf32> to vector<16x64xf32>
    %cst_205 = arith.constant dense<0.000000e+00> : vector<16x64xf32>
    %195 = tpu.matmul %194, %123, %cst_205 {dimension_numbers = #tpu.dot_dimension_numbers<[1], [0], [0], [1], [0, 0, 1, 1], [], []>} : vector<16x64xf32>, vector<64x64xf32>, vector<16x64xf32> -> vector<16x64xf32>
    %c10_206 = arith.constant 10 : index
    %c0_207 = arith.constant 0 : index
    %c0_208 = arith.constant 0 : index
    %196 = vector.load %arg7[%c10_206, %c0_207, %c0_208] : memref<16x64x128xf32, #tpu.memory_space<vmem>>, vector<1x64x128xf32>
    %197 = vector.shape_cast %196 : vector<1x64x128xf32> to vector<64x128xf32>
    %cst_209 = arith.constant dense<0.000000e+00> : vector<16x128xf32>
    %198 = tpu.matmul %195, %197, %cst_209 {dimension_numbers = #tpu.dot_dimension_numbers<[1], [0], [0], [1], [0, 0, 1, 1], [], []>} : vector<16x64xf32>, vector<64x128xf32>, vector<16x128xf32> -> vector<16x128xf32>
    %199 = arith.addf %192, %198 : vector<16x128xf32>
    %c11_210 = arith.constant 11 : index
    %c0_211 = arith.constant 0 : index
    %c0_212 = arith.constant 0 : index
    %200 = vector.load %arg6[%c11_210, %c0_211, %c0_212] : memref<16x16x64xf32, #tpu.memory_space<vmem>>, vector<1x16x64xf32>
    %201 = vector.shape_cast %200 : vector<1x16x64xf32> to vector<16x64xf32>
    %cst_213 = arith.constant dense<0.000000e+00> : vector<16x64xf32>
    %202 = tpu.matmul %201, %123, %cst_213 {dimension_numbers = #tpu.dot_dimension_numbers<[1], [0], [0], [1], [0, 0, 1, 1], [], []>} : vector<16x64xf32>, vector<64x64xf32>, vector<16x64xf32> -> vector<16x64xf32>
    %c11_214 = arith.constant 11 : index
    %c0_215 = arith.constant 0 : index
    %c0_216 = arith.constant 0 : index
    %203 = vector.load %arg7[%c11_214, %c0_215, %c0_216] : memref<16x64x128xf32, #tpu.memory_space<vmem>>, vector<1x64x128xf32>
    %204 = vector.shape_cast %203 : vector<1x64x128xf32> to vector<64x128xf32>
    %cst_217 = arith.constant dense<0.000000e+00> : vector<16x128xf32>
    %205 = tpu.matmul %202, %204, %cst_217 {dimension_numbers = #tpu.dot_dimension_numbers<[1], [0], [0], [1], [0, 0, 1, 1], [], []>} : vector<16x64xf32>, vector<64x128xf32>, vector<16x128xf32> -> vector<16x128xf32>
    %206 = arith.addf %199, %205 : vector<16x128xf32>
    %c12_218 = arith.constant 12 : index
    %c0_219 = arith.constant 0 : index
    %c0_220 = arith.constant 0 : index
    %207 = vector.load %arg6[%c12_218, %c0_219, %c0_220] : memref<16x16x64xf32, #tpu.memory_space<vmem>>, vector<1x16x64xf32>
    %208 = vector.shape_cast %207 : vector<1x16x64xf32> to vector<16x64xf32>
    %cst_221 = arith.constant dense<0.000000e+00> : vector<16x64xf32>
    %209 = tpu.matmul %208, %123, %cst_221 {dimension_numbers = #tpu.dot_dimension_numbers<[1], [0], [0], [1], [0, 0, 1, 1], [], []>} : vector<16x64xf32>, vector<64x64xf32>, vector<16x64xf32> -> vector<16x64xf32>
    %c12_222 = arith.constant 12 : index
    %c0_223 = arith.constant 0 : index
    %c0_224 = arith.constant 0 : index
    %210 = vector.load %arg7[%c12_222, %c0_223, %c0_224] : memref<16x64x128xf32, #tpu.memory_space<vmem>>, vector<1x64x128xf32>
    %211 = vector.shape_cast %210 : vector<1x64x128xf32> to vector<64x128xf32>
    %cst_225 = arith.constant dense<0.000000e+00> : vector<16x128xf32>
    %212 = tpu.matmul %209, %211, %cst_225 {dimension_numbers = #tpu.dot_dimension_numbers<[1], [0], [0], [1], [0, 0, 1, 1], [], []>} : vector<16x64xf32>, vector<64x128xf32>, vector<16x128xf32> -> vector<16x128xf32>
    %213 = arith.addf %206, %212 : vector<16x128xf32>
    %c13_226 = arith.constant 13 : index
    %c0_227 = arith.constant 0 : index
    %c0_228 = arith.constant 0 : index
    %214 = vector.load %arg6[%c13_226, %c0_227, %c0_228] : memref<16x16x64xf32, #tpu.memory_space<vmem>>, vector<1x16x64xf32>
    %215 = vector.shape_cast %214 : vector<1x16x64xf32> to vector<16x64xf32>
    %cst_229 = arith.constant dense<0.000000e+00> : vector<16x64xf32>
    %216 = tpu.matmul %215, %123, %cst_229 {dimension_numbers = #tpu.dot_dimension_numbers<[1], [0], [0], [1], [0, 0, 1, 1], [], []>} : vector<16x64xf32>, vector<64x64xf32>, vector<16x64xf32> -> vector<16x64xf32>
    %c13_230 = arith.constant 13 : index
    %c0_231 = arith.constant 0 : index
    %c0_232 = arith.constant 0 : index
    %217 = vector.load %arg7[%c13_230, %c0_231, %c0_232] : memref<16x64x128xf32, #tpu.memory_space<vmem>>, vector<1x64x128xf32>
    %218 = vector.shape_cast %217 : vector<1x64x128xf32> to vector<64x128xf32>
    %cst_233 = arith.constant dense<0.000000e+00> : vector<16x128xf32>
    %219 = tpu.matmul %216, %218, %cst_233 {dimension_numbers = #tpu.dot_dimension_numbers<[1], [0], [0], [1], [0, 0, 1, 1], [], []>} : vector<16x64xf32>, vector<64x128xf32>, vector<16x128xf32> -> vector<16x128xf32>
    %220 = arith.addf %213, %219 : vector<16x128xf32>
    %c14_234 = arith.constant 14 : index
    %c0_235 = arith.constant 0 : index
    %c0_236 = arith.constant 0 : index
    %221 = vector.load %arg6[%c14_234, %c0_235, %c0_236] : memref<16x16x64xf32, #tpu.memory_space<vmem>>, vector<1x16x64xf32>
    %222 = vector.shape_cast %221 : vector<1x16x64xf32> to vector<16x64xf32>
    %cst_237 = arith.constant dense<0.000000e+00> : vector<16x64xf32>
    %223 = tpu.matmul %222, %123, %cst_237 {dimension_numbers = #tpu.dot_dimension_numbers<[1], [0], [0], [1], [0, 0, 1, 1], [], []>} : vector<16x64xf32>, vector<64x64xf32>, vector<16x64xf32> -> vector<16x64xf32>
    %c14_238 = arith.constant 14 : index
    %c0_239 = arith.constant 0 : index
    %c0_240 = arith.constant 0 : index
    %224 = vector.load %arg7[%c14_238, %c0_239, %c0_240] : memref<16x64x128xf32, #tpu.memory_space<vmem>>, vector<1x64x128xf32>
    %225 = vector.shape_cast %224 : vector<1x64x128xf32> to vector<64x128xf32>
    %cst_241 = arith.constant dense<0.000000e+00> : vector<16x128xf32>
    %226 = tpu.matmul %223, %225, %cst_241 {dimension_numbers = #tpu.dot_dimension_numbers<[1], [0], [0], [1], [0, 0, 1, 1], [], []>} : vector<16x64xf32>, vector<64x128xf32>, vector<16x128xf32> -> vector<16x128xf32>
    %227 = arith.addf %220, %226 : vector<16x128xf32>
    %c15_242 = arith.constant 15 : index
    %c0_243 = arith.constant 0 : index
    %c0_244 = arith.constant 0 : index
    %228 = vector.load %arg6[%c15_242, %c0_243, %c0_244] : memref<16x16x64xf32, #tpu.memory_space<vmem>>, vector<1x16x64xf32>
    %229 = vector.shape_cast %228 : vector<1x16x64xf32> to vector<16x64xf32>
    %cst_245 = arith.constant dense<0.000000e+00> : vector<16x64xf32>
    %230 = tpu.matmul %229, %123, %cst_245 {dimension_numbers = #tpu.dot_dimension_numbers<[1], [0], [0], [1], [0, 0, 1, 1], [], []>} : vector<16x64xf32>, vector<64x64xf32>, vector<16x64xf32> -> vector<16x64xf32>
    %c15_246 = arith.constant 15 : index
    %c0_247 = arith.constant 0 : index
    %c0_248 = arith.constant 0 : index
    %231 = vector.load %arg7[%c15_246, %c0_247, %c0_248] : memref<16x64x128xf32, #tpu.memory_space<vmem>>, vector<1x64x128xf32>
    %232 = vector.shape_cast %231 : vector<1x64x128xf32> to vector<64x128xf32>
    %cst_249 = arith.constant dense<0.000000e+00> : vector<16x128xf32>
    %233 = tpu.matmul %230, %232, %cst_249 {dimension_numbers = #tpu.dot_dimension_numbers<[1], [0], [0], [1], [0, 0, 1, 1], [], []>} : vector<16x64xf32>, vector<64x128xf32>, vector<16x128xf32> -> vector<16x128xf32>
    %234 = arith.addf %227, %233 : vector<16x128xf32>
    %c0_250 = arith.constant 0 : index
    %c0_251 = arith.constant 0 : index
    %235 = vector.load %arg8[%c0_250, %c0_251] : memref<1x128xf32, #tpu.memory_space<vmem>>, vector<1x128xf32>
    %236 = vector.broadcast %235 : vector<1x128xf32> to vector<16x128xf32>
    %237 = arith.addf %234, %236 : vector<16x128xf32>
    %cst_252 = arith.constant 0.000000e+00 : f32
    %238 = vector.broadcast %cst_252 : f32 to vector<16x128xf32>
    %239 = arith.maximumf %237, %238 : vector<16x128xf32>
    %c0_253 = arith.constant 0 : index
    %c0_254 = arith.constant 0 : index
    %c0_255 = arith.constant 0 : index
    %240 = vector.load %arg9[%c0_253, %c0_254, %c0_255] : memref<16x4x16xf32, #tpu.memory_space<vmem>>, vector<1x4x16xf32>
    %241 = vector.shape_cast %240 : vector<1x4x16xf32> to vector<4x16xf32>
    %cst_256 = arith.constant dense<0.000000e+00> : vector<4x128xf32>
    %242 = tpu.matmul %241, %239, %cst_256 {dimension_numbers = #tpu.dot_dimension_numbers<[1], [0], [0], [1], [0, 0, 1, 1], [], []>} : vector<4x16xf32>, vector<16x128xf32>, vector<4x128xf32> -> vector<4x128xf32>
    %c0_257 = arith.constant 0 : index
    %c0_258 = arith.constant 0 : index
    %c0_259 = arith.constant 0 : index
    %243 = vector.load %arg10[%c0_257, %c0_258, %c0_259] : memref<16x128x256xf32, #tpu.memory_space<vmem>>, vector<1x128x256xf32>
    %244 = vector.shape_cast %243 : vector<1x128x256xf32> to vector<128x256xf32>
    %cst_260 = arith.constant dense<0.000000e+00> : vector<4x256xf32>
    %245 = tpu.matmul %242, %244, %cst_260 {dimension_numbers = #tpu.dot_dimension_numbers<[1], [0], [0], [1], [0, 0, 1, 1], [], []>} : vector<4x128xf32>, vector<128x256xf32>, vector<4x256xf32> -> vector<4x256xf32>
    %c1_261 = arith.constant 1 : index
    %c0_262 = arith.constant 0 : index
    %c0_263 = arith.constant 0 : index
    %246 = vector.load %arg9[%c1_261, %c0_262, %c0_263] : memref<16x4x16xf32, #tpu.memory_space<vmem>>, vector<1x4x16xf32>
    %247 = vector.shape_cast %246 : vector<1x4x16xf32> to vector<4x16xf32>
    %cst_264 = arith.constant dense<0.000000e+00> : vector<4x128xf32>
    %248 = tpu.matmul %247, %239, %cst_264 {dimension_numbers = #tpu.dot_dimension_numbers<[1], [0], [0], [1], [0, 0, 1, 1], [], []>} : vector<4x16xf32>, vector<16x128xf32>, vector<4x128xf32> -> vector<4x128xf32>
    %c1_265 = arith.constant 1 : index
    %c0_266 = arith.constant 0 : index
    %c0_267 = arith.constant 0 : index
    %249 = vector.load %arg10[%c1_265, %c0_266, %c0_267] : memref<16x128x256xf32, #tpu.memory_space<vmem>>, vector<1x128x256xf32>
    %250 = vector.shape_cast %249 : vector<1x128x256xf32> to vector<128x256xf32>
    %cst_268 = arith.constant dense<0.000000e+00> : vector<4x256xf32>
    %251 = tpu.matmul %248, %250, %cst_268 {dimension_numbers = #tpu.dot_dimension_numbers<[1], [0], [0], [1], [0, 0, 1, 1], [], []>} : vector<4x128xf32>, vector<128x256xf32>, vector<4x256xf32> -> vector<4x256xf32>
    %252 = arith.addf %245, %251 : vector<4x256xf32>
    %c2_269 = arith.constant 2 : index
    %c0_270 = arith.constant 0 : index
    %c0_271 = arith.constant 0 : index
    %253 = vector.load %arg9[%c2_269, %c0_270, %c0_271] : memref<16x4x16xf32, #tpu.memory_space<vmem>>, vector<1x4x16xf32>
    %254 = vector.shape_cast %253 : vector<1x4x16xf32> to vector<4x16xf32>
    %cst_272 = arith.constant dense<0.000000e+00> : vector<4x128xf32>
    %255 = tpu.matmul %254, %239, %cst_272 {dimension_numbers = #tpu.dot_dimension_numbers<[1], [0], [0], [1], [0, 0, 1, 1], [], []>} : vector<4x16xf32>, vector<16x128xf32>, vector<4x128xf32> -> vector<4x128xf32>
    %c2_273 = arith.constant 2 : index
    %c0_274 = arith.constant 0 : index
    %c0_275 = arith.constant 0 : index
    %256 = vector.load %arg10[%c2_273, %c0_274, %c0_275] : memref<16x128x256xf32, #tpu.memory_space<vmem>>, vector<1x128x256xf32>
    %257 = vector.shape_cast %256 : vector<1x128x256xf32> to vector<128x256xf32>
    %cst_276 = arith.constant dense<0.000000e+00> : vector<4x256xf32>
    %258 = tpu.matmul %255, %257, %cst_276 {dimension_numbers = #tpu.dot_dimension_numbers<[1], [0], [0], [1], [0, 0, 1, 1], [], []>} : vector<4x128xf32>, vector<128x256xf32>, vector<4x256xf32> -> vector<4x256xf32>
    %259 = arith.addf %252, %258 : vector<4x256xf32>
    %c3_277 = arith.constant 3 : index
    %c0_278 = arith.constant 0 : index
    %c0_279 = arith.constant 0 : index
    %260 = vector.load %arg9[%c3_277, %c0_278, %c0_279] : memref<16x4x16xf32, #tpu.memory_space<vmem>>, vector<1x4x16xf32>
    %261 = vector.shape_cast %260 : vector<1x4x16xf32> to vector<4x16xf32>
    %cst_280 = arith.constant dense<0.000000e+00> : vector<4x128xf32>
    %262 = tpu.matmul %261, %239, %cst_280 {dimension_numbers = #tpu.dot_dimension_numbers<[1], [0], [0], [1], [0, 0, 1, 1], [], []>} : vector<4x16xf32>, vector<16x128xf32>, vector<4x128xf32> -> vector<4x128xf32>
    %c3_281 = arith.constant 3 : index
    %c0_282 = arith.constant 0 : index
    %c0_283 = arith.constant 0 : index
    %263 = vector.load %arg10[%c3_281, %c0_282, %c0_283] : memref<16x128x256xf32, #tpu.memory_space<vmem>>, vector<1x128x256xf32>
    %264 = vector.shape_cast %263 : vector<1x128x256xf32> to vector<128x256xf32>
    %cst_284 = arith.constant dense<0.000000e+00> : vector<4x256xf32>
    %265 = tpu.matmul %262, %264, %cst_284 {dimension_numbers = #tpu.dot_dimension_numbers<[1], [0], [0], [1], [0, 0, 1, 1], [], []>} : vector<4x128xf32>, vector<128x256xf32>, vector<4x256xf32> -> vector<4x256xf32>
    %266 = arith.addf %259, %265 : vector<4x256xf32>
    %c4_285 = arith.constant 4 : index
    %c0_286 = arith.constant 0 : index
    %c0_287 = arith.constant 0 : index
    %267 = vector.load %arg9[%c4_285, %c0_286, %c0_287] : memref<16x4x16xf32, #tpu.memory_space<vmem>>, vector<1x4x16xf32>
    %268 = vector.shape_cast %267 : vector<1x4x16xf32> to vector<4x16xf32>
    %cst_288 = arith.constant dense<0.000000e+00> : vector<4x128xf32>
    %269 = tpu.matmul %268, %239, %cst_288 {dimension_numbers = #tpu.dot_dimension_numbers<[1], [0], [0], [1], [0, 0, 1, 1], [], []>} : vector<4x16xf32>, vector<16x128xf32>, vector<4x128xf32> -> vector<4x128xf32>
    %c4_289 = arith.constant 4 : index
    %c0_290 = arith.constant 0 : index
    %c0_291 = arith.constant 0 : index
    %270 = vector.load %arg10[%c4_289, %c0_290, %c0_291] : memref<16x128x256xf32, #tpu.memory_space<vmem>>, vector<1x128x256xf32>
    %271 = vector.shape_cast %270 : vector<1x128x256xf32> to vector<128x256xf32>
    %cst_292 = arith.constant dense<0.000000e+00> : vector<4x256xf32>
    %272 = tpu.matmul %269, %271, %cst_292 {dimension_numbers = #tpu.dot_dimension_numbers<[1], [0], [0], [1], [0, 0, 1, 1], [], []>} : vector<4x128xf32>, vector<128x256xf32>, vector<4x256xf32> -> vector<4x256xf32>
    %273 = arith.addf %266, %272 : vector<4x256xf32>
    %c5_293 = arith.constant 5 : index
    %c0_294 = arith.constant 0 : index
    %c0_295 = arith.constant 0 : index
    %274 = vector.load %arg9[%c5_293, %c0_294, %c0_295] : memref<16x4x16xf32, #tpu.memory_space<vmem>>, vector<1x4x16xf32>
    %275 = vector.shape_cast %274 : vector<1x4x16xf32> to vector<4x16xf32>
    %cst_296 = arith.constant dense<0.000000e+00> : vector<4x128xf32>
    %276 = tpu.matmul %275, %239, %cst_296 {dimension_numbers = #tpu.dot_dimension_numbers<[1], [0], [0], [1], [0, 0, 1, 1], [], []>} : vector<4x16xf32>, vector<16x128xf32>, vector<4x128xf32> -> vector<4x128xf32>
    %c5_297 = arith.constant 5 : index
    %c0_298 = arith.constant 0 : index
    %c0_299 = arith.constant 0 : index
    %277 = vector.load %arg10[%c5_297, %c0_298, %c0_299] : memref<16x128x256xf32, #tpu.memory_space<vmem>>, vector<1x128x256xf32>
    %278 = vector.shape_cast %277 : vector<1x128x256xf32> to vector<128x256xf32>
    %cst_300 = arith.constant dense<0.000000e+00> : vector<4x256xf32>
    %279 = tpu.matmul %276, %278, %cst_300 {dimension_numbers = #tpu.dot_dimension_numbers<[1], [0], [0], [1], [0, 0, 1, 1], [], []>} : vector<4x128xf32>, vector<128x256xf32>, vector<4x256xf32> -> vector<4x256xf32>
    %280 = arith.addf %273, %279 : vector<4x256xf32>
    %c6_301 = arith.constant 6 : index
    %c0_302 = arith.constant 0 : index
    %c0_303 = arith.constant 0 : index
    %281 = vector.load %arg9[%c6_301, %c0_302, %c0_303] : memref<16x4x16xf32, #tpu.memory_space<vmem>>, vector<1x4x16xf32>
    %282 = vector.shape_cast %281 : vector<1x4x16xf32> to vector<4x16xf32>
    %cst_304 = arith.constant dense<0.000000e+00> : vector<4x128xf32>
    %283 = tpu.matmul %282, %239, %cst_304 {dimension_numbers = #tpu.dot_dimension_numbers<[1], [0], [0], [1], [0, 0, 1, 1], [], []>} : vector<4x16xf32>, vector<16x128xf32>, vector<4x128xf32> -> vector<4x128xf32>
    %c6_305 = arith.constant 6 : index
    %c0_306 = arith.constant 0 : index
    %c0_307 = arith.constant 0 : index
    %284 = vector.load %arg10[%c6_305, %c0_306, %c0_307] : memref<16x128x256xf32, #tpu.memory_space<vmem>>, vector<1x128x256xf32>
    %285 = vector.shape_cast %284 : vector<1x128x256xf32> to vector<128x256xf32>
    %cst_308 = arith.constant dense<0.000000e+00> : vector<4x256xf32>
    %286 = tpu.matmul %283, %285, %cst_308 {dimension_numbers = #tpu.dot_dimension_numbers<[1], [0], [0], [1], [0, 0, 1, 1], [], []>} : vector<4x128xf32>, vector<128x256xf32>, vector<4x256xf32> -> vector<4x256xf32>
    %287 = arith.addf %280, %286 : vector<4x256xf32>
    %c7_309 = arith.constant 7 : index
    %c0_310 = arith.constant 0 : index
    %c0_311 = arith.constant 0 : index
    %288 = vector.load %arg9[%c7_309, %c0_310, %c0_311] : memref<16x4x16xf32, #tpu.memory_space<vmem>>, vector<1x4x16xf32>
    %289 = vector.shape_cast %288 : vector<1x4x16xf32> to vector<4x16xf32>
    %cst_312 = arith.constant dense<0.000000e+00> : vector<4x128xf32>
    %290 = tpu.matmul %289, %239, %cst_312 {dimension_numbers = #tpu.dot_dimension_numbers<[1], [0], [0], [1], [0, 0, 1, 1], [], []>} : vector<4x16xf32>, vector<16x128xf32>, vector<4x128xf32> -> vector<4x128xf32>
    %c7_313 = arith.constant 7 : index
    %c0_314 = arith.constant 0 : index
    %c0_315 = arith.constant 0 : index
    %291 = vector.load %arg10[%c7_313, %c0_314, %c0_315] : memref<16x128x256xf32, #tpu.memory_space<vmem>>, vector<1x128x256xf32>
    %292 = vector.shape_cast %291 : vector<1x128x256xf32> to vector<128x256xf32>
    %cst_316 = arith.constant dense<0.000000e+00> : vector<4x256xf32>
    %293 = tpu.matmul %290, %292, %cst_316 {dimension_numbers = #tpu.dot_dimension_numbers<[1], [0], [0], [1], [0, 0, 1, 1], [], []>} : vector<4x128xf32>, vector<128x256xf32>, vector<4x256xf32> -> vector<4x256xf32>
    %294 = arith.addf %287, %293 : vector<4x256xf32>
    %c8_317 = arith.constant 8 : index
    %c0_318 = arith.constant 0 : index
    %c0_319 = arith.constant 0 : index
    %295 = vector.load %arg9[%c8_317, %c0_318, %c0_319] : memref<16x4x16xf32, #tpu.memory_space<vmem>>, vector<1x4x16xf32>
    %296 = vector.shape_cast %295 : vector<1x4x16xf32> to vector<4x16xf32>
    %cst_320 = arith.constant dense<0.000000e+00> : vector<4x128xf32>
    %297 = tpu.matmul %296, %239, %cst_320 {dimension_numbers = #tpu.dot_dimension_numbers<[1], [0], [0], [1], [0, 0, 1, 1], [], []>} : vector<4x16xf32>, vector<16x128xf32>, vector<4x128xf32> -> vector<4x128xf32>
    %c8_321 = arith.constant 8 : index
    %c0_322 = arith.constant 0 : index
    %c0_323 = arith.constant 0 : index
    %298 = vector.load %arg10[%c8_321, %c0_322, %c0_323] : memref<16x128x256xf32, #tpu.memory_space<vmem>>, vector<1x128x256xf32>
    %299 = vector.shape_cast %298 : vector<1x128x256xf32> to vector<128x256xf32>
    %cst_324 = arith.constant dense<0.000000e+00> : vector<4x256xf32>
    %300 = tpu.matmul %297, %299, %cst_324 {dimension_numbers = #tpu.dot_dimension_numbers<[1], [0], [0], [1], [0, 0, 1, 1], [], []>} : vector<4x128xf32>, vector<128x256xf32>, vector<4x256xf32> -> vector<4x256xf32>
    %301 = arith.addf %294, %300 : vector<4x256xf32>
    %c9_325 = arith.constant 9 : index
    %c0_326 = arith.constant 0 : index
    %c0_327 = arith.constant 0 : index
    %302 = vector.load %arg9[%c9_325, %c0_326, %c0_327] : memref<16x4x16xf32, #tpu.memory_space<vmem>>, vector<1x4x16xf32>
    %303 = vector.shape_cast %302 : vector<1x4x16xf32> to vector<4x16xf32>
    %cst_328 = arith.constant dense<0.000000e+00> : vector<4x128xf32>
    %304 = tpu.matmul %303, %239, %cst_328 {dimension_numbers = #tpu.dot_dimension_numbers<[1], [0], [0], [1], [0, 0, 1, 1], [], []>} : vector<4x16xf32>, vector<16x128xf32>, vector<4x128xf32> -> vector<4x128xf32>
    %c9_329 = arith.constant 9 : index
    %c0_330 = arith.constant 0 : index
    %c0_331 = arith.constant 0 : index
    %305 = vector.load %arg10[%c9_329, %c0_330, %c0_331] : memref<16x128x256xf32, #tpu.memory_space<vmem>>, vector<1x128x256xf32>
    %306 = vector.shape_cast %305 : vector<1x128x256xf32> to vector<128x256xf32>
    %cst_332 = arith.constant dense<0.000000e+00> : vector<4x256xf32>
    %307 = tpu.matmul %304, %306, %cst_332 {dimension_numbers = #tpu.dot_dimension_numbers<[1], [0], [0], [1], [0, 0, 1, 1], [], []>} : vector<4x128xf32>, vector<128x256xf32>, vector<4x256xf32> -> vector<4x256xf32>
    %308 = arith.addf %301, %307 : vector<4x256xf32>
    %c10_333 = arith.constant 10 : index
    %c0_334 = arith.constant 0 : index
    %c0_335 = arith.constant 0 : index
    %309 = vector.load %arg9[%c10_333, %c0_334, %c0_335] : memref<16x4x16xf32, #tpu.memory_space<vmem>>, vector<1x4x16xf32>
    %310 = vector.shape_cast %309 : vector<1x4x16xf32> to vector<4x16xf32>
    %cst_336 = arith.constant dense<0.000000e+00> : vector<4x128xf32>
    %311 = tpu.matmul %310, %239, %cst_336 {dimension_numbers = #tpu.dot_dimension_numbers<[1], [0], [0], [1], [0, 0, 1, 1], [], []>} : vector<4x16xf32>, vector<16x128xf32>, vector<4x128xf32> -> vector<4x128xf32>
    %c10_337 = arith.constant 10 : index
    %c0_338 = arith.constant 0 : index
    %c0_339 = arith.constant 0 : index
    %312 = vector.load %arg10[%c10_337, %c0_338, %c0_339] : memref<16x128x256xf32, #tpu.memory_space<vmem>>, vector<1x128x256xf32>
    %313 = vector.shape_cast %312 : vector<1x128x256xf32> to vector<128x256xf32>
    %cst_340 = arith.constant dense<0.000000e+00> : vector<4x256xf32>
    %314 = tpu.matmul %311, %313, %cst_340 {dimension_numbers = #tpu.dot_dimension_numbers<[1], [0], [0], [1], [0, 0, 1, 1], [], []>} : vector<4x128xf32>, vector<128x256xf32>, vector<4x256xf32> -> vector<4x256xf32>
    %315 = arith.addf %308, %314 : vector<4x256xf32>
    %c11_341 = arith.constant 11 : index
    %c0_342 = arith.constant 0 : index
    %c0_343 = arith.constant 0 : index
    %316 = vector.load %arg9[%c11_341, %c0_342, %c0_343] : memref<16x4x16xf32, #tpu.memory_space<vmem>>, vector<1x4x16xf32>
    %317 = vector.shape_cast %316 : vector<1x4x16xf32> to vector<4x16xf32>
    %cst_344 = arith.constant dense<0.000000e+00> : vector<4x128xf32>
    %318 = tpu.matmul %317, %239, %cst_344 {dimension_numbers = #tpu.dot_dimension_numbers<[1], [0], [0], [1], [0, 0, 1, 1], [], []>} : vector<4x16xf32>, vector<16x128xf32>, vector<4x128xf32> -> vector<4x128xf32>
    %c11_345 = arith.constant 11 : index
    %c0_346 = arith.constant 0 : index
    %c0_347 = arith.constant 0 : index
    %319 = vector.load %arg10[%c11_345, %c0_346, %c0_347] : memref<16x128x256xf32, #tpu.memory_space<vmem>>, vector<1x128x256xf32>
    %320 = vector.shape_cast %319 : vector<1x128x256xf32> to vector<128x256xf32>
    %cst_348 = arith.constant dense<0.000000e+00> : vector<4x256xf32>
    %321 = tpu.matmul %318, %320, %cst_348 {dimension_numbers = #tpu.dot_dimension_numbers<[1], [0], [0], [1], [0, 0, 1, 1], [], []>} : vector<4x128xf32>, vector<128x256xf32>, vector<4x256xf32> -> vector<4x256xf32>
    %322 = arith.addf %315, %321 : vector<4x256xf32>
    %c12_349 = arith.constant 12 : index
    %c0_350 = arith.constant 0 : index
    %c0_351 = arith.constant 0 : index
    %323 = vector.load %arg9[%c12_349, %c0_350, %c0_351] : memref<16x4x16xf32, #tpu.memory_space<vmem>>, vector<1x4x16xf32>
    %324 = vector.shape_cast %323 : vector<1x4x16xf32> to vector<4x16xf32>
    %cst_352 = arith.constant dense<0.000000e+00> : vector<4x128xf32>
    %325 = tpu.matmul %324, %239, %cst_352 {dimension_numbers = #tpu.dot_dimension_numbers<[1], [0], [0], [1], [0, 0, 1, 1], [], []>} : vector<4x16xf32>, vector<16x128xf32>, vector<4x128xf32> -> vector<4x128xf32>
    %c12_353 = arith.constant 12 : index
    %c0_354 = arith.constant 0 : index
    %c0_355 = arith.constant 0 : index
    %326 = vector.load %arg10[%c12_353, %c0_354, %c0_355] : memref<16x128x256xf32, #tpu.memory_space<vmem>>, vector<1x128x256xf32>
    %327 = vector.shape_cast %326 : vector<1x128x256xf32> to vector<128x256xf32>
    %cst_356 = arith.constant dense<0.000000e+00> : vector<4x256xf32>
    %328 = tpu.matmul %325, %327, %cst_356 {dimension_numbers = #tpu.dot_dimension_numbers<[1], [0], [0], [1], [0, 0, 1, 1], [], []>} : vector<4x128xf32>, vector<128x256xf32>, vector<4x256xf32> -> vector<4x256xf32>
    %329 = arith.addf %322, %328 : vector<4x256xf32>
    %c13_357 = arith.constant 13 : index
    %c0_358 = arith.constant 0 : index
    %c0_359 = arith.constant 0 : index
    %330 = vector.load %arg9[%c13_357, %c0_358, %c0_359] : memref<16x4x16xf32, #tpu.memory_space<vmem>>, vector<1x4x16xf32>
    %331 = vector.shape_cast %330 : vector<1x4x16xf32> to vector<4x16xf32>
    %cst_360 = arith.constant dense<0.000000e+00> : vector<4x128xf32>
    %332 = tpu.matmul %331, %239, %cst_360 {dimension_numbers = #tpu.dot_dimension_numbers<[1], [0], [0], [1], [0, 0, 1, 1], [], []>} : vector<4x16xf32>, vector<16x128xf32>, vector<4x128xf32> -> vector<4x128xf32>
    %c13_361 = arith.constant 13 : index
    %c0_362 = arith.constant 0 : index
    %c0_363 = arith.constant 0 : index
    %333 = vector.load %arg10[%c13_361, %c0_362, %c0_363] : memref<16x128x256xf32, #tpu.memory_space<vmem>>, vector<1x128x256xf32>
    %334 = vector.shape_cast %333 : vector<1x128x256xf32> to vector<128x256xf32>
    %cst_364 = arith.constant dense<0.000000e+00> : vector<4x256xf32>
    %335 = tpu.matmul %332, %334, %cst_364 {dimension_numbers = #tpu.dot_dimension_numbers<[1], [0], [0], [1], [0, 0, 1, 1], [], []>} : vector<4x128xf32>, vector<128x256xf32>, vector<4x256xf32> -> vector<4x256xf32>
    %336 = arith.addf %329, %335 : vector<4x256xf32>
    %c14_365 = arith.constant 14 : index
    %c0_366 = arith.constant 0 : index
    %c0_367 = arith.constant 0 : index
    %337 = vector.load %arg9[%c14_365, %c0_366, %c0_367] : memref<16x4x16xf32, #tpu.memory_space<vmem>>, vector<1x4x16xf32>
    %338 = vector.shape_cast %337 : vector<1x4x16xf32> to vector<4x16xf32>
    %cst_368 = arith.constant dense<0.000000e+00> : vector<4x128xf32>
    %339 = tpu.matmul %338, %239, %cst_368 {dimension_numbers = #tpu.dot_dimension_numbers<[1], [0], [0], [1], [0, 0, 1, 1], [], []>} : vector<4x16xf32>, vector<16x128xf32>, vector<4x128xf32> -> vector<4x128xf32>
    %c14_369 = arith.constant 14 : index
    %c0_370 = arith.constant 0 : index
    %c0_371 = arith.constant 0 : index
    %340 = vector.load %arg10[%c14_369, %c0_370, %c0_371] : memref<16x128x256xf32, #tpu.memory_space<vmem>>, vector<1x128x256xf32>
    %341 = vector.shape_cast %340 : vector<1x128x256xf32> to vector<128x256xf32>
    %cst_372 = arith.constant dense<0.000000e+00> : vector<4x256xf32>
    %342 = tpu.matmul %339, %341, %cst_372 {dimension_numbers = #tpu.dot_dimension_numbers<[1], [0], [0], [1], [0, 0, 1, 1], [], []>} : vector<4x128xf32>, vector<128x256xf32>, vector<4x256xf32> -> vector<4x256xf32>
    %343 = arith.addf %336, %342 : vector<4x256xf32>
    %c15_373 = arith.constant 15 : index
    %c0_374 = arith.constant 0 : index
    %c0_375 = arith.constant 0 : index
    %344 = vector.load %arg9[%c15_373, %c0_374, %c0_375] : memref<16x4x16xf32, #tpu.memory_space<vmem>>, vector<1x4x16xf32>
    %345 = vector.shape_cast %344 : vector<1x4x16xf32> to vector<4x16xf32>
    %cst_376 = arith.constant dense<0.000000e+00> : vector<4x128xf32>
    %346 = tpu.matmul %345, %239, %cst_376 {dimension_numbers = #tpu.dot_dimension_numbers<[1], [0], [0], [1], [0, 0, 1, 1], [], []>} : vector<4x16xf32>, vector<16x128xf32>, vector<4x128xf32> -> vector<4x128xf32>
    %c15_377 = arith.constant 15 : index
    %c0_378 = arith.constant 0 : index
    %c0_379 = arith.constant 0 : index
    %347 = vector.load %arg10[%c15_377, %c0_378, %c0_379] : memref<16x128x256xf32, #tpu.memory_space<vmem>>, vector<1x128x256xf32>
    %348 = vector.shape_cast %347 : vector<1x128x256xf32> to vector<128x256xf32>
    %cst_380 = arith.constant dense<0.000000e+00> : vector<4x256xf32>
    %349 = tpu.matmul %346, %348, %cst_380 {dimension_numbers = #tpu.dot_dimension_numbers<[1], [0], [0], [1], [0, 0, 1, 1], [], []>} : vector<4x128xf32>, vector<128x256xf32>, vector<4x256xf32> -> vector<4x256xf32>
    %350 = arith.addf %343, %349 : vector<4x256xf32>
    %351 = vector.extract_strided_slice %350 {offsets = [0, 0], sizes = [1, 256], strides = [1, 1]} : vector<4x256xf32> to vector<1x256xf32>
    %c0_381 = arith.constant 0 : index
    %c0_382 = arith.constant 0 : index
    %c0_383 = arith.constant 0 : index
    %352 = vector.load %arg11[%c0_381, %c0_382, %c0_383] : memref<4x256x512xf32, #tpu.memory_space<vmem>>, vector<1x256x512xf32>
    %353 = vector.shape_cast %352 : vector<1x256x512xf32> to vector<256x512xf32>
    %cst_384 = arith.constant dense<0.000000e+00> : vector<1x512xf32>
    %354 = tpu.matmul %351, %353, %cst_384 {dimension_numbers = #tpu.dot_dimension_numbers<[1], [0], [0], [1], [0, 0, 1, 1], [], []>} : vector<1x256xf32>, vector<256x512xf32>, vector<1x512xf32> -> vector<1x512xf32>
    %355 = vector.extract_strided_slice %350 {offsets = [1, 0], sizes = [1, 256], strides = [1, 1]} : vector<4x256xf32> to vector<1x256xf32>
    %c1_385 = arith.constant 1 : index
    %c0_386 = arith.constant 0 : index
    %c0_387 = arith.constant 0 : index
    %356 = vector.load %arg11[%c1_385, %c0_386, %c0_387] : memref<4x256x512xf32, #tpu.memory_space<vmem>>, vector<1x256x512xf32>
    %357 = vector.shape_cast %356 : vector<1x256x512xf32> to vector<256x512xf32>
    %cst_388 = arith.constant dense<0.000000e+00> : vector<1x512xf32>
    %358 = tpu.matmul %355, %357, %cst_388 {dimension_numbers = #tpu.dot_dimension_numbers<[1], [0], [0], [1], [0, 0, 1, 1], [], []>} : vector<1x256xf32>, vector<256x512xf32>, vector<1x512xf32> -> vector<1x512xf32>
    %359 = arith.addf %354, %358 : vector<1x512xf32>
    %360 = vector.extract_strided_slice %350 {offsets = [2, 0], sizes = [1, 256], strides = [1, 1]} : vector<4x256xf32> to vector<1x256xf32>
    %c2_389 = arith.constant 2 : index
    %c0_390 = arith.constant 0 : index
    %c0_391 = arith.constant 0 : index
    %361 = vector.load %arg11[%c2_389, %c0_390, %c0_391] : memref<4x256x512xf32, #tpu.memory_space<vmem>>, vector<1x256x512xf32>
    %362 = vector.shape_cast %361 : vector<1x256x512xf32> to vector<256x512xf32>
    %cst_392 = arith.constant dense<0.000000e+00> : vector<1x512xf32>
    %363 = tpu.matmul %360, %362, %cst_392 {dimension_numbers = #tpu.dot_dimension_numbers<[1], [0], [0], [1], [0, 0, 1, 1], [], []>} : vector<1x256xf32>, vector<256x512xf32>, vector<1x512xf32> -> vector<1x512xf32>
    %364 = arith.addf %359, %363 : vector<1x512xf32>
    %365 = vector.extract_strided_slice %350 {offsets = [3, 0], sizes = [1, 256], strides = [1, 1]} : vector<4x256xf32> to vector<1x256xf32>
    %c3_393 = arith.constant 3 : index
    %c0_394 = arith.constant 0 : index
    %c0_395 = arith.constant 0 : index
    %366 = vector.load %arg11[%c3_393, %c0_394, %c0_395] : memref<4x256x512xf32, #tpu.memory_space<vmem>>, vector<1x256x512xf32>
    %367 = vector.shape_cast %366 : vector<1x256x512xf32> to vector<256x512xf32>
    %cst_396 = arith.constant dense<0.000000e+00> : vector<1x512xf32>
    %368 = tpu.matmul %365, %367, %cst_396 {dimension_numbers = #tpu.dot_dimension_numbers<[1], [0], [0], [1], [0, 0, 1, 1], [], []>} : vector<1x256xf32>, vector<256x512xf32>, vector<1x512xf32> -> vector<1x512xf32>
    %369 = arith.addf %364, %368 : vector<1x512xf32>
    %c0_397 = arith.constant 0 : index
    %c0_398 = arith.constant 0 : index
    %370 = vector.load %arg12[%c0_397, %c0_398] : memref<1x512xf32, #tpu.memory_space<vmem>>, vector<1x512xf32>
    %371 = arith.addf %369, %370 : vector<1x512xf32>
    %c0_399 = arith.constant 0 : index
    %c0_400 = arith.constant 0 : index
    %372 = vector.load %arg13[%c0_399, %c0_400] : memref<512x512xf32, #tpu.memory_space<vmem>>, vector<512x512xf32>
    %cst_401 = arith.constant dense<0.000000e+00> : vector<1x512xf32>
    %373 = tpu.matmul %371, %372, %cst_401 {dimension_numbers = #tpu.dot_dimension_numbers<[1], [0], [0], [1], [0, 0, 1, 1], [], []>} : vector<1x512xf32>, vector<512x512xf32>, vector<1x512xf32> -> vector<1x512xf32>
    %c0_402 = arith.constant 0 : index
    %c0_403 = arith.constant 0 : index
    %374 = vector.load %arg14[%c0_402, %c0_403] : memref<1x512xf32, #tpu.memory_space<vmem>>, vector<1x512xf32>
    %375 = arith.addf %373, %374 : vector<1x512xf32>
    %c0_404 = arith.constant 0 : index
    %c0_405 = arith.constant 0 : index
    %376 = vector.load %arg15[%c0_404, %c0_405] : memref<512x16xf32, #tpu.memory_space<vmem>>, vector<512x16xf32>
    %cst_406 = arith.constant dense<0.000000e+00> : vector<1x16xf32>
    %377 = tpu.matmul %375, %376, %cst_406 {dimension_numbers = #tpu.dot_dimension_numbers<[1], [0], [0], [1], [0, 0, 1, 1], [], []>} : vector<1x512xf32>, vector<512x16xf32>, vector<1x16xf32> -> vector<1x16xf32>
    %c0_407 = arith.constant 0 : index
    %c0_408 = arith.constant 0 : index
    %378 = vector.load %arg16[%c0_407, %c0_408] : memref<1x16xf32, #tpu.memory_space<vmem>>, vector<1x16xf32>
    %379 = arith.addf %377, %378 : vector<1x16xf32>
    %c0_409 = arith.constant 0 : index
    %c0_410 = arith.constant 0 : index
    %380 = vector.load %arg17[%c0_409, %c0_410] : memref<1x16xf32, #tpu.memory_space<vmem>>, vector<1x16xf32>
    tpu.vector_store %arg17[%c0_409, %c0_410], %379 {strides = array<i32>} : memref<1x16xf32, #tpu.memory_space<vmem>>, vector<1x16xf32>,
    return
  }
}

</mosaic_0001>

<bundles_post_ra>
// kernel: forward.1
= control target key start
LH: loop header
LB: loop body
LE: loop exit
PB: predicated region body
PF: predicated region fallthrough
CT: control target
= control target key end

     0   :  { %s24423_s0 = inlined_call_operand.vmem [shape: f32[256,392], index: 0, kind: input, shape index: {}]   ;;  %s24424_s1 = inlined_call_operand.vmem [shape: f32[392,32], index: 1, kind: input, shape index: {}]   ;;  %s24425_s2 = inlined_call_operand.vmem [shape: f32[1,32], index: 2, kind: input, shape index: {}]   ;;  %s24426_s3 = inlined_call_operand.vmem [shape: f32[16,64,256], index: 3, kind: input, shape index: {}]   ;;  %s24427_s4 = inlined_call_operand.vmem [shape: f32[16,32,64], index: 4, kind: input, shape index: {}]   ;;  %s24428_s5 = inlined_call_operand.vmem [shape: f32[1,64], index: 5, kind: input, shape index: {}]   ;;  %s24429_s6 = inlined_call_operand.hbm [shape: f32[16,16,64], index: 6, kind: input, shape index: {}]   ;;  %s24430_s7 = inlined_call_operand.vmem [shape: f32[16,64,128], index: 7, kind: input, shape index: {}]   ;;  %s24431_s8 = inlined_call_operand.vmem [shape: f32[1,128], index: 8, kind: input, shape index: {}]   ;;  %s24432_s9 = inlined_call_operand.vmem [shape: f32[16,4,16], index: 9, kind: input, shape index: {}]   ;;  %s24433_s10 = inlined_call_operand.vmem [shape: f32[16,128,256], index: 10, kind: input, shape index: {}]   ;;  %s24434_s11 = inlined_call_operand.hbm [shape: f32[4,256,512], index: 11, kind: input, shape index: {}]   ;;  %s24435_s12 = inlined_call_operand.vmem [shape: f32[1,512], index: 12, kind: input, shape index: {}]   ;;  %s24436_s13 = inlined_call_operand.hbm [shape: f32[512,512], index: 13, kind: input, shape index: {}]   ;;  %s24437_s14 = inlined_call_operand.vmem [shape: f32[1,512], index: 14, kind: input, shape index: {}]   ;;  %s24438_s15 = inlined_call_operand.vmem [shape: f32[512,16], index: 15, kind: input, shape index: {}]   ;;  %s24439_s16 = inlined_call_operand.vmem [shape: f32[1,16], index: 16, kind: input, shape index: {}]   ;;  %s24440_s17 = inlined_call_operand.vmem [shape: f32[1,16], index: 17, kind: output, shape index: {}]  }
   0x1   :  { %24446 = sst [smem:[#allocation9_spill]] %s24423_s0 }
   0x2   :  { %24447 = sst [smem:[#allocation10_spill]] %s24424_s1 }
   0x3   :  { %22 = vsyncpa [#allocation3], 0 }
   0x4   :  { %23 = vsyncpa [#allocation5], 0  ;;  %s19425_s24 = smov [#allocation4]   ;;  %s19355_s28 = scalar_lea.hbm %s24434_s11, 65536 }
   0x5   :  { %s61_s25 = sshll.u32 %s19425_s24, 4  ;;  %p19356_p0 = scmp.ne.s32.totalorder %s24434_s11, %s19355_s28  ;;  %s62_s25 = int_to_ptr.vmem [resolvable:$true] %s61_s25 }
   0x6   :  { %p19359_p1 = scmp.lt.u32.totalorder %s19355_s28, %s24434_s11 }
   0x8   :  { %p19361_p2 = pnand %p19359_p1, %p19356_p0 }
   0xa   :  { %19364 = shalt.err (!%p19361_p2)
}
   0xb   :  { %s19365_s19 = scalar_lea.vmem %s62_s25, 65536  ;;  %p19370_p4 = scmp.lt.s32.totalorder %s62_s25, %s62_s25 }
   0xc   :  { %p19366_p3 = scmp.ne.s32.totalorder %s62_s25, %s19365_s19  ;;  %p19371_p5 = scmp.lt.s32.totalorder %s19365_s19, %s19365_s19 }
   0xe   :  { %p19372_p6 = por %p19371_p5, %p19370_p4 }
  0x10   :  { %p19373_p7 = pnand %p19372_p6, %p19366_p3 }
  0x12   :  { %19376 = shalt.err (!%p19373_p7)
}
  0x13   :  { %s24443_s1 = smov 512   ;;  %s19427_s20 = smov 32  }
  0x14   :  { %67 = dma.hbm_to_vmem [thread:$0]  %s24434_s11, 65536, %s62_s25, [#allocation5], %s24443_s1, %s24443_s1, %s19427_s20  }
  0x15   :  { %s19428_s23 = smov [#allocation2]   ;;  %s19377_s28 = scalar_lea.hbm %s24429_s6, 4096 }
  0x16   :  { %s41_s24 = sshll.u32 %s19428_s23, 4  ;;  %p19378_p8 = scmp.ne.s32.totalorder %s24429_s6, %s19377_s28  ;;  %s42_s24 = int_to_ptr.vmem [resolvable:$true] %s41_s24 }
  0x17   :  { %p19381_p9 = scmp.lt.u32.totalorder %s19377_s28, %s24429_s6 }
  0x19   :  { %p19383_p10 = pnand %p19381_p9, %p19378_p8 }
  0x1b   :  { %19386 = shalt.err (!%p19383_p10)
}
  0x1c   :  { %s19387_s19 = scalar_lea.vmem %s42_s24, 4096  ;;  %p19392_p12 = scmp.lt.s32.totalorder %s42_s24, %s42_s24 }
  0x1d   :  { %p19388_p11 = scmp.ne.s32.totalorder %s42_s24, %s19387_s19  ;;  %p19393_p13 = scmp.lt.s32.totalorder %s19387_s19, %s19387_s19 }
  0x1f   :  { %p19394_p0 = por %p19393_p13, %p19392_p12 }
  0x21   :  { %p19395_p1 = pnand %p19394_p0, %p19388_p11 }
  0x23   :  { %19398 = shalt.err (!%p19395_p1)
}
  0x24   :  { %s19429_s11 = smov 128   ;;  %s19430_s25 = smov 8  }
  0x25   :  { %47 = dma.hbm_to_vmem [thread:$0]  %s24429_s6, 4096, %s42_s24, [#allocation3], %s19429_s11, %s19429_s11, %s19430_s25  }
  0x26   :  { %s19431_s23 = smov [#allocation6]   ;;  %s19399_s29 = scalar_lea.hbm %s24436_s13, 32768 }
  0x27   :  { %s75_s26 = sshll.u32 %s19431_s23, 4  ;;  %p19400_p2 = scmp.ne.s32.totalorder %s24436_s13, %s19399_s29  ;;  %s76_s26 = int_to_ptr.vmem [resolvable:$true] %s75_s26 }
  0x28   :  { %p19403_p3 = scmp.lt.u32.totalorder %s19399_s29, %s24436_s13 }
  0x2a   :  { %p19405_p4 = pnand %p19403_p3, %p19400_p2 }
  0x2c   :  { %19408 = shalt.err (!%p19405_p4)
}
  0x2d   :  { %s19409_s1 = scalar_lea.vmem %s76_s26, 32768  ;;  %p19414_p6 = scmp.lt.s32.totalorder %s76_s26, %s76_s26 }
  0x2e   :  { %p19410_p5 = scmp.ne.s32.totalorder %s76_s26, %s19409_s1  ;;  %p19415_p7 = scmp.lt.s32.totalorder %s19409_s1, %s19409_s1 }
  0x30   :  { %p19416_p8 = por %p19415_p7, %p19414_p6 }
  0x32   :  { %p19417_p9 = pnand %p19416_p8, %p19410_p5 }
  0x34   :  { %19420 = shalt.err (!%p19417_p9)
}
  0x35   :  { %s24448_s6 = smov 512  }
  0x36   :  { %81 = dma.hbm_to_vmem [thread:$0]  %s24436_s13, 32768, %s76_s26, [#allocation5], %s24448_s6, %s24448_s6, %s19427_s20  }
  0x37   :  { %19421 = dma.done.wait [#allocation3], 4096  }
  0x38   :  { %19422 = vsyncadd [#allocation3], 4294963200 }
  0x39   :  { %19423 = dma.done.wait [#allocation5], 98304  }
  0x3a   :  { %19424 = vsyncadd [#allocation5], 4294868992  ;;  %v19432_v0 = vmov 0.0|0.0   ;;  %s24449_s1 = sld [smem:[#allocation10_spill]]  ;;  %s24450_s21 = sld [smem:[#allocation9_spill]]  ;;  %vm281_vm0 = vcmask 64512  }
  0x3b   :  { %16433 = vmatprep.subr.bf16.mxu0 %v19432_v0  ;;  %vm1112_vm1 = vcmask 261120   ;;  %vm5092_vm2 = vcmask 523264   ;;  %vm19434_vm3 = vmmov 0   ;;  %vm7913_vm4 = vcmask 130048  }
  0x3c   :  { %vm12701_vm5 = vcmask 122880  }
  0x40   :  { %v225_v1 = vld [vmem:[%s24449_s1] sm:$0xff]  ;;  %v226_v2 = vld [vmem:[%s24449_s1 + $0x8] sm:$0xff]  ;;  %v227_v3 = vld [vmem:[%s24449_s1 + $0x10] sm:$0xff] }
  0x41   :  { %v16434_v4 = vpack.c.bf16 %v226_v2, %v225_v1  ;;  %v228_v5 = vld [vmem:[%s24449_s1 + $0x18] sm:$0xff]  ;;  %v229_v7 = vld [vmem:[%s24449_s1 + $0x20] sm:$0xff]  ;;  %v230_v8 = vld [vmem:[%s24449_s1 + $0x28] sm:$0xff] }
  0x42   :  { %v16437_v6 = vpack.c.bf16 %v228_v5, %v227_v3  ;;  %v16440_v9 = vpack.c.bf16 %v230_v8, %v229_v7  ;;  %v231_v10 = vld [vmem:[%s24449_s1 + $0x30] sm:$0xff]  ;;  %v232_v11 = vld [vmem:[%s24449_s1 + $0x38] sm:$0xff]  ;;  %v98_v12 = vld [vmem:[%s24450_s21 + $0x8] sm:$0xff] }
  0x43   :  { %16435 = vmatpush1.bf16.msra.mxu0 %v16434_v4  ;;  %v16443_v13 = vpack.c.bf16 %v232_v11, %v231_v10  ;;  %442 = vmatprep.mubr.f32.mxu0 %v98_v12  ;;  %v233_v14 = vld [vmem:[%s24449_s1 + $0x40] sm:$0xff]  ;;  %v234_v15 = vld [vmem:[%s24449_s1 + $0x48] sm:$0xff]  ;;  %v235_v17 = vld [vmem:[%s24449_s1 + $0x50] sm:$0xff] }
  0x44   :  { %16436 = vmatprep.subr.bf16.mxu0 %v19432_v0  ;;  %v16446_v16 = vpack.c.bf16 %v234_v15, %v233_v14  ;;  %v236_v18 = vld [vmem:[%s24449_s1 + $0x58] sm:$0xff]  ;;  %v237_v20 = vld [vmem:[%s24449_s1 + $0x60] sm:$0xff]  ;;  %v238_v21 = vld [vmem:[%s24449_s1 + $0x68] sm:$0xff] }
  0x45   :  { %v16449_v19 = vpack.c.bf16 %v236_v18, %v235_v17  ;;  %v16452_v22 = vpack.c.bf16 %v238_v21, %v237_v20  ;;  %v239_v23 = vld [vmem:[%s24449_s1 + $0x70] sm:$0xff]  ;;  %v240_v24 = vld [vmem:[%s24449_s1 + $0x78] sm:$0xff]  ;;  %v241_v26 = vld [vmem:[%s24449_s1 + $0x80] sm:$0xff] }
  0x46   :  { %v16455_v25 = vpack.c.bf16 %v240_v24, %v239_v23  ;;  %v242_v27 = vld [vmem:[%s24449_s1 + $0x88] sm:$0xff]  ;;  %v243_v29 = vld [vmem:[%s24449_s1 + $0x90] sm:$0xff]  ;;  %v244_v30 = vld [vmem:[%s24449_s1 + $0x98] sm:$0xff] }
  0x47   :  { %16438 = vmatpush1.bf16.msra.mxu0 %v16437_v6  ;;  %v16458_v28 = vpack.c.bf16 %v242_v27, %v241_v26  ;;  %v16461_v31 = vpack.c.bf16 %v244_v30, %v243_v29  ;;  %v245_v32 = vld [vmem:[%s24449_s1 + $0xa0] sm:$0xff]  ;;  %v246_v33 = vld [vmem:[%s24449_s1 + $0xa8] sm:$0xff]  ;;  %v247_v35 = vld [vmem:[%s24449_s1 + $0xb0] sm:$0xff]  ;;  %v24444_v29 = vmov 0.0  }
  0x48   :  { %16439 = vmatprep.subr.bf16.mxu0 %v19432_v0  ;;  %v16464_v34 = vpack.c.bf16 %v246_v33, %v245_v32  ;;  %v248_v36 = vld [vmem:[%s24449_s1 + $0xb8] sm:$0xff]  ;;  %v249_v38 = vld [vmem:[%s24449_s1 + $0xc0] sm:$0xff]  ;;  %v250_v39 = vld [vmem:[%s24449_s1 + $0xc8] sm:$0xff] }
  0x49   :  { %v16467_v37 = vpack.c.bf16 %v248_v36, %v247_v35  ;;  %v16470_v40 = vpack.c.bf16 %v250_v39, %v249_v38  ;;  %v251_v41 = vld [vmem:[%s24449_s1 + $0xd0] sm:$0xff]  ;;  %v252_v42 = vld [vmem:[%s24449_s1 + $0xd8] sm:$0xff]  ;;  %v253_v44 = vld [vmem:[%s24449_s1 + $0xe0] sm:$0xff] }
  0x4a   :  { %v16473_v43 = vpack.c.bf16 %v252_v42, %v251_v41  ;;  %v254_v45 = vld [vmem:[%s24449_s1 + $0xe8] sm:$0xff]  ;;  %v255_v47 = vld [vmem:[%s24449_s1 + $0xf0] sm:$0xff]  ;;  %v256_v48 = vld [vmem:[%s24449_s1 + $0xf8] sm:$0xff] }
  0x4b   :  { %16441 = vmatpush1.bf16.msra.mxu0 %v16440_v9  ;;  %v16476_v46 = vpack.c.bf16 %v254_v45, %v253_v44  ;;  %v16479_v49 = vpack.c.bf16 %v256_v48, %v255_v47  ;;  %v257_v50 = vld [vmem:[%s24449_s1 + $0x100] sm:$0xff]  ;;  %v258_v51 = vld [vmem:[%s24449_s1 + $0x108] sm:$0xff]  ;;  %v259_v55 = vld [vmem:[%s24449_s1 + $0x110] sm:$0xff] }
  0x4c   :  { %16442 = vmatprep.subr.bf16.mxu0 %v19432_v0  ;;  %v97_v52 = vld [vmem:[%s24450_s21] sm:$0xff]  ;;  %v16482_v53 = vpack.c.bf16 %v258_v51, %v257_v50  ;;  %v102_v54 = vld [vmem:[%s24450_s21 + $0x28] sm:$0xff]  ;;  %v260_v56 = vld [vmem:[%s24449_s1 + $0x118] sm:$0xff] }
  0x4d   :  { %v101_v57 = vld [vmem:[%s24450_s21 + $0x20] sm:$0xff]  ;;  %v16485_v58 = vpack.c.bf16 %v260_v56, %v259_v55  ;;  %v106_v59 = vld [vmem:[%s24450_s21 + $0x48] sm:$0xff]  ;;  %v263_v2 = vld [vmem:[%s24449_s1 + $0x130] sm:$0xff] }
  0x4e   :  { %v261_v60 = vld [vmem:[%s24449_s1 + $0x120] sm:$0xff]  ;;  %v262_v61 = vld [vmem:[%s24449_s1 + $0x128] sm:$0xff]  ;;  %v264_v3 = vld [vmem:[%s24449_s1 + $0x138] sm:$0xff] }
  0x4f   :  { %16444 = vmatpush1.bf16.msra.mxu0 %v16443_v13  ;;  %v105_v62 = vld [vmem:[%s24450_s21 + $0x40] sm:$0xff]  ;;  %v16488_v63 = vpack.c.bf16 %v262_v61, %v261_v60  ;;  %v110_v1 = vld [vmem:[%s24450_s21 + $0x68] sm:$0xff]  ;;  %v16491_v5 = vpack.c.bf16 %v264_v3, %v263_v2  ;;  %v267_v12 = vld [vmem:[%s24449_s1 + $0x150] sm:$0xff] }
  0x50   :  { %16445 = vmatprep.subr.bf16.mxu0 %v19432_v0  ;;  %v109_v4 = vld [vmem:[%s24450_s21 + $0x60] sm:$0xff]  ;;  %v114_v6 = vld [vmem:[%s24450_s21 + $0x88] sm:$0xff]  ;;  %v268_v13 = vld [vmem:[%s24449_s1 + $0x158] sm:$0xff] }
  0x51   :  { %v265_v7 = vld [vmem:[%s24449_s1 + $0x140] sm:$0xff]  ;;  %v266_v8 = vld [vmem:[%s24449_s1 + $0x148] sm:$0xff]  ;;  %v16497_v15 = vpack.c.bf16 %v268_v13, %v267_v12  ;;  %v272_v23 = vld [vmem:[%s24449_s1 + $0x178] sm:$0xff] }
  0x52   :  { %v113_v9 = vld [vmem:[%s24450_s21 + $0x80] sm:$0xff]  ;;  %v16494_v10 = vpack.c.bf16 %v266_v8, %v265_v7  ;;  %v118_v11 = vld [vmem:[%s24450_s21 + $0xa8] sm:$0xff]  ;;  %v100_v13 = vld [vmem:[%s24450_s21 + $0x18] sm:$0xff] }
  0x53   :  { %16447 = vmatpush1.bf16.msra.mxu0 %v16446_v16  ;;  %v117_v14 = vld [vmem:[%s24450_s21 + $0xa0] sm:$0xff]  ;;  %v122_v16 = vld [vmem:[%s24450_s21 + $0xc8] sm:$0xff] }
  0x54   :  { %16448 = vmatprep.subr.bf16.mxu0 %v19432_v0  ;;  %v269_v17 = vld [vmem:[%s24449_s1 + $0x160] sm:$0xff]  ;;  %v270_v18 = vld [vmem:[%s24449_s1 + $0x168] sm:$0xff] }
  0x55   :  { %v16500_v20 = vpack.c.bf16 %v270_v18, %v269_v17  ;;  %v126_v21 = vld [vmem:[%s24450_s21 + $0xe8] sm:$0xff]  ;;  %v125_v24 = vld [vmem:[%s24450_s21 + $0xe0] sm:$0xff]  ;;  %v108_v17 = vld [vmem:[%s24450_s21 + $0x58] sm:$0xff] }
  0x56   :  { %v130_v26 = vld [vmem:[%s24450_s21 + $0x108] sm:$0xff]  ;;  %v129_v27 = vld [vmem:[%s24450_s21 + $0x100] sm:$0xff]  ;;  %v107_v18 = vld [vmem:[%s24450_s21 + $0x50] sm:$0xff] }
  0x57   :  { %16450 = vmatpush1.bf16.msra.mxu0 %v16449_v19  ;;  %v121_v19 = vld [vmem:[%s24450_s21 + $0xc0] sm:$0xff]  ;;  %v138_v32 = vld [vmem:[%s24450_s21 + $0x148] sm:$0xff] }
  0x58   :  { %16451 = vmatprep.subr.bf16.mxu0 %v19432_v0  ;;  %v273_v30 = vld [vmem:[%s24449_s1 + $0x180] sm:$0xff]  ;;  %v146_v36 = vld [vmem:[%s24450_s21 + $0x188] sm:$0xff] }
  0x59   :  { %v137_v33 = vld [vmem:[%s24450_s21 + $0x140] sm:$0xff]  ;;  %v150_v38 = vld [vmem:[%s24450_s21 + $0x1a8] sm:$0xff] }
  0x5a   :  { %v141_v35 = vld [vmem:[%s24450_s21 + $0x160] sm:$0xff]  ;;  %v158_v42 = vld [vmem:[%s24450_s21 + $0x1e8] sm:$0xff] }
  0x5b   :  { %16453 = vmatpush1.bf16.msra.mxu0 %v16452_v22  ;;  %v271_v22 = vld [vmem:[%s24449_s1 + $0x170] sm:$0xff]  ;;  %v149_v39 = vld [vmem:[%s24450_s21 + $0x1a0] sm:$0xff]  ;;  %v162_v44 = vld [vmem:[%s24450_s21 + $0x208] sm:$0xff] }
  0x5c   :  { %16454 = vmatprep.subr.bf16.mxu0 %v19432_v0  ;;  %v153_v41 = vld [vmem:[%s24450_s21 + $0x1c0] sm:$0xff]  ;;  %v170_v48 = vld [vmem:[%s24450_s21 + $0x248] sm:$0xff] }
  0x5d   :  { %v161_v45 = vld [vmem:[%s24450_s21 + $0x200] sm:$0xff]  ;;  %v174_v50 = vld [vmem:[%s24450_s21 + $0x268] sm:$0xff] }
  0x5e   :  { %v165_v47 = vld [vmem:[%s24450_s21 + $0x220] sm:$0xff]  ;;  %v186_v56 = vld [vmem:[%s24450_s21 + $0x2c8] sm:$0xff] }
  0x5f   :  { %16456 = vmatpush1.bf16.msra.mxu0 %v16455_v25  ;;  %v16503_v25 = vpack.c.bf16 %v272_v23, %v271_v22  ;;  %v173_v51 = vld [vmem:[%s24450_s21 + $0x260] sm:$0xff]  ;;  %v194_v60 = vld [vmem:[%s24450_s21 + $0x308] sm:$0xff]  ;;  %v115_v22 = vld [vmem:[%s24450_s21 + $0x90] sm:$0xff] }
  0x60   :  { %16457 = vmatprep.subr.bf16.mxu0 %v19432_v0  ;;  %v181_v55 = vld [vmem:[%s24450_s21 + $0x2a0] sm:$0xff]  ;;  %v206_v3 = vld [vmem:[%s24450_s21 + $0x368] sm:$0xff]  ;;  %v120_v23 = vld [vmem:[%s24450_s21 + $0xb8] sm:$0xff] }
  0x61   :  { %v193_v61 = vld [vmem:[%s24450_s21 + $0x300] sm:$0xff]  ;;  %v214_v7 = vld [vmem:[%s24450_s21 + $0x3a8] sm:$0xff] }
  0x62   :  { %v201_v2 = vld [vmem:[%s24450_s21 + $0x340] sm:$0xff] }
  0x63   :  { %16459 = vmatpush1.bf16.msra.mxu0 %v16458_v28  ;;  %v134_v28 = vld [vmem:[%s24450_s21 + $0x128] sm:$0xff]  ;;  %v213_v8 = vld [vmem:[%s24450_s21 + $0x3a0] sm:$0xff] }
  0x64   :  { %16460 = vmatprep.subr.bf16.mxu0 %v19432_v0  ;;  %v221_v12 = vld [vmem:[%s24450_s21 + $0x3e0] sm:$0xff] }
  0x67   :  { %16462 = vmatpush1.bf16.msra.mxu0 %v16461_v31  ;;  %v133_v31 = vld [vmem:[%s24450_s21 + $0x120] sm:$0xff] }
  0x68   :  { %16463 = vmatprep.subr.bf16.mxu0 %v19432_v0 }
  0x6b   :  { %16465 = vmatpush1.bf16.msra.mxu0 %v16464_v34  ;;  %v142_v34 = vld [vmem:[%s24450_s21 + $0x168] sm:$0xff] }
  0x6c   :  { %16466 = vmatprep.subr.bf16.mxu0 %v19432_v0 }
  0x6f   :  { %16468 = vmatpush1.bf16.msra.mxu0 %v16467_v37  ;;  %v145_v37 = vld [vmem:[%s24450_s21 + $0x180] sm:$0xff] }
  0x70   :  { %16469 = vmatprep.subr.bf16.mxu0 %v19432_v0 }
  0x73   :  { %16471 = vmatpush1.bf16.msra.mxu0 %v16470_v40  ;;  %v154_v40 = vld [vmem:[%s24450_s21 + $0x1c8] sm:$0xff] }
  0x74   :  { %16472 = vmatprep.subr.bf16.mxu0 %v19432_v0 }
  0x77   :  { %16474 = vmatpush1.bf16.msra.mxu0 %v16473_v43  ;;  %v157_v43 = vld [vmem:[%s24450_s21 + $0x1e0] sm:$0xff] }
  0x78   :  { %16475 = vmatprep.subr.bf16.mxu0 %v19432_v0 }
  0x7b   :  { %16477 = vmatpush1.bf16.msra.mxu0 %v16476_v46  ;;  %v166_v46 = vld [vmem:[%s24450_s21 + $0x228] sm:$0xff] }
  0x7c   :  { %16478 = vmatprep.subr.bf16.mxu0 %v19432_v0 }
  0x7f   :  { %16480 = vmatpush1.bf16.msra.mxu0 %v16479_v49  ;;  %v169_v49 = vld [vmem:[%s24450_s21 + $0x240] sm:$0xff] }
  0x80   :  { %16481 = vmatprep.subr.bf16.mxu0 %v19432_v0 }
  0x82   :  { %443 = vmatmul.mubr.f32.vlgmr.msra.gmra.mrb[0].mxu0 %v97_v52  ;;  %v178_v52 = vld [vmem:[%s24450_s21 + $0x288] sm:$0xff] }
  0x83   :  { %447 = vmatprep.mubr.f32.mxu0 %v102_v54  ;;  %16483 = vmatpush1.bf16.msra.mxu0 %v16482_v53  ;;  %v177_v53 = vld [vmem:[%s24450_s21 + $0x280] sm:$0xff]  ;;  %v182_v54 = vld [vmem:[%s24450_s21 + $0x2a8] sm:$0xff] }
  0x84   :  { %16484 = vmatprep.subr.bf16.mxu0 %v19432_v0 }
  0x86   :  { %448 = vmatmul.mubr.f32.gmra.mrb[2].mxu0 %v101_v57  ;;  %v185_v57 = vld [vmem:[%s24450_s21 + $0x2c0] sm:$0xff] }
  0x87   :  { %452 = vmatprep.mubr.f32.mxu0 %v106_v59  ;;  %16486 = vmatpush1.bf16.msra.mxu0 %v16485_v58  ;;  %v190_v58 = vld [vmem:[%s24450_s21 + $0x2e8] sm:$0xff]  ;;  %v189_v59 = vld [vmem:[%s24450_s21 + $0x2e0] sm:$0xff] }
  0x88   :  { %16487 = vmatprep.subr.bf16.mxu0 %v19432_v0 }
  0x8a   :  { %453 = vmatmul.mubr.f32.gmra.mrb[4].mxu0 %v105_v62  ;;  %v198_v62 = vld [vmem:[%s24450_s21 + $0x328] sm:$0xff] }
  0x8b   :  { %457 = vmatprep.mubr.f32.mxu0 %v110_v1  ;;  %16489 = vmatpush1.bf16.msra.mxu0 %v16488_v63  ;;  %v197_v63 = vld [vmem:[%s24450_s21 + $0x320] sm:$0xff]  ;;  %v202_v1 = vld [vmem:[%s24450_s21 + $0x348] sm:$0xff] }
  0x8c   :  { %16490 = vmatprep.subr.bf16.mxu0 %v19432_v0 }
  0x8e   :  { %458 = vmatmul.mubr.f32.gmra.mrb[6].mxu0 %v109_v4  ;;  %v205_v4 = vld [vmem:[%s24450_s21 + $0x360] sm:$0xff] }
  0x8f   :  { %462 = vmatprep.mubr.f32.mxu0 %v114_v6  ;;  %16492 = vmatpush1.bf16.msra.mxu0 %v16491_v5  ;;  %v210_v5 = vld [vmem:[%s24450_s21 + $0x388] sm:$0xff]  ;;  %v209_v6 = vld [vmem:[%s24450_s21 + $0x380] sm:$0xff] }
  0x90   :  { %16493 = vmatprep.subr.bf16.mxu0 %v19432_v0 }
  0x92   :  { %463 = vmatmul.mubr.f32.gmra.mrb[8].mxu0 %v113_v9  ;;  %v218_v9 = vld [vmem:[%s24450_s21 + $0x3c8] sm:$0xff] }
  0x93   :  { %467 = vmatprep.mubr.f32.mxu0 %v118_v11  ;;  %16495 = vmatpush1.bf16.msra.mxu0 %v16494_v10  ;;  %v217_v10 = vld [vmem:[%s24450_s21 + $0x3c0] sm:$0xff]  ;;  %v222_v11 = vld [vmem:[%s24450_s21 + $0x3e8] sm:$0xff] }
  0x94   :  { %16496 = vmatprep.subr.bf16.mxu0 %v19432_v0 }
  0x96   :  { %468 = vmatmul.mubr.f32.gmra.mrb[10].mxu0 %v117_v14  ;;  %v99_v14 = vld [vmem:[%s24450_s21 + $0x10] sm:$0xff] }
  0x97   :  { %472 = vmatprep.mubr.f32.mxu0 %v122_v16  ;;  %16498 = vmatpush1.bf16.msra.mxu0 %v16497_v15  ;;  %v104_v15 = vld [vmem:[%s24450_s21 + $0x38] sm:$0xff]  ;;  %v103_v16 = vld [vmem:[%s24450_s21 + $0x30] sm:$0xff] }
  0x98   :  { %16499 = vmatprep.subr.bf16.mxu0 %v19432_v0 }
  0x9a   :  { %473 = vmatmul.mubr.f32.gmra.mrb[12].mxu0 %v121_v19  ;;  %v112_v19 = vld [vmem:[%s24450_s21 + $0x78] sm:$0xff] }
  0x9b   :  { %477 = vmatprep.mubr.f32.mxu0 %v126_v21  ;;  %16501 = vmatpush1.bf16.msra.mxu0 %v16500_v20  ;;  %v111_v20 = vld [vmem:[%s24450_s21 + $0x70] sm:$0xff]  ;;  %v116_v21 = vld [vmem:[%s24450_s21 + $0x98] sm:$0xff] }
  0x9c   :  { %16502 = vmatprep.subr.bf16.mxu0 %v19432_v0 }
  0x9e   :  { %478 = vmatmul.mubr.f32.gmra.mrb[14].mxu0 %v125_v24  ;;  %v119_v24 = vld [vmem:[%s24450_s21 + $0xb0] sm:$0xff] }
  0x9f   :  { %482 = vmatprep.mubr.f32.mxu0 %v130_v26  ;;  %16504 = vmatpush1.bf16.msra.mxu0 %v16503_v25  ;;  %v124_v25 = vld [vmem:[%s24450_s21 + $0xd8] sm:$0xff]  ;;  %v123_v26 = vld [vmem:[%s24450_s21 + $0xd0] sm:$0xff] }
  0xa0   :  { %635 = vmatprep.subr.mxu0 %v24444_v29 }
  0xa2   :  { %483 = vmatmul.mubr.f32.gmra.mrb[16].mxu0 %v129_v27  ;;  %v128_v27 = vld [vmem:[%s24450_s21 + $0xf8] sm:$0xff] }
  0xa3   :  { %487 = vmatprep.mubr.f32.mxu0 %v134_v28  ;;  %636 = vmatpush1.msra.mxu0 %v273_v30  ;;  %v127_v28 = vld [vmem:[%s24450_s21 + $0xf0] sm:$0xff]  ;;  %v132_v30 = vld [vmem:[%s24450_s21 + $0x118] sm:$0xff] }
  0xa6   :  { %488 = vmatmul.mubr.f32.gmra.mrb[18].mxu0 %v133_v31  ;;  %v131_v31 = vld [vmem:[%s24450_s21 + $0x110] sm:$0xff] }
  0xa7   :  { %492 = vmatprep.mubr.f32.mxu0 %v138_v32  ;;  %v136_v32 = vld [vmem:[%s24450_s21 + $0x138] sm:$0xff] }
  0xaa   :  { %493 = vmatmul.mubr.f32.gmra.mrb[20].mxu0 %v137_v33  ;;  %v135_v33 = vld [vmem:[%s24450_s21 + $0x130] sm:$0xff] }
  0xab   :  { %497 = vmatprep.mubr.f32.mxu0 %v142_v34  ;;  %v140_v34 = vld [vmem:[%s24450_s21 + $0x158] sm:$0xff] }
  0xae   :  { %498 = vmatmul.mubr.f32.gmra.mrb[22].mxu0 %v141_v35  ;;  %v139_v35 = vld [vmem:[%s24450_s21 + $0x150] sm:$0xff] }
  0xaf   :  { %502 = vmatprep.mubr.f32.mxu0 %v146_v36  ;;  %v144_v36 = vld [vmem:[%s24450_s21 + $0x178] sm:$0xff] }
  0xb2   :  { %503 = vmatmul.mubr.f32.gmra.mrb[24].mxu0 %v145_v37  ;;  %v143_v37 = vld [vmem:[%s24450_s21 + $0x170] sm:$0xff] }
  0xb3   :  { %507 = vmatprep.mubr.f32.mxu0 %v150_v38  ;;  %v148_v38 = vld [vmem:[%s24450_s21 + $0x198] sm:$0xff] }
  0xb6   :  { %508 = vmatmul.mubr.f32.gmra.mrb[26].mxu0 %v149_v39  ;;  %v147_v39 = vld [vmem:[%s24450_s21 + $0x190] sm:$0xff] }
  0xb7   :  { %512 = vmatprep.mubr.f32.mxu0 %v154_v40  ;;  %v152_v40 = vld [vmem:[%s24450_s21 + $0x1b8] sm:$0xff] }
  0xba   :  { %513 = vmatmul.mubr.f32.gmra.mrb[28].mxu0 %v153_v41  ;;  %v151_v41 = vld [vmem:[%s24450_s21 + $0x1b0] sm:$0xff] }
  0xbb   :  { %517 = vmatprep.mubr.f32.mxu0 %v158_v42  ;;  %v156_v42 = vld [vmem:[%s24450_s21 + $0x1d8] sm:$0xff] }
  0xbe   :  { %518 = vmatmul.mubr.f32.gmra.mrb[30].mxu0 %v157_v43  ;;  %v155_v43 = vld [vmem:[%s24450_s21 + $0x1d0] sm:$0xff] }
  0xbf   :  { %522 = vmatprep.mubr.f32.mxu0 %v162_v44  ;;  %v160_v44 = vld [vmem:[%s24450_s21 + $0x1f8] sm:$0xff] }
  0xc2   :  { %523 = vmatmul.mubr.f32.gmra.mrb[32].mxu0 %v161_v45  ;;  %v159_v45 = vld [vmem:[%s24450_s21 + $0x1f0] sm:$0xff] }
  0xc3   :  { %527 = vmatprep.mubr.f32.mxu0 %v166_v46  ;;  %v164_v46 = vld [vmem:[%s24450_s21 + $0x218] sm:$0xff] }
  0xc6   :  { %528 = vmatmul.mubr.f32.gmra.mrb[34].mxu0 %v165_v47  ;;  %v163_v47 = vld [vmem:[%s24450_s21 + $0x210] sm:$0xff] }
  0xc7   :  { %532 = vmatprep.mubr.f32.mxu0 %v170_v48  ;;  %v168_v48 = vld [vmem:[%s24450_s21 + $0x238] sm:$0xff] }
  0xca   :  { %533 = vmatmul.mubr.f32.gmra.mrb[36].mxu0 %v169_v49  ;;  %v167_v49 = vld [vmem:[%s24450_s21 + $0x230] sm:$0xff] }
  0xcb   :  { %537 = vmatprep.mubr.f32.mxu0 %v174_v50  ;;  %v172_v50 = vld [vmem:[%s24450_s21 + $0x258] sm:$0xff] }
  0xce   :  { %538 = vmatmul.mubr.f32.gmra.mrb[38].mxu0 %v173_v51  ;;  %v171_v51 = vld [vmem:[%s24450_s21 + $0x250] sm:$0xff] }
  0xcf   :  { %542 = vmatprep.mubr.f32.mxu0 %v178_v52  ;;  %v176_v52 = vld [vmem:[%s24450_s21 + $0x278] sm:$0xff] }
  0xd2   :  { %543 = vmatmul.mubr.f32.gmra.mrb[40].mxu0 %v177_v53  ;;  %v175_v53 = vld [vmem:[%s24450_s21 + $0x270] sm:$0xff] }
  0xd3   :  { %547 = vmatprep.mubr.f32.mxu0 %v182_v54  ;;  %v180_v54 = vld [vmem:[%s24450_s21 + $0x298] sm:$0xff] }
  0xd6   :  { %548 = vmatmul.mubr.f32.gmra.mrb[42].mxu0 %v181_v55  ;;  %v179_v55 = vld [vmem:[%s24450_s21 + $0x290] sm:$0xff] }
  0xd7   :  { %552 = vmatprep.mubr.f32.mxu0 %v186_v56  ;;  %v184_v56 = vld [vmem:[%s24450_s21 + $0x2b8] sm:$0xff] }
  0xda   :  { %553 = vmatmul.mubr.f32.gmra.mrb[44].mxu0 %v185_v57  ;;  %v183_v57 = vld [vmem:[%s24450_s21 + $0x2b0] sm:$0xff] }
  0xdb   :  { %557 = vmatprep.mubr.f32.mxu0 %v190_v58  ;;  %v188_v58 = vld [vmem:[%s24450_s21 + $0x2d8] sm:$0xff] }
  0xde   :  { %558 = vmatmul.mubr.f32.gmra.mrb[46].mxu0 %v189_v59  ;;  %v187_v59 = vld [vmem:[%s24450_s21 + $0x2d0] sm:$0xff] }
  0xdf   :  { %562 = vmatprep.mubr.f32.mxu0 %v194_v60  ;;  %v192_v60 = vld [vmem:[%s24450_s21 + $0x2f8] sm:$0xff] }
  0xe2   :  { %563 = vmatmul.mubr.f32.gmra.mrb[48].mxu0 %v193_v61  ;;  %v191_v61 = vld [vmem:[%s24450_s21 + $0x2f0] sm:$0xff] }
  0xe3   :  { %567 = vmatprep.mubr.f32.mxu0 %v198_v62  ;;  %v196_v62 = vld [vmem:[%s24450_s21 + $0x318] sm:$0xff] }
  0xe6   :  { %568 = vmatmul.mubr.f32.gmra.mrb[50].mxu0 %v197_v63  ;;  %v195_v63 = vld [vmem:[%s24450_s21 + $0x310] sm:$0xff] }
  0xe7   :  { %572 = vmatprep.mubr.f32.mxu0 %v202_v1  ;;  %v200_v1 = vld [vmem:[%s24450_s21 + $0x338] sm:$0xff] }
  0xea   :  { %573 = vmatmul.mubr.f32.gmra.mrb[52].mxu0 %v201_v2  ;;  %v199_v2 = vld [vmem:[%s24450_s21 + $0x330] sm:$0xff] }
  0xeb   :  { %577 = vmatprep.mubr.f32.mxu0 %v206_v3  ;;  %v204_v3 = vld [vmem:[%s24450_s21 + $0x358] sm:$0xff] }
  0xee   :  { %578 = vmatmul.mubr.f32.gmra.mrb[54].mxu0 %v205_v4  ;;  %v203_v4 = vld [vmem:[%s24450_s21 + $0x350] sm:$0xff] }
  0xef   :  { %582 = vmatprep.mubr.f32.mxu0 %v210_v5  ;;  %v208_v5 = vld [vmem:[%s24450_s21 + $0x378] sm:$0xff] }
  0xf2   :  { %583 = vmatmul.mubr.f32.gmra.mrb[56].mxu0 %v209_v6  ;;  %v207_v6 = vld [vmem:[%s24450_s21 + $0x370] sm:$0xff] }
  0xf3   :  { %587 = vmatprep.mubr.f32.mxu0 %v214_v7  ;;  %v212_v7 = vld [vmem:[%s24450_s21 + $0x398] sm:$0xff] }
  0xf6   :  { %588 = vmatmul.mubr.f32.gmra.mrb[58].mxu0 %v213_v8  ;;  %v211_v8 = vld [vmem:[%s24450_s21 + $0x390] sm:$0xff] }
  0xf7   :  { %592 = vmatprep.mubr.f32.mxu0 %v218_v9  ;;  %v216_v9 = vld [vmem:[%s24450_s21 + $0x3b8] sm:$0xff] }
  0xfa   :  { %593 = vmatmul.mubr.f32.gmra.mrb[60].mxu0 %v217_v10  ;;  %v215_v10 = vld [vmem:[%s24450_s21 + $0x3b0] sm:$0xff] }
  0xfb   :  { %597 = vmatprep.mubr.f32.mxu0 %v222_v11  ;;  %v220_v11 = vld [vmem:[%s24450_s21 + $0x3d8] sm:$0xff] }
  0xfe   :  { %598 = vmatmul.mubr.f32.gmra.mrb[62].mxu0 %v221_v12  ;;  %v219_v12 = vld [vmem:[%s24450_s21 + $0x3d0] sm:$0xff] }
  0xff   :  { %12710 = vmatprep.mubr.msk.f32.mxu0 %vm281_vm0, %v100_v13  ;;  %v224_v13 = vld [vmem:[%s24450_s21 + $0x3f8] sm:$0xff] }
 0x102   :  { %668 = vmatmul.mubr.f32.vlgmr.msra.gmra.mrb[0].mxu0 %v99_v14  ;;  %v223_v14 = vld [vmem:[%s24450_s21 + $0x3f0] sm:$0xff] }
 0x103   :  { %12711 = vmatprep.mubr.msk.f32.mxu0 %vm281_vm0, %v104_v15  ;;  %v20158_v15 = vld [vmem:[%s24425_s2] ss:$0 sm:$0xff] }
 0x106   :  { %673 = vmatmul.mubr.f32.gmra.mrb[2].mxu0 %v103_v16 }
 0x107   :  { %12712 = vmatprep.mubr.msk.f32.mxu0 %vm281_vm0, %v108_v17 }
 0x10a   :  { %678 = vmatmul.mubr.f32.gmra.mrb[4].mxu0 %v107_v18 }
 0x10b   :  { %12713 = vmatprep.mubr.msk.f32.mxu0 %vm281_vm0, %v112_v19 }
 0x10e   :  { %683 = vmatmul.mubr.f32.gmra.mrb[6].mxu0 %v111_v20 }
 0x10f   :  { %12714 = vmatprep.mubr.msk.f32.mxu0 %vm281_vm0, %v116_v21 }
 0x112   :  { %688 = vmatmul.mubr.f32.gmra.mrb[8].mxu0 %v115_v22  ;;  %v861_v22 = vld [vmem:[%s24426_s3 + $0x8] sm:$0xff] }
 0x113   :  { %12715 = vmatprep.mubr.msk.f32.mxu0 %vm281_vm0, %v120_v23  ;;  %940 = vmatprep.mubr.f32.mxu1 %v861_v22  ;;  %v12863_v23 = vld [vmem:[%s24426_s3 + $0x288] sm:$0xff] }
 0x116   :  { %693 = vmatmul.mubr.f32.gmra.mrb[10].mxu0 %v119_v24 }
 0x117   :  { %12716 = vmatprep.mubr.msk.f32.mxu0 %vm281_vm0, %v124_v25 }
 0x11a   :  { %698 = vmatmul.mubr.f32.gmra.mrb[12].mxu0 %v123_v26 }
 0x11b   :  { %12717 = vmatprep.mubr.msk.f32.mxu0 %vm281_vm0, %v128_v27 }
 0x11e   :  { %703 = vmatmul.mubr.f32.gmra.mrb[14].mxu0 %v127_v28 }
 0x11f   :  { %12718 = vmatprep.mubr.msk.f32.mxu0 %vm281_vm0, %v132_v30 }
 0x122   :  { %708 = vmatmul.mubr.f32.gmra.mrb[16].mxu0 %v131_v31 }
 0x123   :  { %12719 = vmatprep.mubr.msk.f32.mxu0 %vm281_vm0, %v136_v32 }
 0x126   :  { %713 = vmatmul.mubr.f32.gmra.mrb[18].mxu0 %v135_v33 }
 0x127   :  { %12720 = vmatprep.mubr.msk.f32.mxu0 %vm281_vm0, %v140_v34 }
 0x12a   :  { %718 = vmatmul.mubr.f32.gmra.mrb[20].mxu0 %v139_v35 }
 0x12b   :  { %12721 = vmatprep.mubr.msk.f32.mxu0 %vm281_vm0, %v144_v36 }
 0x12e   :  { %723 = vmatmul.mubr.f32.gmra.mrb[22].mxu0 %v143_v37 }
 0x12f   :  { %12722 = vmatprep.mubr.msk.f32.mxu0 %vm281_vm0, %v148_v38 }
 0x132   :  { %728 = vmatmul.mubr.f32.gmra.mrb[24].mxu0 %v147_v39 }
 0x133   :  { %12723 = vmatprep.mubr.msk.f32.mxu0 %vm281_vm0, %v152_v40 }
 0x136   :  { %733 = vmatmul.mubr.f32.gmra.mrb[26].mxu0 %v151_v41 }
 0x137   :  { %12724 = vmatprep.mubr.msk.f32.mxu0 %vm281_vm0, %v156_v42 }
 0x13a   :  { %738 = vmatmul.mubr.f32.gmra.mrb[28].mxu0 %v155_v43 }
 0x13b   :  { %12725 = vmatprep.mubr.msk.f32.mxu0 %vm281_vm0, %v160_v44 }
 0x13e   :  { %743 = vmatmul.mubr.f32.gmra.mrb[30].mxu0 %v159_v45 }
 0x13f   :  { %12726 = vmatprep.mubr.msk.f32.mxu0 %vm281_vm0, %v164_v46 }
 0x142   :  { %748 = vmatmul.mubr.f32.gmra.mrb[32].mxu0 %v163_v47 }
 0x143   :  { %12727 = vmatprep.mubr.msk.f32.mxu0 %vm281_vm0, %v168_v48 }
 0x146   :  { %753 = vmatmul.mubr.f32.gmra.mrb[34].mxu0 %v167_v49 }
 0x147   :  { %12728 = vmatprep.mubr.msk.f32.mxu0 %vm281_vm0, %v172_v50 }
 0x14a   :  { %758 = vmatmul.mubr.f32.gmra.mrb[36].mxu0 %v171_v51 }
 0x14b   :  { %12729 = vmatprep.mubr.msk.f32.mxu0 %vm281_vm0, %v176_v52 }
 0x14e   :  { %763 = vmatmul.mubr.f32.gmra.mrb[38].mxu0 %v175_v53 }
 0x14f   :  { %12730 = vmatprep.mubr.msk.f32.mxu0 %vm281_vm0, %v180_v54 }
 0x152   :  { %768 = vmatmul.mubr.f32.gmra.mrb[40].mxu0 %v179_v55 }
 0x153   :  { %12731 = vmatprep.mubr.msk.f32.mxu0 %vm281_vm0, %v184_v56 }
 0x156   :  { %773 = vmatmul.mubr.f32.gmra.mrb[42].mxu0 %v183_v57 }
 0x157   :  { %12732 = vmatprep.mubr.msk.f32.mxu0 %vm281_vm0, %v188_v58 }
 0x15a   :  { %778 = vmatmul.mubr.f32.gmra.mrb[44].mxu0 %v187_v59 }
 0x15b   :  { %12733 = vmatprep.mubr.msk.f32.mxu0 %vm281_vm0, %v192_v60 }
 0x15e   :  { %783 = vmatmul.mubr.f32.gmra.mrb[46].mxu0 %v191_v61 }
 0x15f   :  { %12734 = vmatprep.mubr.msk.f32.mxu0 %vm281_vm0, %v196_v62 }
 0x162   :  { %788 = vmatmul.mubr.f32.gmra.mrb[48].mxu0 %v195_v63 }
 0x163   :  { %12735 = vmatprep.mubr.msk.f32.mxu0 %vm281_vm0, %v200_v1 }
 0x166   :  { %793 = vmatmul.mubr.f32.gmra.mrb[50].mxu0 %v199_v2 }
 0x167   :  { %12736 = vmatprep.mubr.msk.f32.mxu0 %vm281_vm0, %v204_v3 }
 0x16a   :  { %798 = vmatmul.mubr.f32.gmra.mrb[52].mxu0 %v203_v4 }
 0x16b   :  { %12737 = vmatprep.mubr.msk.f32.mxu0 %vm281_vm0, %v208_v5 }
 0x16e   :  { %803 = vmatmul.mubr.f32.gmra.mrb[54].mxu0 %v207_v6 }
 0x16f   :  { %12738 = vmatprep.mubr.msk.f32.mxu0 %vm281_vm0, %v212_v7 }
 0x172   :  { %808 = vmatmul.mubr.f32.gmra.mrb[56].mxu0 %v211_v8 }
 0x173   :  { %12739 = vmatprep.mubr.msk.f32.mxu0 %vm281_vm0, %v216_v9 }
 0x176   :  { %813 = vmatmul.mubr.f32.gmra.mrb[58].mxu0 %v215_v10 }
 0x177   :  { %12740 = vmatprep.mubr.msk.f32.mxu0 %vm281_vm0, %v220_v11 }
 0x17a   :  { %818 = vmatmul.mubr.f32.gmra.mrb[60].mxu0 %v219_v12 }
 0x17b   :  { %12741 = vmatprep.mubr.msk.f32.mxu0 %vm281_vm0, %v224_v13 }
 0x17e   :  { %823 = vmatmul.mubr.f32.gmra.mrb[62].mxu0 %v223_v14 }
 0x17f   :  { %2244 = vmatprep.mubr.f32.mxu0 %v12863_v23 }
 0x1d5   :  { %v669_v16 = vpop.f32.mrb[0].mxu0 }
 0x1d6   :  { %v671_v17 = vpop.f32.mrb[1].mxu0  ;;  %v19049_v18 = vadd.f32 %v20158_v15, %v669_v16 }
 0x1d8   :  { %v828_v24 = vmax.f32 %v19049_v18, 0.0 }
 0x1d9   :  { %v674_v19 = vpop.f32.mrb[2].mxu0 }
 0x1da   :  { %v19050_v20 = vadd.f32 %v20158_v15, %v674_v19  ;;  %v676_v21 = vpop.f32.mrb[3].mxu0 }
 0x1dc   :  { %v829_v25 = vmax.f32 %v19050_v20, 0.0 }
 0x1dd   :  { %v679_v26 = vpop.f32.mrb[4].mxu0 }
 0x1de   :  { %v20168_v27 = vpack.c.bf16 %v829_v25, %v828_v24  ;;  %v681_v28 = vpop.f32.mrb[5].mxu0  ;;  %v19051_v30 = vadd.f32 %v20158_v15, %v679_v26 }
 0x1e0   :  { %v830_v34 = vmax.f32 %v19051_v30, 0.0 }
 0x1e1   :  { %v684_v31 = vpop.f32.mrb[6].mxu0 }
 0x1e2   :  { %v19052_v32 = vadd.f32 %v20158_v15, %v684_v31  ;;  %v686_v33 = vpop.f32.mrb[7].mxu0 }
 0x1e4   :  { %v831_v35 = vmax.f32 %v19052_v32, 0.0 }
 0x1e5   :  { %v689_v36 = vpop.f32.mrb[8].mxu0 }
 0x1e6   :  { %v20172_v37 = vpack.c.bf16 %v831_v35, %v830_v34  ;;  %v691_v38 = vpop.f32.mrb[9].mxu0  ;;  %v19053_v39 = vadd.f32 %v20158_v15, %v689_v36 }
 0x1e8   :  { %v832_v43 = vmax.f32 %v19053_v39, 0.0 }
 0x1e9   :  { %v694_v40 = vpop.f32.mrb[10].mxu0 }
 0x1ea   :  { %v19054_v41 = vadd.f32 %v20158_v15, %v694_v40  ;;  %v696_v42 = vpop.f32.mrb[11].mxu0 }
 0x1ec   :  { %v833_v44 = vmax.f32 %v19054_v41, 0.0 }
 0x1ed   :  { %v699_v45 = vpop.f32.mrb[12].mxu0 }
 0x1ee   :  { %v20176_v46 = vpack.c.bf16 %v833_v44, %v832_v43  ;;  %v701_v47 = vpop.f32.mrb[13].mxu0  ;;  %v19055_v48 = vadd.f32 %v20158_v15, %v699_v45 }
 0x1f0   :  { %v834_v52 = vmax.f32 %v19055_v48, 0.0 }
 0x1f1   :  { %v704_v49 = vpop.f32.mrb[14].mxu0 }
 0x1f2   :  { %v19056_v50 = vadd.f32 %v20158_v15, %v704_v49  ;;  %v706_v51 = vpop.f32.mrb[15].mxu0 }
 0x1f4   :  { %v835_v53 = vmax.f32 %v19056_v50, 0.0 }
 0x1f5   :  { %v709_v54 = vpop.f32.mrb[16].mxu0 }
 0x1f6   :  { %v20180_v55 = vpack.c.bf16 %v835_v53, %v834_v52  ;;  %v711_v56 = vpop.f32.mrb[17].mxu0  ;;  %v19057_v57 = vadd.f32 %v20158_v15, %v709_v54 }
 0x1f8   :  { %v836_v61 = vmax.f32 %v19057_v57, 0.0 }
 0x1f9   :  { %v714_v58 = vpop.f32.mrb[18].mxu0 }
 0x1fa   :  { %v19058_v59 = vadd.f32 %v20158_v15, %v714_v58  ;;  %v716_v60 = vpop.f32.mrb[19].mxu0 }
 0x1fc   :  { %v837_v62 = vmax.f32 %v19058_v59, 0.0 }
 0x1fd   :  { %v719_v63 = vpop.f32.mrb[20].mxu0 }
 0x1fe   :  { %v20184_v1 = vpack.c.bf16 %v837_v62, %v836_v61  ;;  %v721_v2 = vpop.f32.mrb[21].mxu0  ;;  %v19059_v3 = vadd.f32 %v20158_v15, %v719_v63 }
 0x200   :  { %v838_v7 = vmax.f32 %v19059_v3, 0.0 }
 0x201   :  { %v724_v4 = vpop.f32.mrb[22].mxu0 }
 0x202   :  { %v19060_v5 = vadd.f32 %v20158_v15, %v724_v4  ;;  %v726_v6 = vpop.f32.mrb[23].mxu0 }
 0x204   :  { %v839_v8 = vmax.f32 %v19060_v5, 0.0 }
 0x205   :  { %v729_v9 = vpop.f32.mrb[24].mxu0 }
 0x206   :  { %v20188_v10 = vpack.c.bf16 %v839_v8, %v838_v7  ;;  %v731_v11 = vpop.f32.mrb[25].mxu0  ;;  %v19061_v12 = vadd.f32 %v20158_v15, %v729_v9 }
 0x208   :  { %v840_v17 = vmax.f32 %v19061_v12, 0.0 }
 0x209   :  { %v734_v13 = vpop.f32.mrb[26].mxu0 }
 0x20a   :  { %v19062_v14 = vadd.f32 %v20158_v15, %v734_v13  ;;  %v736_v16 = vpop.f32.mrb[27].mxu0 }
 0x20c   :  { %v841_v18 = vmax.f32 %v19062_v14, 0.0 }
 0x20d   :  { %v739_v19 = vpop.f32.mrb[28].mxu0 }
 0x20e   :  { %v20192_v20 = vpack.c.bf16 %v841_v18, %v840_v17  ;;  %v741_v21 = vpop.f32.mrb[29].mxu0  ;;  %v19063_v22 = vadd.f32 %v20158_v15, %v739_v19 }
 0x210   :  { %v842_v26 = vmax.f32 %v19063_v22, 0.0 }
 0x211   :  { %v744_v23 = vpop.f32.mrb[30].mxu0 }
 0x212   :  { %v19064_v24 = vadd.f32 %v20158_v15, %v744_v23  ;;  %v746_v25 = vpop.f32.mrb[31].mxu0 }
 0x214   :  { %v843_v28 = vmax.f32 %v19064_v24, 0.0 }
 0x215   :  { %v749_v30 = vpop.f32.mrb[32].mxu0 }
 0x216   :  { %v20196_v31 = vpack.c.bf16 %v843_v28, %v842_v26  ;;  %v751_v32 = vpop.f32.mrb[33].mxu0  ;;  %v19065_v33 = vadd.f32 %v20158_v15, %v749_v30 }
 0x218   :  { %v844_v38 = vmax.f32 %v19065_v33, 0.0 }
 0x219   :  { %v754_v34 = vpop.f32.mrb[34].mxu0 }
 0x21a   :  { %v19066_v35 = vadd.f32 %v20158_v15, %v754_v34  ;;  %v756_v36 = vpop.f32.mrb[35].mxu0 }
 0x21c   :  { %v845_v39 = vmax.f32 %v19066_v35, 0.0 }
 0x21d   :  { %v759_v40 = vpop.f32.mrb[36].mxu0 }
 0x21e   :  { %v20200_v41 = vpack.c.bf16 %v845_v39, %v844_v38  ;;  %v761_v42 = vpop.f32.mrb[37].mxu0  ;;  %v19067_v43 = vadd.f32 %v20158_v15, %v759_v40 }
 0x220   :  { %16506 = vmatprep.subr.bf16.mxu1 %v20200_v41  ;;  %16706 = vmatprep.subr.bf16.mxu0 %v20200_v41  ;;  %v846_v48 = vmax.f32 %v19067_v43, 0.0 }
 0x221   :  { %v764_v44 = vpop.f32.mrb[38].mxu0  ;;  %16508 = vmatpush3.bf16.msra.mxu1 %v20168_v27  ;;  %16708 = vmatpush3.bf16.msra.mxu0 %v20168_v27 }
 0x222   :  { %v19068_v45 = vadd.f32 %v20158_v15, %v764_v44  ;;  %v766_v47 = vpop.f32.mrb[39].mxu0 }
 0x224   :  { %v847_v49 = vmax.f32 %v19068_v45, 0.0 }
 0x225   :  { %v769_v50 = vpop.f32.mrb[40].mxu0 }
 0x226   :  { %v20208_v51 = vpack.c.bf16 %v847_v49, %v846_v48  ;;  %v771_v52 = vpop.f32.mrb[41].mxu0  ;;  %v19069_v53 = vadd.f32 %v20158_v15, %v769_v50 }
 0x228   :  { %16510 = vmatprep.subr.bf16.mxu1 %v20208_v51  ;;  %16710 = vmatprep.subr.bf16.mxu0 %v20208_v51  ;;  %v848_v58 = vmax.f32 %v19069_v53, 0.0 }
 0x229   :  { %v774_v54 = vpop.f32.mrb[42].mxu0  ;;  %16512 = vmatpush3.bf16.msra.mxu1 %v20172_v37  ;;  %16712 = vmatpush3.bf16.msra.mxu0 %v20172_v37 }
 0x22a   :  { %v19070_v56 = vadd.f32 %v20158_v15, %v774_v54  ;;  %v776_v57 = vpop.f32.mrb[43].mxu0  ;;  %v860_v54 = vld [vmem:[%s24426_s3] sm:$0xff] }
 0x22b   :  { %v12865_v57 = vld [vmem:[%s24426_s3 + $0x298] sm:$0xff] }
 0x22c   :  { %v849_v59 = vmax.f32 %v19070_v56, 0.0  ;;  %v863_v56 = vld [vmem:[%s24426_s3 + $0x18] sm:$0xff] }
 0x22d   :  { %v779_v60 = vpop.f32.mrb[44].mxu0 }
 0x22e   :  { %v20216_v61 = vpack.c.bf16 %v849_v59, %v848_v58  ;;  %v781_v62 = vpop.f32.mrb[45].mxu0  ;;  %v19071_v63 = vadd.f32 %v20158_v15, %v779_v60  ;;  %v862_v58 = vld [vmem:[%s24426_s3 + $0x10] sm:$0xff]  ;;  %v865_v60 = vld [vmem:[%s24426_s3 + $0x28] sm:$0xff] }
 0x22f   :  { %v12864_v59 = vld [vmem:[%s24426_s3 + $0x290] sm:$0xff]  ;;  %v12867_v62 = vld [vmem:[%s24426_s3 + $0x2a8] sm:$0xff] }
 0x230   :  { %16514 = vmatprep.subr.bf16.mxu1 %v20216_v61  ;;  %16714 = vmatprep.subr.bf16.mxu0 %v20216_v61  ;;  %v850_v5 = vmax.f32 %v19071_v63, 0.0  ;;  %v864_v63 = vld [vmem:[%s24426_s3 + $0x20] sm:$0xff] }
 0x231   :  { %v784_v2 = vpop.f32.mrb[46].mxu0  ;;  %16516 = vmatpush3.bf16.msra.mxu1 %v20176_v46  ;;  %16716 = vmatpush3.bf16.msra.mxu0 %v20176_v46 }
 0x232   :  { %v19072_v3 = vadd.f32 %v20158_v15, %v784_v2  ;;  %v786_v4 = vpop.f32.mrb[47].mxu0  ;;  %v12866_v2 = vld [vmem:[%s24426_s3 + $0x2a0] sm:$0xff] }
 0x233   :  { %v12869_v4 = vld [vmem:[%s24426_s3 + $0x2b8] sm:$0xff] }
 0x234   :  { %v851_v6 = vmax.f32 %v19072_v3, 0.0  ;;  %v867_v3 = vld [vmem:[%s24426_s3 + $0x38] sm:$0xff] }
 0x235   :  { %v789_v7 = vpop.f32.mrb[48].mxu0 }
 0x236   :  { %v20224_v8 = vpack.c.bf16 %v851_v6, %v850_v5  ;;  %v791_v9 = vpop.f32.mrb[49].mxu0  ;;  %v19073_v11 = vadd.f32 %v20158_v15, %v789_v7  ;;  %v866_v5 = vld [vmem:[%s24426_s3 + $0x30] sm:$0xff]  ;;  %v869_v7 = vld [vmem:[%s24426_s3 + $0x48] sm:$0xff] }
 0x237   :  { %v12868_v6 = vld [vmem:[%s24426_s3 + $0x2b0] sm:$0xff]  ;;  %v12871_v9 = vld [vmem:[%s24426_s3 + $0x2c8] sm:$0xff] }
 0x238   :  { %16518 = vmatprep.subr.bf16.mxu1 %v20224_v8  ;;  %16718 = vmatprep.subr.bf16.mxu0 %v20224_v8  ;;  %v852_v16 = vmax.f32 %v19073_v11, 0.0  ;;  %v868_v11 = vld [vmem:[%s24426_s3 + $0x40] sm:$0xff] }
 0x239   :  { %v794_v12 = vpop.f32.mrb[50].mxu0  ;;  %16520 = vmatpush3.bf16.msra.mxu1 %v20180_v55  ;;  %16720 = vmatpush3.bf16.msra.mxu0 %v20180_v55 }
 0x23a   :  { %v19074_v13 = vadd.f32 %v20158_v15, %v794_v12  ;;  %v796_v14 = vpop.f32.mrb[51].mxu0  ;;  %v12870_v12 = vld [vmem:[%s24426_s3 + $0x2c0] sm:$0xff] }
 0x23b   :  { %v12873_v14 = vld [vmem:[%s24426_s3 + $0x2d8] sm:$0xff] }
 0x23c   :  { %v853_v17 = vmax.f32 %v19074_v13, 0.0  ;;  %v871_v13 = vld [vmem:[%s24426_s3 + $0x58] sm:$0xff] }
 0x23d   :  { %v799_v18 = vpop.f32.mrb[52].mxu0 }
 0x23e   :  { %v20232_v19 = vpack.c.bf16 %v853_v17, %v852_v16  ;;  %v801_v21 = vpop.f32.mrb[53].mxu0  ;;  %v19075_v22 = vadd.f32 %v20158_v15, %v799_v18  ;;  %v870_v16 = vld [vmem:[%s24426_s3 + $0x50] sm:$0xff]  ;;  %v873_v18 = vld [vmem:[%s24426_s3 + $0x68] sm:$0xff] }
 0x23f   :  { %v12872_v17 = vld [vmem:[%s24426_s3 + $0x2d0] sm:$0xff]  ;;  %v12875_v21 = vld [vmem:[%s24426_s3 + $0x2e8] sm:$0xff] }
 0x240   :  { %16522 = vmatprep.subr.bf16.mxu1 %v20232_v19  ;;  %16722 = vmatprep.subr.bf16.mxu0 %v20232_v19  ;;  %v854_v26 = vmax.f32 %v19075_v22, 0.0  ;;  %v872_v22 = vld [vmem:[%s24426_s3 + $0x60] sm:$0xff] }
 0x241   :  { %v804_v23 = vpop.f32.mrb[54].mxu0  ;;  %16524 = vmatpush3.bf16.msra.mxu1 %v20184_v1  ;;  %16724 = vmatpush3.bf16.msra.mxu0 %v20184_v1 }
 0x242   :  { %v19076_v24 = vadd.f32 %v20158_v15, %v804_v23  ;;  %v806_v25 = vpop.f32.mrb[55].mxu0  ;;  %v12874_v23 = vld [vmem:[%s24426_s3 + $0x2e0] sm:$0xff] }
 0x243   :  { %v12877_v25 = vld [vmem:[%s24426_s3 + $0x2f8] sm:$0xff] }
 0x244   :  { %v855_v28 = vmax.f32 %v19076_v24, 0.0  ;;  %v875_v24 = vld [vmem:[%s24426_s3 + $0x78] sm:$0xff] }
 0x245   :  { %v809_v30 = vpop.f32.mrb[56].mxu0 }
 0x246   :  { %v20240_v32 = vpack.c.bf16 %v855_v28, %v854_v26  ;;  %v811_v33 = vpop.f32.mrb[57].mxu0  ;;  %v19077_v34 = vadd.f32 %v20158_v15, %v809_v30  ;;  %v874_v26 = vld [vmem:[%s24426_s3 + $0x70] sm:$0xff]  ;;  %v12743_v30 = vld [vmem:[%s24426_s3 + $0x88] sm:$0xff] }
 0x247   :  { %v12876_v28 = vld [vmem:[%s24426_s3 + $0x2f0] sm:$0xff]  ;;  %v12891_v33 = vld [vmem:[%s24426_s3 + $0x308] sm:$0xff] }
 0x248   :  { %16526 = vmatprep.subr.bf16.mxu1 %v20240_v32  ;;  %16726 = vmatprep.subr.bf16.mxu0 %v20240_v32  ;;  %v856_v39 = vmax.f32 %v19077_v34, 0.0  ;;  %v12742_v34 = vld [vmem:[%s24426_s3 + $0x80] sm:$0xff] }
 0x249   :  { %v814_v35 = vpop.f32.mrb[58].mxu0  ;;  %16528 = vmatpush3.bf16.msra.mxu1 %v20188_v10  ;;  %16728 = vmatpush3.bf16.msra.mxu0 %v20188_v10 }
 0x24a   :  { %v19078_v36 = vadd.f32 %v20158_v15, %v814_v35  ;;  %v816_v38 = vpop.f32.mrb[59].mxu0  ;;  %v12890_v35 = vld [vmem:[%s24426_s3 + $0x300] sm:$0xff] }
 0x24b   :  { %v12893_v38 = vld [vmem:[%s24426_s3 + $0x318] sm:$0xff] }
 0x24c   :  { %v857_v40 = vmax.f32 %v19078_v36, 0.0  ;;  %v12745_v36 = vld [vmem:[%s24426_s3 + $0x98] sm:$0xff] }
 0x24d   :  { %v819_v42 = vpop.f32.mrb[60].mxu0 }
 0x24e   :  { %v20248_v43 = vpack.c.bf16 %v857_v40, %v856_v39  ;;  %v821_v44 = vpop.f32.mrb[61].mxu0  ;;  %v19079_v45 = vadd.f32 %v20158_v15, %v819_v42  ;;  %v12744_v39 = vld [vmem:[%s24426_s3 + $0x90] sm:$0xff]  ;;  %v12747_v42 = vld [vmem:[%s24426_s3 + $0xa8] sm:$0xff] }
 0x24f   :  { %v12892_v40 = vld [vmem:[%s24426_s3 + $0x310] sm:$0xff]  ;;  %v12895_v44 = vld [vmem:[%s24426_s3 + $0x328] sm:$0xff] }
 0x250   :  { %16530 = vmatprep.subr.bf16.mxu1 %v20248_v43  ;;  %16730 = vmatprep.subr.bf16.mxu0 %v20248_v43  ;;  %v858_v50 = vmax.f32 %v19079_v45, 0.0  ;;  %v12746_v45 = vld [vmem:[%s24426_s3 + $0xa0] sm:$0xff] }
 0x251   :  { %v824_v47 = vpop.f32.mrb[62].mxu0  ;;  %16532 = vmatpush3.bf16.msra.mxu1 %v20192_v20  ;;  %16732 = vmatpush3.bf16.msra.mxu0 %v20192_v20 }
 0x252   :  { %v19080_v48 = vadd.f32 %v20158_v15, %v824_v47  ;;  %v826_v49 = vpop.f32.mrb[63].mxu0  ;;  %v12862_v15 = vld [vmem:[%s24426_s3 + $0x280] sm:$0xff] }
 0x253   :  { %v12894_v47 = vld [vmem:[%s24426_s3 + $0x320] sm:$0xff]  ;;  %v12897_v49 = vld [vmem:[%s24426_s3 + $0x338] sm:$0xff] }
 0x254   :  { %v859_v52 = vmax.f32 %v19080_v48, 0.0  ;;  %v12749_v48 = vld [vmem:[%s24426_s3 + $0xb8] sm:$0xff] }
 0x256   :  { %v20256_v53 = vpack.c.bf16 %v859_v52, %v858_v50  ;;  %v12748_v50 = vld [vmem:[%s24426_s3 + $0xb0] sm:$0xff] }
 0x257   :  { %v12896_v52 = vld [vmem:[%s24426_s3 + $0x330] sm:$0xff] }
 0x258   :  { %16534 = vmatprep.subr.bf16.mxu1 %v20256_v53  ;;  %16734 = vmatprep.subr.bf16.mxu0 %v20256_v53 }
 0x259   :  { %16536 = vmatpush3.bf16.msra.mxu1 %v20196_v31  ;;  %16736 = vmatpush3.bf16.msra.mxu0 %v20196_v31 }
 0x25a   :  { %16538 = vmatprep.subr.bf16.mxu1 %v20200_v41  ;;  %16746 = vmatprep.subr.bf16.mxu0 %v20200_v41 }
 0x25c   :  { %941 = vmatmul.mubr.f32.vlgmr.msra.gmra.mrb[0].mxu1 %v860_v54  ;;  %2245 = vmatmul.mubr.f32.vlgmr.msra.gmra.mrb[64].mxu0 %v12862_v15  ;;  %v12751_v54 = vld [vmem:[%s24426_s3 + $0xc8] sm:$0xff] }
 0x25d   :  { %16540 = vmatpush3.bf16.msra.mxu1 %v20168_v27  ;;  %16748 = vmatpush3.bf16.msra.mxu0 %v20168_v27  ;;  %v12899_v15 = vld [vmem:[%s24426_s3 + $0x348] sm:$0xff] }
 0x25e   :  { %16542 = vmatprep.subr.bf16.mxu1 %v20208_v51  ;;  %16750 = vmatprep.subr.bf16.mxu0 %v20208_v51 }
 0x25f   :  { %945 = vmatprep.mubr.f32.mxu1 %v863_v56  ;;  %2249 = vmatprep.mubr.f32.mxu0 %v12865_v57  ;;  %v12750_v56 = vld [vmem:[%s24426_s3 + $0xc0] sm:$0xff] }
 0x260   :  { %946 = vmatmul.mubr.f32.gmra.mrb[2].mxu1 %v862_v58  ;;  %2250 = vmatmul.mubr.f32.gmra.mrb[66].mxu0 %v12864_v59  ;;  %v12898_v57 = vld [vmem:[%s24426_s3 + $0x340] sm:$0xff]  ;;  %v12753_v58 = vld [vmem:[%s24426_s3 + $0xd8] sm:$0xff] }
 0x261   :  { %16544 = vmatpush3.bf16.msra.mxu1 %v20172_v37  ;;  %16752 = vmatpush3.bf16.msra.mxu0 %v20172_v37  ;;  %v12901_v59 = vld [vmem:[%s24426_s3 + $0x358] sm:$0xff] }
 0x262   :  { %16546 = vmatprep.subr.bf16.mxu1 %v20216_v61  ;;  %16754 = vmatprep.subr.bf16.mxu0 %v20216_v61 }
 0x263   :  { %950 = vmatprep.mubr.f32.mxu1 %v865_v60  ;;  %2254 = vmatprep.mubr.f32.mxu0 %v12867_v62  ;;  %v12752_v60 = vld [vmem:[%s24426_s3 + $0xd0] sm:$0xff] }
 0x264   :  { %951 = vmatmul.mubr.f32.gmra.mrb[4].mxu1 %v864_v63  ;;  %2255 = vmatmul.mubr.f32.gmra.mrb[68].mxu0 %v12866_v2  ;;  %v12900_v62 = vld [vmem:[%s24426_s3 + $0x350] sm:$0xff]  ;;  %v12755_v63 = vld [vmem:[%s24426_s3 + $0xe8] sm:$0xff] }
 0x265   :  { %16548 = vmatpush3.bf16.msra.mxu1 %v20176_v46  ;;  %16756 = vmatpush3.bf16.msra.mxu0 %v20176_v46  ;;  %v12903_v2 = vld [vmem:[%s24426_s3 + $0x368] sm:$0xff] }
 0x266   :  { %16550 = vmatprep.subr.bf16.mxu1 %v20224_v8  ;;  %16758 = vmatprep.subr.bf16.mxu0 %v20224_v8 }
 0x267   :  { %955 = vmatprep.mubr.f32.mxu1 %v867_v3  ;;  %2259 = vmatprep.mubr.f32.mxu0 %v12869_v4  ;;  %v12754_v3 = vld [vmem:[%s24426_s3 + $0xe0] sm:$0xff] }
 0x268   :  { %956 = vmatmul.mubr.f32.gmra.mrb[6].mxu1 %v866_v5  ;;  %2260 = vmatmul.mubr.f32.gmra.mrb[70].mxu0 %v12868_v6  ;;  %v12902_v4 = vld [vmem:[%s24426_s3 + $0x360] sm:$0xff]  ;;  %v12757_v5 = vld [vmem:[%s24426_s3 + $0xf8] sm:$0xff] }
 0x269   :  { %16552 = vmatpush3.bf16.msra.mxu1 %v20180_v55  ;;  %16760 = vmatpush3.bf16.msra.mxu0 %v20180_v55  ;;  %v12905_v6 = vld [vmem:[%s24426_s3 + $0x378] sm:$0xff] }
 0x26a   :  { %16554 = vmatprep.subr.bf16.mxu1 %v20232_v19  ;;  %16762 = vmatprep.subr.bf16.mxu0 %v20232_v19 }
 0x26b   :  { %960 = vmatprep.mubr.f32.mxu1 %v869_v7  ;;  %2264 = vmatprep.mubr.f32.mxu0 %v12871_v9  ;;  %v12756_v7 = vld [vmem:[%s24426_s3 + $0xf0] sm:$0xff] }
 0x26c   :  { %961 = vmatmul.mubr.f32.gmra.mrb[8].mxu1 %v868_v11  ;;  %2265 = vmatmul.mubr.f32.gmra.mrb[72].mxu0 %v12870_v12  ;;  %v12904_v9 = vld [vmem:[%s24426_s3 + $0x370] sm:$0xff]  ;;  %v12947_v11 = vld [vmem:[%s24426_s3 + $0x408] sm:$0xff]  ;;  %v12946_v12 = vld [vmem:[%s24426_s3 + $0x400] sm:$0xff] }
 0x26d   :  { %16556 = vmatpush3.bf16.msra.mxu1 %v20184_v1  ;;  %16764 = vmatpush3.bf16.msra.mxu0 %v20184_v1 }
 0x26e   :  { %16558 = vmatprep.subr.bf16.mxu1 %v20240_v32  ;;  %16766 = vmatprep.subr.bf16.mxu0 %v20240_v32 }
 0x26f   :  { %965 = vmatprep.mubr.f32.mxu1 %v871_v13  ;;  %2269 = vmatprep.mubr.f32.mxu0 %v12873_v14  ;;  %v12949_v13 = vld [vmem:[%s24426_s3 + $0x418] sm:$0xff]  ;;  %v12948_v14 = vld [vmem:[%s24426_s3 + $0x410] sm:$0xff] }
 0x270   :  { %966 = vmatmul.mubr.f32.gmra.mrb[10].mxu1 %v870_v16  ;;  %2270 = vmatmul.mubr.f32.gmra.mrb[74].mxu0 %v12872_v17  ;;  %v12951_v16 = vld [vmem:[%s24426_s3 + $0x428] sm:$0xff]  ;;  %v12950_v17 = vld [vmem:[%s24426_s3 + $0x420] sm:$0xff] }
 0x271   :  { %16560 = vmatpush3.bf16.msra.mxu1 %v20188_v10  ;;  %16768 = vmatpush3.bf16.msra.mxu0 %v20188_v10 }
 0x272   :  { %16562 = vmatprep.subr.bf16.mxu1 %v20248_v43  ;;  %16770 = vmatprep.subr.bf16.mxu0 %v20248_v43 }
 0x273   :  { %970 = vmatprep.mubr.f32.mxu1 %v873_v18  ;;  %2274 = vmatprep.mubr.f32.mxu0 %v12875_v21  ;;  %v12953_v18 = vld [vmem:[%s24426_s3 + $0x438] sm:$0xff]  ;;  %v12952_v21 = vld [vmem:[%s24426_s3 + $0x430] sm:$0xff] }
 0x274   :  { %971 = vmatmul.mubr.f32.gmra.mrb[12].mxu1 %v872_v22  ;;  %2275 = vmatmul.mubr.f32.gmra.mrb[76].mxu0 %v12874_v23  ;;  %v12955_v22 = vld [vmem:[%s24426_s3 + $0x448] sm:$0xff]  ;;  %v12954_v23 = vld [vmem:[%s24426_s3 + $0x440] sm:$0xff] }
 0x275   :  { %16564 = vmatpush3.bf16.msra.mxu1 %v20192_v20  ;;  %16772 = vmatpush3.bf16.msra.mxu0 %v20192_v20 }
 0x276   :  { %16566 = vmatprep.subr.bf16.mxu1 %v20256_v53  ;;  %16774 = vmatprep.subr.bf16.mxu0 %v20256_v53 }
 0x277   :  { %975 = vmatprep.mubr.f32.mxu1 %v875_v24  ;;  %2279 = vmatprep.mubr.f32.mxu0 %v12877_v25  ;;  %v12957_v24 = vld [vmem:[%s24426_s3 + $0x458] sm:$0xff]  ;;  %v12956_v25 = vld [vmem:[%s24426_s3 + $0x450] sm:$0xff] }
 0x278   :  { %976 = vmatmul.mubr.f32.gmra.mrb[14].mxu1 %v874_v26  ;;  %2280 = vmatmul.mubr.f32.gmra.mrb[78].mxu0 %v12876_v28  ;;  %v12959_v26 = vld [vmem:[%s24426_s3 + $0x468] sm:$0xff]  ;;  %v12958_v28 = vld [vmem:[%s24426_s3 + $0x460] sm:$0xff] }
 0x279   :  { %16568 = vmatpush3.bf16.msra.mxu1 %v20196_v31  ;;  %16776 = vmatpush3.bf16.msra.mxu0 %v20196_v31 }
 0x27a   :  { %16826 = vmatprep.subr.bf16.mxu0 %v20200_v41  ;;  %1066 = vmatprep.mubr.f32.mxu1 %v12743_v30  ;;  %v12961_v30 = vld [vmem:[%s24426_s3 + $0x478] sm:$0xff] }
 0x27b   :  { %2508 = vmatprep.mubr.f32.mxu0 %v12891_v33  ;;  %v12960_v33 = vld [vmem:[%s24426_s3 + $0x470] sm:$0xff] }
 0x27c   :  { %1067 = vmatmul.mubr.f32.vlgmr.msra.gmra.mrb[16].mxu1 %v12742_v34  ;;  %2509 = vmatmul.mubr.f32.vlgmr.msra.gmra.mrb[80].mxu0 %v12890_v35  ;;  %v12975_v34 = vld [vmem:[%s24426_s3 + $0x488] sm:$0xff]  ;;  %v12974_v35 = vld [vmem:[%s24426_s3 + $0x480] sm:$0xff] }
 0x27d   :  { %16828 = vmatpush3.bf16.msra.mxu0 %v20168_v27  ;;  %1071 = vmatprep.mubr.f32.mxu1 %v12745_v36  ;;  %v12977_v36 = vld [vmem:[%s24426_s3 + $0x498] sm:$0xff] }
 0x27e   :  { %16830 = vmatprep.subr.bf16.mxu0 %v20208_v51  ;;  %2513 = vmatprep.mubr.f32.mxu0 %v12893_v38  ;;  %v12976_v38 = vld [vmem:[%s24426_s3 + $0x490] sm:$0xff] }
 0x280   :  { %1072 = vmatmul.mubr.f32.gmra.mrb[18].mxu1 %v12744_v39  ;;  %2514 = vmatmul.mubr.f32.gmra.mrb[82].mxu0 %v12892_v40  ;;  %v12979_v39 = vld [vmem:[%s24426_s3 + $0x4a8] sm:$0xff]  ;;  %v12978_v40 = vld [vmem:[%s24426_s3 + $0x4a0] sm:$0xff] }
 0x281   :  { %16832 = vmatpush3.bf16.msra.mxu0 %v20172_v37  ;;  %1076 = vmatprep.mubr.f32.mxu1 %v12747_v42  ;;  %v12981_v42 = vld [vmem:[%s24426_s3 + $0x4b8] sm:$0xff] }
 0x282   :  { %16834 = vmatprep.subr.bf16.mxu0 %v20216_v61  ;;  %2518 = vmatprep.mubr.f32.mxu0 %v12895_v44  ;;  %v12980_v44 = vld [vmem:[%s24426_s3 + $0x4b0] sm:$0xff] }
 0x284   :  { %1077 = vmatmul.mubr.f32.gmra.mrb[20].mxu1 %v12746_v45  ;;  %2519 = vmatmul.mubr.f32.gmra.mrb[84].mxu0 %v12894_v47  ;;  %v12983_v45 = vld [vmem:[%s24426_s3 + $0x4c8] sm:$0xff]  ;;  %v12982_v47 = vld [vmem:[%s24426_s3 + $0x4c0] sm:$0xff] }
 0x285   :  { %16836 = vmatpush3.bf16.msra.mxu0 %v20176_v46  ;;  %1081 = vmatprep.mubr.f32.mxu1 %v12749_v48  ;;  %v12985_v48 = vld [vmem:[%s24426_s3 + $0x4d8] sm:$0xff] }
 0x286   :  { %16838 = vmatprep.subr.bf16.mxu0 %v20224_v8  ;;  %2523 = vmatprep.mubr.f32.mxu0 %v12897_v49  ;;  %v12758_v49 = vld [vmem:[%s24427_s4 + $0x20] sm:$0xff] }
 0x288   :  { %1082 = vmatmul.mubr.f32.gmra.mrb[22].mxu1 %v12748_v50  ;;  %2524 = vmatmul.mubr.f32.gmra.mrb[86].mxu0 %v12896_v52  ;;  %v12759_v50 = vld [vmem:[%s24427_s4 + $0x28] sm:$0xff] }
 0x289   :  { %16840 = vmatpush3.bf16.msra.mxu0 %v20180_v55  ;;  %1086 = vmatprep.mubr.f32.mxu1 %v12751_v54  ;;  %v16569_v52 = vpack.c.bf16 %v12759_v50, %v12758_v49  ;;  %v12984_v54 = vld [vmem:[%s24426_s3 + $0x4d0] sm:$0xff]  ;;  %v13087_v49 = vld [vmem:[%s24426_s3 + $0x688] sm:$0xff]  ;;  %v13086_v50 = vld [vmem:[%s24426_s3 + $0x680] sm:$0xff] }
 0x28a   :  { %16842 = vmatprep.subr.bf16.mxu0 %v20232_v19  ;;  %2528 = vmatprep.mubr.f32.mxu0 %v12899_v15  ;;  %v12987_v15 = vld [vmem:[%s24426_s3 + $0x4e8] sm:$0xff] }
 0x28b   :  { %16570 = vmatprep.subr.bf16.mxu1 %v16569_v52 }
 0x28c   :  { %1087 = vmatmul.mubr.f32.gmra.mrb[24].mxu1 %v12750_v56  ;;  %2529 = vmatmul.mubr.f32.gmra.mrb[88].mxu0 %v12898_v57  ;;  %v12760_v56 = vld [vmem:[%s24427_s4 + $0x30] sm:$0xff]  ;;  %v12761_v57 = vld [vmem:[%s24427_s4 + $0x38] sm:$0xff] }
 0x28d   :  { %16844 = vmatpush3.bf16.msra.mxu0 %v20184_v1  ;;  %1091 = vmatprep.mubr.f32.mxu1 %v12753_v58  ;;  %v16573_v58 = vpack.c.bf16 %v12761_v57, %v12760_v56  ;;  %v13090_v56 = vld [vmem:[%s24426_s3 + $0x6a0] sm:$0xff]  ;;  %v13093_v57 = vld [vmem:[%s24426_s3 + $0x6b8] sm:$0xff] }
 0x28e   :  { %16846 = vmatprep.subr.bf16.mxu0 %v20240_v32  ;;  %2533 = vmatprep.mubr.f32.mxu0 %v12901_v59  ;;  %v12986_v59 = vld [vmem:[%s24426_s3 + $0x4e0] sm:$0xff] }
 0x28f   :  { %16572 = vmatpush3.bf16.msra.mxu1 %v16569_v52  ;;  %v13089_v52 = vld [vmem:[%s24426_s3 + $0x698] sm:$0xff] }
 0x290   :  { %1092 = vmatmul.mubr.f32.gmra.mrb[26].mxu1 %v12752_v60  ;;  %2534 = vmatmul.mubr.f32.gmra.mrb[90].mxu0 %v12900_v62  ;;  %v12989_v60 = vld [vmem:[%s24426_s3 + $0x4f8] sm:$0xff]  ;;  %v981_v62 = vld [vmem:[%s24427_s4] sm:$0xff] }
 0x291   :  { %16848 = vmatpush3.bf16.msra.mxu0 %v20188_v10  ;;  %1096 = vmatprep.mubr.f32.mxu1 %v12755_v63  ;;  %v982_v63 = vld [vmem:[%s24427_s4 + $0x8] sm:$0xff] }
 0x292   :  { %16850 = vmatprep.subr.bf16.mxu0 %v20248_v43  ;;  %2538 = vmatprep.mubr.f32.mxu0 %v12903_v2  ;;  %v20636_v2 = vpack.c.bf16 %v982_v63, %v981_v62  ;;  %v13097_v62 = vld [vmem:[%s24426_s3 + $0x6d8] sm:$0xff]  ;;  %v13096_v63 = vld [vmem:[%s24426_s3 + $0x6d0] sm:$0xff] }
 0x293   :  { %16574 = vmatprep.subr.bf16.mxu1 %v16573_v58 }
 0x294   :  { %1097 = vmatmul.mubr.f32.gmra.mrb[28].mxu1 %v12754_v3  ;;  %2539 = vmatmul.mubr.f32.gmra.mrb[92].mxu0 %v12902_v4  ;;  %v12988_v3 = vld [vmem:[%s24426_s3 + $0x4f0] sm:$0xff]  ;;  %v13003_v4 = vld [vmem:[%s24426_s3 + $0x508] sm:$0xff] }
 0x295   :  { %16852 = vmatpush3.bf16.msra.mxu0 %v20192_v20  ;;  %1101 = vmatprep.mubr.f32.mxu1 %v12757_v5  ;;  %v13002_v5 = vld [vmem:[%s24426_s3 + $0x500] sm:$0xff] }
 0x296   :  { %16854 = vmatprep.subr.bf16.mxu0 %v20256_v53  ;;  %2543 = vmatprep.mubr.f32.mxu0 %v12905_v6  ;;  %v13005_v6 = vld [vmem:[%s24426_s3 + $0x518] sm:$0xff] }
 0x297   :  { %16576 = vmatpush3.bf16.msra.mxu1 %v16573_v58  ;;  %v13092_v58 = vld [vmem:[%s24426_s3 + $0x6b0] sm:$0xff] }
 0x298   :  { %1102 = vmatmul.mubr.f32.gmra.mrb[30].mxu1 %v12756_v7  ;;  %2544 = vmatmul.mubr.f32.gmra.mrb[94].mxu0 %v12904_v9  ;;  %v13004_v7 = vld [vmem:[%s24426_s3 + $0x510] sm:$0xff]  ;;  %v13007_v9 = vld [vmem:[%s24426_s3 + $0x528] sm:$0xff] }
 0x299   :  { %16856 = vmatpush3.bf16.msra.mxu0 %v20196_v31  ;;  %3036 = vmatprep.mubr.f32.mxu0 %v12947_v11  ;;  %v13006_v11 = vld [vmem:[%s24426_s3 + $0x520] sm:$0xff] }
 0x29a   :  { %16866 = vmatprep.subr.bf16.mxu0 %v20200_v41  ;;  %16578 = vmatprep.subr.bf16.mxu1 %v20636_v2 }
 0x29c   :  { %3037 = vmatmul.mubr.f32.vlgmr.msra.gmra.mrb[96].mxu0 %v12946_v12  ;;  %v13009_v12 = vld [vmem:[%s24426_s3 + $0x538] sm:$0xff] }
 0x29d   :  { %16868 = vmatpush3.bf16.msra.mxu0 %v20168_v27  ;;  %3041 = vmatprep.mubr.f32.mxu0 %v12949_v13  ;;  %v13008_v13 = vld [vmem:[%s24426_s3 + $0x530] sm:$0xff] }
 0x29e   :  { %16870 = vmatprep.subr.bf16.mxu0 %v20208_v51 }
 0x2a0   :  { %3042 = vmatmul.mubr.f32.gmra.mrb[98].mxu0 %v12948_v14  ;;  %v13011_v14 = vld [vmem:[%s24426_s3 + $0x548] sm:$0xff] }
 0x2a1   :  { %16872 = vmatpush3.bf16.msra.mxu0 %v20172_v37  ;;  %3046 = vmatprep.mubr.f32.mxu0 %v12951_v16  ;;  %v13010_v16 = vld [vmem:[%s24426_s3 + $0x540] sm:$0xff] }
 0x2a2   :  { %16874 = vmatprep.subr.bf16.mxu0 %v20216_v61 }
 0x2a4   :  { %3047 = vmatmul.mubr.f32.gmra.mrb[100].mxu0 %v12950_v17  ;;  %v13013_v17 = vld [vmem:[%s24426_s3 + $0x558] sm:$0xff] }
 0x2a5   :  { %16876 = vmatpush3.bf16.msra.mxu0 %v20176_v46  ;;  %3051 = vmatprep.mubr.f32.mxu0 %v12953_v18  ;;  %v13012_v18 = vld [vmem:[%s24426_s3 + $0x550] sm:$0xff] }
 0x2a6   :  { %16878 = vmatprep.subr.bf16.mxu0 %v20224_v8 }
 0x2a8   :  { %3052 = vmatmul.mubr.f32.gmra.mrb[102].mxu0 %v12952_v21  ;;  %v13015_v21 = vld [vmem:[%s24426_s3 + $0x568] sm:$0xff] }
 0x2a9   :  { %16880 = vmatpush3.bf16.msra.mxu0 %v20180_v55  ;;  %3056 = vmatprep.mubr.f32.mxu0 %v12955_v22  ;;  %v13014_v22 = vld [vmem:[%s24426_s3 + $0x560] sm:$0xff] }
 0x2aa   :  { %16882 = vmatprep.subr.bf16.mxu0 %v20232_v19 }
 0x2ac   :  { %3057 = vmatmul.mubr.f32.gmra.mrb[104].mxu0 %v12954_v23  ;;  %v13017_v23 = vld [vmem:[%s24426_s3 + $0x578] sm:$0xff] }
 0x2ad   :  { %16884 = vmatpush3.bf16.msra.mxu0 %v20184_v1  ;;  %3061 = vmatprep.mubr.f32.mxu0 %v12957_v24  ;;  %v13016_v24 = vld [vmem:[%s24426_s3 + $0x570] sm:$0xff] }
 0x2ae   :  { %16886 = vmatprep.subr.bf16.mxu0 %v20240_v32 }
 0x2b0   :  { %3062 = vmatmul.mubr.f32.gmra.mrb[106].mxu0 %v12956_v25  ;;  %v13031_v25 = vld [vmem:[%s24426_s3 + $0x588] sm:$0xff] }
 0x2b1   :  { %16888 = vmatpush3.bf16.msra.mxu0 %v20188_v10  ;;  %3066 = vmatprep.mubr.f32.mxu0 %v12959_v26  ;;  %v13030_v26 = vld [vmem:[%s24426_s3 + $0x580] sm:$0xff] }
 0x2b2   :  { %16890 = vmatprep.subr.bf16.mxu0 %v20248_v43 }
 0x2b4   :  { %3067 = vmatmul.mubr.f32.gmra.mrb[108].mxu0 %v12958_v28  ;;  %v13033_v28 = vld [vmem:[%s24426_s3 + $0x598] sm:$0xff] }
 0x2b5   :  { %16892 = vmatpush3.bf16.msra.mxu0 %v20192_v20  ;;  %3071 = vmatprep.mubr.f32.mxu0 %v12961_v30  ;;  %v13032_v30 = vld [vmem:[%s24426_s3 + $0x590] sm:$0xff] }
 0x2b6   :  { %16894 = vmatprep.subr.bf16.mxu0 %v20256_v53 }
 0x2b8   :  { %3072 = vmatmul.mubr.f32.gmra.mrb[110].mxu0 %v12960_v33  ;;  %v13035_v33 = vld [vmem:[%s24426_s3 + $0x5a8] sm:$0xff] }
 0x2b9   :  { %16896 = vmatpush3.bf16.msra.mxu0 %v20196_v31  ;;  %3300 = vmatprep.mubr.f32.mxu0 %v12975_v34  ;;  %v13034_v34 = vld [vmem:[%s24426_s3 + $0x5a0] sm:$0xff] }
 0x2ba   :  { %16906 = vmatprep.subr.bf16.mxu0 %v20200_v41 }
 0x2bc   :  { %3301 = vmatmul.mubr.f32.vlgmr.msra.gmra.mrb[112].mxu0 %v12974_v35  ;;  %v13037_v35 = vld [vmem:[%s24426_s3 + $0x5b8] sm:$0xff] }
 0x2bd   :  { %16908 = vmatpush3.bf16.msra.mxu0 %v20168_v27  ;;  %3305 = vmatprep.mubr.f32.mxu0 %v12977_v36  ;;  %v13036_v36 = vld [vmem:[%s24426_s3 + $0x5b0] sm:$0xff] }
 0x2be   :  { %16910 = vmatprep.subr.bf16.mxu0 %v20208_v51 }
 0x2c0   :  { %3306 = vmatmul.mubr.f32.gmra.mrb[114].mxu0 %v12976_v38  ;;  %v13039_v38 = vld [vmem:[%s24426_s3 + $0x5c8] sm:$0xff] }
 0x2c1   :  { %16912 = vmatpush3.bf16.msra.mxu0 %v20172_v37  ;;  %3310 = vmatprep.mubr.f32.mxu0 %v12979_v39  ;;  %v13038_v39 = vld [vmem:[%s24426_s3 + $0x5c0] sm:$0xff] }
 0x2c2   :  { %16914 = vmatprep.subr.bf16.mxu0 %v20216_v61 }
 0x2c4   :  { %3311 = vmatmul.mubr.f32.gmra.mrb[116].mxu0 %v12978_v40  ;;  %v13041_v40 = vld [vmem:[%s24426_s3 + $0x5d8] sm:$0xff] }
 0x2c5   :  { %16916 = vmatpush3.bf16.msra.mxu0 %v20176_v46  ;;  %3315 = vmatprep.mubr.f32.mxu0 %v12981_v42  ;;  %v13040_v42 = vld [vmem:[%s24426_s3 + $0x5d0] sm:$0xff] }
 0x2c6   :  { %16918 = vmatprep.subr.bf16.mxu0 %v20224_v8 }
 0x2c8   :  { %3316 = vmatmul.mubr.f32.gmra.mrb[118].mxu0 %v12980_v44  ;;  %v13043_v44 = vld [vmem:[%s24426_s3 + $0x5e8] sm:$0xff] }
 0x2c9   :  { %16920 = vmatpush3.bf16.msra.mxu0 %v20180_v55  ;;  %3320 = vmatprep.mubr.f32.mxu0 %v12983_v45  ;;  %v13042_v45 = vld [vmem:[%s24426_s3 + $0x5e0] sm:$0xff] }
 0x2ca   :  { %16922 = vmatprep.subr.bf16.mxu0 %v20232_v19 }
 0x2cc   :  { %3321 = vmatmul.mubr.f32.gmra.mrb[120].mxu0 %v12982_v47  ;;  %v13045_v47 = vld [vmem:[%s24426_s3 + $0x5f8] sm:$0xff] }
 0x2cd   :  { %16924 = vmatpush3.bf16.msra.mxu0 %v20184_v1  ;;  %3325 = vmatprep.mubr.f32.mxu0 %v12985_v48  ;;  %v13044_v48 = vld [vmem:[%s24426_s3 + $0x5f0] sm:$0xff] }
 0x2ce   :  { %16926 = vmatprep.subr.bf16.mxu0 %v20240_v32 }
 0x2d0   :  { %3326 = vmatmul.mubr.f32.gmra.mrb[122].mxu0 %v12984_v54  ;;  %v13088_v54 = vld [vmem:[%s24426_s3 + $0x690] sm:$0xff] }
 0x2d1   :  { %16928 = vmatpush3.bf16.msra.mxu0 %v20188_v10  ;;  %3330 = vmatprep.mubr.f32.mxu0 %v12987_v15  ;;  %v13091_v15 = vld [vmem:[%s24426_s3 + $0x6a8] sm:$0xff] }
 0x2d2   :  { %16930 = vmatprep.subr.bf16.mxu0 %v20248_v43 }
 0x2d4   :  { %3331 = vmatmul.mubr.f32.gmra.mrb[124].mxu0 %v12986_v59  ;;  %v13095_v59 = vld [vmem:[%s24426_s3 + $0x6c8] sm:$0xff] }
 0x2d5   :  { %16932 = vmatpush3.bf16.msra.mxu0 %v20192_v20  ;;  %3335 = vmatprep.mubr.f32.mxu0 %v12989_v60  ;;  %v13094_v60 = vld [vmem:[%s24426_s3 + $0x6c0] sm:$0xff] }
 0x2d6   :  { %16934 = vmatprep.subr.bf16.mxu0 %v20256_v53 }
 0x2d8   :  { %3336 = vmatmul.mubr.f32.gmra.mrb[126].mxu0 %v12988_v3  ;;  %v13099_v3 = vld [vmem:[%s24426_s3 + $0x6e8] sm:$0xff] }
 0x2d9   :  { %16936 = vmatpush3.bf16.msra.mxu0 %v20196_v31  ;;  %3564 = vmatprep.mubr.f32.mxu0 %v13003_v4 }
 0x2da   :  { %16946 = vmatprep.subr.bf16.mxu0 %v20200_v41 }
 0x2dc   :  { %3565 = vmatmul.mubr.f32.vlgmr.msra.gmra.mrb[128].mxu0 %v13002_v5 }
 0x2dd   :  { %16948 = vmatpush3.bf16.msra.mxu0 %v20168_v27  ;;  %3569 = vmatprep.mubr.f32.mxu0 %v13005_v6 }
 0x2de   :  { %16950 = vmatprep.subr.bf16.mxu0 %v20208_v51 }
 0x2e0   :  { %3570 = vmatmul.mubr.f32.gmra.mrb[130].mxu0 %v13004_v7  ;;  %v13098_v7 = vld [vmem:[%s24426_s3 + $0x6e0] sm:$0xff] }
 0x2e1   :  { %16952 = vmatpush3.bf16.msra.mxu0 %v20172_v37  ;;  %3574 = vmatprep.mubr.f32.mxu0 %v13007_v9  ;;  %v13101_v9 = vld [vmem:[%s24426_s3 + $0x6f8] sm:$0xff] }
 0x2e2   :  { %16954 = vmatprep.subr.bf16.mxu0 %v20216_v61 }
 0x2e4   :  { %3575 = vmatmul.mubr.f32.gmra.mrb[132].mxu0 %v13006_v11 }
 0x2e5   :  { %16956 = vmatpush3.bf16.msra.mxu0 %v20176_v46  ;;  %3579 = vmatprep.mubr.f32.mxu0 %v13009_v12 }
 0x2e6   :  { %16958 = vmatprep.subr.bf16.mxu0 %v20224_v8 }
 0x2e8   :  { %3580 = vmatmul.mubr.f32.gmra.mrb[134].mxu0 %v13008_v13 }
 0x2e9   :  { %16960 = vmatpush3.bf16.msra.mxu0 %v20180_v55  ;;  %3584 = vmatprep.mubr.f32.mxu0 %v13011_v14  ;;  %v13100_v14 = vld [vmem:[%s24426_s3 + $0x6f0] sm:$0xff] }
 0x2ea   :  { %16962 = vmatprep.subr.bf16.mxu0 %v20232_v19 }
 0x2ec   :  { %3585 = vmatmul.mubr.f32.gmra.mrb[136].mxu0 %v13010_v16  ;;  %v13115_v16 = vld [vmem:[%s24426_s3 + $0x708] sm:$0xff] }
 0x2ed   :  { %16964 = vmatpush3.bf16.msra.mxu0 %v20184_v1  ;;  %3589 = vmatprep.mubr.f32.mxu0 %v13013_v17 }
 0x2ee   :  { %16966 = vmatprep.subr.bf16.mxu0 %v20240_v32 }
 0x2f0   :  { %3590 = vmatmul.mubr.f32.gmra.mrb[138].mxu0 %v13012_v18 }
 0x2f1   :  { %16968 = vmatpush3.bf16.msra.mxu0 %v20188_v10  ;;  %3594 = vmatprep.mubr.f32.mxu0 %v13015_v21 }
 0x2f2   :  { %16970 = vmatprep.subr.bf16.mxu0 %v20248_v43 }
 0x2f4   :  { %3595 = vmatmul.mubr.f32.gmra.mrb[140].mxu0 %v13014_v22  ;;  %v13114_v22 = vld [vmem:[%s24426_s3 + $0x700] sm:$0xff] }
 0x2f5   :  { %16972 = vmatpush3.bf16.msra.mxu0 %v20192_v20  ;;  %3599 = vmatprep.mubr.f32.mxu0 %v13017_v23 }
 0x2f6   :  { %16974 = vmatprep.subr.bf16.mxu0 %v20256_v53 }
 0x2f8   :  { %3600 = vmatmul.mubr.f32.gmra.mrb[142].mxu0 %v13016_v24 }
 0x2f9   :  { %16976 = vmatpush3.bf16.msra.mxu0 %v20196_v31  ;;  %3828 = vmatprep.mubr.f32.mxu0 %v13031_v25 }
 0x2fa   :  { %17026 = vmatprep.subr.bf16.mxu0 %v20200_v41 }
 0x2fc   :  { %3829 = vmatmul.mubr.f32.vlgmr.msra.gmra.mrb[144].mxu0 %v13030_v26 }
 0x2fd   :  { %17028 = vmatpush3.bf16.msra.mxu0 %v20168_v27  ;;  %3833 = vmatprep.mubr.f32.mxu0 %v13033_v28 }
 0x2fe   :  { %17030 = vmatprep.subr.bf16.mxu0 %v20208_v51 }
 0x300   :  { %3834 = vmatmul.mubr.f32.gmra.mrb[146].mxu0 %v13032_v30 }
 0x301   :  { %17032 = vmatpush3.bf16.msra.mxu0 %v20172_v37  ;;  %3838 = vmatprep.mubr.f32.mxu0 %v13035_v33 }
 0x302   :  { %17034 = vmatprep.subr.bf16.mxu0 %v20216_v61 }
 0x304   :  { %3839 = vmatmul.mubr.f32.gmra.mrb[148].mxu0 %v13034_v34 }
 0x305   :  { %17036 = vmatpush3.bf16.msra.mxu0 %v20176_v46  ;;  %3843 = vmatprep.mubr.f32.mxu0 %v13037_v35 }
 0x306   :  { %17038 = vmatprep.subr.bf16.mxu0 %v20224_v8 }
 0x308   :  { %3844 = vmatmul.mubr.f32.gmra.mrb[150].mxu0 %v13036_v36 }
 0x309   :  { %17040 = vmatpush3.bf16.msra.mxu0 %v20180_v55  ;;  %3848 = vmatprep.mubr.f32.mxu0 %v13039_v38 }
 0x30a   :  { %17042 = vmatprep.subr.bf16.mxu0 %v20232_v19 }
 0x30c   :  { %3849 = vmatmul.mubr.f32.gmra.mrb[152].mxu0 %v13038_v39 }
 0x30d   :  { %17044 = vmatpush3.bf16.msra.mxu0 %v20184_v1  ;;  %3853 = vmatprep.mubr.f32.mxu0 %v13041_v40 }
 0x30e   :  { %17046 = vmatprep.subr.bf16.mxu0 %v20240_v32 }
 0x310   :  { %3854 = vmatmul.mubr.f32.gmra.mrb[154].mxu0 %v13040_v42 }
 0x311   :  { %17048 = vmatpush3.bf16.msra.mxu0 %v20188_v10  ;;  %3858 = vmatprep.mubr.f32.mxu0 %v13043_v44 }
 0x312   :  { %17050 = vmatprep.subr.bf16.mxu0 %v20248_v43 }
 0x314   :  { %3859 = vmatmul.mubr.f32.gmra.mrb[156].mxu0 %v13042_v45 }
 0x315   :  { %17052 = vmatpush3.bf16.msra.mxu0 %v20192_v20  ;;  %3863 = vmatprep.mubr.f32.mxu0 %v13045_v47 }
 0x316   :  { %17054 = vmatprep.subr.bf16.mxu0 %v20256_v53 }
 0x318   :  { %3864 = vmatmul.mubr.f32.gmra.mrb[158].mxu0 %v13044_v48 }
 0x319   :  { %17056 = vmatpush3.bf16.msra.mxu0 %v20196_v31  ;;  %4356 = vmatprep.mubr.f32.mxu0 %v13087_v49  ;;  %v983_v49 = vld [vmem:[%s24427_s4 + $0x10] sm:$0xff] }
 0x31a   :  { %17066 = vmatprep.subr.bf16.mxu0 %v20200_v41 }
 0x31c   :  { %4357 = vmatmul.mubr.f32.vlgmr.msra.gmra.mrb[160].mxu0 %v13086_v50  ;;  %v984_v50 = vld [vmem:[%s24427_s4 + $0x18] sm:$0xff] }
 0x31d   :  { %17068 = vmatpush3.bf16.msra.mxu0 %v20168_v27  ;;  %4361 = vmatprep.mubr.f32.mxu0 %v13089_v52 }
 0x31e   :  { %17070 = vmatprep.subr.bf16.mxu0 %v20208_v51 }
 0x320   :  { %4362 = vmatmul.mubr.f32.gmra.mrb[162].mxu0 %v13088_v54 }
 0x321   :  { %17072 = vmatpush3.bf16.msra.mxu0 %v20172_v37  ;;  %4366 = vmatprep.mubr.f32.mxu0 %v13091_v15 }
 0x322   :  { %17074 = vmatprep.subr.bf16.mxu0 %v20216_v61 }
 0x324   :  { %4367 = vmatmul.mubr.f32.gmra.mrb[164].mxu0 %v13090_v56  ;;  %v16581_v56 = vpack.c.bf16 %v984_v50, %v983_v49 }
 0x325   :  { %17076 = vmatpush3.bf16.msra.mxu0 %v20176_v46  ;;  %4371 = vmatprep.mubr.f32.mxu0 %v13093_v57 }
 0x326   :  { %17078 = vmatprep.subr.bf16.mxu0 %v20224_v8 }
 0x328   :  { %4372 = vmatmul.mubr.f32.gmra.mrb[166].mxu0 %v13092_v58 }
 0x329   :  { %17080 = vmatpush3.bf16.msra.mxu0 %v20180_v55  ;;  %4376 = vmatprep.mubr.f32.mxu0 %v13095_v59 }
 0x32a   :  { %17082 = vmatprep.subr.bf16.mxu0 %v20232_v19 }
 0x32c   :  { %4377 = vmatmul.mubr.f32.gmra.mrb[168].mxu0 %v13094_v60 }
 0x32d   :  { %17084 = vmatpush3.bf16.msra.mxu0 %v20184_v1  ;;  %4381 = vmatprep.mubr.f32.mxu0 %v13097_v62 }
 0x32e   :  { %17086 = vmatprep.subr.bf16.mxu0 %v20240_v32 }
 0x32f   :  { %v13899_v4 = vpop.f32.mrb[0].mxu1 }
 0x330   :  { %v13900_v5 = vpop.f32.mrb[1].mxu1  ;;  %4382 = vmatmul.mubr.f32.gmra.mrb[170].mxu0 %v13096_v63 }
 0x331   :  { %v20823_v6 = vadd.f32 %v13900_v5, %v13899_v4  ;;  %17088 = vmatpush3.bf16.msra.mxu0 %v20188_v10  ;;  %4386 = vmatprep.mubr.f32.mxu0 %v13099_v3 }
 0x332   :  { %17090 = vmatprep.subr.bf16.mxu0 %v20248_v43 }
 0x333   :  { %v13902_v11 = vpop.f32.mrb[2].mxu1 }
 0x334   :  { %v13903_v12 = vpop.f32.mrb[3].mxu1  ;;  %4387 = vmatmul.mubr.f32.gmra.mrb[172].mxu0 %v13098_v7 }
 0x335   :  { %v20833_v13 = vadd.f32 %v13903_v12, %v13902_v11  ;;  %17092 = vmatpush3.bf16.msra.mxu0 %v20192_v20  ;;  %4391 = vmatprep.mubr.f32.mxu0 %v13101_v9 }
 0x336   :  { %17094 = vmatprep.subr.bf16.mxu0 %v20256_v53 }
 0x337   :  { %v13905_v17 = vpop.f32.mrb[4].mxu1 }
 0x338   :  { %v13906_v18 = vpop.f32.mrb[5].mxu1  ;;  %4392 = vmatmul.mubr.f32.gmra.mrb[174].mxu0 %v13100_v14 }
 0x339   :  { %v20843_v21 = vadd.f32 %v13906_v18, %v13905_v17  ;;  %17096 = vmatpush3.bf16.msra.mxu0 %v20196_v31  ;;  %4620 = vmatprep.mubr.f32.mxu0 %v13115_v16 }
 0x33a   :  { %17106 = vmatprep.subr.bf16.mxu0 %v20200_v41 }
 0x33b   :  { %v13908_v23 = vpop.f32.mrb[6].mxu1 }
 0x33c   :  { %v13909_v24 = vpop.f32.mrb[7].mxu1  ;;  %4621 = vmatmul.mubr.f32.vlgmr.msra.gmra.mrb[176].mxu0 %v13114_v22 }
 0x33d   :  { %v20850_v25 = vadd.f32 %v13909_v24, %v13908_v23  ;;  %17108 = vmatpush3.bf16.msra.mxu0 %v20168_v27  ;;  %v12796_v23 = vld [vmem:[%s24427_s4 + $0x50] sm:$0xff]  ;;  %v12797_v24 = vld [vmem:[%s24427_s4 + $0x58] sm:$0xff] }
 0x33e   :  { %17110 = vmatprep.subr.bf16.mxu0 %v20208_v51 }
 0x33f   :  { %v13911_v26 = vpop.f32.mrb[8].mxu1 }
 0x340   :  { %v13912_v28 = vpop.f32.mrb[9].mxu1 }
 0x341   :  { %v20854_v30 = vadd.f32 %v13912_v28, %v13911_v26  ;;  %17112 = vmatpush3.bf16.msra.mxu0 %v20172_v37  ;;  %v12781_v26 = vld [vmem:[%s24426_s3 + $0x118] sm:$0xff]  ;;  %v16621_v28 = vpack.c.bf16 %v12797_v24, %v12796_v23  ;;  %v12824_v23 = vld [vmem:[%s24427_s4 + $0x70] sm:$0xff] }
 0x342   :  { %17114 = vmatprep.subr.bf16.mxu0 %v20216_v61  ;;  %v12825_v24 = vld [vmem:[%s24427_s4 + $0x78] sm:$0xff] }
 0x343   :  { %v13914_v33 = vpop.f32.mrb[10].mxu1 }
 0x344   :  { %v13915_v34 = vpop.f32.mrb[11].mxu1 }
 0x345   :  { %v20858_v35 = vadd.f32 %v13915_v34, %v13914_v33  ;;  %17116 = vmatpush3.bf16.msra.mxu0 %v20176_v46  ;;  %v12783_v33 = vld [vmem:[%s24426_s3 + $0x128] sm:$0xff]  ;;  %v12782_v34 = vld [vmem:[%s24426_s3 + $0x120] sm:$0xff] }
 0x346   :  { %17118 = vmatprep.subr.bf16.mxu0 %v20224_v8 }
 0x347   :  { %v13917_v36 = vpop.f32.mrb[12].mxu1 }
 0x348   :  { %v13918_v38 = vpop.f32.mrb[13].mxu1 }
 0x349   :  { %v20862_v39 = vadd.f32 %v13918_v38, %v13917_v36  ;;  %17120 = vmatpush3.bf16.msra.mxu0 %v20180_v55  ;;  %v12784_v36 = vld [vmem:[%s24426_s3 + $0x130] sm:$0xff]  ;;  %v12787_v38 = vld [vmem:[%s24426_s3 + $0x148] sm:$0xff] }
 0x34a   :  { %17122 = vmatprep.subr.bf16.mxu0 %v20232_v19 }
 0x34b   :  { %v13920_v40 = vpop.f32.mrb[14].mxu1 }
 0x34c   :  { %v13921_v42 = vpop.f32.mrb[15].mxu1 }
 0x34d   :  { %v13922_v44 = vadd.f32 %v13921_v42, %v13920_v40  ;;  %17124 = vmatpush3.bf16.msra.mxu0 %v20184_v1  ;;  %v12789_v40 = vld [vmem:[%s24426_s3 + $0x158] sm:$0xff]  ;;  %v12788_v42 = vld [vmem:[%s24426_s3 + $0x150] sm:$0xff] }
 0x34e   :  { %17126 = vmatprep.subr.bf16.mxu0 %v20240_v32 }
 0x34f   :  { %v13955_v45 = vpop.f32.mrb[16].mxu1 }
 0x350   :  { %v13956_v47 = vpop.f32.mrb[17].mxu1 }
 0x351   :  { %v13957_v48 = vadd.f32 %v13956_v47, %v13955_v45  ;;  %17128 = vmatpush3.bf16.msra.mxu0 %v20188_v10  ;;  %v12790_v45 = vld [vmem:[%s24426_s3 + $0x160] sm:$0xff]  ;;  %v12793_v47 = vld [vmem:[%s24426_s3 + $0x178] sm:$0xff] }
 0x352   :  { %17130 = vmatprep.subr.bf16.mxu0 %v20248_v43 }
 0x353   :  { %v13958_v52 = vpop.f32.mrb[18].mxu1  ;;  %15401 = vmatprep.mubr.msk.f32.mxu1 %vm1112_vm1, %v13957_v48  ;;  %v12792_v48 = vld [vmem:[%s24426_s3 + $0x170] sm:$0xff] }
 0x354   :  { %v13959_v54 = vpop.f32.mrb[19].mxu1 }
 0x355   :  { %v13960_v15 = vadd.f32 %v13959_v54, %v13958_v52  ;;  %17132 = vmatpush3.bf16.msra.mxu0 %v20192_v20 }
 0x356   :  { %17134 = vmatprep.subr.bf16.mxu0 %v20256_v53 }
 0x357   :  { %v13961_v57 = vpop.f32.mrb[20].mxu1  ;;  %15402 = vmatmul.mubr.msk.f32.vlgmr.msra.gmra.mrb[32].mxu1 %vm1112_vm1, %v13960_v15 }
 0x358   :  { %16580 = vmatpush3.bf16.msra.mxu1 %v20636_v2  ;;  %v13962_v58 = vpop.f32.mrb[21].mxu1 }
 0x359   :  { %v13963_v59 = vadd.f32 %v13962_v58, %v13961_v57  ;;  %17136 = vmatpush3.bf16.msra.mxu0 %v20196_v31  ;;  %16582 = vmatprep.subr.bf16.mxu1 %v16581_v56 }
 0x35b   :  { %v13964_v60 = vpop.f32.mrb[22].mxu1  ;;  %15404 = vmatprep.mubr.msk.f32.mxu1 %vm1112_vm1, %v13963_v59 }
 0x35c   :  { %16584 = vmatpush3.bf16.msra.mxu1 %v16581_v56  ;;  %v13965_v62 = vpop.f32.mrb[23].mxu1 }
 0x35d   :  { %v13966_v63 = vadd.f32 %v13965_v62, %v13964_v60  ;;  %16586 = vmatprep.subr.bf16.mxu1 %v20200_v41 }
 0x35f   :  { %v13967_v3 = vpop.f32.mrb[24].mxu1  ;;  %15405 = vmatmul.mubr.msk.f32.gmra.mrb[34].mxu1 %vm1112_vm1, %v13966_v63 }
 0x360   :  { %v13968_v4 = vpop.f32.mrb[25].mxu1 }
 0x361   :  { %v13969_v5 = vadd.f32 %v13968_v4, %v13967_v3 }
 0x363   :  { %v13970_v7 = vpop.f32.mrb[26].mxu1  ;;  %15407 = vmatprep.mubr.msk.f32.mxu1 %vm1112_vm1, %v13969_v5 }
 0x364   :  { %v13971_v2 = vpop.f32.mrb[27].mxu1 }
 0x365   :  { %v13972_v9 = vadd.f32 %v13971_v2, %v13970_v7 }
 0x367   :  { %v13973_v11 = vpop.f32.mrb[28].mxu1  ;;  %15408 = vmatmul.mubr.msk.f32.gmra.mrb[36].mxu1 %vm1112_vm1, %v13972_v9 }
 0x368   :  { %v13974_v12 = vpop.f32.mrb[29].mxu1 }
 0x369   :  { %v13975_v14 = vadd.f32 %v13974_v12, %v13973_v11 }
 0x36b   :  { %v13976_v16 = vpop.f32.mrb[30].mxu1  ;;  %15410 = vmatprep.mubr.msk.f32.mxu1 %vm1112_vm1, %v13975_v14 }
 0x36c   :  { %v13977_v17 = vpop.f32.mrb[31].mxu1 }
 0x36d   :  { %v13978_v18 = vadd.f32 %v13977_v17, %v13976_v16 }
 0x36f   :  { %15411 = vmatmul.mubr.msk.f32.gmra.mrb[38].mxu1 %vm1112_vm1, %v13978_v18 }
 0x370   :  { %15421 = vmatprep.mubr.msk.f32.mxu1 %vm1112_vm1, %v20823_v6  ;;  %v12779_v6 = vld [vmem:[%s24426_s3 + $0x108] sm:$0xff] }
 0x373   :  { %15422 = vmatmul.mubr.msk.f32.vlgmr.msra.gmra.mrb[32].mxu1 %vm1112_vm1, %v20833_v13  ;;  %v12794_v13 = vld [vmem:[%s24427_s4 + $0x40] sm:$0xff] }
 0x374   :  { %16588 = vmatpush3.bf16.msra.mxu1 %v20168_v27  ;;  %15424 = vmatprep.mubr.msk.f32.mxu1 %vm1112_vm1, %v20843_v21  ;;  %v12795_v21 = vld [vmem:[%s24427_s4 + $0x48] sm:$0xff] }
 0x375   :  { %16590 = vmatprep.subr.bf16.mxu1 %v20208_v51  ;;  %v16617_v22 = vpack.c.bf16 %v12795_v21, %v12794_v13  ;;  %v12822_v13 = vld [vmem:[%s24427_s4 + $0x60] sm:$0xff]  ;;  %v12823_v21 = vld [vmem:[%s24427_s4 + $0x68] sm:$0xff] }
 0x377   :  { %15425 = vmatmul.mubr.msk.f32.gmra.mrb[34].mxu1 %vm1112_vm1, %v20850_v25  ;;  %v12778_v25 = vld [vmem:[%s24426_s3 + $0x100] sm:$0xff] }
 0x378   :  { %16592 = vmatpush3.bf16.msra.mxu1 %v20172_v37  ;;  %15427 = vmatprep.mubr.msk.f32.mxu1 %vm1112_vm1, %v20854_v30  ;;  %v12780_v30 = vld [vmem:[%s24426_s3 + $0x110] sm:$0xff] }
 0x379   :  { %16594 = vmatprep.subr.bf16.mxu1 %v20216_v61 }
 0x37b   :  { %15428 = vmatmul.mubr.msk.f32.gmra.mrb[36].mxu1 %vm1112_vm1, %v20858_v35  ;;  %v12785_v35 = vld [vmem:[%s24426_s3 + $0x138] sm:$0xff] }
 0x37c   :  { %16596 = vmatpush3.bf16.msra.mxu1 %v20176_v46  ;;  %15430 = vmatprep.mubr.msk.f32.mxu1 %vm1112_vm1, %v20862_v39  ;;  %v12786_v39 = vld [vmem:[%s24426_s3 + $0x140] sm:$0xff] }
 0x37d   :  { %16598 = vmatprep.subr.bf16.mxu1 %v20224_v8 }
 0x37f   :  { %15431 = vmatmul.mubr.msk.f32.gmra.mrb[38].mxu1 %vm1112_vm1, %v13922_v44  ;;  %v12791_v44 = vld [vmem:[%s24426_s3 + $0x168] sm:$0xff] }
 0x380   :  { %16600 = vmatpush3.bf16.msra.mxu1 %v20180_v55  ;;  %1452 = vmatprep.mubr.f32.mxu1 %v12779_v6  ;;  %v12807_v6 = vld [vmem:[%s24426_s3 + $0x188] sm:$0xff] }
 0x381   :  { %16602 = vmatprep.subr.bf16.mxu1 %v20232_v19 }
 0x384   :  { %16604 = vmatpush3.bf16.msra.mxu1 %v20184_v1 }
 0x385   :  { %16606 = vmatprep.subr.bf16.mxu1 %v20240_v32 }
 0x388   :  { %16608 = vmatpush3.bf16.msra.mxu1 %v20188_v10 }
 0x389   :  { %16610 = vmatprep.subr.bf16.mxu1 %v20248_v43 }
 0x38c   :  { %16612 = vmatpush3.bf16.msra.mxu1 %v20192_v20 }
 0x38d   :  { %16614 = vmatprep.subr.bf16.mxu1 %v20256_v53 }
 0x390   :  { %16616 = vmatpush3.bf16.msra.mxu1 %v20196_v31 }
 0x391   :  { %16618 = vmatprep.subr.bf16.mxu1 %v16617_v22 }
 0x393   :  { %1453 = vmatmul.mubr.f32.vlgmr.msra.gmra.mrb[40].mxu1 %v12778_v25  ;;  %v12806_v25 = vld [vmem:[%s24426_s3 + $0x180] sm:$0xff] }
 0x394   :  { %16620 = vmatpush3.bf16.msra.mxu1 %v16617_v22  ;;  %1457 = vmatprep.mubr.f32.mxu1 %v12781_v26  ;;  %v16657_v22 = vpack.c.bf16 %v12823_v21, %v12822_v13  ;;  %v12809_v26 = vld [vmem:[%s24426_s3 + $0x198] sm:$0xff]  ;;  %v12834_v13 = vld [vmem:[%s24426_s3 + $0x200] sm:$0xff] }
 0x395   :  { %16622 = vmatprep.subr.bf16.mxu1 %v16621_v28  ;;  %v12837_v21 = vld [vmem:[%s24426_s3 + $0x218] sm:$0xff] }
 0x397   :  { %1458 = vmatmul.mubr.f32.gmra.mrb[42].mxu1 %v12780_v30  ;;  %v12808_v30 = vld [vmem:[%s24426_s3 + $0x190] sm:$0xff] }
 0x398   :  { %16624 = vmatpush3.bf16.msra.mxu1 %v16621_v28  ;;  %1462 = vmatprep.mubr.f32.mxu1 %v12783_v33  ;;  %v16661_v28 = vpack.c.bf16 %v12825_v24, %v12824_v23  ;;  %v12811_v33 = vld [vmem:[%s24426_s3 + $0x1a8] sm:$0xff]  ;;  %v12838_v24 = vld [vmem:[%s24426_s3 + $0x220] sm:$0xff] }
 0x399   :  { %16626 = vmatprep.subr.bf16.mxu1 %v20200_v41  ;;  %v12839_v23 = vld [vmem:[%s24426_s3 + $0x228] sm:$0xff] }
 0x39b   :  { %1463 = vmatmul.mubr.f32.gmra.mrb[44].mxu1 %v12782_v34  ;;  %v12810_v34 = vld [vmem:[%s24426_s3 + $0x1a0] sm:$0xff] }
 0x39c   :  { %1467 = vmatprep.mubr.f32.mxu1 %v12785_v35  ;;  %v12813_v35 = vld [vmem:[%s24426_s3 + $0x1b8] sm:$0xff] }
 0x39f   :  { %1468 = vmatmul.mubr.f32.gmra.mrb[46].mxu1 %v12784_v36  ;;  %v12812_v36 = vld [vmem:[%s24426_s3 + $0x1b0] sm:$0xff] }
 0x3a0   :  { %1472 = vmatprep.mubr.f32.mxu1 %v12787_v38  ;;  %v12815_v38 = vld [vmem:[%s24426_s3 + $0x1c8] sm:$0xff] }
 0x3a3   :  { %1473 = vmatmul.mubr.f32.gmra.mrb[48].mxu1 %v12786_v39  ;;  %v12814_v39 = vld [vmem:[%s24426_s3 + $0x1c0] sm:$0xff] }
 0x3a4   :  { %1477 = vmatprep.mubr.f32.mxu1 %v12789_v40  ;;  %v12817_v40 = vld [vmem:[%s24426_s3 + $0x1d8] sm:$0xff] }
 0x3a7   :  { %1478 = vmatmul.mubr.f32.gmra.mrb[50].mxu1 %v12788_v42  ;;  %v12816_v42 = vld [vmem:[%s24426_s3 + $0x1d0] sm:$0xff] }
 0x3a8   :  { %1482 = vmatprep.mubr.f32.mxu1 %v12791_v44  ;;  %v12819_v44 = vld [vmem:[%s24426_s3 + $0x1e8] sm:$0xff] }
 0x3ab   :  { %1483 = vmatmul.mubr.f32.gmra.mrb[52].mxu1 %v12790_v45  ;;  %v12818_v45 = vld [vmem:[%s24426_s3 + $0x1e0] sm:$0xff] }
 0x3ac   :  { %1487 = vmatprep.mubr.f32.mxu1 %v12793_v47  ;;  %v12821_v47 = vld [vmem:[%s24426_s3 + $0x1f8] sm:$0xff] }
 0x3af   :  { %1488 = vmatmul.mubr.f32.gmra.mrb[54].mxu1 %v12792_v48  ;;  %v12820_v48 = vld [vmem:[%s24426_s3 + $0x1f0] sm:$0xff] }
 0x466   :  { %v14035_v49 = vpop.f32.mrb[40].mxu1 }
 0x467   :  { %v14036_v50 = vpop.f32.mrb[41].mxu1 }
 0x468   :  { %v14037_v52 = vadd.f32 %v14036_v50, %v14035_v49 }
 0x46a   :  { %v14038_v54 = vpop.f32.mrb[42].mxu1  ;;  %15441 = vmatprep.mubr.msk.f32.mxu1 %vm1112_vm1, %v14037_v52 }
 0x46b   :  { %v14039_v15 = vpop.f32.mrb[43].mxu1 }
 0x46c   :  { %v14040_v56 = vadd.f32 %v14039_v15, %v14038_v54 }
 0x46e   :  { %15442 = vmatmul.mubr.msk.f32.vlgmr.msra.gmra.mrb[32].mxu1 %vm1112_vm1, %v14040_v56  ;;  %v14041_v57 = vpop.f32.mrb[44].mxu1 }
 0x46f   :  { %16628 = vmatpush3.bf16.msra.mxu1 %v20168_v27  ;;  %v14042_v58 = vpop.f32.mrb[45].mxu1 }
 0x470   :  { %16630 = vmatprep.subr.bf16.mxu1 %v20208_v51  ;;  %v14043_v59 = vadd.f32 %v14042_v58, %v14041_v57 }
 0x472   :  { %v14044_v60 = vpop.f32.mrb[46].mxu1  ;;  %15444 = vmatprep.mubr.msk.f32.mxu1 %vm1112_vm1, %v14043_v59 }
 0x473   :  { %16632 = vmatpush3.bf16.msra.mxu1 %v20172_v37  ;;  %v14045_v62 = vpop.f32.mrb[47].mxu1 }
 0x474   :  { %16634 = vmatprep.subr.bf16.mxu1 %v20216_v61  ;;  %v14046_v63 = vadd.f32 %v14045_v62, %v14044_v60 }
 0x476   :  { %v14047_v3 = vpop.f32.mrb[48].mxu1  ;;  %15445 = vmatmul.mubr.msk.f32.gmra.mrb[34].mxu1 %vm1112_vm1, %v14046_v63 }
 0x477   :  { %16636 = vmatpush3.bf16.msra.mxu1 %v20176_v46  ;;  %v14048_v4 = vpop.f32.mrb[49].mxu1 }
 0x478   :  { %16638 = vmatprep.subr.bf16.mxu1 %v20224_v8  ;;  %v14049_v5 = vadd.f32 %v14048_v4, %v14047_v3 }
 0x47a   :  { %v14050_v7 = vpop.f32.mrb[50].mxu1  ;;  %15447 = vmatprep.mubr.msk.f32.mxu1 %vm1112_vm1, %v14049_v5 }
 0x47b   :  { %16640 = vmatpush3.bf16.msra.mxu1 %v20180_v55  ;;  %v14051_v2 = vpop.f32.mrb[51].mxu1 }
 0x47c   :  { %16642 = vmatprep.subr.bf16.mxu1 %v20232_v19  ;;  %v14052_v9 = vadd.f32 %v14051_v2, %v14050_v7 }
 0x47e   :  { %v14053_v11 = vpop.f32.mrb[52].mxu1  ;;  %15448 = vmatmul.mubr.msk.f32.gmra.mrb[36].mxu1 %vm1112_vm1, %v14052_v9 }
 0x47f   :  { %16644 = vmatpush3.bf16.msra.mxu1 %v20184_v1  ;;  %v14054_v12 = vpop.f32.mrb[53].mxu1 }
 0x480   :  { %16646 = vmatprep.subr.bf16.mxu1 %v20240_v32  ;;  %v14055_v14 = vadd.f32 %v14054_v12, %v14053_v11 }
 0x482   :  { %v14056_v16 = vpop.f32.mrb[54].mxu1  ;;  %15450 = vmatprep.mubr.msk.f32.mxu1 %vm1112_vm1, %v14055_v14 }
 0x483   :  { %16648 = vmatpush3.bf16.msra.mxu1 %v20188_v10  ;;  %v14057_v17 = vpop.f32.mrb[55].mxu1 }
 0x484   :  { %16650 = vmatprep.subr.bf16.mxu1 %v20248_v43  ;;  %v14058_v18 = vadd.f32 %v14057_v17, %v14056_v16 }
 0x486   :  { %15451 = vmatmul.mubr.msk.f32.gmra.mrb[38].mxu1 %vm1112_vm1, %v14058_v18 }
 0x487   :  { %16652 = vmatpush3.bf16.msra.mxu1 %v20192_v20  ;;  %1716 = vmatprep.mubr.f32.mxu1 %v12807_v6  ;;  %v12835_v6 = vld [vmem:[%s24426_s3 + $0x208] sm:$0xff] }
 0x488   :  { %16654 = vmatprep.subr.bf16.mxu1 %v20256_v53 }
 0x48b   :  { %16656 = vmatpush3.bf16.msra.mxu1 %v20196_v31 }
 0x48c   :  { %16658 = vmatprep.subr.bf16.mxu1 %v16657_v22 }
 0x48e   :  { %1717 = vmatmul.mubr.f32.vlgmr.msra.gmra.mrb[56].mxu1 %v12806_v25  ;;  %v12841_v25 = vld [vmem:[%s24426_s3 + $0x238] sm:$0xff] }
 0x48f   :  { %16660 = vmatpush3.bf16.msra.mxu1 %v16657_v22  ;;  %1721 = vmatprep.mubr.f32.mxu1 %v12809_v26  ;;  %v12836_v22 = vld [vmem:[%s24426_s3 + $0x210] sm:$0xff] }
 0x490   :  { %16662 = vmatprep.subr.bf16.mxu1 %v16661_v28  ;;  %v12840_v26 = vld [vmem:[%s24426_s3 + $0x230] sm:$0xff] }
 0x492   :  { %1722 = vmatmul.mubr.f32.gmra.mrb[58].mxu1 %v12808_v30  ;;  %v12842_v30 = vld [vmem:[%s24426_s3 + $0x240] sm:$0xff] }
 0x493   :  { %16664 = vmatpush3.bf16.msra.mxu1 %v16661_v28  ;;  %1726 = vmatprep.mubr.f32.mxu1 %v12811_v33  ;;  %v12843_v28 = vld [vmem:[%s24426_s3 + $0x248] sm:$0xff]  ;;  %v12845_v33 = vld [vmem:[%s24426_s3 + $0x258] sm:$0xff] }
 0x494   :  { %16666 = vmatprep.subr.bf16.mxu1 %v20200_v41 }
 0x496   :  { %1727 = vmatmul.mubr.f32.gmra.mrb[60].mxu1 %v12810_v34  ;;  %v12844_v34 = vld [vmem:[%s24426_s3 + $0x250] sm:$0xff] }
 0x497   :  { %1731 = vmatprep.mubr.f32.mxu1 %v12813_v35  ;;  %v12847_v35 = vld [vmem:[%s24426_s3 + $0x268] sm:$0xff] }
 0x49a   :  { %1732 = vmatmul.mubr.f32.gmra.mrb[62].mxu1 %v12812_v36  ;;  %v12846_v36 = vld [vmem:[%s24426_s3 + $0x260] sm:$0xff] }
 0x49b   :  { %1736 = vmatprep.mubr.f32.mxu1 %v12815_v38  ;;  %v12849_v38 = vld [vmem:[%s24426_s3 + $0x278] sm:$0xff] }
 0x49e   :  { %1737 = vmatmul.mubr.f32.gmra.mrb[64].mxu1 %v12814_v39  ;;  %v12848_v39 = vld [vmem:[%s24426_s3 + $0x270] sm:$0xff] }
 0x49f   :  { %1741 = vmatprep.mubr.f32.mxu1 %v12817_v40  ;;  %v12850_v40 = vld [vmem:[%s24427_s4 + $0x80] sm:$0xff] }
 0x4a2   :  { %1742 = vmatmul.mubr.f32.gmra.mrb[66].mxu1 %v12816_v42  ;;  %v12851_v42 = vld [vmem:[%s24427_s4 + $0x88] sm:$0xff] }
 0x4a3   :  { %1746 = vmatprep.mubr.f32.mxu1 %v12819_v44  ;;  %v16697_v44 = vpack.c.bf16 %v12851_v42, %v12850_v40 }
 0x4a6   :  { %1747 = vmatmul.mubr.f32.gmra.mrb[68].mxu1 %v12818_v45  ;;  %v12852_v45 = vld [vmem:[%s24427_s4 + $0x90] sm:$0xff] }
 0x4a7   :  { %1751 = vmatprep.mubr.f32.mxu1 %v12821_v47  ;;  %v12853_v47 = vld [vmem:[%s24427_s4 + $0x98] sm:$0xff] }
 0x4aa   :  { %1752 = vmatmul.mubr.f32.gmra.mrb[70].mxu1 %v12820_v48  ;;  %v16701_v48 = vpack.c.bf16 %v12853_v47, %v12852_v45 }
 0x561   :  { %v14103_v49 = vpop.f32.mrb[56].mxu1 }
 0x562   :  { %v14104_v50 = vpop.f32.mrb[57].mxu1 }
 0x563   :  { %v14105_v52 = vadd.f32 %v14104_v50, %v14103_v49  ;;  %v14239_v49 = vpop.f32.mrb[64].mxu0 }
 0x564   :  { %v14240_v50 = vpop.f32.mrb[65].mxu0 }
 0x565   :  { %v14106_v54 = vpop.f32.mrb[58].mxu1  ;;  %15461 = vmatprep.mubr.msk.f32.mxu1 %vm1112_vm1, %v14105_v52  ;;  %v21147_v52 = vadd.f32 %v14240_v50, %v14239_v49 }
 0x566   :  { %v14107_v15 = vpop.f32.mrb[59].mxu1 }
 0x567   :  { %v14108_v56 = vadd.f32 %v14107_v15, %v14106_v54  ;;  %v14242_v54 = vpop.f32.mrb[66].mxu0 }
 0x568   :  { %v14243_v15 = vpop.f32.mrb[67].mxu0 }
 0x569   :  { %15462 = vmatmul.mubr.msk.f32.vlgmr.msra.gmra.mrb[32].mxu1 %vm1112_vm1, %v14108_v56  ;;  %v14109_v57 = vpop.f32.mrb[60].mxu1  ;;  %v21149_v56 = vadd.f32 %v14243_v15, %v14242_v54 }
 0x56a   :  { %16668 = vmatpush3.bf16.msra.mxu1 %v20168_v27  ;;  %v14110_v58 = vpop.f32.mrb[61].mxu1 }
 0x56b   :  { %16670 = vmatprep.subr.bf16.mxu1 %v20208_v51  ;;  %v14111_v59 = vadd.f32 %v14110_v58, %v14109_v57  ;;  %v14245_v57 = vpop.f32.mrb[68].mxu0 }
 0x56c   :  { %v14246_v58 = vpop.f32.mrb[69].mxu0 }
 0x56d   :  { %v14112_v60 = vpop.f32.mrb[62].mxu1  ;;  %15464 = vmatprep.mubr.msk.f32.mxu1 %vm1112_vm1, %v14111_v59  ;;  %v21151_v59 = vadd.f32 %v14246_v58, %v14245_v57 }
 0x56e   :  { %16672 = vmatpush3.bf16.msra.mxu1 %v20172_v37  ;;  %v14113_v62 = vpop.f32.mrb[63].mxu1 }
 0x56f   :  { %16674 = vmatprep.subr.bf16.mxu1 %v20216_v61  ;;  %v14114_v63 = vadd.f32 %v14113_v62, %v14112_v60  ;;  %v14248_v60 = vpop.f32.mrb[70].mxu0 }
 0x570   :  { %v14249_v62 = vpop.f32.mrb[71].mxu0 }
 0x571   :  { %v14115_v3 = vpop.f32.mrb[64].mxu1  ;;  %15465 = vmatmul.mubr.msk.f32.gmra.mrb[34].mxu1 %vm1112_vm1, %v14114_v63  ;;  %v12878_v63 = vld [vmem:[%s24427_s4 + $0xa0] sm:$0xff] }
 0x572   :  { %16676 = vmatpush3.bf16.msra.mxu1 %v20176_v46  ;;  %v14116_v4 = vpop.f32.mrb[65].mxu1 }
 0x573   :  { %16678 = vmatprep.subr.bf16.mxu1 %v20224_v8  ;;  %v14117_v5 = vadd.f32 %v14116_v4, %v14115_v3  ;;  %v12879_v3 = vld [vmem:[%s24427_s4 + $0xa8] sm:$0xff]  ;;  %v21159_v4 = vadd.f32 %v14249_v62, %v14248_v60 }
 0x575   :  { %v14118_v7 = vpop.f32.mrb[66].mxu1  ;;  %15467 = vmatprep.mubr.msk.f32.mxu1 %vm1112_vm1, %v14117_v5  ;;  %v21161_v5 = vpack.c.bf16 %v12879_v3, %v12878_v63 }
 0x576   :  { %16680 = vmatpush3.bf16.msra.mxu1 %v20180_v55  ;;  %v14119_v2 = vpop.f32.mrb[67].mxu1 }
 0x577   :  { %16682 = vmatprep.subr.bf16.mxu1 %v20232_v19  ;;  %v14120_v9 = vadd.f32 %v14119_v2, %v14118_v7  ;;  %v14251_v7 = vpop.f32.mrb[72].mxu0 }
 0x578   :  { %v14252_v2 = vpop.f32.mrb[73].mxu0 }
 0x579   :  { %v14121_v11 = vpop.f32.mrb[68].mxu1  ;;  %15468 = vmatmul.mubr.msk.f32.gmra.mrb[36].mxu1 %vm1112_vm1, %v14120_v9  ;;  %v21164_v9 = vadd.f32 %v14252_v2, %v14251_v7 }
 0x57a   :  { %16684 = vmatpush3.bf16.msra.mxu1 %v20184_v1  ;;  %v14122_v12 = vpop.f32.mrb[69].mxu1 }
 0x57b   :  { %16686 = vmatprep.subr.bf16.mxu1 %v20240_v32  ;;  %v14123_v14 = vadd.f32 %v14122_v12, %v14121_v11  ;;  %v14254_v11 = vpop.f32.mrb[74].mxu0 }
 0x57c   :  { %v14255_v12 = vpop.f32.mrb[75].mxu0 }
 0x57d   :  { %v14124_v16 = vpop.f32.mrb[70].mxu1  ;;  %15470 = vmatprep.mubr.msk.f32.mxu1 %vm1112_vm1, %v14123_v14  ;;  %v21166_v14 = vadd.f32 %v14255_v12, %v14254_v11 }
 0x57e   :  { %16688 = vmatpush3.bf16.msra.mxu1 %v20188_v10  ;;  %v14125_v17 = vpop.f32.mrb[71].mxu1 }
 0x57f   :  { %16690 = vmatprep.subr.bf16.mxu1 %v20248_v43  ;;  %v14126_v18 = vadd.f32 %v14125_v17, %v14124_v16  ;;  %v14257_v16 = vpop.f32.mrb[76].mxu0 }
 0x580   :  { %v14258_v17 = vpop.f32.mrb[77].mxu0 }
 0x581   :  { %15471 = vmatmul.mubr.msk.f32.gmra.mrb[38].mxu1 %vm1112_vm1, %v14126_v18  ;;  %v21168_v18 = vadd.f32 %v14258_v17, %v14257_v16 }
 0x582   :  { %16692 = vmatpush3.bf16.msra.mxu1 %v20192_v20  ;;  %1980 = vmatprep.mubr.f32.mxu1 %v12835_v6  ;;  %v14260_v6 = vpop.f32.mrb[78].mxu0 }
 0x583   :  { %16694 = vmatprep.subr.bf16.mxu1 %v20256_v53 }
 0x586   :  { %16696 = vmatpush3.bf16.msra.mxu1 %v20196_v31 }
 0x587   :  { %16698 = vmatprep.subr.bf16.mxu1 %v16697_v44 }
 0x589   :  { %1981 = vmatmul.mubr.f32.vlgmr.msra.gmra.mrb[72].mxu1 %v12834_v13  ;;  %v14261_v13 = vpop.f32.mrb[79].mxu0 }
 0x58a   :  { %1985 = vmatprep.mubr.f32.mxu1 %v12837_v21  ;;  %16700 = vmatpush3.bf16.msra.mxu1 %v16697_v44  ;;  %v21170_v21 = vadd.f32 %v14261_v13, %v14260_v6 }
 0x58b   :  { %16702 = vmatprep.subr.bf16.mxu1 %v16701_v48 }
 0x58d   :  { %1986 = vmatmul.mubr.f32.gmra.mrb[74].mxu1 %v12836_v22  ;;  %v14307_v22 = vpop.f32.mrb[80].mxu0 }
 0x58e   :  { %1990 = vmatprep.mubr.f32.mxu1 %v12839_v23  ;;  %16704 = vmatpush3.bf16.msra.mxu1 %v16701_v48  ;;  %v14308_v23 = vpop.f32.mrb[81].mxu0 }
 0x58f   :  { %16738 = vmatprep.subr.bf16.mxu1 %v21161_v5 }
 0x591   :  { %1991 = vmatmul.mubr.f32.gmra.mrb[76].mxu1 %v12838_v24  ;;  %v21172_v24 = vadd.f32 %v14308_v23, %v14307_v22 }
 0x592   :  { %1995 = vmatprep.mubr.f32.mxu1 %v12841_v25  ;;  %v14310_v25 = vpop.f32.mrb[82].mxu0 }
 0x595   :  { %1996 = vmatmul.mubr.f32.gmra.mrb[78].mxu1 %v12840_v26  ;;  %v14311_v26 = vpop.f32.mrb[83].mxu0 }
 0x596   :  { %2000 = vmatprep.mubr.f32.mxu1 %v12843_v28  ;;  %v21174_v28 = vadd.f32 %v14311_v26, %v14310_v25 }
 0x599   :  { %2001 = vmatmul.mubr.f32.gmra.mrb[80].mxu1 %v12842_v30  ;;  %v14313_v30 = vpop.f32.mrb[84].mxu0 }
 0x59a   :  { %2005 = vmatprep.mubr.f32.mxu1 %v12845_v33  ;;  %v14314_v33 = vpop.f32.mrb[85].mxu0 }
 0x59d   :  { %2006 = vmatmul.mubr.f32.gmra.mrb[82].mxu1 %v12844_v34  ;;  %v21176_v34 = vadd.f32 %v14314_v33, %v14313_v30 }
 0x59e   :  { %2010 = vmatprep.mubr.f32.mxu1 %v12847_v35  ;;  %v14316_v35 = vpop.f32.mrb[86].mxu0 }
 0x5a1   :  { %2011 = vmatmul.mubr.f32.gmra.mrb[84].mxu1 %v12846_v36  ;;  %v14317_v36 = vpop.f32.mrb[87].mxu0 }
 0x5a2   :  { %2015 = vmatprep.mubr.f32.mxu1 %v12849_v38  ;;  %v21178_v38 = vadd.f32 %v14317_v36, %v14316_v35  ;;  %v12880_v35 = vld [vmem:[%s24427_s4 + $0xb0] sm:$0xff]  ;;  %v12881_v36 = vld [vmem:[%s24427_s4 + $0xb8] sm:$0xff] }
 0x5a5   :  { %2016 = vmatmul.mubr.f32.gmra.mrb[86].mxu1 %v12848_v39  ;;  %v14319_v39 = vpop.f32.mrb[88].mxu0 }
 0x5a6   :  { %v14320_v40 = vpop.f32.mrb[89].mxu0 }
 0x5a7   :  { %v21180_v42 = vadd.f32 %v14320_v40, %v14319_v39  ;;  %v14322_v44 = vpop.f32.mrb[90].mxu0 }
 0x5a8   :  { %v14323_v45 = vpop.f32.mrb[91].mxu0 }
 0x5a9   :  { %v21182_v47 = vadd.f32 %v14323_v45, %v14322_v44  ;;  %v14325_v48 = vpop.f32.mrb[92].mxu0  ;;  %v16741_v45 = vpack.c.bf16 %v12881_v36, %v12880_v35 }
 0x5aa   :  { %v14326_v49 = vpop.f32.mrb[93].mxu0 }
 0x5ab   :  { %v21184_v50 = vadd.f32 %v14326_v49, %v14325_v48  ;;  %v14328_v54 = vpop.f32.mrb[94].mxu0  ;;  %v12906_v48 = vld [vmem:[%s24427_s4 + $0xc0] sm:$0xff]  ;;  %v12907_v49 = vld [vmem:[%s24427_s4 + $0xc8] sm:$0xff] }
 0x5ac   :  { %v14329_v15 = vpop.f32.mrb[95].mxu0 }
 0x5ad   :  { %v21186_v57 = vadd.f32 %v14329_v15, %v14328_v54  ;;  %v14443_v58 = vpop.f32.mrb[96].mxu0 }
 0x5ae   :  { %v14444_v60 = vpop.f32.mrb[97].mxu0 }
 0x5af   :  { %v21188_v62 = vadd.f32 %v14444_v60, %v14443_v58  ;;  %v14446_v63 = vpop.f32.mrb[98].mxu0  ;;  %v16777_v60 = vpack.c.bf16 %v12907_v49, %v12906_v48  ;;  %v12934_v48 = vld [vmem:[%s24427_s4 + $0xe0] sm:$0xff]  ;;  %v12935_v49 = vld [vmem:[%s24427_s4 + $0xe8] sm:$0xff] }
 0x5b0   :  { %v14447_v3 = vpop.f32.mrb[99].mxu0 }
 0x5b1   :  { %v21190_v7 = vadd.f32 %v14447_v3, %v14446_v63  ;;  %v14449_v2 = vpop.f32.mrb[100].mxu0 }
 0x5b2   :  { %v14450_v11 = vpop.f32.mrb[101].mxu0 }
 0x5b3   :  { %v21192_v12 = vadd.f32 %v14450_v11, %v14449_v2  ;;  %v14452_v16 = vpop.f32.mrb[102].mxu0 }
 0x5b4   :  { %v14453_v17 = vpop.f32.mrb[103].mxu0 }
 0x5b5   :  { %v21194_v6 = vadd.f32 %v14453_v17, %v14452_v16  ;;  %v14455_v13 = vpop.f32.mrb[104].mxu0 }
 0x5b6   :  { %v14456_v22 = vpop.f32.mrb[105].mxu0 }
 0x5b7   :  { %v21196_v23 = vadd.f32 %v14456_v22, %v14455_v13  ;;  %v21198_v25 = vpop.f32.mrb[106].mxu0 }
 0x65c   :  { %v14171_v26 = vpop.f32.mrb[72].mxu1 }
 0x65d   :  { %v14172_v30 = vpop.f32.mrb[73].mxu1 }
 0x65e   :  { %v14173_v33 = vadd.f32 %v14172_v30, %v14171_v26 }
 0x660   :  { %v14174_v39 = vpop.f32.mrb[74].mxu1  ;;  %15481 = vmatprep.mubr.msk.f32.mxu1 %vm1112_vm1, %v14173_v33 }
 0x661   :  { %v14175_v40 = vpop.f32.mrb[75].mxu1 }
 0x662   :  { %v14176_v44 = vadd.f32 %v14175_v40, %v14174_v39  ;;  %v12908_v40 = vld [vmem:[%s24427_s4 + $0xd0] sm:$0xff] }
 0x664   :  { %v14177_v54 = vpop.f32.mrb[76].mxu1  ;;  %15482 = vmatmul.mubr.msk.f32.vlgmr.msra.gmra.mrb[32].mxu1 %vm1112_vm1, %v14176_v44  ;;  %v12909_v44 = vld [vmem:[%s24427_s4 + $0xd8] sm:$0xff] }
 0x665   :  { %v14178_v15 = vpop.f32.mrb[77].mxu1  ;;  %16740 = vmatpush3.bf16.msra.mxu1 %v21161_v5 }
 0x666   :  { %v14179_v58 = vadd.f32 %v14178_v15, %v14177_v54  ;;  %16742 = vmatprep.subr.bf16.mxu1 %v16741_v45  ;;  %v16817_v54 = vpack.c.bf16 %v12935_v49, %v12934_v48  ;;  %v14459_v15 = vpop.f32.mrb[107].mxu0 }
 0x668   :  { %v14180_v63 = vpop.f32.mrb[78].mxu1  ;;  %15484 = vmatprep.mubr.msk.f32.mxu1 %vm1112_vm1, %v14179_v58  ;;  %v21330_v58 = vadd.f32 %v14459_v15, %v21198_v25 }
 0x669   :  { %v14181_v3 = vpop.f32.mrb[79].mxu1  ;;  %16744 = vmatpush3.bf16.msra.mxu1 %v16741_v45  ;;  %v16781_v45 = vpack.c.bf16 %v12909_v44, %v12908_v40 }
 0x66a   :  { %v14182_v2 = vadd.f32 %v14181_v3, %v14180_v63  ;;  %16778 = vmatprep.subr.bf16.mxu1 %v16777_v60  ;;  %v12937_v63 = vld [vmem:[%s24427_s4 + $0xf8] sm:$0xff]  ;;  %v14461_v3 = vpop.f32.mrb[108].mxu0 }
 0x66c   :  { %v14183_v11 = vpop.f32.mrb[80].mxu1  ;;  %15485 = vmatmul.mubr.msk.f32.gmra.mrb[34].mxu1 %vm1112_vm1, %v14182_v2 }
 0x66d   :  { %v14184_v16 = vpop.f32.mrb[81].mxu1 }
 0x66e   :  { %v14185_v17 = vadd.f32 %v14184_v16, %v14183_v11  ;;  %v14462_v11 = vpop.f32.mrb[109].mxu0 }
 0x66f   :  { %v21338_v16 = vadd.f32 %v14462_v11, %v14461_v3 }
 0x670   :  { %v14186_v13 = vpop.f32.mrb[82].mxu1  ;;  %15487 = vmatprep.mubr.msk.f32.mxu1 %vm1112_vm1, %v14185_v17  ;;  %v14464_v17 = vpop.f32.mrb[110].mxu0 }
 0x671   :  { %v14187_v22 = vpop.f32.mrb[83].mxu1 }
 0x672   :  { %v14188_v5 = vadd.f32 %v14187_v22, %v14186_v13  ;;  %v14465_v13 = vpop.f32.mrb[111].mxu0 }
 0x673   :  { %v21340_v25 = vadd.f32 %v14465_v13, %v14464_v17  ;;  %v14511_v22 = vpop.f32.mrb[112].mxu0 }
 0x674   :  { %v14189_v26 = vpop.f32.mrb[84].mxu1  ;;  %15488 = vmatmul.mubr.msk.f32.gmra.mrb[36].mxu1 %vm1112_vm1, %v14188_v5  ;;  %v14512_v5 = vpop.f32.mrb[113].mxu0 }
 0x675   :  { %v14190_v30 = vpop.f32.mrb[85].mxu1 }
 0x676   :  { %v14191_v33 = vadd.f32 %v14190_v30, %v14189_v26  ;;  %v21342_v26 = vadd.f32 %v14512_v5, %v14511_v22  ;;  %v14514_v30 = vpop.f32.mrb[114].mxu0 }
 0x678   :  { %v14192_v35 = vpop.f32.mrb[86].mxu1  ;;  %15490 = vmatprep.mubr.msk.f32.mxu1 %vm1112_vm1, %v14191_v33  ;;  %v14515_v33 = vpop.f32.mrb[115].mxu0 }
 0x679   :  { %v14193_v36 = vpop.f32.mrb[87].mxu1 }
 0x67a   :  { %v14194_v39 = vadd.f32 %v14193_v36, %v14192_v35  ;;  %v21344_v35 = vadd.f32 %v14515_v33, %v14514_v30  ;;  %v14517_v36 = vpop.f32.mrb[116].mxu0 }
 0x67c   :  { %15491 = vmatmul.mubr.msk.f32.gmra.mrb[38].mxu1 %vm1112_vm1, %v14194_v39  ;;  %v14518_v39 = vpop.f32.mrb[117].mxu0 }
 0x67d   :  { %15501 = vmatprep.mubr.msk.f32.mxu1 %vm1112_vm1, %v21147_v52  ;;  %v12919_v52 = vld [vmem:[%s24426_s3 + $0x388] sm:$0xff]  ;;  %v21346_v40 = vadd.f32 %v14518_v39, %v14517_v36  ;;  %v14520_v44 = vpop.f32.mrb[118].mxu0 }
 0x680   :  { %15502 = vmatmul.mubr.msk.f32.vlgmr.msra.gmra.mrb[32].mxu1 %vm1112_vm1, %v21149_v56  ;;  %v12918_v56 = vld [vmem:[%s24426_s3 + $0x380] sm:$0xff] }
 0x681   :  { %16780 = vmatpush3.bf16.msra.mxu1 %v16777_v60  ;;  %15504 = vmatprep.mubr.msk.f32.mxu1 %vm1112_vm1, %v21151_v59  ;;  %v12921_v59 = vld [vmem:[%s24426_s3 + $0x398] sm:$0xff]  ;;  %v12936_v60 = vld [vmem:[%s24427_s4 + $0xf0] sm:$0xff] }
 0x682   :  { %16782 = vmatprep.subr.bf16.mxu1 %v16781_v45  ;;  %v16821_v2 = vpack.c.bf16 %v12937_v63, %v12936_v60 }
 0x684   :  { %15505 = vmatmul.mubr.msk.f32.gmra.mrb[34].mxu1 %vm1112_vm1, %v21159_v4  ;;  %v12920_v4 = vld [vmem:[%s24426_s3 + $0x390] sm:$0xff] }
 0x685   :  { %16784 = vmatpush3.bf16.msra.mxu1 %v16781_v45  ;;  %15507 = vmatprep.mubr.msk.f32.mxu1 %vm1112_vm1, %v21164_v9  ;;  %v12923_v9 = vld [vmem:[%s24426_s3 + $0x3a8] sm:$0xff]  ;;  %v14521_v45 = vpop.f32.mrb[119].mxu0 }
 0x686   :  { %16786 = vmatprep.subr.bf16.mxu1 %v20200_v41 }
 0x688   :  { %15508 = vmatmul.mubr.msk.f32.gmra.mrb[36].mxu1 %vm1112_vm1, %v21166_v14  ;;  %v12922_v14 = vld [vmem:[%s24426_s3 + $0x3a0] sm:$0xff] }
 0x689   :  { %15510 = vmatprep.mubr.msk.f32.mxu1 %vm1112_vm1, %v21168_v18  ;;  %v12925_v18 = vld [vmem:[%s24426_s3 + $0x3b8] sm:$0xff] }
 0x68c   :  { %15511 = vmatmul.mubr.msk.f32.gmra.mrb[38].mxu1 %vm1112_vm1, %v21170_v21  ;;  %v12924_v21 = vld [vmem:[%s24426_s3 + $0x3b0] sm:$0xff] }
 0x68d   :  { %15521 = vmatprep.mubr.msk.f32.mxu1 %vm1112_vm1, %v21172_v24  ;;  %v12927_v24 = vld [vmem:[%s24426_s3 + $0x3c8] sm:$0xff] }
 0x690   :  { %15522 = vmatmul.mubr.msk.f32.vlgmr.msra.gmra.mrb[32].mxu1 %vm1112_vm1, %v21174_v28  ;;  %v12926_v28 = vld [vmem:[%s24426_s3 + $0x3c0] sm:$0xff] }
 0x691   :  { %16788 = vmatpush3.bf16.msra.mxu1 %v20168_v27  ;;  %15524 = vmatprep.mubr.msk.f32.mxu1 %vm1112_vm1, %v21176_v34  ;;  %v12929_v34 = vld [vmem:[%s24426_s3 + $0x3d8] sm:$0xff] }
 0x692   :  { %16790 = vmatprep.subr.bf16.mxu1 %v20208_v51 }
 0x694   :  { %15525 = vmatmul.mubr.msk.f32.gmra.mrb[34].mxu1 %vm1112_vm1, %v21178_v38  ;;  %v12928_v38 = vld [vmem:[%s24426_s3 + $0x3d0] sm:$0xff] }
 0x695   :  { %16792 = vmatpush3.bf16.msra.mxu1 %v20172_v37  ;;  %15527 = vmatprep.mubr.msk.f32.mxu1 %vm1112_vm1, %v21180_v42  ;;  %v12931_v42 = vld [vmem:[%s24426_s3 + $0x3e8] sm:$0xff] }
 0x696   :  { %16794 = vmatprep.subr.bf16.mxu1 %v20216_v61 }
 0x698   :  { %15528 = vmatmul.mubr.msk.f32.gmra.mrb[36].mxu1 %vm1112_vm1, %v21182_v47  ;;  %v12930_v47 = vld [vmem:[%s24426_s3 + $0x3e0] sm:$0xff] }
 0x699   :  { %16796 = vmatpush3.bf16.msra.mxu1 %v20176_v46  ;;  %15530 = vmatprep.mubr.msk.f32.mxu1 %vm1112_vm1, %v21184_v50  ;;  %v12933_v50 = vld [vmem:[%s24426_s3 + $0x3f8] sm:$0xff] }
 0x69a   :  { %16798 = vmatprep.subr.bf16.mxu1 %v20224_v8 }
 0x69c   :  { %15531 = vmatmul.mubr.msk.f32.gmra.mrb[38].mxu1 %vm1112_vm1, %v21186_v57  ;;  %v12932_v57 = vld [vmem:[%s24426_s3 + $0x3f0] sm:$0xff] }
 0x69d   :  { %16800 = vmatpush3.bf16.msra.mxu1 %v20180_v55  ;;  %2772 = vmatprep.mubr.f32.mxu1 %v12919_v52  ;;  %v21348_v52 = vadd.f32 %v14521_v45, %v14520_v44 }
 0x69e   :  { %16802 = vmatprep.subr.bf16.mxu1 %v20232_v19 }
 0x6a1   :  { %16804 = vmatpush3.bf16.msra.mxu1 %v20184_v1 }
 0x6a2   :  { %16806 = vmatprep.subr.bf16.mxu1 %v20240_v32 }
 0x6a5   :  { %16808 = vmatpush3.bf16.msra.mxu1 %v20188_v10 }
 0x6a6   :  { %16810 = vmatprep.subr.bf16.mxu1 %v20248_v43 }
 0x6a9   :  { %16812 = vmatpush3.bf16.msra.mxu1 %v20192_v20 }
 0x6aa   :  { %16814 = vmatprep.subr.bf16.mxu1 %v20256_v53 }
 0x6ad   :  { %16816 = vmatpush3.bf16.msra.mxu1 %v20196_v31 }
 0x6ae   :  { %16818 = vmatprep.subr.bf16.mxu1 %v16817_v54 }
 0x6b0   :  { %2773 = vmatmul.mubr.f32.vlgmr.msra.gmra.mrb[88].mxu1 %v12918_v56  ;;  %v12962_v56 = vld [vmem:[%s24427_s4 + $0x100] sm:$0xff] }
 0x6b1   :  { %2777 = vmatprep.mubr.f32.mxu1 %v12921_v59  ;;  %16820 = vmatpush3.bf16.msra.mxu1 %v16817_v54  ;;  %v12963_v59 = vld [vmem:[%s24427_s4 + $0x108] sm:$0xff] }
 0x6b2   :  { %16822 = vmatprep.subr.bf16.mxu1 %v16821_v2 }
 0x6b4   :  { %2778 = vmatmul.mubr.f32.gmra.mrb[90].mxu1 %v12920_v4  ;;  %v14523_v4 = vpop.f32.mrb[120].mxu0 }
 0x6b5   :  { %2782 = vmatprep.mubr.f32.mxu1 %v12923_v9  ;;  %16824 = vmatpush3.bf16.msra.mxu1 %v16821_v2  ;;  %v21356_v9 = vpack.c.bf16 %v12963_v59, %v12962_v56 }
 0x6b7   :  { %16858 = vmatprep.subr.bf16.mxu1 %v21356_v9 }
 0x6b8   :  { %2783 = vmatmul.mubr.f32.gmra.mrb[92].mxu1 %v12922_v14  ;;  %v14524_v14 = vpop.f32.mrb[121].mxu0 }
 0x6b9   :  { %2787 = vmatprep.mubr.f32.mxu1 %v12925_v18  ;;  %v21359_v18 = vadd.f32 %v14524_v14, %v14523_v4 }
 0x6bc   :  { %2788 = vmatmul.mubr.f32.gmra.mrb[94].mxu1 %v12924_v21  ;;  %v14526_v21 = vpop.f32.mrb[122].mxu0 }
 0x6bd   :  { %2792 = vmatprep.mubr.f32.mxu1 %v12927_v24  ;;  %v14527_v24 = vpop.f32.mrb[123].mxu0 }
 0x6c0   :  { %2793 = vmatmul.mubr.f32.gmra.mrb[96].mxu1 %v12926_v28  ;;  %v21361_v28 = vadd.f32 %v14527_v24, %v14526_v21 }
 0x6c1   :  { %2797 = vmatprep.mubr.f32.mxu1 %v12929_v34  ;;  %v14529_v34 = vpop.f32.mrb[124].mxu0 }
 0x6c4   :  { %2798 = vmatmul.mubr.f32.gmra.mrb[98].mxu1 %v12928_v38  ;;  %v14530_v38 = vpop.f32.mrb[125].mxu0 }
 0x6c5   :  { %2802 = vmatprep.mubr.f32.mxu1 %v12931_v42  ;;  %v21363_v42 = vadd.f32 %v14530_v38, %v14529_v34 }
 0x6c8   :  { %2803 = vmatmul.mubr.f32.gmra.mrb[100].mxu1 %v12930_v47  ;;  %v14532_v47 = vpop.f32.mrb[126].mxu0 }
 0x6c9   :  { %2807 = vmatprep.mubr.f32.mxu1 %v12933_v50  ;;  %v14533_v50 = vpop.f32.mrb[127].mxu0 }
 0x6ca   :  { %v14579_v48 = vpop.f32.mrb[128].mxu0 }
 0x6cb   :  { %v14580_v49 = vpop.f32.mrb[129].mxu0 }
 0x6cc   :  { %2808 = vmatmul.mubr.f32.gmra.mrb[102].mxu1 %v12932_v57  ;;  %v21365_v57 = vadd.f32 %v14533_v50, %v14532_v47  ;;  %v21367_v54 = vadd.f32 %v14580_v49, %v14579_v48  ;;  %v14582_v15 = vpop.f32.mrb[130].mxu0 }
 0x6cd   :  { %v14583_v60 = vpop.f32.mrb[131].mxu0 }
 0x6ce   :  { %v21369_v63 = vadd.f32 %v14583_v60, %v14582_v15  ;;  %v14585_v3 = vpop.f32.mrb[132].mxu0 }
 0x6cf   :  { %v14586_v2 = vpop.f32.mrb[133].mxu0 }
 0x6d0   :  { %v21371_v11 = vadd.f32 %v14586_v2, %v14585_v3  ;;  %v14588_v17 = vpop.f32.mrb[134].mxu0 }
 0x6d1   :  { %v14589_v13 = vpop.f32.mrb[135].mxu0 }
 0x6d2   :  { %v21373_v22 = vadd.f32 %v14589_v13, %v14588_v17  ;;  %v14591_v5 = vpop.f32.mrb[136].mxu0 }
 0x6d3   :  { %v14592_v30 = vpop.f32.mrb[137].mxu0 }
 0x6d4   :  { %v21375_v33 = vadd.f32 %v14592_v30, %v14591_v5  ;;  %v14594_v36 = vpop.f32.mrb[138].mxu0 }
 0x6d5   :  { %v14595_v39 = vpop.f32.mrb[139].mxu0 }
 0x6d6   :  { %v21377_v44 = vadd.f32 %v14595_v39, %v14594_v36  ;;  %v14597_v45 = vpop.f32.mrb[140].mxu0 }
 0x6d7   :  { %v14598_v56 = vpop.f32.mrb[141].mxu0 }
 0x6d8   :  { %v21379_v59 = vadd.f32 %v14598_v56, %v14597_v45  ;;  %v14600_v4 = vpop.f32.mrb[142].mxu0 }
 0x6d9   :  { %v14601_v14 = vpop.f32.mrb[143].mxu0 }
 0x6da   :  { %v21381_v21 = vadd.f32 %v14601_v14, %v14600_v4  ;;  %v14647_v24 = vpop.f32.mrb[144].mxu0 }
 0x6db   :  { %v14648_v34 = vpop.f32.mrb[145].mxu0 }
 0x6dc   :  { %v21383_v38 = vadd.f32 %v14648_v34, %v14647_v24  ;;  %v14650_v47 = vpop.f32.mrb[146].mxu0 }
 0x6dd   :  { %v14651_v50 = vpop.f32.mrb[147].mxu0 }
 0x6de   :  { %v21385_v48 = vadd.f32 %v14651_v50, %v14650_v47  ;;  %v14653_v49 = vpop.f32.mrb[148].mxu0 }
 0x6df   :  { %v14654_v15 = vpop.f32.mrb[149].mxu0 }
 0x6e0   :  { %v21387_v60 = vadd.f32 %v14654_v15, %v14653_v49  ;;  %v14656_v3 = vpop.f32.mrb[150].mxu0 }
 0x6e1   :  { %v14657_v2 = vpop.f32.mrb[151].mxu0 }
 0x6e2   :  { %v21389_v17 = vadd.f32 %v14657_v2, %v14656_v3  ;;  %v14659_v13 = vpop.f32.mrb[152].mxu0  ;;  %v12964_v3 = vld [vmem:[%s24427_s4 + $0x110] sm:$0xff]  ;;  %v12965_v2 = vld [vmem:[%s24427_s4 + $0x118] sm:$0xff] }
 0x6e3   :  { %v14660_v5 = vpop.f32.mrb[153].mxu0 }
 0x6e4   :  { %v21391_v30 = vadd.f32 %v14660_v5, %v14659_v13  ;;  %v14662_v36 = vpop.f32.mrb[154].mxu0 }
 0x6e5   :  { %v14663_v39 = vpop.f32.mrb[155].mxu0 }
 0x6e6   :  { %v21393_v45 = vadd.f32 %v14663_v39, %v14662_v36  ;;  %v14665_v56 = vpop.f32.mrb[156].mxu0  ;;  %v13117_v36 = vld [vmem:[%s24426_s3 + $0x718] sm:$0xff] }
 0x6e7   :  { %v14666_v4 = vpop.f32.mrb[157].mxu0  ;;  %4625 = vmatprep.mubr.f32.mxu0 %v13117_v36 }
 0x6e8   :  { %v21395_v14 = vadd.f32 %v14666_v4, %v14665_v56  ;;  %v14668_v24 = vpop.f32.mrb[158].mxu0  ;;  %v16861_v56 = vpack.c.bf16 %v12965_v2, %v12964_v3  ;;  %v13116_v4 = vld [vmem:[%s24426_s3 + $0x710] sm:$0xff] }
 0x6e9   :  { %v14669_v34 = vpop.f32.mrb[159].mxu0  ;;  %4626 = vmatmul.mubr.f32.gmra.mrb[178].mxu0 %v13116_v4  ;;  %v13120_v4 = vld [vmem:[%s24426_s3 + $0x730] sm:$0xff] }
 0x6ea   :  { %v21397_v47 = vadd.f32 %v14669_v34, %v14668_v24  ;;  %v12990_v24 = vld [vmem:[%s24427_s4 + $0x120] sm:$0xff]  ;;  %v12991_v34 = vld [vmem:[%s24427_s4 + $0x128] sm:$0xff] }
 0x6eb   :  { %v21423_v2 = vpack.c.bf16 %v12991_v34, %v12990_v24  ;;  %v13122_v34 = vld [vmem:[%s24426_s3 + $0x740] sm:$0xff] }
 0x783   :  { %v14375_v50 = vpop.f32.mrb[88].mxu1 }
 0x784   :  { %v14376_v49 = vpop.f32.mrb[89].mxu1 }
 0x785   :  { %v14377_v15 = vadd.f32 %v14376_v49, %v14375_v50 }
 0x787   :  { %v14378_v13 = vpop.f32.mrb[90].mxu1  ;;  %15541 = vmatprep.mubr.msk.f32.mxu1 %vm1112_vm1, %v14377_v15  ;;  %v13119_v15 = vld [vmem:[%s24426_s3 + $0x728] sm:$0xff] }
 0x788   :  { %v14379_v5 = vpop.f32.mrb[91].mxu1  ;;  %4630 = vmatprep.mubr.f32.mxu0 %v13119_v15  ;;  %v13125_v15 = vld [vmem:[%s24426_s3 + $0x758] sm:$0xff] }
 0x789   :  { %v14380_v39 = vadd.f32 %v14379_v5, %v14378_v13  ;;  %v13118_v13 = vld [vmem:[%s24426_s3 + $0x720] sm:$0xff] }
 0x78a   :  { %4631 = vmatmul.mubr.f32.gmra.mrb[180].mxu0 %v13118_v13 }
 0x78b   :  { %v14381_v50 = vpop.f32.mrb[92].mxu1  ;;  %15542 = vmatmul.mubr.msk.f32.vlgmr.msra.gmra.mrb[32].mxu1 %vm1112_vm1, %v14380_v39 }
 0x78c   :  { %v14382_v49 = vpop.f32.mrb[93].mxu1  ;;  %16860 = vmatpush3.bf16.msra.mxu1 %v21356_v9  ;;  %v13121_v9 = vld [vmem:[%s24426_s3 + $0x738] sm:$0xff] }
 0x78d   :  { %v14383_v3 = vadd.f32 %v14382_v49, %v14381_v50  ;;  %16862 = vmatprep.subr.bf16.mxu1 %v16861_v56  ;;  %4635 = vmatprep.mubr.f32.mxu0 %v13121_v9  ;;  %v14783_v50 = vpop.f32.mrb[160].mxu0 }
 0x78e   :  { %4636 = vmatmul.mubr.f32.gmra.mrb[182].mxu0 %v13120_v4 }
 0x78f   :  { %v14384_v5 = vpop.f32.mrb[94].mxu1  ;;  %15544 = vmatprep.mubr.msk.f32.mxu1 %vm1112_vm1, %v14383_v3  ;;  %v14784_v3 = vpop.f32.mrb[161].mxu0 }
 0x790   :  { %v14385_v36 = vpop.f32.mrb[95].mxu1  ;;  %16864 = vmatpush3.bf16.msra.mxu1 %v16861_v56  ;;  %v13123_v56 = vld [vmem:[%s24426_s3 + $0x748] sm:$0xff] }
 0x791   :  { %v14386_v39 = vadd.f32 %v14385_v36, %v14384_v5  ;;  %16898 = vmatprep.subr.bf16.mxu1 %v21423_v2  ;;  %4640 = vmatprep.mubr.f32.mxu0 %v13123_v56  ;;  %v21446_v5 = vadd.f32 %v14784_v3, %v14783_v50  ;;  %v21448_v36 = vpop.f32.mrb[162].mxu0  ;;  %v13127_v56 = vld [vmem:[%s24426_s3 + $0x768] sm:$0xff] }
 0x792   :  { %4641 = vmatmul.mubr.f32.gmra.mrb[184].mxu0 %v13122_v34  ;;  %v13126_v34 = vld [vmem:[%s24426_s3 + $0x760] sm:$0xff] }
 0x793   :  { %v14387_v24 = vpop.f32.mrb[96].mxu1  ;;  %15545 = vmatmul.mubr.msk.f32.gmra.mrb[34].mxu1 %vm1112_vm1, %v14386_v39  ;;  %4645 = vmatprep.mubr.f32.mxu0 %v13125_v15  ;;  %v13124_v39 = vld [vmem:[%s24426_s3 + $0x750] sm:$0xff] }
 0x794   :  { %v14388_v49 = vpop.f32.mrb[97].mxu1 }
 0x795   :  { %v14389_v13 = vadd.f32 %v14388_v49, %v14387_v24  ;;  %v13129_v49 = vld [vmem:[%s24426_s3 + $0x778] sm:$0xff] }
 0x796   :  { %4646 = vmatmul.mubr.f32.gmra.mrb[186].mxu0 %v13124_v39 }
 0x797   :  { %v14390_v9 = vpop.f32.mrb[98].mxu1  ;;  %15547 = vmatprep.mubr.msk.f32.mxu1 %vm1112_vm1, %v14389_v13  ;;  %4650 = vmatprep.mubr.f32.mxu0 %v13127_v56  ;;  %v12993_v56 = vld [vmem:[%s24427_s4 + $0x138] sm:$0xff] }
 0x798   :  { %v14391_v4 = vpop.f32.mrb[99].mxu1 }
 0x799   :  { %v14392_v29 = vadd.f32 %v14391_v4, %v14390_v9  ;;  %v13143_v9 = vld [vmem:[%s24426_s3 + $0x788] sm:$0xff]  ;;  %v12992_v4 = vld [vmem:[%s24427_s4 + $0x130] sm:$0xff] }
 0x79a   :  { %4651 = vmatmul.mubr.f32.gmra.mrb[188].mxu0 %v13126_v34  ;;  %v13145_v34 = vld [vmem:[%s24426_s3 + $0x798] sm:$0xff] }
 0x79b   :  { %v14393_v24 = vpop.f32.mrb[100].mxu1  ;;  %15548 = vmatmul.mubr.msk.f32.gmra.mrb[36].mxu1 %vm1112_vm1, %v14392_v29  ;;  %4655 = vmatprep.mubr.f32.mxu0 %v13129_v49  ;;  %v13128_v29 = vld [vmem:[%s24426_s3 + $0x770] sm:$0xff]  ;;  %v13018_v49 = vld [vmem:[%s24427_s4 + $0x140] sm:$0xff] }
 0x79c   :  { %v14394_v50 = vpop.f32.mrb[101].mxu1 }
 0x79d   :  { %v14395_v15 = vadd.f32 %v14394_v50, %v14393_v24  ;;  %v13142_v24 = vld [vmem:[%s24426_s3 + $0x780] sm:$0xff]  ;;  %v16901_v50 = vpack.c.bf16 %v12993_v56, %v12992_v4  ;;  %v13155_v4 = vld [vmem:[%s24426_s3 + $0x7e8] sm:$0xff] }
 0x79e   :  { %4656 = vmatmul.mubr.f32.gmra.mrb[190].mxu0 %v13128_v29 }
 0x79f   :  { %v14396_v3 = vpop.f32.mrb[102].mxu1  ;;  %15550 = vmatprep.mubr.msk.f32.mxu1 %vm1112_vm1, %v14395_v15  ;;  %4884 = vmatprep.mubr.f32.mxu0 %v13143_v9  ;;  %v13019_v15 = vld [vmem:[%s24427_s4 + $0x148] sm:$0xff] }
 0x7a0   :  { %v14397_v13 = vpop.f32.mrb[103].mxu1  ;;  %v16937_v29 = vpack.c.bf16 %v13019_v15, %v13018_v49 }
 0x7a1   :  { %v14398_v39 = vadd.f32 %v14397_v13, %v14396_v3  ;;  %v13147_v3 = vld [vmem:[%s24426_s3 + $0x7a8] sm:$0xff]  ;;  %v13153_v13 = vld [vmem:[%s24426_s3 + $0x7d8] sm:$0xff] }
 0x7a2   :  { %4885 = vmatmul.mubr.f32.vlgmr.msra.gmra.mrb[192].mxu0 %v13142_v24  ;;  %v13049_v24 = vld [vmem:[%s24427_s4 + $0x178] sm:$0xff] }
 0x7a3   :  { %15551 = vmatmul.mubr.msk.f32.gmra.mrb[38].mxu1 %vm1112_vm1, %v14398_v39  ;;  %4889 = vmatprep.mubr.f32.mxu0 %v13145_v34  ;;  %v13046_v39 = vld [vmem:[%s24427_s4 + $0x160] sm:$0xff] }
 0x7a4   :  { %15561 = vmatprep.mubr.msk.f32.mxu1 %vm1112_vm1, %v21188_v62  ;;  %v13144_v62 = vld [vmem:[%s24426_s3 + $0x790] sm:$0xff] }
 0x7a6   :  { %4890 = vmatmul.mubr.f32.gmra.mrb[194].mxu0 %v13144_v62 }
 0x7a7   :  { %15562 = vmatmul.mubr.msk.f32.vlgmr.msra.gmra.mrb[32].mxu1 %vm1112_vm1, %v21190_v7  ;;  %4894 = vmatprep.mubr.f32.mxu0 %v13147_v3  ;;  %v13146_v7 = vld [vmem:[%s24426_s3 + $0x7a0] sm:$0xff] }
 0x7a8   :  { %15564 = vmatprep.mubr.msk.f32.mxu1 %vm1112_vm1, %v21192_v12  ;;  %16900 = vmatpush3.bf16.msra.mxu1 %v21423_v2  ;;  %v13149_v12 = vld [vmem:[%s24426_s3 + $0x7b8] sm:$0xff]  ;;  %v13020_v2 = vld [vmem:[%s24427_s4 + $0x150] sm:$0xff] }
 0x7a9   :  { %16902 = vmatprep.subr.bf16.mxu1 %v16901_v50 }
 0x7aa   :  { %4895 = vmatmul.mubr.f32.gmra.mrb[196].mxu0 %v13146_v7 }
 0x7ab   :  { %15565 = vmatmul.mubr.msk.f32.gmra.mrb[34].mxu1 %vm1112_vm1, %v21194_v6  ;;  %4899 = vmatprep.mubr.f32.mxu0 %v13149_v12  ;;  %v13148_v6 = vld [vmem:[%s24426_s3 + $0x7b0] sm:$0xff] }
 0x7ac   :  { %15567 = vmatprep.mubr.msk.f32.mxu1 %vm1112_vm1, %v21196_v23  ;;  %16904 = vmatpush3.bf16.msra.mxu1 %v16901_v50  ;;  %v13151_v23 = vld [vmem:[%s24426_s3 + $0x7c8] sm:$0xff] }
 0x7ad   :  { %16938 = vmatprep.subr.bf16.mxu1 %v16937_v29 }
 0x7ae   :  { %4900 = vmatmul.mubr.f32.gmra.mrb[198].mxu0 %v13148_v6 }
 0x7af   :  { %15568 = vmatmul.mubr.msk.f32.gmra.mrb[36].mxu1 %vm1112_vm1, %v21330_v58  ;;  %v13021_v58 = vld [vmem:[%s24427_s4 + $0x158] sm:$0xff]  ;;  %4904 = vmatprep.mubr.f32.mxu0 %v13151_v23 }
 0x7b0   :  { %15570 = vmatprep.mubr.msk.f32.mxu1 %vm1112_vm1, %v21338_v16  ;;  %v13150_v16 = vld [vmem:[%s24426_s3 + $0x7c0] sm:$0xff]  ;;  %v16941_v9 = vpack.c.bf16 %v13021_v58, %v13020_v2 }
 0x7b2   :  { %4905 = vmatmul.mubr.f32.gmra.mrb[200].mxu0 %v13150_v16 }
 0x7b3   :  { %15571 = vmatmul.mubr.msk.f32.gmra.mrb[38].mxu1 %vm1112_vm1, %v21340_v25  ;;  %v13047_v25 = vld [vmem:[%s24427_s4 + $0x168] sm:$0xff]  ;;  %4909 = vmatprep.mubr.f32.mxu0 %v13153_v13 }
 0x7b4   :  { %15581 = vmatprep.mubr.msk.f32.mxu1 %vm1112_vm1, %v21342_v26  ;;  %v13152_v26 = vld [vmem:[%s24426_s3 + $0x7d0] sm:$0xff]  ;;  %v16977_v56 = vpack.c.bf16 %v13047_v25, %v13046_v39  ;;  %v13103_v39 = vld [vmem:[%s24427_s4 + $0x1a8] sm:$0xff] }
 0x7b6   :  { %4910 = vmatmul.mubr.f32.gmra.mrb[202].mxu0 %v13152_v26 }
 0x7b7   :  { %15582 = vmatmul.mubr.msk.f32.vlgmr.msra.gmra.mrb[32].mxu1 %vm1112_vm1, %v21344_v35  ;;  %4914 = vmatprep.mubr.f32.mxu0 %v13155_v4  ;;  %v13154_v35 = vld [vmem:[%s24426_s3 + $0x7e0] sm:$0xff] }
 0x7b8   :  { %15584 = vmatprep.mubr.msk.f32.mxu1 %vm1112_vm1, %v21346_v40  ;;  %16940 = vmatpush3.bf16.msra.mxu1 %v16937_v29  ;;  %v13157_v40 = vld [vmem:[%s24426_s3 + $0x7f8] sm:$0xff] }
 0x7b9   :  { %16942 = vmatprep.subr.bf16.mxu1 %v16941_v9 }
 0x7ba   :  { %4915 = vmatmul.mubr.f32.gmra.mrb[204].mxu0 %v13154_v35 }
 0x7bb   :  { %15585 = vmatmul.mubr.msk.f32.gmra.mrb[34].mxu1 %vm1112_vm1, %v21348_v52  ;;  %4919 = vmatprep.mubr.f32.mxu0 %v13157_v40  ;;  %v13156_v52 = vld [vmem:[%s24426_s3 + $0x7f0] sm:$0xff] }
 0x7bc   :  { %15587 = vmatprep.mubr.msk.f32.mxu1 %vm1112_vm1, %v21359_v18  ;;  %16944 = vmatpush3.bf16.msra.mxu1 %v16941_v9  ;;  %v13048_v18 = vld [vmem:[%s24427_s4 + $0x170] sm:$0xff]  ;;  %v13102_v9 = vld [vmem:[%s24427_s4 + $0x1a0] sm:$0xff] }
 0x7bd   :  { %16978 = vmatprep.subr.bf16.mxu1 %v16977_v56  ;;  %v17057_v26 = vpack.c.bf16 %v13103_v39, %v13102_v9  ;;  %v13131_v9 = vld [vmem:[%s24427_s4 + $0x1c8] sm:$0xff] }
 0x7be   :  { %4920 = vmatmul.mubr.f32.gmra.mrb[206].mxu0 %v13156_v52 }
 0x7bf   :  { %15588 = vmatmul.mubr.msk.f32.gmra.mrb[36].mxu1 %vm1112_vm1, %v21361_v28  ;;  %v16981_v28 = vpack.c.bf16 %v13049_v24, %v13048_v18 }
 0x7c0   :  { %15590 = vmatprep.mubr.msk.f32.mxu1 %vm1112_vm1, %v21363_v42  ;;  %v14787_v42 = vpop.f32.mrb[163].mxu0 }
 0x7c3   :  { %15591 = vmatmul.mubr.msk.f32.gmra.mrb[38].mxu1 %vm1112_vm1, %v21365_v57  ;;  %v21677_v57 = vadd.f32 %v14787_v42, %v21448_v36 }
 0x7c4   :  { %15601 = vmatprep.mubr.msk.f32.mxu1 %vm1112_vm1, %v21367_v54  ;;  %v14789_v54 = vpop.f32.mrb[164].mxu0 }
 0x7c7   :  { %15602 = vmatmul.mubr.msk.f32.vlgmr.msra.gmra.mrb[32].mxu1 %vm1112_vm1, %v21369_v63  ;;  %v14790_v63 = vpop.f32.mrb[165].mxu0 }
 0x7c8   :  { %16980 = vmatpush3.bf16.msra.mxu1 %v16977_v56  ;;  %15604 = vmatprep.mubr.msk.f32.mxu1 %vm1112_vm1, %v21371_v11  ;;  %v21679_v11 = vadd.f32 %v14790_v63, %v14789_v54 }
 0x7c9   :  { %16982 = vmatprep.subr.bf16.mxu1 %v16981_v28 }
 0x7cb   :  { %15605 = vmatmul.mubr.msk.f32.gmra.mrb[34].mxu1 %vm1112_vm1, %v21373_v22  ;;  %v14792_v22 = vpop.f32.mrb[166].mxu0 }
 0x7cc   :  { %16984 = vmatpush3.bf16.msra.mxu1 %v16981_v28  ;;  %15607 = vmatprep.mubr.msk.f32.mxu1 %vm1112_vm1, %v21375_v33  ;;  %v14793_v33 = vpop.f32.mrb[167].mxu0 }
 0x7cd   :  { %16986 = vmatprep.subr.bf16.mxu1 %v20200_v41  ;;  %v13067_v41 = vld [vmem:[%s24426_s3 + $0x648] sm:$0xff] }
 0x7cf   :  { %15608 = vmatmul.mubr.msk.f32.gmra.mrb[36].mxu1 %vm1112_vm1, %v21377_v44  ;;  %v13074_v44 = vld [vmem:[%s24427_s4 + $0x180] sm:$0xff] }
 0x7d0   :  { %15610 = vmatprep.mubr.msk.f32.mxu1 %vm1112_vm1, %v21379_v59  ;;  %v13075_v59 = vld [vmem:[%s24427_s4 + $0x188] sm:$0xff] }
 0x7d3   :  { %15611 = vmatmul.mubr.msk.f32.gmra.mrb[38].mxu1 %vm1112_vm1, %v21381_v21  ;;  %v21687_v21 = vadd.f32 %v14793_v33, %v14792_v22 }
 0x7d4   :  { %15621 = vmatprep.mubr.msk.f32.mxu1 %vm1112_vm1, %v21383_v38  ;;  %v17017_v38 = vpack.c.bf16 %v13075_v59, %v13074_v44 }
 0x7d7   :  { %15622 = vmatmul.mubr.msk.f32.vlgmr.msra.gmra.mrb[32].mxu1 %vm1112_vm1, %v21385_v48  ;;  %v14795_v48 = vpop.f32.mrb[168].mxu0 }
 0x7d8   :  { %16988 = vmatpush3.bf16.msra.mxu1 %v20168_v27  ;;  %15624 = vmatprep.mubr.msk.f32.mxu1 %vm1112_vm1, %v21387_v60  ;;  %v13059_v27 = vld [vmem:[%s24426_s3 + $0x608] sm:$0xff]  ;;  %v14796_v60 = vpop.f32.mrb[169].mxu0 }
 0x7d9   :  { %16990 = vmatprep.subr.bf16.mxu1 %v20208_v51  ;;  %v13066_v51 = vld [vmem:[%s24426_s3 + $0x640] sm:$0xff] }
 0x7db   :  { %15625 = vmatmul.mubr.msk.f32.gmra.mrb[34].mxu1 %vm1112_vm1, %v21389_v17  ;;  %v13076_v17 = vld [vmem:[%s24427_s4 + $0x190] sm:$0xff] }
 0x7dc   :  { %16992 = vmatpush3.bf16.msra.mxu1 %v20172_v37  ;;  %15627 = vmatprep.mubr.msk.f32.mxu1 %vm1112_vm1, %v21391_v30  ;;  %v13058_v37 = vld [vmem:[%s24426_s3 + $0x600] sm:$0xff]  ;;  %v13077_v30 = vld [vmem:[%s24427_s4 + $0x198] sm:$0xff] }
 0x7dd   :  { %16994 = vmatprep.subr.bf16.mxu1 %v20216_v61  ;;  %v13069_v61 = vld [vmem:[%s24426_s3 + $0x658] sm:$0xff] }
 0x7df   :  { %15628 = vmatmul.mubr.msk.f32.gmra.mrb[36].mxu1 %vm1112_vm1, %v21393_v45  ;;  %v21695_v45 = vadd.f32 %v14796_v60, %v14795_v48 }
 0x7e0   :  { %16996 = vmatpush3.bf16.msra.mxu1 %v20176_v46  ;;  %15630 = vmatprep.mubr.msk.f32.mxu1 %vm1112_vm1, %v21395_v14  ;;  %v13061_v46 = vld [vmem:[%s24426_s3 + $0x618] sm:$0xff]  ;;  %v17021_v14 = vpack.c.bf16 %v13077_v30, %v13076_v17 }
 0x7e1   :  { %16998 = vmatprep.subr.bf16.mxu1 %v20224_v8  ;;  %v13068_v8 = vld [vmem:[%s24426_s3 + $0x650] sm:$0xff] }
 0x7e3   :  { %15631 = vmatmul.mubr.msk.f32.gmra.mrb[38].mxu1 %vm1112_vm1, %v21397_v47  ;;  %v14798_v47 = vpop.f32.mrb[170].mxu0 }
 0x7e4   :  { %17000 = vmatpush3.bf16.msra.mxu1 %v20180_v55  ;;  %4092 = vmatprep.mubr.f32.mxu1 %v13059_v27  ;;  %v13060_v55 = vld [vmem:[%s24426_s3 + $0x610] sm:$0xff]  ;;  %v14799_v36 = vpop.f32.mrb[171].mxu0 }
 0x7e5   :  { %17002 = vmatprep.subr.bf16.mxu1 %v20232_v19  ;;  %v13071_v19 = vld [vmem:[%s24426_s3 + $0x668] sm:$0xff]  ;;  %v21697_v34 = vadd.f32 %v14799_v36, %v14798_v47  ;;  %v14801_v50 = vpop.f32.mrb[172].mxu0 }
 0x7e6   :  { %v14802_v49 = vpop.f32.mrb[173].mxu0 }
 0x7e7   :  { %v21699_v15 = vadd.f32 %v14802_v49, %v14801_v50  ;;  %v14804_v62 = vpop.f32.mrb[174].mxu0 }
 0x7e8   :  { %17004 = vmatpush3.bf16.msra.mxu1 %v20184_v1  ;;  %v13063_v1 = vld [vmem:[%s24426_s3 + $0x628] sm:$0xff]  ;;  %v14805_v3 = vpop.f32.mrb[175].mxu0 }
 0x7e9   :  { %17006 = vmatprep.subr.bf16.mxu1 %v20240_v32  ;;  %v13070_v32 = vld [vmem:[%s24426_s3 + $0x660] sm:$0xff]  ;;  %v21701_v29 = vadd.f32 %v14805_v3, %v14804_v62  ;;  %v14851_v7 = vpop.f32.mrb[176].mxu0  ;;  %v13104_v3 = vld [vmem:[%s24427_s4 + $0x1b0] sm:$0xff] }
 0x7ea   :  { %v14852_v12 = vpop.f32.mrb[177].mxu0 }
 0x7eb   :  { %v21703_v6 = vadd.f32 %v14852_v12, %v14851_v7  ;;  %v14854_v23 = vpop.f32.mrb[178].mxu0  ;;  %v13105_v7 = vld [vmem:[%s24427_s4 + $0x1b8] sm:$0xff] }
 0x7ec   :  { %17008 = vmatpush3.bf16.msra.mxu1 %v20188_v10  ;;  %v13062_v10 = vld [vmem:[%s24426_s3 + $0x620] sm:$0xff]  ;;  %v14855_v2 = vpop.f32.mrb[179].mxu0 }
 0x7ed   :  { %17010 = vmatprep.subr.bf16.mxu1 %v20248_v43  ;;  %v13073_v43 = vld [vmem:[%s24426_s3 + $0x678] sm:$0xff]  ;;  %v21705_v58 = vadd.f32 %v14855_v2, %v14854_v23 }
 0x7f0   :  { %17012 = vmatpush3.bf16.msra.mxu1 %v20192_v20  ;;  %v13065_v20 = vld [vmem:[%s24426_s3 + $0x638] sm:$0xff] }
 0x7f1   :  { %17014 = vmatprep.subr.bf16.mxu1 %v20256_v53  ;;  %v13072_v53 = vld [vmem:[%s24426_s3 + $0x670] sm:$0xff] }
 0x7f4   :  { %17016 = vmatpush3.bf16.msra.mxu1 %v20196_v31  ;;  %v13064_v31 = vld [vmem:[%s24426_s3 + $0x630] sm:$0xff] }
 0x7f5   :  { %17018 = vmatprep.subr.bf16.mxu1 %v17017_v38 }
 0x7f7   :  { %4093 = vmatmul.mubr.f32.vlgmr.msra.gmra.mrb[104].mxu1 %v13058_v37 }
 0x7f8   :  { %4097 = vmatprep.mubr.f32.mxu1 %v13061_v46  ;;  %17020 = vmatpush3.bf16.msra.mxu1 %v17017_v38 }
 0x7f9   :  { %17022 = vmatprep.subr.bf16.mxu1 %v17021_v14 }
 0x7fb   :  { %4098 = vmatmul.mubr.f32.gmra.mrb[106].mxu1 %v13060_v55 }
 0x7fc   :  { %4102 = vmatprep.mubr.f32.mxu1 %v13063_v1  ;;  %17024 = vmatpush3.bf16.msra.mxu1 %v17021_v14 }
 0x7fd   :  { %17058 = vmatprep.subr.bf16.mxu1 %v17057_v26 }
 0x7ff   :  { %4103 = vmatmul.mubr.f32.gmra.mrb[108].mxu1 %v13062_v10 }
 0x800   :  { %4107 = vmatprep.mubr.f32.mxu1 %v13065_v20 }
 0x803   :  { %4108 = vmatmul.mubr.f32.gmra.mrb[110].mxu1 %v13064_v31 }
 0x804   :  { %4112 = vmatprep.mubr.f32.mxu1 %v13067_v41 }
 0x807   :  { %4113 = vmatmul.mubr.f32.gmra.mrb[112].mxu1 %v13066_v51 }
 0x808   :  { %4117 = vmatprep.mubr.f32.mxu1 %v13069_v61 }
 0x80b   :  { %4118 = vmatmul.mubr.f32.gmra.mrb[114].mxu1 %v13068_v8 }
 0x80c   :  { %4122 = vmatprep.mubr.f32.mxu1 %v13071_v19 }
 0x80f   :  { %4123 = vmatmul.mubr.f32.gmra.mrb[116].mxu1 %v13070_v32 }
 0x810   :  { %4127 = vmatprep.mubr.f32.mxu1 %v13073_v43 }
 0x813   :  { %4128 = vmatmul.mubr.f32.gmra.mrb[118].mxu1 %v13072_v53 }
 0x85d   :  { %v14857_v16 = vpop.f32.mrb[180].mxu0 }
 0x85e   :  { %v14858_v13 = vpop.f32.mrb[181].mxu0 }
 0x85f   :  { %v21713_v25 = vadd.f32 %v14858_v13, %v14857_v16  ;;  %v17061_v16 = vpack.c.bf16 %v13105_v7, %v13104_v3  ;;  %v13130_v13 = vld [vmem:[%s24427_s4 + $0x1c0] sm:$0xff] }
 0x861   :  { %v14860_v4 = vpop.f32.mrb[182].mxu0 }
 0x862   :  { %v14861_v56 = vpop.f32.mrb[183].mxu0 }
 0x863   :  { %v21715_v35 = vadd.f32 %v14861_v56, %v14860_v4 }
 0x865   :  { %v14863_v40 = vpop.f32.mrb[184].mxu0 }
 0x866   :  { %v14864_v52 = vpop.f32.mrb[185].mxu0 }
 0x867   :  { %v21717_v18 = vadd.f32 %v14864_v52, %v14863_v40  ;;  %v17097_v40 = vpack.c.bf16 %v13131_v9, %v13130_v13  ;;  %v5438_v13 = vld [vmem:[#allocation2 + $0x20] sm:$0xff]  ;;  %v5439_v9 = vld [vmem:[#allocation2 + $0x28] sm:$0xff] }
 0x869   :  { %v14866_v24 = vpop.f32.mrb[186].mxu0 }
 0x86a   :  { %v14867_v28 = vpop.f32.mrb[187].mxu0 }
 0x86b   :  { %v21719_v27 = vadd.f32 %v14867_v28, %v14866_v24 }
 0x86d   :  { %v14869_v37 = vpop.f32.mrb[188].mxu0 }
 0x86e   :  { %v14870_v46 = vpop.f32.mrb[189].mxu0 }
 0x86f   :  { %v21721_v55 = vadd.f32 %v14870_v46, %v14869_v37 }
 0x871   :  { %v14872_v1 = vpop.f32.mrb[190].mxu0 }
 0x872   :  { %v14873_v10 = vpop.f32.mrb[191].mxu0 }
 0x873   :  { %v21723_v20 = vadd.f32 %v14873_v10, %v14872_v1 }
 0x875   :  { %v14919_v31 = vpop.f32.mrb[192].mxu0 }
 0x876   :  { %v14920_v41 = vpop.f32.mrb[193].mxu0 }
 0x877   :  { %v21725_v51 = vadd.f32 %v14920_v41, %v14919_v31 }
 0x879   :  { %v14922_v61 = vpop.f32.mrb[194].mxu0 }
 0x87a   :  { %v14923_v8 = vpop.f32.mrb[195].mxu0 }
 0x87b   :  { %v21727_v19 = vadd.f32 %v14923_v8, %v14922_v61 }
 0x87d   :  { %v14925_v32 = vpop.f32.mrb[196].mxu0 }
 0x87e   :  { %v14926_v43 = vpop.f32.mrb[197].mxu0 }
 0x87f   :  { %v21729_v53 = vadd.f32 %v14926_v43, %v14925_v32 }
 0x881   :  { %v14928_v42 = vpop.f32.mrb[198].mxu0 }
 0x882   :  { %v14929_v54 = vpop.f32.mrb[199].mxu0 }
 0x883   :  { %v21731_v63 = vadd.f32 %v14929_v54, %v14928_v42  ;;  %v13132_v54 = vld [vmem:[%s24427_s4 + $0x1d0] sm:$0xff] }
 0x885   :  { %v14931_v22 = vpop.f32.mrb[200].mxu0 }
 0x886   :  { %v14932_v33 = vpop.f32.mrb[201].mxu0 }
 0x887   :  { %v21733_v44 = vadd.f32 %v14932_v33, %v14931_v22  ;;  %v13133_v22 = vld [vmem:[%s24427_s4 + $0x1d8] sm:$0xff] }
 0x888   :  { %v17101_v33 = vpack.c.bf16 %v13133_v22, %v13132_v54  ;;  %v13182_v54 = vld [vmem:[%s24430_s7 + $0x78] sm:$0xff] }
 0x889   :  { %v14934_v59 = vpop.f32.mrb[202].mxu0 }
 0x88a   :  { %v14935_v38 = vpop.f32.mrb[203].mxu0 }
 0x88b   :  { %v21735_v48 = vadd.f32 %v14935_v38, %v14934_v59  ;;  %v13158_v59 = vld [vmem:[%s24427_s4 + $0x1e0] sm:$0xff]  ;;  %v13159_v38 = vld [vmem:[%s24427_s4 + $0x1e8] sm:$0xff] }
 0x88d   :  { %v14937_v60 = vpop.f32.mrb[204].mxu0 }
 0x88e   :  { %v14938_v17 = vpop.f32.mrb[205].mxu0 }
 0x88f   :  { %v21737_v30 = vadd.f32 %v14938_v17, %v14937_v60  ;;  %v17137_v60 = vpack.c.bf16 %v13159_v38, %v13158_v59  ;;  %v5175_v59 = vld [vmem:[%s24430_s7 + $0x8] sm:$0xff] }
 0x891   :  { %v14940_v14 = vpop.f32.mrb[206].mxu0 }
 0x892   :  { %v14941_v47 = vpop.f32.mrb[207].mxu0 }
 0x893   :  { %v21739_v36 = vadd.f32 %v14941_v47, %v14940_v14 }
 0x8ca   :  { %v14715_v50 = vpop.f32.mrb[104].mxu1 }
 0x8cb   :  { %v14716_v49 = vpop.f32.mrb[105].mxu1 }
 0x8cc   :  { %v14717_v62 = vadd.f32 %v14716_v49, %v14715_v50 }
 0x8ce   :  { %v14718_v12 = vpop.f32.mrb[106].mxu1  ;;  %15641 = vmatprep.mubr.msk.f32.mxu1 %vm1112_vm1, %v14717_v62 }
 0x8cf   :  { %v14719_v23 = vpop.f32.mrb[107].mxu1 }
 0x8d0   :  { %v14720_v2 = vadd.f32 %v14719_v23, %v14718_v12 }
 0x8d2   :  { %v14721_v39 = vpop.f32.mrb[108].mxu1  ;;  %15642 = vmatmul.mubr.msk.f32.vlgmr.msra.gmra.mrb[32].mxu1 %vm1112_vm1, %v14720_v2  ;;  %v5184_v2 = vld [vmem:[#allocation2 + $0x18] sm:$0xff] }
 0x8d3   :  { %v14722_v4 = vpop.f32.mrb[109].mxu1  ;;  %17060 = vmatpush3.bf16.msra.mxu1 %v17057_v26 }
 0x8d4   :  { %v14723_v56 = vadd.f32 %v14722_v4, %v14721_v39  ;;  %17062 = vmatprep.subr.bf16.mxu1 %v17061_v16  ;;  %v5614_v39 = vld [vmem:[#allocation2 + $0x30] sm:$0xff]  ;;  %v5615_v4 = vld [vmem:[#allocation2 + $0x38] sm:$0xff] }
 0x8d6   :  { %v14724_v52 = vpop.f32.mrb[110].mxu1  ;;  %15644 = vmatprep.mubr.msk.f32.mxu1 %vm1112_vm1, %v14723_v56  ;;  %v5790_v56 = vld [vmem:[#allocation2 + $0x40] sm:$0xff] }
 0x8d7   :  { %v14725_v24 = vpop.f32.mrb[111].mxu1  ;;  %17064 = vmatpush3.bf16.msra.mxu1 %v17061_v16  ;;  %v5091_v16 = vld [vmem:[#allocation2 + $0x8] sm:$0xff] }
 0x8d8   :  { %v14726_v28 = vadd.f32 %v14725_v24, %v14724_v52  ;;  %17098 = vmatprep.subr.bf16.mxu1 %v17097_v40  ;;  %v5966_v52 = vld [vmem:[#allocation2 + $0x50] sm:$0xff]  ;;  %v5967_v24 = vld [vmem:[#allocation2 + $0x58] sm:$0xff] }
 0x8da   :  { %v14727_v37 = vpop.f32.mrb[112].mxu1  ;;  %15645 = vmatmul.mubr.msk.f32.gmra.mrb[34].mxu1 %vm1112_vm1, %v14726_v28  ;;  %v6142_v28 = vld [vmem:[#allocation2 + $0x60] sm:$0xff] }
 0x8db   :  { %v14728_v46 = vpop.f32.mrb[113].mxu1 }
 0x8dc   :  { %v14729_v1 = vadd.f32 %v14728_v46, %v14727_v37  ;;  %v13175_v37 = vld [vmem:[%s24430_s7 + $0x40] sm:$0xff]  ;;  %v13176_v46 = vld [vmem:[%s24430_s7 + $0x48] sm:$0xff] }
 0x8de   :  { %v14730_v10 = vpop.f32.mrb[114].mxu1  ;;  %15647 = vmatprep.mubr.msk.f32.mxu1 %vm1112_vm1, %v14729_v1  ;;  %v17177_v1 = vpack.c.bf16 %v13176_v46, %v13175_v37  ;;  %v13203_v46 = vld [vmem:[%s24430_s7 + $0xd0] sm:$0xff] }
 0x8df   :  { %v14731_v31 = vpop.f32.mrb[115].mxu1 }
 0x8e0   :  { %v14732_v26 = vadd.f32 %v14731_v31, %v14730_v10  ;;  %v13177_v10 = vld [vmem:[%s24430_s7 + $0x50] sm:$0xff]  ;;  %v13178_v31 = vld [vmem:[%s24430_s7 + $0x58] sm:$0xff] }
 0x8e2   :  { %v14733_v41 = vpop.f32.mrb[116].mxu1  ;;  %15648 = vmatmul.mubr.msk.f32.gmra.mrb[36].mxu1 %vm1112_vm1, %v14732_v26  ;;  %v17181_v26 = vpack.c.bf16 %v13178_v31, %v13177_v10 }
 0x8e3   :  { %v14734_v61 = vpop.f32.mrb[117].mxu1 }
 0x8e4   :  { %v14735_v8 = vadd.f32 %v14734_v61, %v14733_v41  ;;  %v13179_v41 = vld [vmem:[%s24430_s7 + $0x60] sm:$0xff]  ;;  %v13180_v61 = vld [vmem:[%s24430_s7 + $0x68] sm:$0xff] }
 0x8e6   :  { %v14736_v32 = vpop.f32.mrb[118].mxu1  ;;  %15650 = vmatprep.mubr.msk.f32.mxu1 %vm1112_vm1, %v14735_v8  ;;  %v17185_v8 = vpack.c.bf16 %v13180_v61, %v13179_v41  ;;  %v13205_v41 = vld [vmem:[%s24430_s7 + $0xe0] sm:$0xff]  ;;  %v13206_v61 = vld [vmem:[%s24430_s7 + $0xe8] sm:$0xff] }
 0x8e7   :  { %v14737_v43 = vpop.f32.mrb[119].mxu1 }
 0x8e8   :  { %v14738_v42 = vadd.f32 %v14737_v43, %v14736_v32  ;;  %v6143_v32 = vld [vmem:[#allocation2 + $0x68] sm:$0xff]  ;;  %v6318_v43 = vld [vmem:[#allocation2 + $0x70] sm:$0xff] }
 0x8ea   :  { %15651 = vmatmul.mubr.msk.f32.gmra.mrb[38].mxu1 %vm1112_vm1, %v14738_v42  ;;  %v13181_v42 = vld [vmem:[%s24430_s7 + $0x70] sm:$0xff] }
 0x8eb   :  { %15661 = vmatprep.mubr.msk.f32.mxu1 %vm1112_vm1, %v21446_v5  ;;  %v13160_v5 = vld [vmem:[%s24427_s4 + $0x1f0] sm:$0xff]  ;;  %v17189_v22 = vpack.c.bf16 %v13182_v54, %v13181_v42  ;;  %v13213_v54 = vld [vmem:[%s24430_s7 + $0x100] sm:$0xff] }
 0x8ee   :  { %15662 = vmatmul.mubr.msk.f32.vlgmr.msra.gmra.mrb[32].mxu1 %vm1112_vm1, %v21677_v57  ;;  %v13161_v57 = vld [vmem:[%s24427_s4 + $0x1f8] sm:$0xff] }
 0x8ef   :  { %15664 = vmatprep.mubr.msk.f32.mxu1 %vm1112_vm1, %v21679_v11  ;;  %17100 = vmatpush3.bf16.msra.mxu1 %v17097_v40  ;;  %v17141_v11 = vpack.c.bf16 %v13161_v57, %v13160_v5  ;;  %v5791_v40 = vld [vmem:[#allocation2 + $0x48] sm:$0xff]  ;;  %v6494_v5 = vld [vmem:[#allocation2 + $0x80] sm:$0xff] }
 0x8f0   :  { %17102 = vmatprep.subr.bf16.mxu1 %v17101_v33  ;;  %v6495_v57 = vld [vmem:[#allocation2 + $0x88] sm:$0xff] }
 0x8f2   :  { %15665 = vmatmul.mubr.msk.f32.gmra.mrb[34].mxu1 %vm1112_vm1, %v21687_v21  ;;  %v5183_v21 = vld [vmem:[#allocation2 + $0x10] sm:$0xff] }
 0x8f3   :  { %15667 = vmatprep.mubr.msk.f32.mxu1 %vm1112_vm1, %v21695_v45  ;;  %17104 = vmatpush3.bf16.msra.mxu1 %v17101_v33  ;;  %v5090_v45 = vld [vmem:[#allocation2] sm:$0xff] }
 0x8f4   :  { %17138 = vmatprep.subr.bf16.mxu1 %v17137_v60  ;;  %15748 = vmatprep.mubr.msk.f32.mxu0 %vm5092_vm2, %v5183_v21  ;;  %v5174_v33 = vld [vmem:[%s24430_s7] sm:$0xff]  ;;  %v6671_v21 = vld [vmem:[#allocation2 + $0x98] sm:$0xff] }
 0x8f5   :  { %v21942_v38 = vpack.c.bf16 %v5175_v59, %v5174_v33  ;;  %v13215_v59 = vld [vmem:[%s24430_s7 + $0x110] sm:$0xff] }
 0x8f6   :  { %15668 = vmatmul.mubr.msk.f32.gmra.mrb[36].mxu1 %vm1112_vm1, %v21697_v34  ;;  %v13170_v34 = vld [vmem:[%s24428_s5] ss:$0 sm:$0xff] }
 0x8f7   :  { %15670 = vmatprep.mubr.msk.f32.mxu1 %vm1112_vm1, %v21699_v15 }
 0x8fa   :  { %15671 = vmatmul.mubr.msk.f32.gmra.mrb[38].mxu1 %vm1112_vm1, %v21701_v29 }
 0x8fb   :  { %15681 = vmatprep.mubr.msk.f32.mxu1 %vm1112_vm1, %v21703_v6 }
 0x8fe   :  { %15682 = vmatmul.mubr.msk.f32.vlgmr.msra.gmra.mrb[32].mxu1 %vm1112_vm1, %v21705_v58 }
 0x8ff   :  { %15684 = vmatprep.mubr.msk.f32.mxu1 %vm1112_vm1, %v21713_v25  ;;  %17140 = vmatpush3.bf16.msra.mxu1 %v17137_v60  ;;  %v6319_v60 = vld [vmem:[#allocation2 + $0x78] sm:$0xff] }
 0x900   :  { %17142 = vmatprep.subr.bf16.mxu1 %v17141_v11 }
 0x902   :  { %15685 = vmatmul.mubr.msk.f32.gmra.mrb[34].mxu1 %vm1112_vm1, %v21715_v35 }
 0x903   :  { %15687 = vmatprep.mubr.msk.f32.mxu1 %vm1112_vm1, %v21717_v18  ;;  %17144 = vmatpush3.bf16.msra.mxu1 %v17141_v11  ;;  %v6670_v11 = vld [vmem:[#allocation2 + $0x90] sm:$0xff] }
 0x906   :  { %15688 = vmatmul.mubr.msk.f32.gmra.mrb[36].mxu1 %vm1112_vm1, %v21719_v27 }
 0x907   :  { %15690 = vmatprep.mubr.msk.f32.mxu1 %vm1112_vm1, %v21721_v55 }
 0x90a   :  { %15691 = vmatmul.mubr.msk.f32.gmra.mrb[38].mxu1 %vm1112_vm1, %v21723_v20 }
 0x90b   :  { %15701 = vmatprep.mubr.msk.f32.mxu1 %vm1112_vm1, %v21725_v51 }
 0x90e   :  { %15702 = vmatmul.mubr.msk.f32.vlgmr.msra.gmra.mrb[32].mxu1 %vm1112_vm1, %v21727_v19 }
 0x90f   :  { %15704 = vmatprep.mubr.msk.f32.mxu1 %vm1112_vm1, %v21729_v53 }
 0x912   :  { %15705 = vmatmul.mubr.msk.f32.gmra.mrb[34].mxu1 %vm1112_vm1, %v21731_v63 }
 0x913   :  { %15707 = vmatprep.mubr.msk.f32.mxu1 %vm1112_vm1, %v21733_v44 }
 0x916   :  { %15708 = vmatmul.mubr.msk.f32.gmra.mrb[36].mxu1 %vm1112_vm1, %v21735_v48 }
 0x917   :  { %15710 = vmatprep.mubr.msk.f32.mxu1 %vm1112_vm1, %v21737_v30 }
 0x91a   :  { %15711 = vmatmul.mubr.msk.f32.gmra.mrb[38].mxu1 %vm1112_vm1, %v21739_v36 }
 0x91b   :  { %15729 = vmatprep.mubr.msk.f32.mxu1 %vm5092_vm2, %v5090_v45  ;;  %v6846_v45 = vld [vmem:[#allocation2 + $0xa0] sm:$0xff] }
 0x9e1   :  { %v15703_v15 = vpop.f32.mrb[32].mxu1 }
 0x9e2   :  { %v5075_v29 = vadd.f32 %v15703_v15, %v13170_v34  ;;  %v5020_v6 = vpop.f32.mrb[33].mxu1  ;;  %v7022_v15 = vld [vmem:[#allocation2 + $0xb0] sm:$0xff] }
 0x9e3   :  { %v5074_v58 = vadd.f32 %v13170_v34, %v5020_v6  ;;  %v7198_v6 = vld [vmem:[#allocation2 + $0xc0] sm:$0xff] }
 0x9e4   :  { %v5083_v25 = vmax.f32 %v5075_v29, 0.0  ;;  %v7023_v29 = vld [vmem:[#allocation2 + $0xb8] sm:$0xff] }
 0x9e5   :  { %v5082_v35 = vmax.f32 %v5074_v58, 0.0  ;;  %v15706_v18 = vpop.f32.mrb[34].mxu1  ;;  %v7199_v58 = vld [vmem:[#allocation2 + $0xc8] sm:$0xff] }
 0x9e6   :  { %v5077_v27 = vadd.f32 %v15706_v18, %v13170_v34  ;;  %v5030_v55 = vpop.f32.mrb[35].mxu1  ;;  %v7550_v18 = vld [vmem:[#allocation2 + $0xe0] sm:$0xff] }
 0x9e7   :  { %v21832_v20 = vpack.c.bf16 %v5083_v25, %v5082_v35  ;;  %v5076_v51 = vadd.f32 %v13170_v34, %v5030_v55  ;;  %v7374_v25 = vld [vmem:[#allocation2 + $0xd0] sm:$0xff]  ;;  %v7375_v35 = vld [vmem:[#allocation2 + $0xd8] sm:$0xff] }
 0x9e8   :  { %v5085_v19 = vmax.f32 %v5077_v27, 0.0  ;;  %v7551_v27 = vld [vmem:[#allocation2 + $0xe8] sm:$0xff]  ;;  %v7726_v55 = vld [vmem:[#allocation2 + $0xf0] sm:$0xff] }
 0x9e9   :  { %v5084_v53 = vmax.f32 %v5076_v51, 0.0  ;;  %v15709_v63 = vpop.f32.mrb[36].mxu1  ;;  %17146 = vmatprep.subr.bf16.mxu1 %v21832_v20  ;;  %17162 = vmatprep.subr.bf16.mxu0 %v21832_v20  ;;  %v5176_v51 = vld [vmem:[%s24430_s7 + $0x10] sm:$0xff] }
 0x9ea   :  { %v5079_v44 = vadd.f32 %v15709_v63, %v13170_v34  ;;  %v5040_v48 = vpop.f32.mrb[37].mxu1  ;;  %17148 = vmatpush3.bf16.msra.mxu1 %v21832_v20  ;;  %17164 = vmatpush3.bf16.msra.mxu0 %v21832_v20 }
 0x9eb   :  { %v21838_v17 = vpack.c.bf16 %v5085_v19, %v5084_v53  ;;  %v5078_v30 = vadd.f32 %v13170_v34, %v5040_v48  ;;  %v5177_v19 = vld [vmem:[%s24430_s7 + $0x18] sm:$0xff] }
 0x9ec   :  { %v5087_v14 = vmax.f32 %v5079_v44, 0.0  ;;  %v17197_v48 = vpack.c.bf16 %v5177_v19, %v5176_v51  ;;  %v13229_v19 = vld [vmem:[%s24430_s7 + $0x160] sm:$0xff] }
 0x9ed   :  { %v5086_v47 = vmax.f32 %v5078_v30, 0.0  ;;  %v15712_v36 = vpop.f32.mrb[38].mxu1  ;;  %17150 = vmatprep.subr.bf16.mxu1 %v21838_v17  ;;  %17166 = vmatprep.subr.bf16.mxu0 %v21838_v17 }
 0x9ee   :  { %v5081_v50 = vadd.f32 %v15712_v36, %v13170_v34  ;;  %v5050_v49 = vpop.f32.mrb[39].mxu1  ;;  %17152 = vmatpush3.bf16.msra.mxu1 %v21838_v17  ;;  %17168 = vmatpush3.bf16.msra.mxu0 %v21838_v17  ;;  %v5181_v36 = vld [vmem:[%s24430_s7 + $0x38] sm:$0xff] }
 0x9ef   :  { %v21844_v62 = vpack.c.bf16 %v5087_v14, %v5086_v47  ;;  %v5080_v3 = vadd.f32 %v13170_v34, %v5050_v49  ;;  %v6847_v34 = vld [vmem:[#allocation2 + $0xa8] sm:$0xff]  ;;  %v13189_v49 = vld [vmem:[%s24430_s7 + $0x80] sm:$0xff] }
 0x9f0   :  { %v5089_v7 = vmax.f32 %v5081_v50, 0.0  ;;  %v5179_v14 = vld [vmem:[%s24430_s7 + $0x28] sm:$0xff] }
 0x9f1   :  { %v5088_v12 = vmax.f32 %v5080_v3, 0.0  ;;  %17154 = vmatprep.subr.bf16.mxu1 %v21844_v62  ;;  %17170 = vmatprep.subr.bf16.mxu0 %v21844_v62  ;;  %v7727_v3 = vld [vmem:[#allocation2 + $0xf8] sm:$0xff] }
 0x9f2   :  { %17156 = vmatpush3.bf16.msra.mxu1 %v21844_v62  ;;  %17172 = vmatpush3.bf16.msra.mxu0 %v21844_v62 }
 0x9f3   :  { %v21850_v23 = vpack.c.bf16 %v5089_v7, %v5088_v12  ;;  %v13191_v12 = vld [vmem:[%s24430_s7 + $0x90] sm:$0xff] }
 0x9f5   :  { %17158 = vmatprep.subr.bf16.mxu1 %v21850_v23  ;;  %17174 = vmatprep.subr.bf16.mxu0 %v21850_v23 }
 0x9f6   :  { %17160 = vmatpush3.bf16.msra.mxu1 %v21850_v23  ;;  %17176 = vmatpush3.bf16.msra.mxu0 %v21850_v23 }
 0x9f7   :  { %17210 = vmatprep.subr.bf16.mxu0 %v21832_v20  ;;  %17178 = vmatprep.subr.bf16.mxu1 %v17177_v1 }
 0x9f9   :  { %15749 = vmatmul.mubr.msk.f32.vlgmr.msra.gmra.mrb[208].mxu0 %vm5092_vm2, %v5184_v2  ;;  %15730 = vmatmul.mubr.msk.f32.vlgmr.msra.gmra.mrb[120].mxu1 %vm5092_vm2, %v5091_v16 }
 0x9fa   :  { %17212 = vmatpush3.bf16.msra.mxu0 %v21832_v20  ;;  %15805 = vmatprep.mubr.msk.f32.mxu0 %vm5092_vm2, %v5438_v13 }
 0x9fb   :  { %17214 = vmatprep.subr.bf16.mxu0 %v21838_v17  ;;  %17180 = vmatpush3.bf16.msra.mxu1 %v17177_v1  ;;  %v13204_v1 = vld [vmem:[%s24430_s7 + $0xd8] sm:$0xff] }
 0x9fc   :  { %17182 = vmatprep.subr.bf16.mxu1 %v17181_v26  ;;  %v17261_v31 = vpack.c.bf16 %v13204_v1, %v13203_v46  ;;  %v13255_v1 = vld [vmem:[%s24430_s7 + $0x1f0] sm:$0xff] }
 0x9fe   :  { %17216 = vmatpush3.bf16.msra.mxu0 %v21838_v17 }
 0x9ff   :  { %17218 = vmatprep.subr.bf16.mxu0 %v21844_v62  ;;  %17184 = vmatpush3.bf16.msra.mxu1 %v17181_v26 }
 0xa00   :  { %17186 = vmatprep.subr.bf16.mxu1 %v17185_v8 }
 0xa02   :  { %17220 = vmatpush3.bf16.msra.mxu0 %v21844_v62 }
 0xa03   :  { %17222 = vmatprep.subr.bf16.mxu0 %v21850_v23  ;;  %17188 = vmatpush3.bf16.msra.mxu1 %v17185_v8  ;;  %v17265_v8 = vpack.c.bf16 %v13206_v61, %v13205_v41  ;;  %v13262_v41 = vld [vmem:[%s24430_s7 + $0x208] sm:$0xff] }
 0xa04   :  { %17190 = vmatprep.subr.bf16.mxu1 %v17189_v22 }
 0xa06   :  { %17224 = vmatpush3.bf16.msra.mxu0 %v21850_v23 }
 0xa07   :  { %17242 = vmatprep.subr.bf16.mxu0 %v21832_v20  ;;  %17192 = vmatpush3.bf16.msra.mxu1 %v17189_v22  ;;  %v13214_v22 = vld [vmem:[%s24430_s7 + $0x108] sm:$0xff] }
 0xa08   :  { %17194 = vmatprep.subr.bf16.mxu1 %v21942_v38  ;;  %v17289_v33 = vpack.c.bf16 %v13214_v22, %v13213_v54  ;;  %v13265_v22 = vld [vmem:[%s24430_s7 + $0x220] sm:$0xff] }
 0xa09   :  { %15806 = vmatmul.mubr.msk.f32.vlgmr.msra.gmra.mrb[210].mxu0 %vm5092_vm2, %v5439_v9  ;;  %v13193_v9 = vld [vmem:[%s24430_s7 + $0xa0] sm:$0xff] }
 0xa0a   :  { %17244 = vmatpush3.bf16.msra.mxu0 %v21832_v20  ;;  %15843 = vmatprep.mubr.msk.f32.mxu0 %vm5092_vm2, %v5614_v39  ;;  %v13194_v39 = vld [vmem:[%s24430_s7 + $0xa8] sm:$0xff] }
 0xa0b   :  { %17246 = vmatprep.subr.bf16.mxu0 %v21838_v17 }
 0xa0e   :  { %17248 = vmatpush3.bf16.msra.mxu0 %v21838_v17 }
 0xa0f   :  { %17250 = vmatprep.subr.bf16.mxu0 %v21844_v62 }
 0xa12   :  { %17252 = vmatpush3.bf16.msra.mxu0 %v21844_v62 }
 0xa13   :  { %17254 = vmatprep.subr.bf16.mxu0 %v21850_v23 }
 0xa16   :  { %17256 = vmatpush3.bf16.msra.mxu0 %v21850_v23 }
 0xa17   :  { %17274 = vmatprep.subr.bf16.mxu0 %v21832_v20 }
 0xa19   :  { %15844 = vmatmul.mubr.msk.f32.vlgmr.msra.gmra.mrb[212].mxu0 %vm5092_vm2, %v5615_v4  ;;  %v17233_v4 = vpack.c.bf16 %v13194_v39, %v13193_v9  ;;  %v13250_v9 = vld [vmem:[%s24430_s7 + $0x1c8] sm:$0xff] }
 0xa1a   :  { %17276 = vmatpush3.bf16.msra.mxu0 %v21832_v20  ;;  %15881 = vmatprep.mubr.msk.f32.mxu0 %vm5092_vm2, %v5790_v56  ;;  %v13195_v56 = vld [vmem:[%s24430_s7 + $0xb0] sm:$0xff] }
 0xa1b   :  { %17278 = vmatprep.subr.bf16.mxu0 %v21838_v17 }
 0xa1e   :  { %17280 = vmatpush3.bf16.msra.mxu0 %v21838_v17 }
 0xa1f   :  { %17282 = vmatprep.subr.bf16.mxu0 %v21844_v62 }
 0xa22   :  { %17284 = vmatpush3.bf16.msra.mxu0 %v21844_v62 }
 0xa23   :  { %17286 = vmatprep.subr.bf16.mxu0 %v21850_v23 }
 0xa26   :  { %17288 = vmatpush3.bf16.msra.mxu0 %v21850_v23 }
 0xa27   :  { %17306 = vmatprep.subr.bf16.mxu0 %v21832_v20 }
 0xa29   :  { %15882 = vmatmul.mubr.msk.f32.vlgmr.msra.gmra.mrb[214].mxu0 %vm5092_vm2, %v5791_v40  ;;  %v13196_v40 = vld [vmem:[%s24430_s7 + $0xb8] sm:$0xff] }
 0xa2a   :  { %17308 = vmatpush3.bf16.msra.mxu0 %v21832_v20  ;;  %15919 = vmatprep.mubr.msk.f32.mxu0 %vm5092_vm2, %v5966_v52  ;;  %v17237_v52 = vpack.c.bf16 %v13196_v40, %v13195_v56  ;;  %v13252_v56 = vld [vmem:[%s24430_s7 + $0x1d8] sm:$0xff] }
 0xa2b   :  { %17310 = vmatprep.subr.bf16.mxu0 %v21838_v17 }
 0xa2e   :  { %17312 = vmatpush3.bf16.msra.mxu0 %v21838_v17 }
 0xa2f   :  { %17314 = vmatprep.subr.bf16.mxu0 %v21844_v62 }
 0xa32   :  { %17316 = vmatpush3.bf16.msra.mxu0 %v21844_v62 }
 0xa33   :  { %17318 = vmatprep.subr.bf16.mxu0 %v21850_v23 }
 0xa36   :  { %17320 = vmatpush3.bf16.msra.mxu0 %v21850_v23 }
 0xa37   :  { %17338 = vmatprep.subr.bf16.mxu0 %v21832_v20 }
 0xa39   :  { %15920 = vmatmul.mubr.msk.f32.vlgmr.msra.gmra.mrb[216].mxu0 %vm5092_vm2, %v5967_v24  ;;  %v13201_v24 = vld [vmem:[%s24430_s7 + $0xc0] sm:$0xff] }
 0xa3a   :  { %17340 = vmatpush3.bf16.msra.mxu0 %v21832_v20  ;;  %15957 = vmatprep.mubr.msk.f32.mxu0 %vm5092_vm2, %v6142_v28  ;;  %v13202_v28 = vld [vmem:[%s24430_s7 + $0xc8] sm:$0xff] }
 0xa3b   :  { %17342 = vmatprep.subr.bf16.mxu0 %v21838_v17  ;;  %v17257_v37 = vpack.c.bf16 %v13202_v28, %v13201_v24  ;;  %v13253_v28 = vld [vmem:[%s24430_s7 + $0x1e0] sm:$0xff] }
 0xa3e   :  { %17344 = vmatpush3.bf16.msra.mxu0 %v21838_v17 }
 0xa3f   :  { %17346 = vmatprep.subr.bf16.mxu0 %v21844_v62 }
 0xa42   :  { %17348 = vmatpush3.bf16.msra.mxu0 %v21844_v62 }
 0xa43   :  { %17350 = vmatprep.subr.bf16.mxu0 %v21850_v23 }
 0xa46   :  { %17352 = vmatpush3.bf16.msra.mxu0 %v21850_v23 }
 0xa47   :  { %17370 = vmatprep.subr.bf16.mxu0 %v21832_v20 }
 0xa49   :  { %15958 = vmatmul.mubr.msk.f32.vlgmr.msra.gmra.mrb[218].mxu0 %vm5092_vm2, %v6143_v32  ;;  %v13207_v32 = vld [vmem:[%s24430_s7 + $0xf0] sm:$0xff] }
 0xa4a   :  { %17372 = vmatpush3.bf16.msra.mxu0 %v21832_v20  ;;  %15995 = vmatprep.mubr.msk.f32.mxu0 %vm5092_vm2, %v6318_v43  ;;  %v13208_v43 = vld [vmem:[%s24430_s7 + $0xf8] sm:$0xff] }
 0xa4b   :  { %17374 = vmatprep.subr.bf16.mxu0 %v21838_v17  ;;  %v17269_v42 = vpack.c.bf16 %v13208_v43, %v13207_v32  ;;  %v13264_v32 = vld [vmem:[%s24430_s7 + $0x218] sm:$0xff] }
 0xa4e   :  { %17376 = vmatpush3.bf16.msra.mxu0 %v21838_v17 }
 0xa4f   :  { %17378 = vmatprep.subr.bf16.mxu0 %v21844_v62 }
 0xa52   :  { %17380 = vmatpush3.bf16.msra.mxu0 %v21844_v62 }
 0xa53   :  { %17382 = vmatprep.subr.bf16.mxu0 %v21850_v23 }
 0xa56   :  { %17384 = vmatpush3.bf16.msra.mxu0 %v21850_v23 }
 0xa57   :  { %17402 = vmatprep.subr.bf16.mxu0 %v21832_v20 }
 0xa59   :  { %15996 = vmatmul.mubr.msk.f32.vlgmr.msra.gmra.mrb[220].mxu0 %vm5092_vm2, %v6319_v60 }
 0xa5a   :  { %17404 = vmatpush3.bf16.msra.mxu0 %v21832_v20  ;;  %16033 = vmatprep.mubr.msk.f32.mxu0 %vm5092_vm2, %v6494_v5 }
 0xa5b   :  { %17406 = vmatprep.subr.bf16.mxu0 %v21838_v17 }
 0xa5e   :  { %17408 = vmatpush3.bf16.msra.mxu0 %v21838_v17 }
 0xa5f   :  { %17410 = vmatprep.subr.bf16.mxu0 %v21844_v62 }
 0xa62   :  { %17412 = vmatpush3.bf16.msra.mxu0 %v21844_v62 }
 0xa63   :  { %17414 = vmatprep.subr.bf16.mxu0 %v21850_v23 }
 0xa66   :  { %17416 = vmatpush3.bf16.msra.mxu0 %v21850_v23 }
 0xa67   :  { %17434 = vmatprep.subr.bf16.mxu0 %v21832_v20 }
 0xa69   :  { %16034 = vmatmul.mubr.msk.f32.vlgmr.msra.gmra.mrb[222].mxu0 %vm5092_vm2, %v6495_v57 }
 0xa6a   :  { %17436 = vmatpush3.bf16.msra.mxu0 %v21832_v20  ;;  %16071 = vmatprep.mubr.msk.f32.mxu0 %vm5092_vm2, %v6670_v11  ;;  %v13217_v11 = vld [vmem:[%s24430_s7 + $0x120] sm:$0xff] }
 0xa6b   :  { %17438 = vmatprep.subr.bf16.mxu0 %v21838_v17 }
 0xa6e   :  { %17440 = vmatpush3.bf16.msra.mxu0 %v21838_v17 }
 0xa6f   :  { %17442 = vmatprep.subr.bf16.mxu0 %v21844_v62 }
 0xa72   :  { %17444 = vmatpush3.bf16.msra.mxu0 %v21844_v62 }
 0xa73   :  { %17446 = vmatprep.subr.bf16.mxu0 %v21850_v23 }
 0xa76   :  { %17448 = vmatpush3.bf16.msra.mxu0 %v21850_v23 }
 0xa77   :  { %17466 = vmatprep.subr.bf16.mxu0 %v21832_v20 }
 0xa79   :  { %16072 = vmatmul.mubr.msk.f32.vlgmr.msra.gmra.mrb[224].mxu0 %vm5092_vm2, %v6671_v21  ;;  %v13218_v21 = vld [vmem:[%s24430_s7 + $0x128] sm:$0xff] }
 0xa7a   :  { %17468 = vmatpush3.bf16.msra.mxu0 %v21832_v20  ;;  %16109 = vmatprep.mubr.msk.f32.mxu0 %vm5092_vm2, %v6846_v45  ;;  %v17297_v45 = vpack.c.bf16 %v13218_v21, %v13217_v11  ;;  %v13274_v11 = vld [vmem:[%s24430_s7 + $0x248] sm:$0xff] }
 0xa7b   :  { %17470 = vmatprep.subr.bf16.mxu0 %v21838_v17 }
 0xa7e   :  { %17472 = vmatpush3.bf16.msra.mxu0 %v21838_v17 }
 0xa7f   :  { %17474 = vmatprep.subr.bf16.mxu0 %v21844_v62 }
 0xa82   :  { %17476 = vmatpush3.bf16.msra.mxu0 %v21844_v62 }
 0xa83   :  { %17478 = vmatprep.subr.bf16.mxu0 %v21850_v23 }
 0xa86   :  { %17480 = vmatpush3.bf16.msra.mxu0 %v21850_v23 }
 0xa87   :  { %17498 = vmatprep.subr.bf16.mxu0 %v21832_v20 }
 0xa89   :  { %16110 = vmatmul.mubr.msk.f32.vlgmr.msra.gmra.mrb[226].mxu0 %vm5092_vm2, %v6847_v34  ;;  %v13219_v34 = vld [vmem:[%s24430_s7 + $0x130] sm:$0xff] }
 0xa8a   :  { %17500 = vmatpush3.bf16.msra.mxu0 %v21832_v20  ;;  %16147 = vmatprep.mubr.msk.f32.mxu0 %vm5092_vm2, %v7022_v15  ;;  %v13220_v15 = vld [vmem:[%s24430_s7 + $0x138] sm:$0xff] }
 0xa8b   :  { %17502 = vmatprep.subr.bf16.mxu0 %v21838_v17 }
 0xa8e   :  { %17504 = vmatpush3.bf16.msra.mxu0 %v21838_v17 }
 0xa8f   :  { %17506 = vmatprep.subr.bf16.mxu0 %v21844_v62 }
 0xa92   :  { %17508 = vmatpush3.bf16.msra.mxu0 %v21844_v62 }
 0xa93   :  { %17510 = vmatprep.subr.bf16.mxu0 %v21850_v23 }
 0xa96   :  { %17512 = vmatpush3.bf16.msra.mxu0 %v21850_v23 }
 0xa97   :  { %17530 = vmatprep.subr.bf16.mxu0 %v21832_v20 }
 0xa99   :  { %16148 = vmatmul.mubr.msk.f32.vlgmr.msra.gmra.mrb[228].mxu0 %vm5092_vm2, %v7023_v29  ;;  %v17301_v29 = vpack.c.bf16 %v13220_v15, %v13219_v34  ;;  %v13276_v34 = vld [vmem:[%s24430_s7 + $0x258] sm:$0xff] }
 0xa9a   :  { %17532 = vmatpush3.bf16.msra.mxu0 %v21832_v20  ;;  %16185 = vmatprep.mubr.msk.f32.mxu0 %vm5092_vm2, %v7198_v6  ;;  %v13225_v6 = vld [vmem:[%s24430_s7 + $0x140] sm:$0xff] }
 0xa9b   :  { %17534 = vmatprep.subr.bf16.mxu0 %v21838_v17 }
 0xa9e   :  { %17536 = vmatpush3.bf16.msra.mxu0 %v21838_v17 }
 0xa9f   :  { %17538 = vmatprep.subr.bf16.mxu0 %v21844_v62 }
 0xaa2   :  { %17540 = vmatpush3.bf16.msra.mxu0 %v21844_v62 }
 0xaa3   :  { %17542 = vmatprep.subr.bf16.mxu0 %v21850_v23 }
 0xaa6   :  { %17544 = vmatpush3.bf16.msra.mxu0 %v21850_v23 }
 0xaa7   :  { %17562 = vmatprep.subr.bf16.mxu0 %v21832_v20 }
 0xaa9   :  { %16186 = vmatmul.mubr.msk.f32.vlgmr.msra.gmra.mrb[230].mxu0 %vm5092_vm2, %v7199_v58  ;;  %v13226_v58 = vld [vmem:[%s24430_s7 + $0x148] sm:$0xff] }
 0xaaa   :  { %17564 = vmatpush3.bf16.msra.mxu0 %v21832_v20  ;;  %16223 = vmatprep.mubr.msk.f32.mxu0 %vm5092_vm2, %v7374_v25  ;;  %v17321_v25 = vpack.c.bf16 %v13226_v58, %v13225_v6  ;;  %v13277_v58 = vld [vmem:[%s24430_s7 + $0x260] sm:$0xff] }
 0xaab   :  { %17566 = vmatprep.subr.bf16.mxu0 %v21838_v17 }
 0xaae   :  { %17568 = vmatpush3.bf16.msra.mxu0 %v21838_v17 }
 0xaaf   :  { %17570 = vmatprep.subr.bf16.mxu0 %v21844_v62 }
 0xab2   :  { %17572 = vmatpush3.bf16.msra.mxu0 %v21844_v62 }
 0xab3   :  { %17574 = vmatprep.subr.bf16.mxu0 %v21850_v23 }
 0xab6   :  { %17576 = vmatpush3.bf16.msra.mxu0 %v21850_v23 }
 0xab7   :  { %17594 = vmatprep.subr.bf16.mxu0 %v21832_v20 }
 0xab9   :  { %16224 = vmatmul.mubr.msk.f32.vlgmr.msra.gmra.mrb[232].mxu0 %vm5092_vm2, %v7375_v35  ;;  %v13227_v35 = vld [vmem:[%s24430_s7 + $0x150] sm:$0xff] }
 0xaba   :  { %17596 = vmatpush3.bf16.msra.mxu0 %v21832_v20  ;;  %16261 = vmatprep.mubr.msk.f32.mxu0 %vm5092_vm2, %v7550_v18  ;;  %v13228_v18 = vld [vmem:[%s24430_s7 + $0x158] sm:$0xff] }
 0xabb   :  { %17598 = vmatprep.subr.bf16.mxu0 %v21838_v17 }
 0xabe   :  { %17600 = vmatpush3.bf16.msra.mxu0 %v21838_v17 }
 0xabf   :  { %17602 = vmatprep.subr.bf16.mxu0 %v21844_v62 }
 0xac2   :  { %17604 = vmatpush3.bf16.msra.mxu0 %v21844_v62 }
 0xac3   :  { %17606 = vmatprep.subr.bf16.mxu0 %v21850_v23 }
 0xac6   :  { %17608 = vmatpush3.bf16.msra.mxu0 %v21850_v23 }
 0xac7   :  { %17626 = vmatprep.subr.bf16.mxu0 %v21832_v20 }
 0xac9   :  { %16262 = vmatmul.mubr.msk.f32.vlgmr.msra.gmra.mrb[234].mxu0 %vm5092_vm2, %v7551_v27 }
 0xaca   :  { %17628 = vmatpush3.bf16.msra.mxu0 %v21832_v20  ;;  %16299 = vmatprep.mubr.msk.f32.mxu0 %vm5092_vm2, %v7726_v55  ;;  %v5178_v20 = vld [vmem:[%s24430_s7 + $0x20] sm:$0xff]  ;;  %v17325_v55 = vpack.c.bf16 %v13228_v18, %v13227_v35  ;;  %v13279_v18 = vld [vmem:[%s24430_s7 + $0x270] sm:$0xff] }
 0xacb   :  { %17630 = vmatprep.subr.bf16.mxu0 %v21838_v17  ;;  %v17201_v47 = vpack.c.bf16 %v5179_v14, %v5178_v20  ;;  %v13237_v20 = vld [vmem:[%s24430_s7 + $0x180] sm:$0xff]  ;;  %v13238_v14 = vld [vmem:[%s24430_s7 + $0x188] sm:$0xff] }
 0xacc   :  { %v15750_v53 = vpop.f32.mrb[208].mxu0  ;;  %v15731_v63 = vpop.f32.mrb[120].mxu1 }
 0xacd   :  { %v5257_v44 = vpop.f32.mrb[209].mxu0  ;;  %v5165_v30 = vpop.f32.mrb[121].mxu1 }
 0xace   :  { %15767 = vmatprep.mubr.msk.f32.mxu1 %vm5092_vm2, %v5257_v44  ;;  %17632 = vmatpush3.bf16.msra.mxu0 %v21838_v17  ;;  %v5180_v17 = vld [vmem:[%s24430_s7 + $0x30] sm:$0xff] }
 0xacf   :  { %15768 = vmatmul.mubr.msk.f32.vlgmr.msra.gmra.mrb[122].mxu1 %vm5092_vm2, %v15750_v53  ;;  %17634 = vmatprep.subr.bf16.mxu0 %v21844_v62  ;;  %v17205_v50 = vpack.c.bf16 %v5181_v36, %v5180_v17  ;;  %v13230_v53 = vld [vmem:[%s24430_s7 + $0x168] sm:$0xff]  ;;  %v13231_v44 = vld [vmem:[%s24430_s7 + $0x170] sm:$0xff]  ;;  %v13240_v36 = vld [vmem:[%s24430_s7 + $0x198] sm:$0xff] }
 0xad0   :  { %17196 = vmatpush3.bf16.msra.mxu1 %v21942_v38  ;;  %15786 = vmatprep.mubr.msk.f32.mxu1 %vm5092_vm2, %v5165_v30  ;;  %v13216_v38 = vld [vmem:[%s24430_s7 + $0x118] sm:$0xff]  ;;  %v13239_v17 = vld [vmem:[%s24430_s7 + $0x190] sm:$0xff] }
 0xad1   :  { %17198 = vmatprep.subr.bf16.mxu1 %v17197_v48  ;;  %v17293_v5 = vpack.c.bf16 %v13216_v38, %v13215_v59  ;;  %v13267_v38 = vld [vmem:[%s24430_s7 + $0x230] sm:$0xff] }
 0xad2   :  { %17636 = vmatpush3.bf16.msra.mxu0 %v21844_v62  ;;  %v13190_v62 = vld [vmem:[%s24430_s7 + $0x88] sm:$0xff] }
 0xad3   :  { %17638 = vmatprep.subr.bf16.mxu0 %v21850_v23  ;;  %v17225_v7 = vpack.c.bf16 %v13190_v62, %v13189_v49  ;;  %v17357_v49 = vpack.c.bf16 %v13240_v36, %v13239_v17  ;;  %v13291_v36 = vld [vmem:[%s24430_s7 + $0x2b0] sm:$0xff] }
 0xad4   :  { %17200 = vmatpush3.bf16.msra.mxu1 %v17197_v48  ;;  %v13232_v48 = vld [vmem:[%s24430_s7 + $0x178] sm:$0xff] }
 0xad5   :  { %17202 = vmatprep.subr.bf16.mxu1 %v17201_v47  ;;  %v17333_v30 = vpack.c.bf16 %v13232_v48, %v13231_v44  ;;  %v13288_v44 = vld [vmem:[%s24430_s7 + $0x298] sm:$0xff] }
 0xad6   :  { %17640 = vmatpush3.bf16.msra.mxu0 %v21850_v23  ;;  %v13192_v23 = vld [vmem:[%s24430_s7 + $0x98] sm:$0xff] }
 0xad7   :  { %17657 = vmatprep.subr.bf16.mxu0 %v19432_v0  ;;  %v17229_v16 = vpack.c.bf16 %v13192_v23, %v13191_v12  ;;  %v13243_v23 = vld [vmem:[%s24430_s7 + $0x1b0] sm:$0xff] }
 0xad8   :  { %17204 = vmatpush3.bf16.msra.mxu1 %v17201_v47  ;;  %v17353_v47 = vpack.c.bf16 %v13238_v14, %v13237_v20  ;;  %v13289_v14 = vld [vmem:[%s24430_s7 + $0x2a0] sm:$0xff] }
 0xad9   :  { %17206 = vmatprep.subr.bf16.mxu1 %v17205_v50  ;;  %16300 = vmatmul.mubr.msk.f32.vlgmr.msra.gmra.mrb[236].mxu0 %vm5092_vm2, %v7727_v3  ;;  %v13241_v3 = vld [vmem:[%s24430_s7 + $0x1a0] sm:$0xff] }
 0xadc   :  { %17208 = vmatpush3.bf16.msra.mxu1 %v17205_v50  ;;  %v15807_v2 = vpop.f32.mrb[210].mxu0 }
 0xadd   :  { %17226 = vmatprep.subr.bf16.mxu1 %v17225_v7  ;;  %v5512_v13 = vpop.f32.mrb[211].mxu0 }
 0xadf   :  { %15787 = vmatmul.mubr.msk.f32.vlgmr.msra.gmra.mrb[122].mxu1 %vm5092_vm2, %v15731_v63  ;;  %v17329_v63 = vpack.c.bf16 %v13230_v53, %v13229_v19  ;;  %v13286_v19 = vld [vmem:[%s24430_s7 + $0x288] sm:$0xff] }
 0xae0   :  { %17228 = vmatpush3.bf16.msra.mxu1 %v17225_v7  ;;  %15824 = vmatprep.mubr.msk.f32.mxu1 %vm5092_vm2, %v5512_v13  ;;  %v13242_v7 = vld [vmem:[%s24430_s7 + $0x1a8] sm:$0xff]  ;;  %v13249_v13 = vld [vmem:[%s24430_s7 + $0x1c0] sm:$0xff] }
 0xae1   :  { %17230 = vmatprep.subr.bf16.mxu1 %v17229_v16  ;;  %v17361_v12 = vpack.c.bf16 %v13242_v7, %v13241_v3  ;;  %v17385_v39 = vpack.c.bf16 %v13250_v9, %v13249_v13  ;;  %v13298_v3 = vld [vmem:[%s24430_s7 + $0x2c8] sm:$0xff]  ;;  %v13301_v9 = vld [vmem:[%s24430_s7 + $0x2e0] sm:$0xff] }
 0xae4   :  { %17232 = vmatpush3.bf16.msra.mxu1 %v17229_v16 }
 0xae5   :  { %17234 = vmatprep.subr.bf16.mxu1 %v17233_v4 }
 0xae8   :  { %17236 = vmatpush3.bf16.msra.mxu1 %v17233_v4  ;;  %v13251_v4 = vld [vmem:[%s24430_s7 + $0x1d0] sm:$0xff] }
 0xae9   :  { %17238 = vmatprep.subr.bf16.mxu1 %v17237_v52 }
 0xaec   :  { %17240 = vmatpush3.bf16.msra.mxu1 %v17237_v52  ;;  %v15845_v10 = vpop.f32.mrb[212].mxu0  ;;  %v17389_v52 = vpack.c.bf16 %v13252_v56, %v13251_v4  ;;  %v13303_v56 = vld [vmem:[%s24430_s7 + $0x2f0] sm:$0xff] }
 0xaed   :  { %17258 = vmatprep.subr.bf16.mxu1 %v17257_v37  ;;  %v5688_v26 = vpop.f32.mrb[213].mxu0 }
 0xaef   :  { %15825 = vmatmul.mubr.msk.f32.vlgmr.msra.gmra.mrb[122].mxu1 %vm5092_vm2, %v15807_v2  ;;  %v13244_v2 = vld [vmem:[%s24430_s7 + $0x1b8] sm:$0xff] }
 0xaf0   :  { %17260 = vmatpush3.bf16.msra.mxu1 %v17257_v37  ;;  %15862 = vmatprep.mubr.msk.f32.mxu1 %vm5092_vm2, %v5688_v26  ;;  %v17365_v16 = vpack.c.bf16 %v13244_v2, %v13243_v23  ;;  %v13254_v37 = vld [vmem:[%s24430_s7 + $0x1e8] sm:$0xff]  ;;  %v13261_v26 = vld [vmem:[%s24430_s7 + $0x200] sm:$0xff]  ;;  %v13300_v23 = vld [vmem:[%s24430_s7 + $0x2d8] sm:$0xff] }
 0xaf1   :  { %17262 = vmatprep.subr.bf16.mxu1 %v17261_v31  ;;  %v17393_v46 = vpack.c.bf16 %v13254_v37, %v13253_v28  ;;  %v17417_v61 = vpack.c.bf16 %v13262_v41, %v13261_v26  ;;  %v13310_v28 = vld [vmem:[%s24430_s7 + $0x308] sm:$0xff]  ;;  %v13313_v41 = vld [vmem:[%s24430_s7 + $0x320] sm:$0xff] }
 0xaf4   :  { %17264 = vmatpush3.bf16.msra.mxu1 %v17261_v31 }
 0xaf5   :  { %17266 = vmatprep.subr.bf16.mxu1 %v17265_v8 }
 0xaf8   :  { %17268 = vmatpush3.bf16.msra.mxu1 %v17265_v8  ;;  %v13263_v8 = vld [vmem:[%s24430_s7 + $0x210] sm:$0xff] }
 0xaf9   :  { %17270 = vmatprep.subr.bf16.mxu1 %v17269_v42 }
 0xafc   :  { %17272 = vmatpush3.bf16.msra.mxu1 %v17269_v42  ;;  %v15883_v60 = vpop.f32.mrb[214].mxu0  ;;  %v17421_v42 = vpack.c.bf16 %v13264_v32, %v13263_v8  ;;  %v13315_v32 = vld [vmem:[%s24430_s7 + $0x330] sm:$0xff] }
 0xafd   :  { %17290 = vmatprep.subr.bf16.mxu1 %v17289_v33  ;;  %v5864_v57 = vpop.f32.mrb[215].mxu0 }
 0xaff   :  { %15863 = vmatmul.mubr.msk.f32.vlgmr.msra.gmra.mrb[122].mxu1 %vm5092_vm2, %v15845_v10  ;;  %v13256_v10 = vld [vmem:[%s24430_s7 + $0x1f8] sm:$0xff] }
 0xb00   :  { %17292 = vmatpush3.bf16.msra.mxu1 %v17289_v33  ;;  %15900 = vmatprep.mubr.msk.f32.mxu1 %vm5092_vm2, %v5864_v57  ;;  %v17397_v31 = vpack.c.bf16 %v13256_v10, %v13255_v1  ;;  %v13266_v33 = vld [vmem:[%s24430_s7 + $0x228] sm:$0xff]  ;;  %v13273_v57 = vld [vmem:[%s24430_s7 + $0x240] sm:$0xff]  ;;  %v13312_v1 = vld [vmem:[%s24430_s7 + $0x318] sm:$0xff] }
 0xb01   :  { %17294 = vmatprep.subr.bf16.mxu1 %v17293_v5  ;;  %v17425_v59 = vpack.c.bf16 %v13266_v33, %v13265_v22  ;;  %v17449_v21 = vpack.c.bf16 %v13274_v11, %v13273_v57  ;;  %v13322_v22 = vld [vmem:[%s24430_s7 + $0x348] sm:$0xff]  ;;  %v13325_v11 = vld [vmem:[%s24430_s7 + $0x360] sm:$0xff] }
 0xb04   :  { %17296 = vmatpush3.bf16.msra.mxu1 %v17293_v5 }
 0xb05   :  { %17298 = vmatprep.subr.bf16.mxu1 %v17297_v45 }
 0xb08   :  { %17300 = vmatpush3.bf16.msra.mxu1 %v17297_v45  ;;  %v13275_v45 = vld [vmem:[%s24430_s7 + $0x250] sm:$0xff] }
 0xb09   :  { %17302 = vmatprep.subr.bf16.mxu1 %v17301_v29 }
 0xb0c   :  { %17304 = vmatpush3.bf16.msra.mxu1 %v17301_v29  ;;  %v15921_v27 = vpop.f32.mrb[216].mxu0  ;;  %v17453_v29 = vpack.c.bf16 %v13276_v34, %v13275_v45  ;;  %v13327_v34 = vld [vmem:[%s24430_s7 + $0x370] sm:$0xff] }
 0xb0d   :  { %17322 = vmatprep.subr.bf16.mxu1 %v17321_v25  ;;  %v6040_v51 = vpop.f32.mrb[217].mxu0 }
 0xb0f   :  { %15901 = vmatmul.mubr.msk.f32.vlgmr.msra.gmra.mrb[122].mxu1 %vm5092_vm2, %v15883_v60  ;;  %v13268_v60 = vld [vmem:[%s24430_s7 + $0x238] sm:$0xff] }
 0xb10   :  { %17324 = vmatpush3.bf16.msra.mxu1 %v17321_v25  ;;  %15938 = vmatprep.mubr.msk.f32.mxu1 %vm5092_vm2, %v6040_v51  ;;  %v17429_v5 = vpack.c.bf16 %v13268_v60, %v13267_v38  ;;  %v13278_v25 = vld [vmem:[%s24430_s7 + $0x268] sm:$0xff]  ;;  %v13285_v51 = vld [vmem:[%s24430_s7 + $0x280] sm:$0xff]  ;;  %v13324_v38 = vld [vmem:[%s24430_s7 + $0x358] sm:$0xff] }
 0xb11   :  { %17326 = vmatprep.subr.bf16.mxu1 %v17325_v55  ;;  %v17457_v35 = vpack.c.bf16 %v13278_v25, %v13277_v58  ;;  %v17481_v53 = vpack.c.bf16 %v13286_v19, %v13285_v51  ;;  %v13334_v58 = vld [vmem:[%s24430_s7 + $0x388] sm:$0xff]  ;;  %v13337_v19 = vld [vmem:[%s24430_s7 + $0x3a0] sm:$0xff] }
 0xb14   :  { %17328 = vmatpush3.bf16.msra.mxu1 %v17325_v55 }
 0xb15   :  { %17330 = vmatprep.subr.bf16.mxu1 %v17329_v63 }
 0xb18   :  { %17332 = vmatpush3.bf16.msra.mxu1 %v17329_v63  ;;  %v13287_v63 = vld [vmem:[%s24430_s7 + $0x290] sm:$0xff] }
 0xb19   :  { %17334 = vmatprep.subr.bf16.mxu1 %v17333_v30 }
 0xb1c   :  { %17336 = vmatpush3.bf16.msra.mxu1 %v17333_v30  ;;  %v15959_v50 = vpop.f32.mrb[218].mxu0  ;;  %v17485_v30 = vpack.c.bf16 %v13288_v44, %v13287_v63  ;;  %v13339_v44 = vld [vmem:[%s24430_s7 + $0x3b0] sm:$0xff] }
 0xb1d   :  { %17354 = vmatprep.subr.bf16.mxu1 %v17353_v47  ;;  %v6216_v62 = vpop.f32.mrb[219].mxu0 }
 0xb1f   :  { %15939 = vmatmul.mubr.msk.f32.vlgmr.msra.gmra.mrb[122].mxu1 %vm5092_vm2, %v15921_v27  ;;  %v13280_v27 = vld [vmem:[%s24430_s7 + $0x278] sm:$0xff] }
 0xb20   :  { %17356 = vmatpush3.bf16.msra.mxu1 %v17353_v47  ;;  %15976 = vmatprep.mubr.msk.f32.mxu1 %vm5092_vm2, %v6216_v62  ;;  %v17461_v55 = vpack.c.bf16 %v13280_v27, %v13279_v18  ;;  %v13290_v47 = vld [vmem:[%s24430_s7 + $0x2a8] sm:$0xff]  ;;  %v13297_v62 = vld [vmem:[%s24430_s7 + $0x2c0] sm:$0xff]  ;;  %v13336_v18 = vld [vmem:[%s24430_s7 + $0x398] sm:$0xff] }
 0xb21   :  { %17358 = vmatprep.subr.bf16.mxu1 %v17357_v49  ;;  %v17489_v17 = vpack.c.bf16 %v13290_v47, %v13289_v14  ;;  %v17513_v7 = vpack.c.bf16 %v13298_v3, %v13297_v62  ;;  %v13346_v14 = vld [vmem:[%s24430_s7 + $0x3c8] sm:$0xff]  ;;  %v13349_v3 = vld [vmem:[%s24430_s7 + $0x3e0] sm:$0xff] }
 0xb24   :  { %17360 = vmatpush3.bf16.msra.mxu1 %v17357_v49 }
 0xb25   :  { %17362 = vmatprep.subr.bf16.mxu1 %v17361_v12 }
 0xb28   :  { %17364 = vmatpush3.bf16.msra.mxu1 %v17361_v12  ;;  %v13299_v12 = vld [vmem:[%s24430_s7 + $0x2d0] sm:$0xff] }
 0xb29   :  { %17366 = vmatprep.subr.bf16.mxu1 %v17365_v16 }
 0xb2c   :  { %17368 = vmatpush3.bf16.msra.mxu1 %v17365_v16  ;;  %v15997_v40 = vpop.f32.mrb[220].mxu0  ;;  %v17517_v16 = vpack.c.bf16 %v13300_v23, %v13299_v12  ;;  %v13351_v23 = vld [vmem:[%s24430_s7 + $0x3f0] sm:$0xff] }
 0xb2d   :  { %17386 = vmatprep.subr.bf16.mxu1 %v17385_v39  ;;  %v6392_v24 = vpop.f32.mrb[221].mxu0 }
 0xb2f   :  { %15977 = vmatmul.mubr.msk.f32.vlgmr.msra.gmra.mrb[122].mxu1 %vm5092_vm2, %v15959_v50  ;;  %v13292_v50 = vld [vmem:[%s24430_s7 + $0x2b8] sm:$0xff] }
 0xb30   :  { %17388 = vmatpush3.bf16.msra.mxu1 %v17385_v39  ;;  %16014 = vmatprep.mubr.msk.f32.mxu1 %vm5092_vm2, %v6392_v24  ;;  %v17493_v49 = vpack.c.bf16 %v13292_v50, %v13291_v36  ;;  %v13302_v39 = vld [vmem:[%s24430_s7 + $0x2e8] sm:$0xff]  ;;  %v13309_v24 = vld [vmem:[%s24430_s7 + $0x300] sm:$0xff]  ;;  %v13348_v36 = vld [vmem:[%s24430_s7 + $0x3d8] sm:$0xff] }
 0xb31   :  { %17390 = vmatprep.subr.bf16.mxu1 %v17389_v52  ;;  %v17521_v4 = vpack.c.bf16 %v13302_v39, %v13301_v9  ;;  %v17545_v37 = vpack.c.bf16 %v13310_v28, %v13309_v24  ;;  %v13355_v9 = vld [vmem:[%s24431_s8] ss:$0 sm:$0xff] }
 0xb34   :  { %17392 = vmatpush3.bf16.msra.mxu1 %v17389_v52 }
 0xb35   :  { %17394 = vmatprep.subr.bf16.mxu1 %v17393_v46 }
 0xb38   :  { %17396 = vmatpush3.bf16.msra.mxu1 %v17393_v46  ;;  %v13311_v46 = vld [vmem:[%s24430_s7 + $0x310] sm:$0xff] }
 0xb39   :  { %17398 = vmatprep.subr.bf16.mxu1 %v17397_v31 }
 0xb3c   :  { %17400 = vmatpush3.bf16.msra.mxu1 %v17397_v31  ;;  %v16035_v43 = vpop.f32.mrb[222].mxu0  ;;  %v17549_v31 = vpack.c.bf16 %v13312_v1, %v13311_v46  ;;  %v13362_v46 = vld [vmem:[%s24433_s10 + $0x118] sm:$0xff]  ;;  %v7912_v1 = vld [vmem:[%s24432_s9] sm:$0xf] }
 0xb3d   :  { %17418 = vmatprep.subr.bf16.mxu1 %v17417_v61  ;;  %v6568_v54 = vpop.f32.mrb[223].mxu0 }
 0xb3f   :  { %16015 = vmatmul.mubr.msk.f32.vlgmr.msra.gmra.mrb[122].mxu1 %vm5092_vm2, %v15997_v40  ;;  %v13304_v40 = vld [vmem:[%s24430_s7 + $0x2f8] sm:$0xff] }
 0xb40   :  { %17420 = vmatpush3.bf16.msra.mxu1 %v17417_v61  ;;  %16052 = vmatprep.mubr.msk.f32.mxu1 %vm5092_vm2, %v6568_v54  ;;  %v17525_v52 = vpack.c.bf16 %v13304_v40, %v13303_v56  ;;  %v13314_v61 = vld [vmem:[%s24430_s7 + $0x328] sm:$0xff]  ;;  %v13321_v54 = vld [vmem:[%s24430_s7 + $0x340] sm:$0xff] }
 0xb41   :  { %17422 = vmatprep.subr.bf16.mxu1 %v17421_v42  ;;  %v17553_v8 = vpack.c.bf16 %v13314_v61, %v13313_v41  ;;  %v17577_v33 = vpack.c.bf16 %v13322_v22, %v13321_v54  ;;  %v13361_v41 = vld [vmem:[%s24433_s10 + $0x110] sm:$0xff]  ;;  %v13364_v61 = vld [vmem:[%s24433_s10 + $0x128] sm:$0xff]  ;;  %v13363_v22 = vld [vmem:[%s24433_s10 + $0x120] sm:$0xff] }
 0xb44   :  { %17424 = vmatpush3.bf16.msra.mxu1 %v17421_v42 }
 0xb45   :  { %17426 = vmatprep.subr.bf16.mxu1 %v17425_v59 }
 0xb48   :  { %17428 = vmatpush3.bf16.msra.mxu1 %v17425_v59  ;;  %v13323_v59 = vld [vmem:[%s24430_s7 + $0x350] sm:$0xff] }
 0xb49   :  { %17430 = vmatprep.subr.bf16.mxu1 %v17429_v5 }
 0xb4c   :  { %17432 = vmatpush3.bf16.msra.mxu1 %v17429_v5  ;;  %v16073_v15 = vpop.f32.mrb[224].mxu0  ;;  %v17581_v5 = vpack.c.bf16 %v13324_v38, %v13323_v59  ;;  %v13368_v59 = vld [vmem:[%s24433_s10 + $0x148] sm:$0xff]  ;;  %v13370_v38 = vld [vmem:[%s24433_s10 + $0x158] sm:$0xff] }
 0xb4d   :  { %17450 = vmatprep.subr.bf16.mxu1 %v17449_v21  ;;  %v6744_v6 = vpop.f32.mrb[225].mxu0 }
 0xb4f   :  { %16053 = vmatmul.mubr.msk.f32.vlgmr.msra.gmra.mrb[122].mxu1 %vm5092_vm2, %v16035_v43  ;;  %v13316_v43 = vld [vmem:[%s24430_s7 + $0x338] sm:$0xff] }
 0xb50   :  { %17452 = vmatpush3.bf16.msra.mxu1 %v17449_v21  ;;  %16090 = vmatprep.mubr.msk.f32.mxu1 %vm5092_vm2, %v6744_v6  ;;  %v17557_v42 = vpack.c.bf16 %v13316_v43, %v13315_v32  ;;  %v13326_v21 = vld [vmem:[%s24430_s7 + $0x368] sm:$0xff]  ;;  %v13333_v6 = vld [vmem:[%s24430_s7 + $0x380] sm:$0xff] }
 0xb51   :  { %17454 = vmatprep.subr.bf16.mxu1 %v17453_v29  ;;  %v17585_v45 = vpack.c.bf16 %v13326_v21, %v13325_v11  ;;  %v17609_v25 = vpack.c.bf16 %v13334_v58, %v13333_v6  ;;  %v13357_v32 = vld [vmem:[%s24432_s9 + $0x4] sm:$0xf]  ;;  %v13425_v43 = vld [vmem:[%s24432_s9 + $0xc] sm:$0xf]  ;;  %v13369_v21 = vld [vmem:[%s24433_s10 + $0x150] sm:$0xff] }
 0xb52   :  { %v13367_v11 = vld [vmem:[%s24433_s10 + $0x140] sm:$0xff] }
 0xb53   :  { %v13371_v58 = vld [vmem:[%s24433_s10 + $0x160] sm:$0xff] }
 0xb54   :  { %17456 = vmatpush3.bf16.msra.mxu1 %v17453_v29 }
 0xb55   :  { %17458 = vmatprep.subr.bf16.mxu1 %v17457_v35 }
 0xb58   :  { %17460 = vmatpush3.bf16.msra.mxu1 %v17457_v35  ;;  %v13335_v35 = vld [vmem:[%s24430_s7 + $0x390] sm:$0xff] }
 0xb59   :  { %17462 = vmatprep.subr.bf16.mxu1 %v17461_v55 }
 0xb5c   :  { %17464 = vmatpush3.bf16.msra.mxu1 %v17461_v55  ;;  %v16111_v48 = vpop.f32.mrb[226].mxu0  ;;  %v17613_v55 = vpack.c.bf16 %v13336_v18, %v13335_v35  ;;  %v13376_v35 = vld [vmem:[%s24433_s10 + $0x188] sm:$0xff]  ;;  %v13378_v18 = vld [vmem:[%s24433_s10 + $0x198] sm:$0xff] }
 0xb5d   :  { %17482 = vmatprep.subr.bf16.mxu1 %v17481_v53  ;;  %v6920_v20 = vpop.f32.mrb[227].mxu0 }
 0xb5f   :  { %16091 = vmatmul.mubr.msk.f32.vlgmr.msra.gmra.mrb[122].mxu1 %vm5092_vm2, %v16073_v15  ;;  %v13328_v15 = vld [vmem:[%s24430_s7 + $0x378] sm:$0xff] }
 0xb60   :  { %17484 = vmatpush3.bf16.msra.mxu1 %v17481_v53  ;;  %16128 = vmatprep.mubr.msk.f32.mxu1 %vm5092_vm2, %v6920_v20  ;;  %v17589_v29 = vpack.c.bf16 %v13328_v15, %v13327_v34  ;;  %v13338_v53 = vld [vmem:[%s24430_s7 + $0x3a8] sm:$0xff]  ;;  %v13345_v20 = vld [vmem:[%s24430_s7 + $0x3c0] sm:$0xff]  ;;  %v13374_v34 = vld [vmem:[%s24433_s10 + $0x178] sm:$0xff] }
 0xb61   :  { %17486 = vmatprep.subr.bf16.mxu1 %v17485_v30  ;;  %v17617_v63 = vpack.c.bf16 %v13338_v53, %v13337_v19  ;;  %v17641_v47 = vpack.c.bf16 %v13346_v14, %v13345_v20  ;;  %v13493_v15 = vld [vmem:[%s24432_s9 + $0x14] sm:$0xf]  ;;  %v13375_v19 = vld [vmem:[%s24433_s10 + $0x180] sm:$0xff] }
 0xb62   :  { %v13377_v53 = vld [vmem:[%s24433_s10 + $0x190] sm:$0xff]  ;;  %v13379_v14 = vld [vmem:[%s24433_s10 + $0x1a0] sm:$0xff] }
 0xb64   :  { %17488 = vmatpush3.bf16.msra.mxu1 %v17485_v30 }
 0xb65   :  { %17490 = vmatprep.subr.bf16.mxu1 %v17489_v17 }
 0xb68   :  { %17492 = vmatpush3.bf16.msra.mxu1 %v17489_v17  ;;  %v13347_v17 = vld [vmem:[%s24430_s7 + $0x3d0] sm:$0xff] }
 0xb69   :  { %17494 = vmatprep.subr.bf16.mxu1 %v17493_v49 }
 0xb6c   :  { %17496 = vmatpush3.bf16.msra.mxu1 %v17493_v49  ;;  %v16149_v2 = vpop.f32.mrb[228].mxu0  ;;  %v17645_v49 = vpack.c.bf16 %v13348_v36, %v13347_v17  ;;  %v13384_v17 = vld [vmem:[%s24433_s10 + $0x1c8] sm:$0xff]  ;;  %v13386_v36 = vld [vmem:[%s24433_s10 + $0x1d8] sm:$0xff] }
 0xb6d   :  { %17514 = vmatprep.subr.bf16.mxu1 %v17513_v7  ;;  %v7096_v13 = vpop.f32.mrb[229].mxu0 }
 0xb6f   :  { %16129 = vmatmul.mubr.msk.f32.vlgmr.msra.gmra.mrb[122].mxu1 %vm5092_vm2, %v16111_v48  ;;  %v13340_v48 = vld [vmem:[%s24430_s7 + $0x3b8] sm:$0xff] }
 0xb70   :  { %17516 = vmatpush3.bf16.msra.mxu1 %v17513_v7  ;;  %16166 = vmatprep.mubr.msk.f32.mxu1 %vm5092_vm2, %v7096_v13  ;;  %v17621_v30 = vpack.c.bf16 %v13340_v48, %v13339_v44  ;;  %v13350_v7 = vld [vmem:[%s24430_s7 + $0x3e8] sm:$0xff]  ;;  %v24451_v13 = vmov 0.0   ;;  %v13382_v44 = vld [vmem:[%s24433_s10 + $0x1b8] sm:$0xff] }
 0xb71   :  { %17518 = vmatprep.subr.bf16.mxu1 %v17517_v16  ;;  %v17649_v12 = vpack.c.bf16 %v13350_v7, %v13349_v3  ;;  %16325 = vmatprep.mubr.msk.f32.mxu0 %vm19434_vm3, %v24451_v13  ;;  %v13561_v48 = vld [vmem:[%s24432_s9 + $0x1c] sm:$0xf]  ;;  %v13383_v3 = vld [vmem:[%s24433_s10 + $0x1c0] sm:$0xff]  ;;  %v13385_v7 = vld [vmem:[%s24433_s10 + $0x1d0] sm:$0xff] }
 0xb74   :  { %17520 = vmatpush3.bf16.msra.mxu1 %v17517_v16 }
 0xb75   :  { %17522 = vmatprep.subr.bf16.mxu1 %v17521_v4 }
 0xb78   :  { %17524 = vmatpush3.bf16.msra.mxu1 %v17521_v4 }
 0xb79   :  { %17526 = vmatprep.subr.bf16.mxu1 %v17525_v52 }
 0xb7c   :  { %17528 = vmatpush3.bf16.msra.mxu1 %v17525_v52  ;;  %v16187_v10 = vpop.f32.mrb[230].mxu0 }
 0xb7d   :  { %17546 = vmatprep.subr.bf16.mxu1 %v17545_v37  ;;  %v7272_v26 = vpop.f32.mrb[231].mxu0 }
 0xb7f   :  { %16167 = vmatmul.mubr.msk.f32.vlgmr.msra.gmra.mrb[122].mxu1 %vm5092_vm2, %v16149_v2  ;;  %v13352_v2 = vld [vmem:[%s24430_s7 + $0x3f8] sm:$0xff] }
 0xb80   :  { %17548 = vmatpush3.bf16.msra.mxu1 %v17545_v37  ;;  %16204 = vmatprep.mubr.msk.f32.mxu1 %vm5092_vm2, %v7272_v26  ;;  %v17653_v16 = vpack.c.bf16 %v13352_v2, %v13351_v23  ;;  %v13360_v37 = vld [vmem:[%s24433_s10 + $0x108] sm:$0xff]  ;;  %v13359_v26 = vld [vmem:[%s24433_s10 + $0x100] sm:$0xff]  ;;  %v13390_v23 = vld [vmem:[%s24433_s10 + $0x1f8] sm:$0xff] }
 0xb81   :  { %17550 = vmatprep.subr.bf16.mxu1 %v17549_v31  ;;  %v13629_v2 = vld [vmem:[%s24432_s9 + $0x24] sm:$0xf] }
 0xb84   :  { %17552 = vmatpush3.bf16.msra.mxu1 %v17549_v31  ;;  %v17663_v31 = vpack.c.bf16 %v13362_v46, %v13360_v37  ;;  %v13765_v37 = vld [vmem:[%s24432_s9 + $0x34] sm:$0xf]  ;;  %v13799_v46 = vld [vmem:[%s24432_s9 + $0x38] sm:$0xf] }
 0xb85   :  { %17554 = vmatprep.subr.bf16.mxu1 %v17553_v8 }
 0xb88   :  { %17556 = vmatpush3.bf16.msra.mxu1 %v17553_v8  ;;  %v13366_v8 = vld [vmem:[%s24433_s10 + $0x138] sm:$0xff] }
 0xb89   :  { %17558 = vmatprep.subr.bf16.mxu1 %v17557_v42  ;;  %v17667_v54 = vpack.c.bf16 %v13366_v8, %v13364_v61  ;;  %v7994_v61 = vld [vmem:[%s24433_s10 + $0x38] sm:$0xff] }
 0xb8c   :  { %17560 = vmatpush3.bf16.msra.mxu1 %v17557_v42  ;;  %v16225_v60 = vpop.f32.mrb[232].mxu0  ;;  %v17665_v42 = vpack.c.bf16 %v13361_v41, %v13359_v26  ;;  %v7992_v41 = vld [vmem:[%s24433_s10 + $0x28] sm:$0xff] }
 0xb8d   :  { %17578 = vmatprep.subr.bf16.mxu1 %v17577_v33  ;;  %v7448_v57 = vpop.f32.mrb[233].mxu0 }
 0xb8f   :  { %16205 = vmatmul.mubr.msk.f32.vlgmr.msra.gmra.mrb[122].mxu1 %vm5092_vm2, %v16187_v10  ;;  %v13391_v10 = vld [vmem:[%s24432_s9 + $0x8] sm:$0xf] }
 0xb90   :  { %17580 = vmatpush3.bf16.msra.mxu1 %v17577_v33  ;;  %16242 = vmatprep.mubr.msk.f32.mxu1 %vm5092_vm2, %v7448_v57  ;;  %v13365_v33 = vld [vmem:[%s24433_s10 + $0x130] sm:$0xff]  ;;  %v17671_v57 = vpack.c.bf16 %v13370_v38, %v13368_v59  ;;  %v7996_v38 = vld [vmem:[%s24433_s10 + $0x48] sm:$0xff] }
 0xb91   :  { %17582 = vmatprep.subr.bf16.mxu1 %v17581_v5 }
 0xb94   :  { %17584 = vmatpush3.bf16.msra.mxu1 %v17581_v5  ;;  %v17669_v5 = vpack.c.bf16 %v13365_v33, %v13363_v22  ;;  %v7991_v22 = vld [vmem:[%s24433_s10 + $0x20] sm:$0xff]  ;;  %v7993_v33 = vld [vmem:[%s24433_s10 + $0x30] sm:$0xff] }
 0xb95   :  { %17586 = vmatprep.subr.bf16.mxu1 %v17585_v45 }
 0xb98   :  { %17588 = vmatpush3.bf16.msra.mxu1 %v17585_v45  ;;  %v13372_v45 = vld [vmem:[%s24433_s10 + $0x168] sm:$0xff] }
 0xb99   :  { %17590 = vmatprep.subr.bf16.mxu1 %v17589_v29  ;;  %v17675_v6 = vpack.c.bf16 %v13374_v34, %v13372_v45  ;;  %v7995_v34 = vld [vmem:[%s24433_s10 + $0x40] sm:$0xff] }
 0xb9c   :  { %17592 = vmatpush3.bf16.msra.mxu1 %v17589_v29  ;;  %v16263_v27 = vpop.f32.mrb[234].mxu0  ;;  %v17673_v29 = vpack.c.bf16 %v13369_v21, %v13367_v11  ;;  %v17701_v21 = vpack.c.bf16 %v7993_v33, %v7991_v22  ;;  %v13401_v33 = vld [vmem:[%s24433_s10 + $0x240] sm:$0xff] }
 0xb9d   :  { %17610 = vmatprep.subr.bf16.mxu1 %v17609_v25  ;;  %v7624_v51 = vpop.f32.mrb[235].mxu0 }
 0xb9f   :  { %16243 = vmatmul.mubr.msk.f32.vlgmr.msra.gmra.mrb[122].mxu1 %vm5092_vm2, %v16225_v60  ;;  %v13459_v60 = vld [vmem:[%s24432_s9 + $0x10] sm:$0xf] }
 0xba0   :  { %17612 = vmatpush3.bf16.msra.mxu1 %v17609_v25  ;;  %16280 = vmatprep.mubr.msk.f32.mxu1 %vm5092_vm2, %v7624_v51  ;;  %v13373_v25 = vld [vmem:[%s24433_s10 + $0x170] sm:$0xff]  ;;  %v17679_v51 = vpack.c.bf16 %v13378_v18, %v13376_v35 }
 0xba1   :  { %17614 = vmatprep.subr.bf16.mxu1 %v17613_v55 }
 0xba4   :  { %17616 = vmatpush3.bf16.msra.mxu1 %v17613_v55  ;;  %v17677_v55 = vpack.c.bf16 %v13373_v25, %v13371_v58 }
 0xba5   :  { %17618 = vmatprep.subr.bf16.mxu1 %v17617_v63 }
 0xba8   :  { %17620 = vmatpush3.bf16.msra.mxu1 %v17617_v63  ;;  %v13380_v63 = vld [vmem:[%s24433_s10 + $0x1a8] sm:$0xff] }
 0xba9   :  { %17622 = vmatprep.subr.bf16.mxu1 %v17621_v30  ;;  %v17683_v20 = vpack.c.bf16 %v13382_v44, %v13380_v63  ;;  %v8003_v44 = vld [vmem:[%s24433_s10 + $0x80] sm:$0xff] }
 0xbac   :  { %17624 = vmatpush3.bf16.msra.mxu1 %v17621_v30  ;;  %v16301_v50 = vpop.f32.mrb[236].mxu0  ;;  %v17681_v30 = vpack.c.bf16 %v13377_v53, %v13375_v19  ;;  %v8006_v19 = vld [vmem:[%s24433_s10 + $0x98] sm:$0xff] }
 0xbad   :  { %17642 = vmatprep.subr.bf16.mxu1 %v17641_v47  ;;  %v7800_v62 = vpop.f32.mrb[237].mxu0 }
 0xbaf   :  { %16281 = vmatmul.mubr.msk.f32.vlgmr.msra.gmra.mrb[122].mxu1 %vm5092_vm2, %v16263_v27  ;;  %v13527_v27 = vld [vmem:[%s24432_s9 + $0x18] sm:$0xf] }
 0xbb0   :  { %17644 = vmatpush3.bf16.msra.mxu1 %v17641_v47  ;;  %16318 = vmatprep.mubr.msk.f32.mxu1 %vm5092_vm2, %v7800_v62  ;;  %v13381_v47 = vld [vmem:[%s24433_s10 + $0x1b0] sm:$0xff]  ;;  %v17687_v62 = vpack.c.bf16 %v13386_v36, %v13384_v17  ;;  %v8007_v17 = vld [vmem:[%s24433_s10 + $0xa0] sm:$0xff] }
 0xbb1   :  { %17646 = vmatprep.subr.bf16.mxu1 %v17645_v49  ;;  %v8009_v36 = vld [vmem:[%s24433_s10 + $0xb0] sm:$0xff] }
 0xbb4   :  { %17648 = vmatpush3.bf16.msra.mxu1 %v17645_v49  ;;  %v17685_v49 = vpack.c.bf16 %v13381_v47, %v13379_v14 }
 0xbb5   :  { %17650 = vmatprep.subr.bf16.mxu1 %v17649_v12 }
 0xbb8   :  { %17652 = vmatpush3.bf16.msra.mxu1 %v17649_v12  ;;  %v13388_v12 = vld [vmem:[%s24433_s10 + $0x1e8] sm:$0xff] }
 0xbb9   :  { %17654 = vmatprep.subr.bf16.mxu1 %v17653_v16 }
 0xbbc   :  { %17656 = vmatpush3.bf16.msra.mxu1 %v17653_v16  ;;  %v17689_v16 = vpack.c.bf16 %v13385_v7, %v13383_v3  ;;  %v8011_v7 = vld [vmem:[%s24433_s10 + $0xc0] sm:$0xff] }
 0xbbd   :  { %17727 = vmatprep.subr.bf16.mxu1 %v19432_v0 }
 0xbbf   :  { %16319 = vmatmul.mubr.msk.f32.vlgmr.msra.gmra.mrb[122].mxu1 %vm5092_vm2, %v16301_v50  ;;  %v13595_v50 = vld [vmem:[%s24432_s9 + $0x20] sm:$0xf] }
 0xbc0   :  { %16339 = vmatprep.mubr.msk.f32.mxu1 %vm19434_vm3, %v24451_v13 }
 0xc92   :  { %v16320_v39 = vpop.f32.mrb[122].mxu1 }
 0xc93   :  { %v7909_v4 = vadd.f32 %v16320_v39, %v13355_v9  ;;  %v7890_v56 = vpop.f32.mrb[123].mxu1  ;;  %v13387_v39 = vld [vmem:[%s24433_s10 + $0x1e0] sm:$0xff] }
 0xc94   :  { %v7908_v40 = vadd.f32 %v13355_v9, %v7890_v56  ;;  %v17691_v9 = vpack.c.bf16 %v13390_v23, %v13388_v12  ;;  %v13663_v56 = vld [vmem:[%s24432_s9 + $0x28] sm:$0xf]  ;;  %v8013_v12 = vld [vmem:[%s24433_s10 + $0xd0] sm:$0xff] }
 0xc95   :  { %v7911_v52 = vmax.f32 %v7909_v4, 0.0  ;;  %v13389_v4 = vld [vmem:[%s24433_s10 + $0x1f0] sm:$0xff]  ;;  %v8016_v23 = vld [vmem:[%s24433_s10 + $0xe8] sm:$0xff] }
 0xc96   :  { %v7910_v24 = vmax.f32 %v7908_v40, 0.0  ;;  %v17693_v40 = vpack.c.bf16 %v13389_v4, %v13387_v39  ;;  %v8015_v39 = vld [vmem:[%s24433_s10 + $0xe0] sm:$0xff]  ;;  %v8017_v4 = vld [vmem:[%s24433_s10 + $0xf0] sm:$0xff] }
 0xc98   :  { %v22427_v28 = vpack.c.bf16 %v7911_v52, %v7910_v24  ;;  %v13697_v52 = vld [vmem:[%s24432_s9 + $0x2c] sm:$0xf]  ;;  %v13731_v24 = vld [vmem:[%s24432_s9 + $0x30] sm:$0xf] }
 0xc9a   :  { %17659 = vmatpush3.bf16.msra.mxu0 %v22427_v28  ;;  %17729 = vmatpush3.bf16.msra.mxu1 %v22427_v28 }
 0xc9b   :  { %17660 = vmatprep.subr.bf16.mxu0 %v19432_v0  ;;  %17762 = vmatprep.subr.bf16.mxu1 %v19432_v0 }
 0xc9d   :  { %16326 = vmatmul.mubr.msk.f32.vlgmr.msra.gmra.mrb[238].mxu0 %vm7913_vm4, %v7912_v1  ;;  %16340 = vmatmul.mubr.msk.f32.vlgmr.msra.gmra.mrb[124].mxu1 %vm7913_vm4, %v13391_v10  ;;  %v7988_v1 = vld [vmem:[%s24433_s10 + $0x8] sm:$0xff]  ;;  %v7990_v10 = vld [vmem:[%s24433_s10 + $0x18] sm:$0xff] }
 0xc9e   :  { %17662 = vmatpush3.bf16.msra.mxu0 %v22427_v28  ;;  %17764 = vmatpush3.bf16.msra.mxu1 %v22427_v28 }
 0xc9f   :  { %16332 = vmatprep.mubr.msk.f32.mxu0 %vm19434_vm3, %v24451_v13  ;;  %16346 = vmatprep.mubr.msk.f32.mxu1 %vm19434_vm3, %v24451_v13 }
 0xca0   :  { %17797 = vmatprep.subr.bf16.mxu1 %v19432_v0  ;;  %17664 = vmatprep.subr.bf16.mxu0 %v17663_v31  ;;  %v17695_v31 = vpack.c.bf16 %v7990_v10, %v7988_v1  ;;  %v13398_v1 = vld [vmem:[%s24433_s10 + $0x228] sm:$0xff]  ;;  %v13400_v10 = vld [vmem:[%s24433_s10 + $0x238] sm:$0xff] }
 0xca1   :  { %16333 = vmatmul.mubr.msk.f32.vlgmr.msra.gmra.mrb[240].mxu0 %vm7913_vm4, %v13357_v32  ;;  %16347 = vmatmul.mubr.msk.f32.vlgmr.msra.gmra.mrb[126].mxu1 %vm7913_vm4, %v13425_v43 }
 0xca2   :  { %17799 = vmatpush3.bf16.msra.mxu1 %v22427_v28  ;;  %16353 = vmatprep.mubr.msk.f32.mxu1 %vm19434_vm3, %v24451_v13 }
 0xca3   :  { %17832 = vmatprep.subr.bf16.mxu1 %v19432_v0  ;;  %17666 = vmatpush1.bf16.msra.mxu0 %v17665_v42 }
 0xca4   :  { %17668 = vmatprep.subr.bf16.mxu0 %v17667_v54  ;;  %8191 = vmatprep.mubr.f32.mxu0 %v24451_v13  ;;  %v17699_v54 = vpack.c.bf16 %v7994_v61, %v7992_v41  ;;  %v13397_v41 = vld [vmem:[%s24433_s10 + $0x220] sm:$0xff]  ;;  %v13399_v61 = vld [vmem:[%s24433_s10 + $0x230] sm:$0xff] }
 0xca5   :  { %16354 = vmatmul.mubr.msk.f32.vlgmr.msra.gmra.mrb[128].mxu1 %vm7913_vm4, %v13459_v60  ;;  %v7998_v60 = vld [vmem:[%s24433_s10 + $0x58] sm:$0xff] }
 0xca6   :  { %17834 = vmatpush3.bf16.msra.mxu1 %v22427_v28  ;;  %16360 = vmatprep.mubr.msk.f32.mxu1 %vm19434_vm3, %v24451_v13  ;;  %v17703_v45 = vpack.c.bf16 %v7998_v60, %v7996_v38  ;;  %v13406_v38 = vld [vmem:[%s24433_s10 + $0x268] sm:$0xff] }
 0xca7   :  { %17867 = vmatprep.subr.bf16.mxu1 %v19432_v0  ;;  %17670 = vmatpush1.bf16.msra.mxu0 %v17669_v5 }
 0xca8   :  { %17672 = vmatprep.subr.bf16.mxu0 %v17671_v57 }
 0xca9   :  { %16361 = vmatmul.mubr.msk.f32.vlgmr.msra.gmra.mrb[130].mxu1 %vm7913_vm4, %v13493_v15  ;;  %v7997_v15 = vld [vmem:[%s24433_s10 + $0x50] sm:$0xff] }
 0xcaa   :  { %17869 = vmatpush3.bf16.msra.mxu1 %v22427_v28  ;;  %16367 = vmatprep.mubr.msk.f32.mxu1 %vm19434_vm3, %v24451_v13  ;;  %v17705_v35 = vpack.c.bf16 %v7997_v15, %v7995_v34  ;;  %v13412_v34 = vld [vmem:[%s24433_s10 + $0x298] sm:$0xff] }
 0xcab   :  { %17902 = vmatprep.subr.bf16.mxu1 %v19432_v0  ;;  %17674 = vmatpush1.bf16.msra.mxu0 %v17673_v29  ;;  %v8000_v29 = vld [vmem:[%s24433_s10 + $0x68] sm:$0xff] }
 0xcac   :  { %17676 = vmatprep.subr.bf16.mxu0 %v17675_v6  ;;  %v8002_v6 = vld [vmem:[%s24433_s10 + $0x78] sm:$0xff] }
 0xcad   :  { %16368 = vmatmul.mubr.msk.f32.vlgmr.msra.gmra.mrb[132].mxu1 %vm7913_vm4, %v13527_v27  ;;  %v17707_v18 = vpack.c.bf16 %v8002_v6, %v8000_v29  ;;  %v7999_v27 = vld [vmem:[%s24433_s10 + $0x60] sm:$0xff] }
 0xcae   :  { %17904 = vmatpush3.bf16.msra.mxu1 %v22427_v28  ;;  %16374 = vmatprep.mubr.msk.f32.mxu1 %vm19434_vm3, %v24451_v13  ;;  %v13409_v6 = vld [vmem:[%s24433_s10 + $0x280] sm:$0xff] }
 0xcaf   :  { %17937 = vmatprep.subr.bf16.mxu1 %v19432_v0  ;;  %17678 = vmatpush1.bf16.msra.mxu0 %v17677_v55  ;;  %v8001_v55 = vld [vmem:[%s24433_s10 + $0x70] sm:$0xff] }
 0xcb0   :  { %17680 = vmatprep.subr.bf16.mxu0 %v17679_v51  ;;  %v8004_v51 = vld [vmem:[%s24433_s10 + $0x88] sm:$0xff]  ;;  %v17709_v53 = vpack.c.bf16 %v8001_v55, %v7999_v27 }
 0xcb1   :  { %16375 = vmatmul.mubr.msk.f32.vlgmr.msra.gmra.mrb[134].mxu1 %vm7913_vm4, %v13561_v48  ;;  %v17711_v63 = vpack.c.bf16 %v8006_v19, %v8004_v51  ;;  %v8005_v48 = vld [vmem:[%s24433_s10 + $0x90] sm:$0xff]  ;;  %v13413_v51 = vld [vmem:[%s24433_s10 + $0x2a0] sm:$0xff] }
 0xcb2   :  { %17939 = vmatpush3.bf16.msra.mxu1 %v22427_v28  ;;  %16381 = vmatprep.mubr.msk.f32.mxu1 %vm19434_vm3, %v24451_v13  ;;  %v17713_v14 = vpack.c.bf16 %v8005_v48, %v8003_v44  ;;  %v13415_v19 = vld [vmem:[%s24433_s10 + $0x2b0] sm:$0xff] }
 0xcb3   :  { %17972 = vmatprep.subr.bf16.mxu1 %v19432_v0  ;;  %17682 = vmatpush1.bf16.msra.mxu0 %v17681_v30  ;;  %v8008_v30 = vld [vmem:[%s24433_s10 + $0xa8] sm:$0xff]  ;;  %v17752_v44 = vpack.c.bf16 %v13415_v19, %v13413_v51 }
 0xcb4   :  { %17684 = vmatprep.subr.bf16.mxu0 %v17683_v20  ;;  %v8010_v20 = vld [vmem:[%s24433_s10 + $0xb8] sm:$0xff] }
 0xcb5   :  { %16382 = vmatmul.mubr.msk.f32.vlgmr.msra.gmra.mrb[136].mxu1 %vm7913_vm4, %v13595_v50  ;;  %v17715_v47 = vpack.c.bf16 %v8010_v20, %v8008_v30  ;;  %v8012_v50 = vld [vmem:[%s24433_s10 + $0xc8] sm:$0xff]  ;;  %v13417_v30 = vld [vmem:[%s24433_s10 + $0x2c0] sm:$0xff]  ;;  %v13419_v20 = vld [vmem:[%s24433_s10 + $0x2d0] sm:$0xff] }
 0xcb6   :  { %17974 = vmatpush3.bf16.msra.mxu1 %v22427_v28  ;;  %16388 = vmatprep.mubr.msk.f32.mxu1 %vm19434_vm3, %v24451_v13 }
 0xcb7   :  { %18007 = vmatprep.subr.bf16.mxu1 %v19432_v0  ;;  %17686 = vmatpush1.bf16.msra.mxu0 %v17685_v49  ;;  %v8014_v49 = vld [vmem:[%s24433_s10 + $0xd8] sm:$0xff] }
 0xcb8   :  { %17688 = vmatprep.subr.bf16.mxu0 %v17687_v62  ;;  %v17717_v62 = vpack.c.bf16 %v8009_v36, %v8007_v17  ;;  %v17719_v3 = vpack.c.bf16 %v8014_v49, %v8012_v50  ;;  %v17756_v17 = vpack.c.bf16 %v13419_v20, %v13417_v30  ;;  %v13421_v50 = vld [vmem:[%s24433_s10 + $0x2e0] sm:$0xff]  ;;  %v13423_v49 = vld [vmem:[%s24433_s10 + $0x2f0] sm:$0xff] }
 0xcb9   :  { %16389 = vmatmul.mubr.msk.f32.vlgmr.msra.gmra.mrb[138].mxu1 %vm7913_vm4, %v13629_v2  ;;  %v8018_v2 = vld [vmem:[%s24433_s10 + $0xf8] sm:$0xff] }
 0xcba   :  { %18009 = vmatpush3.bf16.msra.mxu1 %v22427_v28  ;;  %16395 = vmatprep.mubr.msk.f32.mxu1 %vm19434_vm3, %v24451_v13 }
 0xcbb   :  { %18042 = vmatprep.subr.bf16.mxu1 %v19432_v0  ;;  %17690 = vmatpush1.bf16.msra.mxu0 %v17689_v16  ;;  %v17721_v16 = vpack.c.bf16 %v8013_v12, %v8011_v7  ;;  %v17760_v7 = vpack.c.bf16 %v13423_v49, %v13421_v50 }
 0xcbc   :  { %17692 = vmatprep.subr.bf16.mxu0 %v17691_v9  ;;  %v17723_v9 = vpack.c.bf16 %v8018_v2, %v8016_v23  ;;  %v13427_v23 = vld [vmem:[%s24433_s10 + $0x300] sm:$0xff]  ;;  %v13429_v2 = vld [vmem:[%s24433_s10 + $0x310] sm:$0xff] }
 0xcbd   :  { %16396 = vmatmul.mubr.msk.f32.vlgmr.msra.gmra.mrb[140].mxu1 %vm7913_vm4, %v13663_v56  ;;  %v13394_v56 = vld [vmem:[%s24433_s10 + $0x208] sm:$0xff] }
 0xcbe   :  { %18044 = vmatpush3.bf16.msra.mxu1 %v22427_v28  ;;  %16402 = vmatprep.mubr.msk.f32.mxu1 %vm19434_vm3, %v24451_v13 }
 0xcbf   :  { %18077 = vmatprep.subr.bf16.mxu1 %v19432_v0  ;;  %17694 = vmatpush1.bf16.msra.mxu0 %v17693_v40  ;;  %v13396_v40 = vld [vmem:[%s24433_s10 + $0x218] sm:$0xff] }
 0xcc0   :  { %17696 = vmatprep.subr.bf16.mxu0 %v17695_v31 }
 0xcc1   :  { %16403 = vmatmul.mubr.msk.f32.vlgmr.msra.gmra.mrb[142].mxu1 %vm7913_vm4, %v13697_v52  ;;  %v17725_v52 = vpack.c.bf16 %v8017_v4, %v8015_v39  ;;  %v17767_v39 = vpack.c.bf16 %v13429_v2, %v13427_v23  ;;  %v13470_v23 = vld [vmem:[%s24433_s10 + $0x448] sm:$0xff]  ;;  %v13472_v2 = vld [vmem:[%s24433_s10 + $0x458] sm:$0xff] }
 0xcc2   :  { %18079 = vmatpush3.bf16.msra.mxu1 %v22427_v28  ;;  %16409 = vmatprep.mubr.msk.f32.mxu1 %vm19434_vm3, %v24451_v13 }
 0xcc3   :  { %18112 = vmatprep.subr.bf16.mxu1 %v19432_v0 }
 0xcc5   :  { %16410 = vmatmul.mubr.msk.f32.vlgmr.msra.gmra.mrb[144].mxu1 %vm7913_vm4, %v13731_v24  ;;  %v17730_v24 = vpack.c.bf16 %v13396_v40, %v13394_v56  ;;  %v13431_v40 = vld [vmem:[%s24433_s10 + $0x320] sm:$0xff] }
 0xcc6   :  { %18114 = vmatpush3.bf16.msra.mxu1 %v22427_v28  ;;  %16416 = vmatprep.mubr.msk.f32.mxu1 %vm19434_vm3, %v24451_v13 }
 0xcc7   :  { %18147 = vmatprep.subr.bf16.mxu1 %v19432_v0 }
 0xcc9   :  { %16417 = vmatmul.mubr.msk.f32.vlgmr.msra.gmra.mrb[146].mxu1 %vm7913_vm4, %v13765_v37  ;;  %v13393_v37 = vld [vmem:[%s24433_s10 + $0x200] sm:$0xff] }
 0xcca   :  { %18149 = vmatpush3.bf16.msra.mxu1 %v22427_v28  ;;  %16423 = vmatprep.mubr.msk.f32.mxu1 %vm19434_vm3, %v24451_v13 }
 0xccb   :  { %18182 = vmatprep.subr.bf16.mxu1 %v19432_v0  ;;  %v7987_v0 = vld [vmem:[%s24433_s10] sm:$0xff] }
 0xccd   :  { %16424 = vmatmul.mubr.msk.f32.vlgmr.msra.gmra.mrb[148].mxu1 %vm7913_vm4, %v13799_v46  ;;  %v13395_v46 = vld [vmem:[%s24433_s10 + $0x210] sm:$0xff] }
 0xcce   :  { %18184 = vmatpush3.bf16.msra.mxu1 %v22427_v28  ;;  %16430 = vmatprep.mubr.msk.f32.mxu1 %vm19434_vm3, %v24451_v13  ;;  %v7989_v28 = vld [vmem:[%s24433_s10 + $0x10] sm:$0xff]  ;;  %v17732_v31 = vpack.c.bf16 %v13395_v46, %v13393_v37  ;;  %v13436_v37 = vld [vmem:[%s24433_s10 + $0x348] sm:$0xff]  ;;  %v13438_v46 = vld [vmem:[%s24433_s10 + $0x358] sm:$0xff] }
 0xccf   :  { %v17697_v42 = vpack.c.bf16 %v7989_v28, %v7987_v0  ;;  %v17734_v28 = vpack.c.bf16 %v13400_v10, %v13398_v1  ;;  %v17773_v10 = vpack.c.bf16 %v13438_v46, %v13436_v37  ;;  %v13473_v37 = vld [vmem:[%s24433_s10 + $0x460] sm:$0xff]  ;;  %v13475_v46 = vld [vmem:[%s24433_s10 + $0x470] sm:$0xff] }
 0xd70   :  { %v22656_v26 = vpop.f32.mrb[238].mxu0  ;;  %v22664_v8 = vpop.f32.mrb[124].mxu1 }
 0xd71   :  { %v16327_v32 = vpop.f32.mrb[239].mxu0  ;;  %v16341_v43 = vpop.f32.mrb[125].mxu1 }
 0xd72   :  { %v13402_v43 = vld [vmem:[%s24433_s10 + $0x248] sm:$0xff] }
 0xd74   :  { %v8090_v59 = vpop.f32.mrb[240].mxu0  ;;  %v22678_v5 = vpop.f32.mrb[126].mxu1 }
 0xd75   :  { %8192 = vmatmul.mubr.f32.vlgmr.msra.gmra.mrb[242].mxu0 %v8090_v59  ;;  %v16334_v57 = vpop.f32.mrb[241].mxu0  ;;  %v16348_v11 = vpop.f32.mrb[127].mxu1  ;;  %v13403_v59 = vld [vmem:[%s24433_s10 + $0x250] sm:$0xff] }
 0xd76   :  { %17698 = vmatpush1.bf16.msra.mxu0 %v17697_v42  ;;  %8262 = vmatprep.mubr.f32.mxu0 %v24451_v13  ;;  %v13404_v42 = vld [vmem:[%s24433_s10 + $0x258] sm:$0xff]  ;;  %v17740_v60 = vpack.c.bf16 %v13403_v59, %v13401_v33  ;;  %v13405_v11 = vld [vmem:[%s24433_s10 + $0x260] sm:$0xff] }
 0xd77   :  { %17700 = vmatprep.subr.bf16.mxu0 %v17699_v54  ;;  %v17736_v54 = vpack.c.bf16 %v13399_v61, %v13397_v41  ;;  %v17738_v22 = vpack.c.bf16 %v13404_v42, %v13402_v43  ;;  %v13440_v41 = vld [vmem:[%s24433_s10 + $0x368] sm:$0xff]  ;;  %v13439_v43 = vld [vmem:[%s24433_s10 + $0x360] sm:$0xff]  ;;  %v13441_v42 = vld [vmem:[%s24433_s10 + $0x370] sm:$0xff] }
 0xd78   :  { %v22693_v58 = vpop.f32.mrb[128].mxu1  ;;  %v17779_v33 = vpack.c.bf16 %v13441_v42, %v13439_v43 }
 0xd79   :  { %v16355_v25 = vpop.f32.mrb[129].mxu1 }
 0xd7a   :  { %17702 = vmatpush1.bf16.msra.mxu0 %v17701_v21  ;;  %v13407_v21 = vld [vmem:[%s24433_s10 + $0x270] sm:$0xff] }
 0xd7b   :  { %17704 = vmatprep.subr.bf16.mxu0 %v17703_v45  ;;  %v13410_v45 = vld [vmem:[%s24433_s10 + $0x288] sm:$0xff]  ;;  %v17744_v15 = vpack.c.bf16 %v13407_v21, %v13405_v11  ;;  %v13411_v25 = vld [vmem:[%s24433_s10 + $0x290] sm:$0xff] }
 0xd7c   :  { %v22767_v0 = vpop.f32.mrb[130].mxu1  ;;  %v17746_v29 = vpack.c.bf16 %v13412_v34, %v13410_v45  ;;  %v17748_v27 = vpack.c.bf16 %v13411_v25, %v13409_v6  ;;  %v13447_v45 = vld [vmem:[%s24433_s10 + $0x3a0] sm:$0xff]  ;;  %v13449_v34 = vld [vmem:[%s24433_s10 + $0x3b0] sm:$0xff] }
 0xd7d   :  { %v16362_v32 = vpop.f32.mrb[131].mxu1  ;;  %v17787_v6 = vpack.c.bf16 %v13449_v34, %v13447_v45 }
 0xd7e   :  { %17706 = vmatpush1.bf16.msra.mxu0 %v17705_v35  ;;  %v13414_v35 = vld [vmem:[%s24433_s10 + $0x2a8] sm:$0xff] }
 0xd7f   :  { %17708 = vmatprep.subr.bf16.mxu0 %v17707_v18  ;;  %v13416_v18 = vld [vmem:[%s24433_s10 + $0x2b8] sm:$0xff] }
 0xd80   :  { %v17750_v55 = vpack.c.bf16 %v13416_v18, %v13414_v35  ;;  %v22867_v4 = vpop.f32.mrb[132].mxu1  ;;  %v13451_v35 = vld [vmem:[%s24433_s10 + $0x3c0] sm:$0xff]  ;;  %v13453_v18 = vld [vmem:[%s24433_s10 + $0x3d0] sm:$0xff] }
 0xd81   :  { %v17791_v51 = vpack.c.bf16 %v13453_v18, %v13451_v35 }
 0xd82   :  { %17710 = vmatpush1.bf16.msra.mxu0 %v17709_v53  ;;  %v13418_v53 = vld [vmem:[%s24433_s10 + $0x2c8] sm:$0xff] }
 0xd83   :  { %17712 = vmatprep.subr.bf16.mxu0 %v17711_v63  ;;  %v13420_v63 = vld [vmem:[%s24433_s10 + $0x2d8] sm:$0xff] }
 0xd84   :  { %v17754_v48 = vpack.c.bf16 %v13420_v63, %v13418_v53  ;;  %v13455_v53 = vld [vmem:[%s24433_s10 + $0x3e0] sm:$0xff]  ;;  %v13457_v63 = vld [vmem:[%s24433_s10 + $0x3f0] sm:$0xff] }
 0xd85   :  { %v17795_v30 = vpack.c.bf16 %v13457_v63, %v13455_v53 }
 0xd86   :  { %17714 = vmatpush1.bf16.msra.mxu0 %v17713_v14  ;;  %v13422_v14 = vld [vmem:[%s24433_s10 + $0x2e8] sm:$0xff] }
 0xd87   :  { %17716 = vmatprep.subr.bf16.mxu0 %v17715_v47  ;;  %v13424_v47 = vld [vmem:[%s24433_s10 + $0x2f8] sm:$0xff] }
 0xd88   :  { %v17758_v36 = vpack.c.bf16 %v13424_v47, %v13422_v14  ;;  %v13461_v14 = vld [vmem:[%s24433_s10 + $0x400] sm:$0xff]  ;;  %v13463_v47 = vld [vmem:[%s24433_s10 + $0x410] sm:$0xff] }
 0xd89   :  { %v17802_v50 = vpack.c.bf16 %v13463_v47, %v13461_v14  ;;  %v13504_v14 = vld [vmem:[%s24433_s10 + $0x548] sm:$0xff]  ;;  %v13506_v47 = vld [vmem:[%s24433_s10 + $0x558] sm:$0xff] }
 0xd8a   :  { %17718 = vmatpush1.bf16.msra.mxu0 %v17717_v62  ;;  %v13428_v62 = vld [vmem:[%s24433_s10 + $0x308] sm:$0xff] }
 0xd8b   :  { %17720 = vmatprep.subr.bf16.mxu0 %v17719_v3  ;;  %v13430_v3 = vld [vmem:[%s24433_s10 + $0x318] sm:$0xff] }
 0xd8c   :  { %v17765_v12 = vpack.c.bf16 %v13430_v3, %v13428_v62  ;;  %v13465_v3 = vld [vmem:[%s24433_s10 + $0x420] sm:$0xff] }
 0xd8e   :  { %17722 = vmatpush1.bf16.msra.mxu0 %v17721_v16  ;;  %v13432_v16 = vld [vmem:[%s24433_s10 + $0x328] sm:$0xff] }
 0xd8f   :  { %17724 = vmatprep.subr.bf16.mxu0 %v17723_v9  ;;  %v13434_v9 = vld [vmem:[%s24433_s10 + $0x338] sm:$0xff] }
 0xd90   :  { %v17769_v56 = vpack.c.bf16 %v13434_v9, %v13432_v16  ;;  %v17808_v9 = vpack.c.bf16 %v13472_v2, %v13470_v23  ;;  %v13507_v23 = vld [vmem:[%s24433_s10 + $0x560] sm:$0xff]  ;;  %v13509_v2 = vld [vmem:[%s24433_s10 + $0x570] sm:$0xff] }
 0xd92   :  { %17726 = vmatpush1.bf16.msra.mxu0 %v17725_v52  ;;  %v13433_v52 = vld [vmem:[%s24433_s10 + $0x330] sm:$0xff] }
 0xd93   :  { %17731 = vmatprep.subr.bf16.mxu0 %v17730_v24  ;;  %v16369_v24 = vpop.f32.mrb[133].mxu1  ;;  %v17771_v1 = vpack.c.bf16 %v13433_v52, %v13431_v40  ;;  %v13474_v40 = vld [vmem:[%s24433_s10 + $0x468] sm:$0xff] }
 0xd94   :  { %v22967_v49 = vpop.f32.mrb[134].mxu1 }
 0xd95   :  { %8263 = vmatmul.mubr.f32.vlgmr.msra.gmra.mrb[242].mxu0 %v22656_v26  ;;  %v13408_v26 = vld [vmem:[%s24433_s10 + $0x278] sm:$0xff] }
 0xd96   :  { %17733 = vmatpush1.bf16.msra.mxu0 %v17732_v31  ;;  %8441 = vmatprep.mubr.f32.mxu0 %v24451_v13  ;;  %v17742_v57 = vpack.c.bf16 %v13408_v26, %v13406_v38  ;;  %v13435_v31 = vld [vmem:[%s24433_s10 + $0x340] sm:$0xff]  ;;  %v13445_v26 = vld [vmem:[%s24433_s10 + $0x390] sm:$0xff] }
 0xd97   :  { %17735 = vmatprep.subr.bf16.mxu0 %v17734_v28  ;;  %v13437_v28 = vld [vmem:[%s24433_s10 + $0x350] sm:$0xff]  ;;  %v13443_v38 = vld [vmem:[%s24433_s10 + $0x380] sm:$0xff] }
 0xd98   :  { %v17775_v61 = vpack.c.bf16 %v13437_v28, %v13435_v31  ;;  %v17783_v11 = vpack.c.bf16 %v13445_v26, %v13443_v38  ;;  %v17814_v31 = vpack.c.bf16 %v13475_v46, %v13473_v37  ;;  %v13518_v37 = vld [vmem:[%s24433_s10 + $0x5b8] sm:$0xff] }
 0xd9a   :  { %17737 = vmatpush1.bf16.msra.mxu0 %v17736_v54  ;;  %v13444_v54 = vld [vmem:[%s24433_s10 + $0x388] sm:$0xff] }
 0xd9b   :  { %17739 = vmatprep.subr.bf16.mxu0 %v17738_v22  ;;  %v13446_v22 = vld [vmem:[%s24433_s10 + $0x398] sm:$0xff] }
 0xd9c   :  { %v17781_v59 = vpack.c.bf16 %v13446_v22, %v13444_v54  ;;  %v13481_v54 = vld [vmem:[%s24433_s10 + $0x4a0] sm:$0xff]  ;;  %v13483_v22 = vld [vmem:[%s24433_s10 + $0x4b0] sm:$0xff] }
 0xd9d   :  { %v17822_v38 = vpack.c.bf16 %v13483_v22, %v13481_v54  ;;  %v13526_v54 = vld [vmem:[%s24433_s10 + $0x5f8] sm:$0xff] }
 0xd9e   :  { %17741 = vmatpush1.bf16.msra.mxu0 %v17740_v60  ;;  %v13448_v60 = vld [vmem:[%s24433_s10 + $0x3a8] sm:$0xff] }
 0xd9f   :  { %17743 = vmatprep.subr.bf16.mxu0 %v17742_v57  ;;  %v13450_v57 = vld [vmem:[%s24433_s10 + $0x3b8] sm:$0xff] }
 0xda0   :  { %v17785_v21 = vpack.c.bf16 %v13450_v57, %v13448_v60  ;;  %v13485_v60 = vld [vmem:[%s24433_s10 + $0x4c0] sm:$0xff]  ;;  %v13487_v57 = vld [vmem:[%s24433_s10 + $0x4d0] sm:$0xff] }
 0xda1   :  { %v17826_v45 = vpack.c.bf16 %v13487_v57, %v13485_v60  ;;  %v13532_v60 = vld [vmem:[%s24433_s10 + $0x618] sm:$0xff] }
 0xda2   :  { %17745 = vmatpush1.bf16.msra.mxu0 %v17744_v15  ;;  %v13452_v15 = vld [vmem:[%s24433_s10 + $0x3c8] sm:$0xff] }
 0xda3   :  { %17747 = vmatprep.subr.bf16.mxu0 %v17746_v29  ;;  %v13454_v29 = vld [vmem:[%s24433_s10 + $0x3d8] sm:$0xff] }
 0xda4   :  { %v17789_v25 = vpack.c.bf16 %v13454_v29, %v13452_v15  ;;  %v13489_v15 = vld [vmem:[%s24433_s10 + $0x4e0] sm:$0xff]  ;;  %v13491_v29 = vld [vmem:[%s24433_s10 + $0x4f0] sm:$0xff] }
 0xda5   :  { %v17830_v35 = vpack.c.bf16 %v13491_v29, %v13489_v15  ;;  %v13536_v15 = vld [vmem:[%s24433_s10 + $0x638] sm:$0xff] }
 0xda6   :  { %17749 = vmatpush1.bf16.msra.mxu0 %v17748_v27  ;;  %v13456_v27 = vld [vmem:[%s24433_s10 + $0x3e8] sm:$0xff] }
 0xda7   :  { %17751 = vmatprep.subr.bf16.mxu0 %v17750_v55  ;;  %v13458_v55 = vld [vmem:[%s24433_s10 + $0x3f8] sm:$0xff] }
 0xda8   :  { %v17793_v19 = vpack.c.bf16 %v13458_v55, %v13456_v27  ;;  %v13495_v27 = vld [vmem:[%s24433_s10 + $0x500] sm:$0xff]  ;;  %v13497_v55 = vld [vmem:[%s24433_s10 + $0x510] sm:$0xff] }
 0xda9   :  { %v17837_v53 = vpack.c.bf16 %v13497_v55, %v13495_v27  ;;  %v13538_v55 = vld [vmem:[%s24433_s10 + $0x648] sm:$0xff] }
 0xdaa   :  { %17753 = vmatpush1.bf16.msra.mxu0 %v17752_v44  ;;  %v13462_v44 = vld [vmem:[%s24433_s10 + $0x408] sm:$0xff] }
 0xdab   :  { %17755 = vmatprep.subr.bf16.mxu0 %v17754_v48  ;;  %v13464_v48 = vld [vmem:[%s24433_s10 + $0x418] sm:$0xff] }
 0xdac   :  { %v17800_v20 = vpack.c.bf16 %v13464_v48, %v13462_v44  ;;  %v13499_v48 = vld [vmem:[%s24433_s10 + $0x520] sm:$0xff] }
 0xdae   :  { %17757 = vmatpush1.bf16.msra.mxu0 %v17756_v17  ;;  %v13466_v17 = vld [vmem:[%s24433_s10 + $0x428] sm:$0xff] }
 0xdaf   :  { %17759 = vmatprep.subr.bf16.mxu0 %v17758_v36  ;;  %v13468_v36 = vld [vmem:[%s24433_s10 + $0x438] sm:$0xff] }
 0xdb0   :  { %v17804_v62 = vpack.c.bf16 %v13468_v36, %v13466_v17  ;;  %v17843_v36 = vpack.c.bf16 %v13506_v47, %v13504_v14  ;;  %v13541_v47 = vld [vmem:[%s24433_s10 + $0x660] sm:$0xff] }
 0xdb2   :  { %17761 = vmatpush1.bf16.msra.mxu0 %v17760_v7  ;;  %v13467_v7 = vld [vmem:[%s24433_s10 + $0x430] sm:$0xff] }
 0xdb3   :  { %17766 = vmatprep.subr.bf16.mxu0 %v17765_v12  ;;  %v16376_v12 = vpop.f32.mrb[135].mxu1  ;;  %v17806_v16 = vpack.c.bf16 %v13467_v7, %v13465_v3  ;;  %v13508_v3 = vld [vmem:[%s24433_s10 + $0x568] sm:$0xff] }
 0xdb4   :  { %v23067_v63 = vpop.f32.mrb[136].mxu1 }
 0xdb5   :  { %8442 = vmatmul.mubr.f32.vlgmr.msra.gmra.mrb[242].mxu0 %v22664_v8  ;;  %v13442_v8 = vld [vmem:[%s24433_s10 + $0x378] sm:$0xff] }
 0xdb6   :  { %17768 = vmatpush1.bf16.msra.mxu0 %v17767_v39  ;;  %8622 = vmatprep.mubr.f32.mxu0 %v24451_v13  ;;  %v17777_v32 = vpack.c.bf16 %v13442_v8, %v13440_v41  ;;  %v13469_v39 = vld [vmem:[%s24433_s10 + $0x440] sm:$0xff]  ;;  %v13479_v8 = vld [vmem:[%s24433_s10 + $0x490] sm:$0xff] }
 0xdb7   :  { %17770 = vmatprep.subr.bf16.mxu0 %v17769_v56  ;;  %v13471_v56 = vld [vmem:[%s24433_s10 + $0x450] sm:$0xff]  ;;  %v13477_v41 = vld [vmem:[%s24433_s10 + $0x480] sm:$0xff] }
 0xdb8   :  { %v17810_v52 = vpack.c.bf16 %v13471_v56, %v13469_v39  ;;  %v17818_v43 = vpack.c.bf16 %v13479_v8, %v13477_v41  ;;  %v17849_v39 = vpack.c.bf16 %v13509_v2, %v13507_v23  ;;  %v13522_v41 = vld [vmem:[%s24433_s10 + $0x5d8] sm:$0xff] }
 0xdb9   :  { %v13552_v23 = vld [vmem:[%s24433_s10 + $0x6b8] sm:$0xff] }
 0xdba   :  { %17772 = vmatpush1.bf16.msra.mxu0 %v17771_v1  ;;  %v13478_v1 = vld [vmem:[%s24433_s10 + $0x488] sm:$0xff] }
 0xdbb   :  { %17774 = vmatprep.subr.bf16.mxu0 %v17773_v10  ;;  %v13480_v10 = vld [vmem:[%s24433_s10 + $0x498] sm:$0xff] }
 0xdbc   :  { %v17816_v28 = vpack.c.bf16 %v13480_v10, %v13478_v1  ;;  %v13515_v10 = vld [vmem:[%s24433_s10 + $0x5a0] sm:$0xff] }
 0xdbe   :  { %17776 = vmatpush1.bf16.msra.mxu0 %v17775_v61  ;;  %v13482_v61 = vld [vmem:[%s24433_s10 + $0x4a8] sm:$0xff] }
 0xdbf   :  { %17778 = vmatprep.subr.bf16.mxu0 %v17777_v32  ;;  %v13484_v32 = vld [vmem:[%s24433_s10 + $0x4b8] sm:$0xff] }
 0xdc0   :  { %v17820_v42 = vpack.c.bf16 %v13484_v32, %v13482_v61  ;;  %v13519_v32 = vld [vmem:[%s24433_s10 + $0x5c0] sm:$0xff] }
 0xdc2   :  { %17780 = vmatpush1.bf16.msra.mxu0 %v17779_v33  ;;  %v13486_v33 = vld [vmem:[%s24433_s10 + $0x4c8] sm:$0xff] }
 0xdc3   :  { %17782 = vmatprep.subr.bf16.mxu0 %v17781_v59  ;;  %v13488_v59 = vld [vmem:[%s24433_s10 + $0x4d8] sm:$0xff] }
 0xdc4   :  { %v17824_v26 = vpack.c.bf16 %v13488_v59, %v13486_v33  ;;  %v13523_v59 = vld [vmem:[%s24433_s10 + $0x5e0] sm:$0xff] }
 0xdc6   :  { %17784 = vmatpush1.bf16.msra.mxu0 %v17783_v11  ;;  %v13490_v11 = vld [vmem:[%s24433_s10 + $0x4e8] sm:$0xff] }
 0xdc7   :  { %17786 = vmatprep.subr.bf16.mxu0 %v17785_v21  ;;  %v13492_v21 = vld [vmem:[%s24433_s10 + $0x4f8] sm:$0xff] }
 0xdc8   :  { %v17828_v34 = vpack.c.bf16 %v13492_v21, %v13490_v11  ;;  %v13529_v21 = vld [vmem:[%s24433_s10 + $0x600] sm:$0xff] }
 0xdca   :  { %17788 = vmatpush1.bf16.msra.mxu0 %v17787_v6  ;;  %v13496_v6 = vld [vmem:[%s24433_s10 + $0x508] sm:$0xff] }
 0xdcb   :  { %17790 = vmatprep.subr.bf16.mxu0 %v17789_v25  ;;  %v13498_v25 = vld [vmem:[%s24433_s10 + $0x518] sm:$0xff] }
 0xdcc   :  { %v17835_v18 = vpack.c.bf16 %v13498_v25, %v13496_v6 }
 0xdce   :  { %17792 = vmatpush1.bf16.msra.mxu0 %v17791_v51  ;;  %v13500_v51 = vld [vmem:[%s24433_s10 + $0x528] sm:$0xff] }
 0xdcf   :  { %17794 = vmatprep.subr.bf16.mxu0 %v17793_v19  ;;  %v13502_v19 = vld [vmem:[%s24433_s10 + $0x538] sm:$0xff] }
 0xdd0   :  { %v17839_v44 = vpack.c.bf16 %v13502_v19, %v13500_v51  ;;  %v13540_v51 = vld [vmem:[%s24433_s10 + $0x658] sm:$0xff] }
 0xdd2   :  { %17796 = vmatpush1.bf16.msra.mxu0 %v17795_v30  ;;  %v13501_v30 = vld [vmem:[%s24433_s10 + $0x530] sm:$0xff] }
 0xdd3   :  { %17801 = vmatprep.subr.bf16.mxu0 %v17800_v20  ;;  %v16383_v20 = vpop.f32.mrb[137].mxu1  ;;  %v17841_v17 = vpack.c.bf16 %v13501_v30, %v13499_v48  ;;  %v13539_v48 = vld [vmem:[%s24433_s10 + $0x650] sm:$0xff]  ;;  %v13542_v30 = vld [vmem:[%s24433_s10 + $0x668] sm:$0xff] }
 0xdd4   :  { %v23171_v6 = vpop.f32.mrb[138].mxu1 }
 0xdd5   :  { %8623 = vmatmul.mubr.f32.vlgmr.msra.gmra.mrb[242].mxu0 %v22678_v5  ;;  %v13476_v5 = vld [vmem:[%s24433_s10 + $0x478] sm:$0xff]  ;;  %v16390_v27 = vpop.f32.mrb[139].mxu1 }
 0xdd6   :  { %17803 = vmatpush1.bf16.msra.mxu0 %v17802_v50  ;;  %8803 = vmatprep.mubr.f32.mxu0 %v24451_v13  ;;  %v17812_v24 = vpack.c.bf16 %v13476_v5, %v13474_v40  ;;  %v13503_v50 = vld [vmem:[%s24433_s10 + $0x540] sm:$0xff]  ;;  %v13513_v5 = vld [vmem:[%s24433_s10 + $0x590] sm:$0xff] }
 0xdd7   :  { %17805 = vmatprep.subr.bf16.mxu0 %v17804_v62  ;;  %v13505_v62 = vld [vmem:[%s24433_s10 + $0x550] sm:$0xff]  ;;  %v13511_v40 = vld [vmem:[%s24433_s10 + $0x580] sm:$0xff] }
 0xdd8   :  { %v17845_v7 = vpack.c.bf16 %v13505_v62, %v13503_v50  ;;  %v17853_v46 = vpack.c.bf16 %v13513_v5, %v13511_v40  ;;  %v13548_v50 = vld [vmem:[%s24433_s10 + $0x698] sm:$0xff] }
 0xdd9   :  { %v13556_v40 = vld [vmem:[%s24433_s10 + $0x6d8] sm:$0xff] }
 0xdda   :  { %17807 = vmatpush1.bf16.msra.mxu0 %v17806_v16  ;;  %v13512_v16 = vld [vmem:[%s24433_s10 + $0x588] sm:$0xff] }
 0xddb   :  { %17809 = vmatprep.subr.bf16.mxu0 %v17808_v9  ;;  %v13514_v9 = vld [vmem:[%s24433_s10 + $0x598] sm:$0xff] }
 0xddc   :  { %v17851_v56 = vpack.c.bf16 %v13514_v9, %v13512_v16  ;;  %v13549_v9 = vld [vmem:[%s24433_s10 + $0x6a0] sm:$0xff] }
 0xdde   :  { %17811 = vmatpush1.bf16.msra.mxu0 %v17810_v52  ;;  %v13833_v52 = vld [vmem:[%s24432_s9 + $0x3c] sm:$0xf] }
 0xddf   :  { %17813 = vmatprep.subr.bf16.mxu0 %v17812_v24  ;;  %v13516_v24 = vld [vmem:[%s24433_s10 + $0x5a8] sm:$0xff]  ;;  %16431 = vmatmul.mubr.msk.f32.vlgmr.msra.gmra.mrb[150].mxu1 %vm7913_vm4, %v13833_v52 }
 0xde0   :  { %v17855_v1 = vpack.c.bf16 %v13518_v37, %v13516_v24  ;;  %v13553_v24 = vld [vmem:[%s24433_s10 + $0x6c0] sm:$0xff]  ;;  %v13555_v37 = vld [vmem:[%s24433_s10 + $0x6d0] sm:$0xff] }
 0xde2   :  { %17815 = vmatpush1.bf16.msra.mxu0 %v17814_v31  ;;  %v13517_v31 = vld [vmem:[%s24433_s10 + $0x5b0] sm:$0xff] }
 0xde3   :  { %17817 = vmatprep.subr.bf16.mxu0 %v17816_v28  ;;  %v13520_v28 = vld [vmem:[%s24433_s10 + $0x5c8] sm:$0xff]  ;;  %v17857_v8 = vpack.c.bf16 %v13517_v31, %v13515_v10  ;;  %v17896_v10 = vpack.c.bf16 %v13555_v37, %v13553_v24 }
 0xde4   :  { %v17859_v61 = vpack.c.bf16 %v13522_v41, %v13520_v28  ;;  %v13557_v28 = vld [vmem:[%s24433_s10 + $0x6e0] sm:$0xff]  ;;  %v13559_v41 = vld [vmem:[%s24433_s10 + $0x6f0] sm:$0xff] }
 0xde6   :  { %17819 = vmatpush1.bf16.msra.mxu0 %v17818_v43  ;;  %v13521_v43 = vld [vmem:[%s24433_s10 + $0x5d0] sm:$0xff] }
 0xde7   :  { %17821 = vmatprep.subr.bf16.mxu0 %v17820_v42  ;;  %v13524_v42 = vld [vmem:[%s24433_s10 + $0x5e8] sm:$0xff]  ;;  %v17861_v22 = vpack.c.bf16 %v13521_v43, %v13519_v32  ;;  %v17900_v32 = vpack.c.bf16 %v13559_v41, %v13557_v28 }
 0xde8   :  { %v17863_v33 = vpack.c.bf16 %v13526_v54, %v13524_v42  ;;  %v13563_v42 = vld [vmem:[%s24433_s10 + $0x700] sm:$0xff]  ;;  %v13565_v54 = vld [vmem:[%s24433_s10 + $0x710] sm:$0xff] }
 0xdea   :  { %17823 = vmatpush1.bf16.msra.mxu0 %v17822_v38  ;;  %v13525_v38 = vld [vmem:[%s24433_s10 + $0x5f0] sm:$0xff] }
 0xdeb   :  { %17825 = vmatprep.subr.bf16.mxu0 %v17824_v26  ;;  %v13530_v26 = vld [vmem:[%s24433_s10 + $0x608] sm:$0xff]  ;;  %v17865_v57 = vpack.c.bf16 %v13525_v38, %v13523_v59  ;;  %v17907_v59 = vpack.c.bf16 %v13565_v54, %v13563_v42  ;;  %v23271_v38 = vpop.f32.mrb[140].mxu1  ;;  %v13608_v54 = vld [vmem:[%s24433_s10 + $0x858] sm:$0xff] }
 0xdec   :  { %v17870_v11 = vpack.c.bf16 %v13532_v60, %v13530_v26  ;;  %v13567_v60 = vld [vmem:[%s24433_s10 + $0x720] sm:$0xff]  ;;  %v13606_v42 = vld [vmem:[%s24433_s10 + $0x848] sm:$0xff] }
 0xdee   :  { %17827 = vmatpush1.bf16.msra.mxu0 %v17826_v45  ;;  %v13531_v45 = vld [vmem:[%s24433_s10 + $0x610] sm:$0xff] }
 0xdef   :  { %17829 = vmatprep.subr.bf16.mxu0 %v17828_v34  ;;  %v13534_v34 = vld [vmem:[%s24433_s10 + $0x628] sm:$0xff]  ;;  %v17872_v29 = vpack.c.bf16 %v13531_v45, %v13529_v21  ;;  %v13574_v45 = vld [vmem:[%s24433_s10 + $0x758] sm:$0xff] }
 0xdf0   :  { %v17874_v25 = vpack.c.bf16 %v13536_v15, %v13534_v34  ;;  %v13572_v21 = vld [vmem:[%s24433_s10 + $0x748] sm:$0xff] }
 0xdf1   :  { %v17913_v15 = vpack.c.bf16 %v13574_v45, %v13572_v21  ;;  %v13609_v21 = vld [vmem:[%s24433_s10 + $0x860] sm:$0xff]  ;;  %v13611_v45 = vld [vmem:[%s24433_s10 + $0x870] sm:$0xff] }
 0xdf2   :  { %17831 = vmatpush1.bf16.msra.mxu0 %v17830_v35  ;;  %v13533_v35 = vld [vmem:[%s24433_s10 + $0x620] sm:$0xff] }
 0xdf3   :  { %17836 = vmatprep.subr.bf16.mxu0 %v17835_v18  ;;  %v13535_v18 = vld [vmem:[%s24433_s10 + $0x630] sm:$0xff] }
 0xdf4   :  { %v17876_v19 = vpack.c.bf16 %v13535_v18, %v13533_v35  ;;  %v13576_v35 = vld [vmem:[%s24433_s10 + $0x768] sm:$0xff] }
 0xdf5   :  { %8804 = vmatmul.mubr.f32.vlgmr.msra.gmra.mrb[242].mxu0 %v22693_v58  ;;  %v13510_v58 = vld [vmem:[%s24433_s10 + $0x578] sm:$0xff] }
 0xdf6   :  { %17838 = vmatpush1.bf16.msra.mxu0 %v17837_v53  ;;  %8984 = vmatprep.mubr.f32.mxu0 %v24451_v13  ;;  %v17847_v12 = vpack.c.bf16 %v13510_v58, %v13508_v3  ;;  %v17878_v53 = vpack.c.bf16 %v13540_v51, %v13538_v55  ;;  %v13545_v58 = vld [vmem:[%s24433_s10 + $0x680] sm:$0xff]  ;;  %v13577_v51 = vld [vmem:[%s24433_s10 + $0x770] sm:$0xff] }
 0xdf7   :  { %17840 = vmatprep.subr.bf16.mxu0 %v17839_v44  ;;  %v13537_v44 = vld [vmem:[%s24433_s10 + $0x640] sm:$0xff] }
 0xdf8   :  { %v17880_v20 = vpack.c.bf16 %v13539_v48, %v13537_v44  ;;  %v13575_v55 = vld [vmem:[%s24433_s10 + $0x760] sm:$0xff] }
 0xdf9   :  { %v17919_v44 = vpack.c.bf16 %v13577_v51, %v13575_v55 }
 0xdfa   :  { %17842 = vmatpush1.bf16.msra.mxu0 %v17841_v17  ;;  %v13543_v17 = vld [vmem:[%s24433_s10 + $0x670] sm:$0xff] }
 0xdfb   :  { %17844 = vmatprep.subr.bf16.mxu0 %v17843_v36  ;;  %v13546_v36 = vld [vmem:[%s24433_s10 + $0x688] sm:$0xff]  ;;  %v17884_v62 = vpack.c.bf16 %v13543_v17, %v13541_v47 }
 0xdfc   :  { %v17886_v3 = vpack.c.bf16 %v13548_v50, %v13546_v36  ;;  %v13583_v36 = vld [vmem:[%s24433_s10 + $0x7a0] sm:$0xff]  ;;  %v13585_v50 = vld [vmem:[%s24433_s10 + $0x7b0] sm:$0xff] }
 0xdfe   :  { %17846 = vmatpush1.bf16.msra.mxu0 %v17845_v7  ;;  %v13547_v7 = vld [vmem:[%s24433_s10 + $0x690] sm:$0xff] }
 0xdff   :  { %17848 = vmatprep.subr.bf16.mxu0 %v17847_v12  ;;  %v13550_v12 = vld [vmem:[%s24433_s10 + $0x6a8] sm:$0xff]  ;;  %v17888_v2 = vpack.c.bf16 %v13547_v7, %v13545_v58  ;;  %v17927_v58 = vpack.c.bf16 %v13585_v50, %v13583_v36 }
 0xe00   :  { %v17890_v16 = vpack.c.bf16 %v13552_v23, %v13550_v12  ;;  %v13587_v12 = vld [vmem:[%s24433_s10 + $0x7c0] sm:$0xff]  ;;  %v13589_v23 = vld [vmem:[%s24433_s10 + $0x7d0] sm:$0xff] }
 0xe02   :  { %17850 = vmatpush1.bf16.msra.mxu0 %v17849_v39  ;;  %v13551_v39 = vld [vmem:[%s24433_s10 + $0x6b0] sm:$0xff] }
 0xe03   :  { %17852 = vmatprep.subr.bf16.mxu0 %v17851_v56  ;;  %v13554_v56 = vld [vmem:[%s24433_s10 + $0x6c8] sm:$0xff]  ;;  %v17892_v5 = vpack.c.bf16 %v13551_v39, %v13549_v9  ;;  %v17931_v9 = vpack.c.bf16 %v13589_v23, %v13587_v12 }
 0xe04   :  { %v17894_v52 = vpack.c.bf16 %v13556_v40, %v13554_v56  ;;  %v13591_v56 = vld [vmem:[%s24433_s10 + $0x7e0] sm:$0xff]  ;;  %v13593_v40 = vld [vmem:[%s24433_s10 + $0x7f0] sm:$0xff] }
 0xe05   :  { %v17935_v24 = vpack.c.bf16 %v13593_v40, %v13591_v56 }
 0xe06   :  { %17854 = vmatpush1.bf16.msra.mxu0 %v17853_v46  ;;  %v13558_v46 = vld [vmem:[%s24433_s10 + $0x6e8] sm:$0xff] }
 0xe07   :  { %17856 = vmatprep.subr.bf16.mxu0 %v17855_v1  ;;  %v13560_v1 = vld [vmem:[%s24433_s10 + $0x6f8] sm:$0xff] }
 0xe08   :  { %v17898_v31 = vpack.c.bf16 %v13560_v1, %v13558_v46  ;;  %v13597_v46 = vld [vmem:[%s24433_s10 + $0x800] sm:$0xff]  ;;  %v13599_v1 = vld [vmem:[%s24433_s10 + $0x810] sm:$0xff] }
 0xe09   :  { %v17942_v28 = vpack.c.bf16 %v13599_v1, %v13597_v46  ;;  %v13640_v46 = vld [vmem:[%s24433_s10 + $0x948] sm:$0xff]  ;;  %v13642_v1 = vld [vmem:[%s24433_s10 + $0x958] sm:$0xff] }
 0xe0a   :  { %17858 = vmatpush1.bf16.msra.mxu0 %v17857_v8  ;;  %v13564_v8 = vld [vmem:[%s24433_s10 + $0x708] sm:$0xff] }
 0xe0b   :  { %17860 = vmatprep.subr.bf16.mxu0 %v17859_v61  ;;  %v13566_v61 = vld [vmem:[%s24433_s10 + $0x718] sm:$0xff] }
 0xe0c   :  { %v17905_v43 = vpack.c.bf16 %v13566_v61, %v13564_v8  ;;  %v13601_v61 = vld [vmem:[%s24433_s10 + $0x820] sm:$0xff] }
 0xe0e   :  { %17862 = vmatpush1.bf16.msra.mxu0 %v17861_v22  ;;  %v13568_v22 = vld [vmem:[%s24433_s10 + $0x728] sm:$0xff] }
 0xe0f   :  { %17864 = vmatprep.subr.bf16.mxu0 %v17863_v33  ;;  %v13570_v33 = vld [vmem:[%s24433_s10 + $0x738] sm:$0xff] }
 0xe10   :  { %v17909_v26 = vpack.c.bf16 %v13570_v33, %v13568_v22  ;;  %v17948_v33 = vpack.c.bf16 %v13608_v54, %v13606_v42  ;;  %v13643_v42 = vld [vmem:[%s24433_s10 + $0x960] sm:$0xff]  ;;  %v13645_v54 = vld [vmem:[%s24433_s10 + $0x970] sm:$0xff] }
 0xe12   :  { %17866 = vmatpush1.bf16.msra.mxu0 %v17865_v57  ;;  %v13569_v57 = vld [vmem:[%s24433_s10 + $0x730] sm:$0xff] }
 0xe13   :  { %17871 = vmatprep.subr.bf16.mxu0 %v17870_v11  ;;  %v16397_v11 = vpop.f32.mrb[141].mxu1  ;;  %v17911_v34 = vpack.c.bf16 %v13569_v57, %v13567_v60  ;;  %v13610_v60 = vld [vmem:[%s24433_s10 + $0x868] sm:$0xff] }
 0xe14   :  { %v23371_v41 = vpop.f32.mrb[142].mxu1 }
 0xe15   :  { %8985 = vmatmul.mubr.f32.vlgmr.msra.gmra.mrb[242].mxu0 %v22767_v0  ;;  %v13544_v0 = vld [vmem:[%s24433_s10 + $0x678] sm:$0xff] }
 0xe16   :  { %17873 = vmatpush1.bf16.msra.mxu0 %v17872_v29  ;;  %9165 = vmatprep.mubr.f32.mxu0 %v24451_v13  ;;  %v17882_v14 = vpack.c.bf16 %v13544_v0, %v13542_v30  ;;  %v13571_v29 = vld [vmem:[%s24433_s10 + $0x740] sm:$0xff]  ;;  %v13581_v0 = vld [vmem:[%s24433_s10 + $0x790] sm:$0xff] }
 0xe17   :  { %17875 = vmatprep.subr.bf16.mxu0 %v17874_v25  ;;  %v13573_v25 = vld [vmem:[%s24433_s10 + $0x750] sm:$0xff]  ;;  %v13579_v30 = vld [vmem:[%s24433_s10 + $0x780] sm:$0xff] }
 0xe18   :  { %v17915_v18 = vpack.c.bf16 %v13573_v25, %v13571_v29  ;;  %v17923_v47 = vpack.c.bf16 %v13581_v0, %v13579_v30  ;;  %v17954_v29 = vpack.c.bf16 %v13611_v45, %v13609_v21 }
 0xe1a   :  { %17877 = vmatpush1.bf16.msra.mxu0 %v17876_v19  ;;  %v13580_v19 = vld [vmem:[%s24433_s10 + $0x788] sm:$0xff] }
 0xe1b   :  { %17879 = vmatprep.subr.bf16.mxu0 %v17878_v53  ;;  %v13582_v53 = vld [vmem:[%s24433_s10 + $0x798] sm:$0xff] }
 0xe1c   :  { %v17921_v48 = vpack.c.bf16 %v13582_v53, %v13580_v19  ;;  %v13617_v19 = vld [vmem:[%s24433_s10 + $0x8a0] sm:$0xff]  ;;  %v13619_v53 = vld [vmem:[%s24433_s10 + $0x8b0] sm:$0xff] }
 0xe1d   :  { %v17962_v30 = vpack.c.bf16 %v13619_v53, %v13617_v19 }
 0xe1e   :  { %17881 = vmatpush1.bf16.msra.mxu0 %v17880_v20  ;;  %v13584_v20 = vld [vmem:[%s24433_s10 + $0x7a8] sm:$0xff] }
 0xe1f   :  { %17883 = vmatprep.subr.bf16.mxu0 %v17882_v14  ;;  %v13586_v14 = vld [vmem:[%s24433_s10 + $0x7b8] sm:$0xff] }
 0xe20   :  { %v17925_v17 = vpack.c.bf16 %v13586_v14, %v13584_v20  ;;  %v13621_v20 = vld [vmem:[%s24433_s10 + $0x8c0] sm:$0xff]  ;;  %v13623_v14 = vld [vmem:[%s24433_s10 + $0x8d0] sm:$0xff] }
 0xe21   :  { %v17966_v36 = vpack.c.bf16 %v13623_v14, %v13621_v20 }
 0xe22   :  { %17885 = vmatpush1.bf16.msra.mxu0 %v17884_v62  ;;  %v13588_v62 = vld [vmem:[%s24433_s10 + $0x7c8] sm:$0xff] }
 0xe23   :  { %17887 = vmatprep.subr.bf16.mxu0 %v17886_v3  ;;  %v13590_v3 = vld [vmem:[%s24433_s10 + $0x7d8] sm:$0xff] }
 0xe24   :  { %v17929_v7 = vpack.c.bf16 %v13590_v3, %v13588_v62  ;;  %v13625_v62 = vld [vmem:[%s24433_s10 + $0x8e0] sm:$0xff]  ;;  %v13627_v3 = vld [vmem:[%s24433_s10 + $0x8f0] sm:$0xff] }
 0xe25   :  { %v17970_v12 = vpack.c.bf16 %v13627_v3, %v13625_v62 }
 0xe26   :  { %17889 = vmatpush1.bf16.msra.mxu0 %v17888_v2  ;;  %v13592_v2 = vld [vmem:[%s24433_s10 + $0x7e8] sm:$0xff] }
 0xe27   :  { %17891 = vmatprep.subr.bf16.mxu0 %v17890_v16  ;;  %v13594_v16 = vld [vmem:[%s24433_s10 + $0x7f8] sm:$0xff] }
 0xe28   :  { %v17933_v39 = vpack.c.bf16 %v13594_v16, %v13592_v2  ;;  %v13631_v2 = vld [vmem:[%s24433_s10 + $0x900] sm:$0xff]  ;;  %v13633_v16 = vld [vmem:[%s24433_s10 + $0x910] sm:$0xff] }
 0xe29   :  { %v17977_v56 = vpack.c.bf16 %v13633_v16, %v13631_v2  ;;  %v13674_v2 = vld [vmem:[%s24433_s10 + $0xa48] sm:$0xff]  ;;  %v13676_v16 = vld [vmem:[%s24433_s10 + $0xa58] sm:$0xff] }
 0xe2a   :  { %17893 = vmatpush1.bf16.msra.mxu0 %v17892_v5  ;;  %v13598_v5 = vld [vmem:[%s24433_s10 + $0x808] sm:$0xff] }
 0xe2b   :  { %17895 = vmatprep.subr.bf16.mxu0 %v17894_v52  ;;  %v13600_v52 = vld [vmem:[%s24433_s10 + $0x818] sm:$0xff] }
 0xe2c   :  { %v17940_v37 = vpack.c.bf16 %v13600_v52, %v13598_v5  ;;  %v13635_v52 = vld [vmem:[%s24433_s10 + $0x920] sm:$0xff] }
 0xe2e   :  { %17897 = vmatpush1.bf16.msra.mxu0 %v17896_v10  ;;  %v13602_v10 = vld [vmem:[%s24433_s10 + $0x828] sm:$0xff] }
 0xe2f   :  { %17899 = vmatprep.subr.bf16.mxu0 %v17898_v31  ;;  %v13604_v31 = vld [vmem:[%s24433_s10 + $0x838] sm:$0xff] }
 0xe30   :  { %v17944_v8 = vpack.c.bf16 %v13604_v31, %v13602_v10  ;;  %v17983_v31 = vpack.c.bf16 %v13642_v1, %v13640_v46  ;;  %v13677_v46 = vld [vmem:[%s24433_s10 + $0xa60] sm:$0xff]  ;;  %v13679_v1 = vld [vmem:[%s24433_s10 + $0xa70] sm:$0xff] }
 0xe32   :  { %17901 = vmatpush1.bf16.msra.mxu0 %v17900_v32  ;;  %v13603_v32 = vld [vmem:[%s24433_s10 + $0x830] sm:$0xff] }
 0xe33   :  { %17906 = vmatprep.subr.bf16.mxu0 %v17905_v43  ;;  %v16404_v43 = vpop.f32.mrb[143].mxu1  ;;  %v17946_v22 = vpack.c.bf16 %v13603_v32, %v13601_v61  ;;  %v13644_v61 = vld [vmem:[%s24433_s10 + $0x968] sm:$0xff] }
 0xe34   :  { %v23471_v40 = vpop.f32.mrb[144].mxu1 }
 0xe35   :  { %9166 = vmatmul.mubr.f32.vlgmr.msra.gmra.mrb[242].mxu0 %v22867_v4  ;;  %v13578_v4 = vld [vmem:[%s24433_s10 + $0x778] sm:$0xff] }
 0xe36   :  { %17908 = vmatpush1.bf16.msra.mxu0 %v17907_v59  ;;  %9346 = vmatprep.mubr.f32.mxu0 %v24451_v13  ;;  %v17917_v27 = vpack.c.bf16 %v13578_v4, %v13576_v35  ;;  %v13605_v59 = vld [vmem:[%s24433_s10 + $0x840] sm:$0xff]  ;;  %v13615_v4 = vld [vmem:[%s24433_s10 + $0x890] sm:$0xff] }
 0xe37   :  { %17910 = vmatprep.subr.bf16.mxu0 %v17909_v26  ;;  %v13607_v26 = vld [vmem:[%s24433_s10 + $0x850] sm:$0xff]  ;;  %v13613_v35 = vld [vmem:[%s24433_s10 + $0x880] sm:$0xff] }
 0xe38   :  { %v17950_v57 = vpack.c.bf16 %v13607_v26, %v13605_v59  ;;  %v17958_v55 = vpack.c.bf16 %v13615_v4, %v13613_v35  ;;  %v17989_v59 = vpack.c.bf16 %v13645_v54, %v13643_v42 }
 0xe3a   :  { %17912 = vmatpush1.bf16.msra.mxu0 %v17911_v34  ;;  %v13614_v34 = vld [vmem:[%s24433_s10 + $0x888] sm:$0xff] }
 0xe3b   :  { %17914 = vmatprep.subr.bf16.mxu0 %v17913_v15  ;;  %v13616_v15 = vld [vmem:[%s24433_s10 + $0x898] sm:$0xff] }
 0xe3c   :  { %v17956_v25 = vpack.c.bf16 %v13616_v15, %v13614_v34  ;;  %v13651_v34 = vld [vmem:[%s24433_s10 + $0x9a0] sm:$0xff]  ;;  %v13653_v15 = vld [vmem:[%s24433_s10 + $0x9b0] sm:$0xff] }
 0xe3d   :  { %v17997_v35 = vpack.c.bf16 %v13653_v15, %v13651_v34 }
 0xe3e   :  { %17916 = vmatpush1.bf16.msra.mxu0 %v17915_v18  ;;  %v13618_v18 = vld [vmem:[%s24433_s10 + $0x8a8] sm:$0xff] }
 0xe3f   :  { %17918 = vmatprep.subr.bf16.mxu0 %v17917_v27  ;;  %v13620_v27 = vld [vmem:[%s24433_s10 + $0x8b8] sm:$0xff] }
 0xe40   :  { %v17960_v51 = vpack.c.bf16 %v13620_v27, %v13618_v18  ;;  %v13655_v18 = vld [vmem:[%s24433_s10 + $0x9c0] sm:$0xff]  ;;  %v13657_v27 = vld [vmem:[%s24433_s10 + $0x9d0] sm:$0xff] }
 0xe41   :  { %v18001_v19 = vpack.c.bf16 %v13657_v27, %v13655_v18 }
 0xe42   :  { %17920 = vmatpush1.bf16.msra.mxu0 %v17919_v44  ;;  %v13622_v44 = vld [vmem:[%s24433_s10 + $0x8c8] sm:$0xff] }
 0xe43   :  { %17922 = vmatprep.subr.bf16.mxu0 %v17921_v48  ;;  %v13624_v48 = vld [vmem:[%s24433_s10 + $0x8d8] sm:$0xff] }
 0xe44   :  { %v17964_v0 = vpack.c.bf16 %v13624_v48, %v13622_v44  ;;  %v13659_v44 = vld [vmem:[%s24433_s10 + $0x9e0] sm:$0xff]  ;;  %v13661_v48 = vld [vmem:[%s24433_s10 + $0x9f0] sm:$0xff] }
 0xe45   :  { %v18005_v20 = vpack.c.bf16 %v13661_v48, %v13659_v44 }
 0xe46   :  { %17924 = vmatpush1.bf16.msra.mxu0 %v17923_v47  ;;  %v13626_v47 = vld [vmem:[%s24433_s10 + $0x8e8] sm:$0xff] }
 0xe47   :  { %17926 = vmatprep.subr.bf16.mxu0 %v17925_v17  ;;  %v13628_v17 = vld [vmem:[%s24433_s10 + $0x8f8] sm:$0xff] }
 0xe48   :  { %v17968_v50 = vpack.c.bf16 %v13628_v17, %v13626_v47  ;;  %v13665_v47 = vld [vmem:[%s24433_s10 + $0xa00] sm:$0xff]  ;;  %v13667_v17 = vld [vmem:[%s24433_s10 + $0xa10] sm:$0xff] }
 0xe49   :  { %v18012_v62 = vpack.c.bf16 %v13667_v17, %v13665_v47  ;;  %v13708_v47 = vld [vmem:[%s24433_s10 + $0xb48] sm:$0xff]  ;;  %v13710_v17 = vld [vmem:[%s24433_s10 + $0xb58] sm:$0xff] }
 0xe4a   :  { %17928 = vmatpush1.bf16.msra.mxu0 %v17927_v58  ;;  %v13632_v58 = vld [vmem:[%s24433_s10 + $0x908] sm:$0xff] }
 0xe4b   :  { %17930 = vmatprep.subr.bf16.mxu0 %v17929_v7  ;;  %v13634_v7 = vld [vmem:[%s24433_s10 + $0x918] sm:$0xff] }
 0xe4c   :  { %v17975_v23 = vpack.c.bf16 %v13634_v7, %v13632_v58  ;;  %v13669_v7 = vld [vmem:[%s24433_s10 + $0xa20] sm:$0xff] }
 0xe4e   :  { %17932 = vmatpush1.bf16.msra.mxu0 %v17931_v9  ;;  %v13636_v9 = vld [vmem:[%s24433_s10 + $0x928] sm:$0xff] }
 0xe4f   :  { %17934 = vmatprep.subr.bf16.mxu0 %v17933_v39  ;;  %v13638_v39 = vld [vmem:[%s24433_s10 + $0x938] sm:$0xff] }
 0xe50   :  { %v17979_v5 = vpack.c.bf16 %v13638_v39, %v13636_v9  ;;  %v18018_v39 = vpack.c.bf16 %v13676_v16, %v13674_v2  ;;  %v13711_v2 = vld [vmem:[%s24433_s10 + $0xb60] sm:$0xff]  ;;  %v13713_v16 = vld [vmem:[%s24433_s10 + $0xb70] sm:$0xff] }
 0xe52   :  { %17936 = vmatpush1.bf16.msra.mxu0 %v17935_v24  ;;  %v13637_v24 = vld [vmem:[%s24433_s10 + $0x930] sm:$0xff] }
 0xe53   :  { %17941 = vmatprep.subr.bf16.mxu0 %v17940_v37  ;;  %v16411_v37 = vpop.f32.mrb[145].mxu1  ;;  %v17981_v10 = vpack.c.bf16 %v13637_v24, %v13635_v52  ;;  %v13678_v52 = vld [vmem:[%s24433_s10 + $0xa68] sm:$0xff] }
 0xe54   :  { %v23571_v3 = vpop.f32.mrb[146].mxu1 }
 0xe55   :  { %9347 = vmatmul.mubr.f32.vlgmr.msra.gmra.mrb[242].mxu0 %v22967_v49  ;;  %v13612_v49 = vld [vmem:[%s24433_s10 + $0x878] sm:$0xff] }
 0xe56   :  { %17943 = vmatpush1.bf16.msra.mxu0 %v17942_v28  ;;  %9527 = vmatprep.mubr.f32.mxu0 %v24451_v13  ;;  %v17952_v11 = vpack.c.bf16 %v13612_v49, %v13610_v60  ;;  %v13639_v28 = vld [vmem:[%s24433_s10 + $0x940] sm:$0xff]  ;;  %v13649_v49 = vld [vmem:[%s24433_s10 + $0x990] sm:$0xff] }
 0xe57   :  { %17945 = vmatprep.subr.bf16.mxu0 %v17944_v8  ;;  %v13641_v8 = vld [vmem:[%s24433_s10 + $0x950] sm:$0xff]  ;;  %v13647_v60 = vld [vmem:[%s24433_s10 + $0x980] sm:$0xff] }
 0xe58   :  { %v17985_v32 = vpack.c.bf16 %v13641_v8, %v13639_v28  ;;  %v17993_v21 = vpack.c.bf16 %v13649_v49, %v13647_v60  ;;  %v18024_v28 = vpack.c.bf16 %v13679_v1, %v13677_v46 }
 0xe5a   :  { %17947 = vmatpush1.bf16.msra.mxu0 %v17946_v22  ;;  %v13648_v22 = vld [vmem:[%s24433_s10 + $0x988] sm:$0xff] }
 0xe5b   :  { %17949 = vmatprep.subr.bf16.mxu0 %v17948_v33  ;;  %v13650_v33 = vld [vmem:[%s24433_s10 + $0x998] sm:$0xff] }
 0xe5c   :  { %v17991_v26 = vpack.c.bf16 %v13650_v33, %v13648_v22  ;;  %v13685_v22 = vld [vmem:[%s24433_s10 + $0xaa0] sm:$0xff]  ;;  %v13687_v33 = vld [vmem:[%s24433_s10 + $0xab0] sm:$0xff] }
 0xe5d   :  { %v18032_v60 = vpack.c.bf16 %v13687_v33, %v13685_v22 }
 0xe5e   :  { %17951 = vmatpush1.bf16.msra.mxu0 %v17950_v57  ;;  %v13652_v57 = vld [vmem:[%s24433_s10 + $0x9a8] sm:$0xff] }
 0xe5f   :  { %17953 = vmatprep.subr.bf16.mxu0 %v17952_v11  ;;  %v13654_v11 = vld [vmem:[%s24433_s10 + $0x9b8] sm:$0xff] }
 0xe60   :  { %v17995_v45 = vpack.c.bf16 %v13654_v11, %v13652_v57  ;;  %v13689_v57 = vld [vmem:[%s24433_s10 + $0xac0] sm:$0xff]  ;;  %v13691_v11 = vld [vmem:[%s24433_s10 + $0xad0] sm:$0xff] }
 0xe61   :  { %v18036_v34 = vpack.c.bf16 %v13691_v11, %v13689_v57 }
 0xe62   :  { %17955 = vmatpush1.bf16.msra.mxu0 %v17954_v29  ;;  %v13656_v29 = vld [vmem:[%s24433_s10 + $0x9c8] sm:$0xff] }
 0xe63   :  { %17957 = vmatprep.subr.bf16.mxu0 %v17956_v25  ;;  %v13658_v25 = vld [vmem:[%s24433_s10 + $0x9d8] sm:$0xff] }
 0xe64   :  { %v17999_v4 = vpack.c.bf16 %v13658_v25, %v13656_v29  ;;  %v13693_v29 = vld [vmem:[%s24433_s10 + $0xae0] sm:$0xff]  ;;  %v13695_v25 = vld [vmem:[%s24433_s10 + $0xaf0] sm:$0xff] }
 0xe65   :  { %v18040_v18 = vpack.c.bf16 %v13695_v25, %v13693_v29 }
 0xe66   :  { %17959 = vmatpush1.bf16.msra.mxu0 %v17958_v55  ;;  %v13660_v55 = vld [vmem:[%s24433_s10 + $0x9e8] sm:$0xff] }
 0xe67   :  { %17961 = vmatprep.subr.bf16.mxu0 %v17960_v51  ;;  %v13662_v51 = vld [vmem:[%s24433_s10 + $0x9f8] sm:$0xff] }
 0xe68   :  { %v18003_v53 = vpack.c.bf16 %v13662_v51, %v13660_v55  ;;  %v13699_v55 = vld [vmem:[%s24433_s10 + $0xb00] sm:$0xff]  ;;  %v13701_v51 = vld [vmem:[%s24433_s10 + $0xb10] sm:$0xff] }
 0xe69   :  { %v18047_v44 = vpack.c.bf16 %v13701_v51, %v13699_v55  ;;  %v13744_v55 = vld [vmem:[%s24433_s10 + $0xc58] sm:$0xff] }
 0xe6a   :  { %17963 = vmatpush1.bf16.msra.mxu0 %v17962_v30  ;;  %v13666_v30 = vld [vmem:[%s24433_s10 + $0xa08] sm:$0xff] }
 0xe6b   :  { %17965 = vmatprep.subr.bf16.mxu0 %v17964_v0  ;;  %v13668_v0 = vld [vmem:[%s24433_s10 + $0xa18] sm:$0xff] }
 0xe6c   :  { %v18010_v14 = vpack.c.bf16 %v13668_v0, %v13666_v30  ;;  %v13703_v0 = vld [vmem:[%s24433_s10 + $0xb20] sm:$0xff] }
 0xe6e   :  { %17967 = vmatpush1.bf16.msra.mxu0 %v17966_v36  ;;  %v13670_v36 = vld [vmem:[%s24433_s10 + $0xa28] sm:$0xff] }
 0xe6f   :  { %17969 = vmatprep.subr.bf16.mxu0 %v17968_v50  ;;  %v13672_v50 = vld [vmem:[%s24433_s10 + $0xa38] sm:$0xff] }
 0xe70   :  { %v18014_v58 = vpack.c.bf16 %v13672_v50, %v13670_v36  ;;  %v18053_v50 = vpack.c.bf16 %v13710_v17, %v13708_v47  ;;  %v10936_v47 = vld [vmem:[#allocation4 + $0x420] sm:$0xff]  ;;  %v10941_v17 = vld [vmem:[#allocation4 + $0x448] sm:$0xff] }
 0xe72   :  { %17971 = vmatpush1.bf16.msra.mxu0 %v17970_v12  ;;  %v13671_v12 = vld [vmem:[%s24433_s10 + $0xa30] sm:$0xff] }
 0xe73   :  { %17976 = vmatprep.subr.bf16.mxu0 %v17975_v23  ;;  %v16418_v23 = vpop.f32.mrb[147].mxu1  ;;  %v18016_v9 = vpack.c.bf16 %v13671_v12, %v13669_v7  ;;  %v13712_v7 = vld [vmem:[%s24433_s10 + $0xb68] sm:$0xff] }
 0xe74   :  { %v23671_v48 = vpop.f32.mrb[148].mxu1 }
 0xe75   :  { %9528 = vmatmul.mubr.f32.vlgmr.msra.gmra.mrb[242].mxu0 %v23067_v63  ;;  %v13646_v63 = vld [vmem:[%s24433_s10 + $0x978] sm:$0xff] }
 0xe76   :  { %17978 = vmatpush1.bf16.msra.mxu0 %v17977_v56  ;;  %9708 = vmatprep.mubr.f32.mxu0 %v24451_v13  ;;  %v17987_v43 = vpack.c.bf16 %v13646_v63, %v13644_v61  ;;  %v13673_v56 = vld [vmem:[%s24433_s10 + $0xa40] sm:$0xff]  ;;  %v13683_v63 = vld [vmem:[%s24433_s10 + $0xa90] sm:$0xff] }
 0xe77   :  { %17980 = vmatprep.subr.bf16.mxu0 %v17979_v5  ;;  %v13675_v5 = vld [vmem:[%s24433_s10 + $0xa50] sm:$0xff]  ;;  %v13681_v61 = vld [vmem:[%s24433_s10 + $0xa80] sm:$0xff] }
 0xe78   :  { %v18020_v24 = vpack.c.bf16 %v13675_v5, %v13673_v56  ;;  %v18028_v42 = vpack.c.bf16 %v13683_v63, %v13681_v61  ;;  %v18059_v56 = vpack.c.bf16 %v13713_v16, %v13711_v2  ;;  %v10953_v2 = vld [vmem:[#allocation4 + $0x4a8] sm:$0xff] }
 0xe7a   :  { %17982 = vmatpush1.bf16.msra.mxu0 %v17981_v10  ;;  %v13682_v10 = vld [vmem:[%s24433_s10 + $0xa88] sm:$0xff] }
 0xe7b   :  { %17984 = vmatprep.subr.bf16.mxu0 %v17983_v31  ;;  %v13684_v31 = vld [vmem:[%s24433_s10 + $0xa98] sm:$0xff] }
 0xe7c   :  { %v18026_v8 = vpack.c.bf16 %v13684_v31, %v13682_v10  ;;  %v13719_v10 = vld [vmem:[%s24433_s10 + $0xba0] sm:$0xff]  ;;  %v13721_v31 = vld [vmem:[%s24433_s10 + $0xbb0] sm:$0xff] }
 0xe7d   :  { %v18067_v61 = vpack.c.bf16 %v13721_v31, %v13719_v10  ;;  %v13752_v10 = vld [vmem:[%s24433_s10 + $0xc98] sm:$0xff] }
 0xe7e   :  { %17986 = vmatpush1.bf16.msra.mxu0 %v17985_v32  ;;  %v13686_v32 = vld [vmem:[%s24433_s10 + $0xaa8] sm:$0xff] }
 0xe7f   :  { %17988 = vmatprep.subr.bf16.mxu0 %v17987_v43  ;;  %v13688_v43 = vld [vmem:[%s24433_s10 + $0xab8] sm:$0xff] }
 0xe80   :  { %v18030_v54 = vpack.c.bf16 %v13688_v43, %v13686_v32  ;;  %v13723_v32 = vld [vmem:[%s24433_s10 + $0xbc0] sm:$0xff]  ;;  %v13725_v43 = vld [vmem:[%s24433_s10 + $0xbd0] sm:$0xff] }
 0xe81   :  { %v18071_v22 = vpack.c.bf16 %v13725_v43, %v13723_v32  ;;  %v10960_v32 = vld [vmem:[#allocation4 + $0x4e0] sm:$0xff] }
 0xe82   :  { %17990 = vmatpush1.bf16.msra.mxu0 %v17989_v59  ;;  %v13690_v59 = vld [vmem:[%s24433_s10 + $0xac8] sm:$0xff] }
 0xe83   :  { %17992 = vmatprep.subr.bf16.mxu0 %v17991_v26  ;;  %v13692_v26 = vld [vmem:[%s24433_s10 + $0xad8] sm:$0xff] }
 0xe84   :  { %v18034_v49 = vpack.c.bf16 %v13692_v26, %v13690_v59  ;;  %v13727_v59 = vld [vmem:[%s24433_s10 + $0xbe0] sm:$0xff]  ;;  %v13729_v26 = vld [vmem:[%s24433_s10 + $0xbf0] sm:$0xff] }
 0xe85   :  { %v18075_v57 = vpack.c.bf16 %v13729_v26, %v13727_v59  ;;  %v13756_v59 = vld [vmem:[%s24433_s10 + $0xcb8] sm:$0xff] }
 0xe86   :  { %17994 = vmatpush1.bf16.msra.mxu0 %v17993_v21  ;;  %v13694_v21 = vld [vmem:[%s24433_s10 + $0xae8] sm:$0xff] }
 0xe87   :  { %17996 = vmatprep.subr.bf16.mxu0 %v17995_v45  ;;  %v13696_v45 = vld [vmem:[%s24433_s10 + $0xaf8] sm:$0xff] }
 0xe88   :  { %v18038_v15 = vpack.c.bf16 %v13696_v45, %v13694_v21  ;;  %v13733_v21 = vld [vmem:[%s24433_s10 + $0xc00] sm:$0xff]  ;;  %v13735_v45 = vld [vmem:[%s24433_s10 + $0xc10] sm:$0xff] }
 0xe89   :  { %v18082_v29 = vpack.c.bf16 %v13735_v45, %v13733_v21  ;;  %v10968_v21 = vld [vmem:[#allocation4 + $0x520] sm:$0xff] }
 0xe8a   :  { %17998 = vmatpush1.bf16.msra.mxu0 %v17997_v35  ;;  %v13700_v35 = vld [vmem:[%s24433_s10 + $0xb08] sm:$0xff] }
 0xe8b   :  { %18000 = vmatprep.subr.bf16.mxu0 %v17999_v4  ;;  %v13702_v4 = vld [vmem:[%s24433_s10 + $0xb18] sm:$0xff] }
 0xe8c   :  { %v18045_v27 = vpack.c.bf16 %v13702_v4, %v13700_v35  ;;  %v13737_v35 = vld [vmem:[%s24433_s10 + $0xc20] sm:$0xff]  ;;  %v13739_v4 = vld [vmem:[%s24433_s10 + $0xc30] sm:$0xff] }
 0xe8e   :  { %18002 = vmatpush1.bf16.msra.mxu0 %v18001_v19  ;;  %v13704_v19 = vld [vmem:[%s24433_s10 + $0xb28] sm:$0xff] }
 0xe8f   :  { %18004 = vmatprep.subr.bf16.mxu0 %v18003_v53  ;;  %v13706_v53 = vld [vmem:[%s24433_s10 + $0xb38] sm:$0xff] }
 0xe90   :  { %v18049_v30 = vpack.c.bf16 %v13706_v53, %v13704_v19  ;;  %v13741_v19 = vld [vmem:[%s24433_s10 + $0xc40] sm:$0xff]  ;;  %v13743_v53 = vld [vmem:[%s24433_s10 + $0xc50] sm:$0xff] }
 0xe92   :  { %18006 = vmatpush1.bf16.msra.mxu0 %v18005_v20  ;;  %v13705_v20 = vld [vmem:[%s24433_s10 + $0xb30] sm:$0xff] }
 0xe93   :  { %18011 = vmatprep.subr.bf16.mxu0 %v18010_v14  ;;  %v16425_v14 = vpop.f32.mrb[149].mxu1  ;;  %v18051_v36 = vpack.c.bf16 %v13705_v20, %v13703_v0  ;;  %v10932_v0 = vld [vmem:[#allocation4 + $0x400] sm:$0xff]  ;;  %v18086_v20 = vpack.c.bf16 %v13739_v4, %v13737_v35  ;;  %v13760_v35 = vld [vmem:[%s24433_s10 + $0xcd8] sm:$0xff] }
 0xe95   :  { %9709 = vmatmul.mubr.f32.vlgmr.msra.gmra.mrb[242].mxu0 %v23171_v6  ;;  %v13680_v6 = vld [vmem:[%s24433_s10 + $0xa78] sm:$0xff] }
 0xe96   :  { %18013 = vmatpush1.bf16.msra.mxu0 %v18012_v62  ;;  %9889 = vmatprep.mubr.f32.mxu0 %v24451_v13  ;;  %v18022_v37 = vpack.c.bf16 %v13680_v6, %v13678_v52  ;;  %v13707_v62 = vld [vmem:[%s24433_s10 + $0xb40] sm:$0xff]  ;;  %v13717_v6 = vld [vmem:[%s24433_s10 + $0xb90] sm:$0xff] }
 0xe97   :  { %18015 = vmatprep.subr.bf16.mxu0 %v18014_v58  ;;  %v13709_v58 = vld [vmem:[%s24433_s10 + $0xb50] sm:$0xff]  ;;  %v13715_v52 = vld [vmem:[%s24433_s10 + $0xb80] sm:$0xff] }
 0xe98   :  { %v18055_v12 = vpack.c.bf16 %v13709_v58, %v13707_v62  ;;  %v18063_v46 = vpack.c.bf16 %v13717_v6, %v13715_v52  ;;  %v10940_v58 = vld [vmem:[#allocation4 + $0x440] sm:$0xff] }
 0xe99   :  { %v10952_v52 = vld [vmem:[#allocation4 + $0x4a0] sm:$0xff] }
 0xe9a   :  { %18017 = vmatpush1.bf16.msra.mxu0 %v18016_v9  ;;  %v13716_v9 = vld [vmem:[%s24433_s10 + $0xb88] sm:$0xff] }
 0xe9b   :  { %18019 = vmatprep.subr.bf16.mxu0 %v18018_v39  ;;  %v13718_v39 = vld [vmem:[%s24433_s10 + $0xb98] sm:$0xff] }
 0xe9c   :  { %v18061_v5 = vpack.c.bf16 %v13718_v39, %v13716_v9  ;;  %v18090_v9 = vpack.c.bf16 %v13743_v53, %v13741_v19  ;;  %v13745_v39 = vld [vmem:[%s24433_s10 + $0xc60] sm:$0xff] }
 0xe9d   :  { %v10972_v19 = vld [vmem:[#allocation4 + $0x540] sm:$0xff] }
 0xe9e   :  { %18021 = vmatpush1.bf16.msra.mxu0 %v18020_v24  ;;  %v13720_v24 = vld [vmem:[%s24433_s10 + $0xba8] sm:$0xff]  ;;  %v10976_v53 = vld [vmem:[#allocation4 + $0x560] sm:$0xff] }
 0xe9f   :  { %18023 = vmatprep.subr.bf16.mxu0 %v18022_v37  ;;  %v13722_v37 = vld [vmem:[%s24433_s10 + $0xbb8] sm:$0xff] }
 0xea0   :  { %v18065_v1 = vpack.c.bf16 %v13722_v37, %v13720_v24  ;;  %v13747_v24 = vld [vmem:[%s24433_s10 + $0xc70] sm:$0xff]  ;;  %v10957_v37 = vld [vmem:[#allocation4 + $0x4c8] sm:$0xff] }
 0xea2   :  { %18025 = vmatpush1.bf16.msra.mxu0 %v18024_v28  ;;  %v13724_v28 = vld [vmem:[%s24433_s10 + $0xbc8] sm:$0xff] }
 0xea3   :  { %18027 = vmatprep.subr.bf16.mxu0 %v18026_v8  ;;  %v13726_v8 = vld [vmem:[%s24433_s10 + $0xbd8] sm:$0xff] }
 0xea4   :  { %v18069_v63 = vpack.c.bf16 %v13726_v8, %v13724_v28  ;;  %v18094_v28 = vpack.c.bf16 %v13747_v24, %v13745_v39  ;;  %v13749_v8 = vld [vmem:[%s24433_s10 + $0xc80] sm:$0xff] }
 0xea5   :  { %v13767_v24 = vld [vmem:[%s24433_s10 + $0xd00] sm:$0xff] }
 0xea6   :  { %18029 = vmatpush1.bf16.msra.mxu0 %v18028_v42  ;;  %v13728_v42 = vld [vmem:[%s24433_s10 + $0xbe8] sm:$0xff] }
 0xea7   :  { %18031 = vmatprep.subr.bf16.mxu0 %v18030_v54  ;;  %v13730_v54 = vld [vmem:[%s24433_s10 + $0xbf8] sm:$0xff] }
 0xea8   :  { %v18073_v33 = vpack.c.bf16 %v13730_v54, %v13728_v42  ;;  %v13751_v42 = vld [vmem:[%s24433_s10 + $0xc90] sm:$0xff]  ;;  %v10965_v54 = vld [vmem:[#allocation4 + $0x508] sm:$0xff] }
 0xeaa   :  { %18033 = vmatpush1.bf16.msra.mxu0 %v18032_v60  ;;  %v13734_v60 = vld [vmem:[%s24433_s10 + $0xc08] sm:$0xff] }
 0xeab   :  { %18035 = vmatprep.subr.bf16.mxu0 %v18034_v49  ;;  %v13736_v49 = vld [vmem:[%s24433_s10 + $0xc18] sm:$0xff] }
 0xeac   :  { %v18080_v11 = vpack.c.bf16 %v13736_v49, %v13734_v60  ;;  %v18098_v60 = vpack.c.bf16 %v13751_v42, %v13749_v8  ;;  %v13753_v49 = vld [vmem:[%s24433_s10 + $0xca0] sm:$0xff]  ;;  %v13773_v42 = vld [vmem:[%s24433_s10 + $0xd30] sm:$0xff] }
 0xeae   :  { %18037 = vmatpush1.bf16.msra.mxu0 %v18036_v34  ;;  %v13738_v34 = vld [vmem:[%s24433_s10 + $0xc28] sm:$0xff] }
 0xeaf   :  { %18039 = vmatprep.subr.bf16.mxu0 %v18038_v15  ;;  %v13740_v15 = vld [vmem:[%s24433_s10 + $0xc38] sm:$0xff] }
 0xeb0   :  { %v18084_v25 = vpack.c.bf16 %v13740_v15, %v13738_v34  ;;  %v13755_v34 = vld [vmem:[%s24433_s10 + $0xcb0] sm:$0xff]  ;;  %v10973_v15 = vld [vmem:[#allocation4 + $0x548] sm:$0xff] }
 0xeb2   :  { %18041 = vmatpush1.bf16.msra.mxu0 %v18040_v18  ;;  %v23777_v18 = vpop.f32.mrb[150].mxu1 }
 0xeb3   :  { %18046 = vmatprep.subr.bf16.mxu0 %v18045_v27  ;;  %v13742_v27 = vld [vmem:[%s24433_s10 + $0xc48] sm:$0xff]  ;;  %v16432_v51 = vpop.f32.mrb[151].mxu1 }
 0xeb5   :  { %9890 = vmatmul.mubr.f32.vlgmr.msra.gmra.mrb[242].mxu0 %v23271_v38  ;;  %v13714_v38 = vld [vmem:[%s24433_s10 + $0xb78] sm:$0xff] }
 0xeb6   :  { %18048 = vmatpush1.bf16.msra.mxu0 %v18047_v44  ;;  %10070 = vmatprep.mubr.f32.mxu0 %v24451_v13  ;;  %v18057_v23 = vpack.c.bf16 %v13714_v38, %v13712_v7  ;;  %v10933_v44 = vld [vmem:[#allocation4 + $0x408] sm:$0xff]  ;;  %v10944_v7 = vld [vmem:[#allocation4 + $0x460] sm:$0xff] }
 0xeb7   :  { %18050 = vmatprep.subr.bf16.mxu0 %v18049_v30  ;;  %v10937_v30 = vld [vmem:[#allocation4 + $0x428] sm:$0xff]  ;;  %v18223_v16 = vpack.c.bf16 %v10944_v7, %v10940_v58  ;;  %v10984_v58 = vld [vmem:[#allocation4 + $0x5a0] sm:$0xff] }
 0xeb8   :  { %v18217_v14 = vpack.c.bf16 %v10937_v30, %v10933_v44  ;;  %v10949_v38 = vld [vmem:[#allocation4 + $0x488] sm:$0xff]  ;;  %v13759_v30 = vld [vmem:[%s24433_s10 + $0xcd0] sm:$0xff] }
 0xeba   :  { %18052 = vmatpush1.bf16.msra.mxu0 %v18051_v36  ;;  %v10945_v36 = vld [vmem:[#allocation4 + $0x468] sm:$0xff]  ;;  %18218 = vmatprep.subr.bf16.mxu1 %v18217_v14 }
 0xebb   :  { %18054 = vmatprep.subr.bf16.mxu0 %v18053_v50  ;;  %v18219_v50 = vpack.c.bf16 %v10936_v47, %v10932_v0  ;;  %v18221_v62 = vpack.c.bf16 %v10945_v36, %v10941_v17  ;;  %v10981_v0 = vld [vmem:[#allocation4 + $0x588] sm:$0xff]  ;;  %v13764_v47 = vld [vmem:[%s24433_s10 + $0xcf8] sm:$0xff]  ;;  %v18239_v17 = vpack.c.bf16 %v10976_v53, %v10972_v19  ;;  %v11012_v19 = vld [vmem:[#allocation4 + $0x680] sm:$0xff] }
 0xebc   :  { %v13762_v14 = vld [vmem:[%s24433_s10 + $0xce8] sm:$0xff]  ;;  %v11016_v53 = vld [vmem:[#allocation4 + $0x6a0] sm:$0xff] }
 0xebd   :  { %18220 = vmatpush1.bf16.msra.mxu1 %v18219_v50  ;;  %v18108_v7 = vpack.c.bf16 %v13764_v47, %v13762_v14  ;;  %v13784_v14 = vld [vmem:[%s24433_s10 + $0xd88] sm:$0xff]  ;;  %v13786_v47 = vld [vmem:[%s24433_s10 + $0xd98] sm:$0xff] }
 0xebe   :  { %18056 = vmatpush1.bf16.msra.mxu0 %v18055_v12  ;;  %v13746_v12 = vld [vmem:[%s24433_s10 + $0xc68] sm:$0xff]  ;;  %18222 = vmatprep.subr.bf16.mxu1 %v18221_v62  ;;  %v10980_v62 = vld [vmem:[#allocation4 + $0x580] sm:$0xff] }
 0xebf   :  { %18058 = vmatprep.subr.bf16.mxu0 %v18057_v23  ;;  %v13748_v23 = vld [vmem:[%s24433_s10 + $0xc78] sm:$0xff] }
 0xec0   :  { %v18092_v6 = vpack.c.bf16 %v13748_v23, %v13746_v12  ;;  %v10989_v12 = vld [vmem:[#allocation4 + $0x5c8] sm:$0xff] }
 0xec1   :  { %18224 = vmatpush1.bf16.msra.mxu1 %v18223_v16  ;;  %v10993_v23 = vld [vmem:[#allocation4 + $0x5e8] sm:$0xff]  ;;  %v13770_v16 = vld [vmem:[%s24433_s10 + $0xd18] sm:$0xff] }
 0xec2   :  { %18060 = vmatpush1.bf16.msra.mxu0 %v18059_v56  ;;  %v18225_v56 = vpack.c.bf16 %v10953_v2, %v10949_v38  ;;  %v13763_v38 = vld [vmem:[%s24433_s10 + $0xcf0] sm:$0xff]  ;;  %v13768_v2 = vld [vmem:[%s24433_s10 + $0xd08] sm:$0xff] }
 0xec3   :  { %18062 = vmatprep.subr.bf16.mxu0 %v18061_v5  ;;  %v10948_v5 = vld [vmem:[#allocation4 + $0x480] sm:$0xff] }
 0xec4   :  { %v18227_v31 = vpack.c.bf16 %v10952_v52, %v10948_v5  ;;  %18226 = vmatprep.subr.bf16.mxu1 %v18225_v56  ;;  %v18245_v56 = vpack.c.bf16 %v10993_v23, %v10989_v12  ;;  %v10988_v5 = vld [vmem:[#allocation4 + $0x5c0] sm:$0xff]  ;;  %v11029_v12 = vld [vmem:[#allocation4 + $0x708] sm:$0xff] }
 0xec5   :  { %v10992_v52 = vld [vmem:[#allocation4 + $0x5e0] sm:$0xff]  ;;  %v11033_v23 = vld [vmem:[#allocation4 + $0x728] sm:$0xff] }
 0xec6   :  { %18064 = vmatpush1.bf16.msra.mxu0 %v18063_v46  ;;  %v10961_v46 = vld [vmem:[#allocation4 + $0x4e8] sm:$0xff]  ;;  %18228 = vmatpush1.bf16.msra.mxu1 %v18227_v31 }
 0xec7   :  { %18066 = vmatprep.subr.bf16.mxu0 %v18065_v1  ;;  %v13750_v1 = vld [vmem:[%s24433_s10 + $0xc88] sm:$0xff] }
 0xec8   :  { %v18096_v43 = vpack.c.bf16 %v13752_v10, %v13750_v1  ;;  %v13774_v1 = vld [vmem:[%s24433_s10 + $0xd38] sm:$0xff]  ;;  %v10997_v10 = vld [vmem:[#allocation4 + $0x608] sm:$0xff] }
 0xec9   :  { %v11001_v31 = vld [vmem:[#allocation4 + $0x628] sm:$0xff] }
 0xeca   :  { %18068 = vmatpush1.bf16.msra.mxu0 %v18067_v61  ;;  %v18229_v61 = vpack.c.bf16 %v10961_v46, %v10957_v37  ;;  %v13769_v37 = vld [vmem:[%s24433_s10 + $0xd10] sm:$0xff]  ;;  %v13772_v46 = vld [vmem:[%s24433_s10 + $0xd28] sm:$0xff] }
 0xecb   :  { %18070 = vmatprep.subr.bf16.mxu0 %v18069_v63  ;;  %v10956_v63 = vld [vmem:[#allocation4 + $0x4c0] sm:$0xff]  ;;  %v18117_v8 = vpack.c.bf16 %v13769_v37, %v13767_v24  ;;  %v13789_v37 = vld [vmem:[%s24433_s10 + $0xdb0] sm:$0xff] }
 0xecc   :  { %v18231_v26 = vpack.c.bf16 %v10960_v32, %v10956_v63  ;;  %18230 = vmatprep.subr.bf16.mxu1 %v18229_v61  ;;  %v13771_v61 = vld [vmem:[%s24433_s10 + $0xd20] sm:$0xff] }
 0xecd   :  { %v10996_v63 = vld [vmem:[#allocation4 + $0x600] sm:$0xff] }
 0xece   :  { %18072 = vmatpush1.bf16.msra.mxu0 %v18071_v22  ;;  %v10969_v22 = vld [vmem:[#allocation4 + $0x528] sm:$0xff]  ;;  %18232 = vmatpush1.bf16.msra.mxu1 %v18231_v26  ;;  %v11000_v32 = vld [vmem:[#allocation4 + $0x620] sm:$0xff]  ;;  %v13778_v26 = vld [vmem:[%s24433_s10 + $0xd58] sm:$0xff] }
 0xecf   :  { %18074 = vmatprep.subr.bf16.mxu0 %v18073_v33  ;;  %v13754_v33 = vld [vmem:[%s24433_s10 + $0xca8] sm:$0xff] }
 0xed0   :  { %v18100_v45 = vpack.c.bf16 %v13756_v59, %v13754_v33  ;;  %v11009_v33 = vld [vmem:[#allocation4 + $0x668] sm:$0xff] }
 0xed1   :  { %v13776_v59 = vld [vmem:[%s24433_s10 + $0xd48] sm:$0xff] }
 0xed2   :  { %18076 = vmatpush1.bf16.msra.mxu0 %v18075_v57  ;;  %v18233_v57 = vpack.c.bf16 %v10969_v22, %v10965_v54  ;;  %v18249_v54 = vpack.c.bf16 %v11001_v31, %v10997_v10  ;;  %v11005_v22 = vld [vmem:[#allocation4 + $0x648] sm:$0xff]  ;;  %v13794_v31 = vld [vmem:[%s24433_s10 + $0xdd8] sm:$0xff] }
 0xed3   :  { %18081 = vmatprep.subr.bf16.mxu0 %v18080_v11  ;;  %v10964_v11 = vld [vmem:[#allocation4 + $0x500] sm:$0xff]  ;;  %v13792_v10 = vld [vmem:[%s24433_s10 + $0xdc8] sm:$0xff] }
 0xed4   :  { %v18235_v4 = vpack.c.bf16 %v10968_v21, %v10964_v11  ;;  %18234 = vmatprep.subr.bf16.mxu1 %v18233_v57  ;;  %v13775_v57 = vld [vmem:[%s24433_s10 + $0xd40] sm:$0xff]  ;;  %v18253_v11 = vpack.c.bf16 %v11009_v33, %v11005_v22  ;;  %v11045_v22 = vld [vmem:[#allocation4 + $0x788] sm:$0xff] }
 0xed5   :  { %10071 = vmatmul.mubr.f32.vlgmr.msra.gmra.mrb[242].mxu0 %v23371_v41  ;;  %v18088_v41 = vpack.c.bf16 %v13744_v55, %v13742_v27  ;;  %v18102_v27 = vpack.c.bf16 %v13755_v34, %v13753_v49  ;;  %v13757_v55 = vld [vmem:[%s24433_s10 + $0xcc0] sm:$0xff]  ;;  %v18121_v49 = vpack.c.bf16 %v13773_v42, %v13771_v61  ;;  %v18123_v34 = vpack.c.bf16 %v13778_v26, %v13776_v59  ;;  %v11049_v33 = vld [vmem:[#allocation4 + $0x7a8] sm:$0xff]  ;;  %v13798_v26 = vld [vmem:[%s24433_s10 + $0xdf8] sm:$0xff] }
 0xed6   :  { %18083 = vmatpush1.bf16.msra.mxu0 %v18082_v29  ;;  %10251 = vmatprep.mubr.f32.mxu0 %v24451_v13  ;;  %v10977_v29 = vld [vmem:[#allocation4 + $0x568] sm:$0xff]  ;;  %v18106_v36 = vpack.c.bf16 %v13759_v30, %v13757_v55  ;;  %v11004_v21 = vld [vmem:[#allocation4 + $0x640] sm:$0xff]  ;;  %v13781_v30 = vld [vmem:[%s24433_s10 + $0xd70] sm:$0xff]  ;;  %v18139_v42 = vpack.c.bf16 %v13794_v31, %v13792_v10 }
 0xed7   :  { %18085 = vmatprep.subr.bf16.mxu0 %v18084_v25  ;;  %v13758_v25 = vld [vmem:[%s24433_s10 + $0xcc8] sm:$0xff]  ;;  %v18237_v51 = vpack.c.bf16 %v10977_v29, %v10973_v15  ;;  %18236 = vmatpush1.bf16.msra.mxu1 %v18235_v4  ;;  %v13777_v15 = vld [vmem:[%s24433_s10 + $0xd50] sm:$0xff]  ;;  %v13779_v55 = vld [vmem:[%s24433_s10 + $0xd60] sm:$0xff] }
 0xed8   :  { %v18104_v44 = vpack.c.bf16 %v13760_v35, %v13758_v25  ;;  %v11017_v29 = vld [vmem:[#allocation4 + $0x6a8] sm:$0xff]  ;;  %v13782_v35 = vld [vmem:[%s24433_s10 + $0xd78] sm:$0xff]  ;;  %v13791_v61 = vld [vmem:[%s24433_s10 + $0xdc0] sm:$0xff] }
 0xed9   :  { %18238 = vmatprep.subr.bf16.mxu1 %v18237_v51  ;;  %v13780_v25 = vld [vmem:[%s24433_s10 + $0xd68] sm:$0xff] }
 0xeda   :  { %18087 = vmatpush1.bf16.msra.mxu0 %v18086_v20  ;;  %v10985_v20 = vld [vmem:[#allocation4 + $0x5a8] sm:$0xff] }
 0xedb   :  { %18089 = vmatprep.subr.bf16.mxu0 %v18088_v41  ;;  %v13761_v41 = vld [vmem:[%s24433_s10 + $0xce0] sm:$0xff]  ;;  %v18241_v50 = vpack.c.bf16 %v10985_v20, %v10981_v0  ;;  %18240 = vmatpush1.bf16.msra.mxu1 %v18239_v17  ;;  %v11021_v0 = vld [vmem:[#allocation4 + $0x6c8] sm:$0xff]  ;;  %v18259_v17 = vpack.c.bf16 %v11016_v53, %v11012_v19  ;;  %v13808_v19 = vld [vmem:[%s24433_s10 + $0xe38] sm:$0xff] }
 0xedc   :  { %v18110_v39 = vpack.c.bf16 %v13763_v38, %v13761_v41  ;;  %v11025_v20 = vld [vmem:[#allocation4 + $0x6e8] sm:$0xff]  ;;  %v13783_v41 = vld [vmem:[%s24433_s10 + $0xd80] sm:$0xff]  ;;  %v13785_v38 = vld [vmem:[%s24433_s10 + $0xd90] sm:$0xff] }
 0xedd   :  { %18242 = vmatprep.subr.bf16.mxu1 %v18241_v50  ;;  %v18261_v50 = vpack.c.bf16 %v11025_v20, %v11021_v0  ;;  %v13796_v59 = vld [vmem:[%s24433_s10 + $0xde8] sm:$0xff]  ;;  %v13807_v0 = vld [vmem:[%s24433_s10 + $0xe30] sm:$0xff] }
 0xede   :  { %18091 = vmatpush1.bf16.msra.mxu0 %v18090_v9  ;;  %v18243_v9 = vpack.c.bf16 %v10984_v58, %v10980_v62  ;;  %v11020_v62 = vld [vmem:[#allocation4 + $0x6c0] sm:$0xff]  ;;  %v13810_v20 = vld [vmem:[%s24433_s10 + $0xe48] sm:$0xff] }
 0xedf   :  { %18093 = vmatprep.subr.bf16.mxu0 %v18092_v6  ;;  %v18115_v6 = vpack.c.bf16 %v13770_v16, %v13768_v2  ;;  %v11024_v58 = vld [vmem:[#allocation4 + $0x6e0] sm:$0xff]  ;;  %v13788_v2 = vld [vmem:[%s24433_s10 + $0xda8] sm:$0xff]  ;;  %v13790_v16 = vld [vmem:[%s24433_s10 + $0xdb8] sm:$0xff] }
 0xee0   :  { %18244 = vmatpush1.bf16.msra.mxu1 %v18243_v9  ;;  %v18263_v9 = vpack.c.bf16 %v11024_v58, %v11020_v62  ;;  %v18135_v24 = vpack.c.bf16 %v13790_v16, %v13788_v2 }
 0xee1   :  { %18246 = vmatprep.subr.bf16.mxu1 %v18245_v56  ;;  %v13787_v56 = vld [vmem:[%s24433_s10 + $0xda0] sm:$0xff] }
 0xee2   :  { %18095 = vmatpush1.bf16.msra.mxu0 %v18094_v28  ;;  %v18247_v28 = vpack.c.bf16 %v10992_v52, %v10988_v5  ;;  %v18265_v5 = vpack.c.bf16 %v11033_v23, %v11029_v12  ;;  %v11028_v52 = vld [vmem:[#allocation4 + $0x700] sm:$0xff]  ;;  %v13818_v12 = vld [vmem:[%s24433_s10 + $0xe88] sm:$0xff]  ;;  %v13820_v23 = vld [vmem:[%s24433_s10 + $0xe98] sm:$0xff] }
 0xee3   :  { %18097 = vmatprep.subr.bf16.mxu0 %v18096_v43  ;;  %v18119_v43 = vpack.c.bf16 %v13774_v1, %v13772_v46  ;;  %v11037_v46 = vld [vmem:[#allocation4 + $0x748] sm:$0xff]  ;;  %v18166_v16 = vpack.c.bf16 %v13820_v23, %v13818_v12  ;;  %v13859_v23 = vld [vmem:[%s24433_s10 + $0xfc0] sm:$0xff] }
 0xee4   :  { %18248 = vmatpush1.bf16.msra.mxu1 %v18247_v28  ;;  %v11041_v1 = vld [vmem:[#allocation4 + $0x768] sm:$0xff] }
 0xee5   :  { %18250 = vmatprep.subr.bf16.mxu1 %v18249_v54  ;;  %v13793_v54 = vld [vmem:[%s24433_s10 + $0xdd0] sm:$0xff] }
 0xee6   :  { %18099 = vmatpush1.bf16.msra.mxu0 %v18098_v60  ;;  %v18251_v60 = vpack.c.bf16 %v11000_v32, %v10996_v63  ;;  %v18269_v63 = vpack.c.bf16 %v11041_v1, %v11037_v46  ;;  %v11036_v32 = vld [vmem:[#allocation4 + $0x740] sm:$0xff]  ;;  %v13826_v46 = vld [vmem:[%s24433_s10 + $0xec8] sm:$0xff]  ;;  %v13828_v1 = vld [vmem:[%s24433_s10 + $0xed8] sm:$0xff] }
 0xee7   :  { %18101 = vmatprep.subr.bf16.mxu0 %v18100_v45  ;;  %v11008_v45 = vld [vmem:[#allocation4 + $0x660] sm:$0xff]  ;;  %v18174_v31 = vpack.c.bf16 %v13828_v1, %v13826_v46 }
 0xee8   :  { %18252 = vmatpush1.bf16.msra.mxu1 %v18251_v60  ;;  %v18255_v4 = vpack.c.bf16 %v11008_v45, %v11004_v21  ;;  %v11048_v21 = vld [vmem:[#allocation4 + $0x7a0] sm:$0xff]  ;;  %v18143_v45 = vpack.c.bf16 %v13798_v26, %v13796_v59 }
 0xee9   :  { %18254 = vmatprep.subr.bf16.mxu1 %v18253_v11  ;;  %v11044_v11 = vld [vmem:[#allocation4 + $0x780] sm:$0xff] }
 0xeea   :  { %18103 = vmatpush1.bf16.msra.mxu0 %v18102_v27  ;;  %v18125_v27 = vpack.c.bf16 %v13777_v15, %v13775_v57  ;;  %v18273_v57 = vpack.c.bf16 %v11049_v33, %v11045_v22  ;;  %v13797_v15 = vld [vmem:[%s24433_s10 + $0xdf0] sm:$0xff]  ;;  %v13836_v22 = vld [vmem:[%s24433_s10 + $0xf08] sm:$0xff]  ;;  %v13838_v33 = vld [vmem:[%s24433_s10 + $0xf18] sm:$0xff] }
 0xeeb   :  { %18105 = vmatprep.subr.bf16.mxu0 %v18104_v44  ;;  %v18127_v44 = vpack.c.bf16 %v13782_v35, %v13780_v25  ;;  %v18275_v25 = vpack.c.bf16 %v11048_v21, %v11044_v11  ;;  %v18185_v26 = vpack.c.bf16 %v13838_v33, %v13836_v22  ;;  %v13842_v11 = vld [vmem:[%s24433_s10 + $0xf38] sm:$0xff]  ;;  %v11052_v1 = vld [vmem:[#allocation4 + $0x7c0] sm:$0xff] }
 0xeec   :  { %18256 = vmatpush1.bf16.msra.mxu1 %v18255_v4 }
 0xeee   :  { %18107 = vmatpush1.bf16.msra.mxu0 %v18106_v36  ;;  %v18129_v36 = vpack.c.bf16 %v13781_v30, %v13779_v55  ;;  %v13803_v55 = vld [vmem:[%s24433_s10 + $0xe10] sm:$0xff]  ;;  %v13805_v30 = vld [vmem:[%s24433_s10 + $0xe20] sm:$0xff] }
 0xeef   :  { %18109 = vmatprep.subr.bf16.mxu0 %v18108_v7  ;;  %v18131_v7 = vpack.c.bf16 %v13786_v47, %v13784_v14  ;;  %v13812_v14 = vld [vmem:[%s24433_s10 + $0xe58] sm:$0xff]  ;;  %v18156_v47 = vpack.c.bf16 %v13807_v0, %v13805_v30 }
 0xef0   :  { %v13854_v30 = vld [vmem:[%s24433_s10 + $0xf98] sm:$0xff] }
 0xef2   :  { %18111 = vmatpush1.bf16.msra.mxu0 %v18110_v39  ;;  %v18133_v39 = vpack.c.bf16 %v13785_v38, %v13783_v41  ;;  %v13811_v41 = vld [vmem:[%s24433_s10 + $0xe50] sm:$0xff] }
 0xef3   :  { %18116 = vmatprep.subr.bf16.mxu0 %v18115_v6  ;;  %v11032_v6 = vld [vmem:[#allocation4 + $0x720] sm:$0xff]  ;;  %v13815_v38 = vld [vmem:[%s24433_s10 + $0xe70] sm:$0xff] }
 0xef4   :  { %v18267_v28 = vpack.c.bf16 %v11032_v6, %v11028_v52 }
 0xef5   :  { %10252 = vmatmul.mubr.f32.vlgmr.msra.gmra.mrb[242].mxu0 %v23471_v40  ;;  %v11013_v40 = vld [vmem:[#allocation4 + $0x688] sm:$0xff] }
 0xef6   :  { %18118 = vmatpush1.bf16.msra.mxu0 %v18117_v8  ;;  %10432 = vmatprep.mubr.f32.mxu0 %v24451_v13  ;;  %v18257_v51 = vpack.c.bf16 %v11017_v29, %v11013_v40  ;;  %v18137_v8 = vpack.c.bf16 %v13789_v37, %v13787_v56  ;;  %v13802_v40 = vld [vmem:[%s24433_s10 + $0xe08] sm:$0xff]  ;;  %v13804_v29 = vld [vmem:[%s24433_s10 + $0xe18] sm:$0xff]  ;;  %v13823_v37 = vld [vmem:[%s24433_s10 + $0xeb0] sm:$0xff] }
 0xef7   :  { %18120 = vmatprep.subr.bf16.mxu0 %v18119_v43  ;;  %v11040_v43 = vld [vmem:[#allocation4 + $0x760] sm:$0xff]  ;;  %v18150_v4 = vpack.c.bf16 %v13804_v29, %v13802_v40  ;;  %v13822_v56 = vld [vmem:[%s24433_s10 + $0xea8] sm:$0xff]  ;;  %v13846_v29 = vld [vmem:[%s24433_s10 + $0xf58] sm:$0xff] }
 0xef8   :  { %18258 = vmatprep.subr.bf16.mxu1 %v18257_v51  ;;  %v18271_v60 = vpack.c.bf16 %v11040_v43, %v11036_v32  ;;  %v13806_v51 = vld [vmem:[%s24433_s10 + $0xe28] sm:$0xff] }
 0xef9   :  { %18260 = vmatpush1.bf16.msra.mxu1 %v18259_v17  ;;  %v18158_v17 = vpack.c.bf16 %v13812_v14, %v13810_v20  ;;  %v13844_v40 = vld [vmem:[%s24433_s10 + $0xf48] sm:$0xff]  ;;  %v13851_v14 = vld [vmem:[%s24433_s10 + $0xf80] sm:$0xff] }
 0xefa   :  { %18122 = vmatpush1.bf16.msra.mxu0 %v18121_v49  ;;  %18262 = vmatprep.subr.bf16.mxu1 %v18261_v50  ;;  %v18141_v49 = vpack.c.bf16 %v13793_v54, %v13791_v61  ;;  %v13814_v50 = vld [vmem:[%s24433_s10 + $0xe68] sm:$0xff]  ;;  %v13831_v54 = vld [vmem:[%s24433_s10 + $0xef0] sm:$0xff] }
 0xefb   :  { %18124 = vmatprep.subr.bf16.mxu0 %v18123_v34  ;;  %v13795_v34 = vld [vmem:[%s24433_s10 + $0xde0] sm:$0xff]  ;;  %v13830_v61 = vld [vmem:[%s24433_s10 + $0xee8] sm:$0xff] }
 0xefc   :  { %v18145_v35 = vpack.c.bf16 %v13797_v15, %v13795_v34  ;;  %v13839_v34 = vld [vmem:[%s24433_s10 + $0xf20] sm:$0xff]  ;;  %v13841_v15 = vld [vmem:[%s24433_s10 + $0xf30] sm:$0xff] }
 0xefd   :  { %18264 = vmatpush1.bf16.msra.mxu1 %v18263_v9  ;;  %v13817_v9 = vld [vmem:[%s24433_s10 + $0xe80] sm:$0xff] }
 0xefe   :  { %18126 = vmatpush1.bf16.msra.mxu0 %v18125_v27  ;;  %18266 = vmatprep.subr.bf16.mxu1 %v18265_v5  ;;  %v13801_v27 = vld [vmem:[%s24433_s10 + $0xe00] sm:$0xff]  ;;  %v13824_v5 = vld [vmem:[%s24433_s10 + $0xeb8] sm:$0xff] }
 0xeff   :  { %18128 = vmatprep.subr.bf16.mxu0 %v18127_v44  ;;  %v18152_v53 = vpack.c.bf16 %v13803_v55, %v13801_v27  ;;  %v18154_v44 = vpack.c.bf16 %v13808_v19, %v13806_v51  ;;  %v18170_v6 = vpack.c.bf16 %v13824_v5, %v13822_v56  ;;  %v13845_v27 = vld [vmem:[%s24433_s10 + $0xf50] sm:$0xff]  ;;  %v13848_v55 = vld [vmem:[%s24433_s10 + $0xf68] sm:$0xff]  ;;  %v13847_v19 = vld [vmem:[%s24433_s10 + $0xf60] sm:$0xff] }
 0xf00   :  { %v13863_v5 = vld [vmem:[%s24433_s10 + $0xfe0] sm:$0xff] }
 0xf01   :  { %18268 = vmatpush1.bf16.msra.mxu1 %v18267_v28  ;;  %v13825_v28 = vld [vmem:[%s24433_s10 + $0xec0] sm:$0xff] }
 0xf02   :  { %18130 = vmatpush1.bf16.msra.mxu0 %v18129_v36  ;;  %18270 = vmatprep.subr.bf16.mxu1 %v18269_v63  ;;  %v13809_v36 = vld [vmem:[%s24433_s10 + $0xe40] sm:$0xff]  ;;  %v13832_v63 = vld [vmem:[%s24433_s10 + $0xef8] sm:$0xff] }
 0xf03   :  { %18132 = vmatprep.subr.bf16.mxu0 %v18131_v7  ;;  %v18160_v62 = vpack.c.bf16 %v13811_v41, %v13809_v36  ;;  %v13813_v7 = vld [vmem:[%s24433_s10 + $0xe60] sm:$0xff]  ;;  %v18178_v43 = vpack.c.bf16 %v13832_v63, %v13830_v61  ;;  %v13858_v36 = vld [vmem:[%s24433_s10 + $0xfb8] sm:$0xff]  ;;  %v10934_v63 = vld [vmem:[#allocation4 + $0x410] sm:$0xff] }
 0xf04   :  { %v18164_v2 = vpack.c.bf16 %v13815_v38, %v13813_v7  ;;  %v13862_v7 = vld [vmem:[%s24433_s10 + $0xfd8] sm:$0xff] }
 0xf05   :  { %18272 = vmatpush1.bf16.msra.mxu1 %v18271_v60  ;;  %v13835_v60 = vld [vmem:[%s24433_s10 + $0xf00] sm:$0xff] }
 0xf06   :  { %18134 = vmatpush1.bf16.msra.mxu0 %v18133_v39  ;;  %18274 = vmatprep.subr.bf16.mxu1 %v18273_v57  ;;  %v13819_v39 = vld [vmem:[%s24433_s10 + $0xe90] sm:$0xff]  ;;  %v13840_v57 = vld [vmem:[%s24433_s10 + $0xf28] sm:$0xff] }
 0xf07   :  { %18136 = vmatprep.subr.bf16.mxu0 %v18135_v24  ;;  %v18168_v52 = vpack.c.bf16 %v13819_v39, %v13817_v9  ;;  %v13821_v24 = vld [vmem:[%s24433_s10 + $0xea0] sm:$0xff]  ;;  %v13866_v9 = vld [vmem:[%s24433_s10 + $0xff8] sm:$0xff] }
 0xf08   :  { %v18172_v10 = vpack.c.bf16 %v13823_v37, %v13821_v24  ;;  %v11053_v24 = vld [vmem:[#allocation4 + $0x7c8] sm:$0xff] }
 0xf09   :  { %18276 = vmatpush1.bf16.msra.mxu1 %v18275_v25  ;;  %v18191_v25 = vpack.c.bf16 %v13841_v15, %v13839_v34  ;;  %v11057_v37 = vld [vmem:[#allocation4 + $0x7e8] sm:$0xff]  ;;  %v10950_v34 = vld [vmem:[#allocation4 + $0x490] sm:$0xff] }
 0xf0a   :  { %18138 = vmatpush1.bf16.msra.mxu0 %v18137_v8  ;;  %v13827_v8 = vld [vmem:[%s24433_s10 + $0xed0] sm:$0xff]  ;;  %v18277_v46 = vpack.c.bf16 %v11057_v37, %v11053_v24  ;;  %v11011_v24 = vld [vmem:[#allocation4 + $0x678] sm:$0xff] }
 0xf0b   :  { %18140 = vmatprep.subr.bf16.mxu0 %v18139_v42  ;;  %v18176_v32 = vpack.c.bf16 %v13827_v8, %v13825_v28  ;;  %v13829_v42 = vld [vmem:[%s24433_s10 + $0xee0] sm:$0xff]  ;;  %v10935_v28 = vld [vmem:[#allocation4 + $0x418] sm:$0xff]  ;;  %v10954_v15 = vld [vmem:[#allocation4 + $0x4b0] sm:$0xff] }
 0xf0c   :  { %v18180_v59 = vpack.c.bf16 %v13831_v54, %v13829_v42  ;;  %18278 = vmatprep.subr.bf16.mxu1 %v18277_v46  ;;  %v10939_v8 = vld [vmem:[#allocation4 + $0x438] sm:$0xff] }
 0xf0d   :  { %v18281_v61 = vpack.c.bf16 %v10939_v8, %v10935_v28  ;;  %v10943_v42 = vld [vmem:[#allocation4 + $0x458] sm:$0xff] }
 0xf0e   :  { %18142 = vmatpush1.bf16.msra.mxu0 %v18141_v49  ;;  %v13837_v49 = vld [vmem:[%s24433_s10 + $0xf10] sm:$0xff]  ;;  %v10947_v54 = vld [vmem:[#allocation4 + $0x478] sm:$0xff] }
 0xf0f   :  { %18144 = vmatprep.subr.bf16.mxu0 %v18143_v45  ;;  %v18187_v21 = vpack.c.bf16 %v13837_v49, %v13835_v60  ;;  %v18189_v45 = vpack.c.bf16 %v13842_v11, %v13840_v57  ;;  %v10942_v60 = vld [vmem:[#allocation4 + $0x450] sm:$0xff]  ;;  %v10951_v57 = vld [vmem:[#allocation4 + $0x498] sm:$0xff] }
 0xf10   :  { %v10946_v49 = vld [vmem:[#allocation4 + $0x470] sm:$0xff]  ;;  %v10955_v11 = vld [vmem:[#allocation4 + $0x4b8] sm:$0xff] }
 0xf11   :  { %v11019_v28 = vld [vmem:[#allocation4 + $0x6b8] sm:$0xff] }
 0xf12   :  { %18146 = vmatpush1.bf16.msra.mxu0 %v18145_v35  ;;  %v18193_v35 = vpack.c.bf16 %v13846_v29, %v13844_v40  ;;  %v10959_v40 = vld [vmem:[#allocation4 + $0x4d8] sm:$0xff] }
 0xf13   :  { %18151 = vmatprep.subr.bf16.mxu0 %v18150_v4  ;;  %v13843_v4 = vld [vmem:[%s24433_s10 + $0xf40] sm:$0xff]  ;;  %v10963_v29 = vld [vmem:[#allocation4 + $0x4f8] sm:$0xff] }
 0xf15   :  { %10433 = vmatmul.mubr.f32.vlgmr.msra.gmra.mrb[242].mxu0 %v23571_v3  ;;  %v13816_v3 = vld [vmem:[%s24433_s10 + $0xe78] sm:$0xff] }
 0xf16   :  { %18153 = vmatpush1.bf16.msra.mxu0 %v18152_v53  ;;  %10613 = vmatprep.mubr.f32.mxu0 %v24451_v13  ;;  %v18162_v58 = vpack.c.bf16 %v13816_v3, %v13814_v50  ;;  %v13849_v53 = vld [vmem:[%s24433_s10 + $0xf70] sm:$0xff]  ;;  %v13855_v3 = vld [vmem:[%s24433_s10 + $0xfa0] sm:$0xff] }
 0xf17   :  { %18155 = vmatprep.subr.bf16.mxu0 %v18154_v44  ;;  %v13852_v44 = vld [vmem:[%s24433_s10 + $0xf88] sm:$0xff]  ;;  %v18199_v0 = vpack.c.bf16 %v13849_v53, %v13847_v19  ;;  %v10966_v19 = vld [vmem:[#allocation4 + $0x510] sm:$0xff] }
 0xf18   :  { %v18201_v20 = vpack.c.bf16 %v13854_v30, %v13852_v44  ;;  %v10970_v53 = vld [vmem:[#allocation4 + $0x530] sm:$0xff]  ;;  %v10975_v44 = vld [vmem:[#allocation4 + $0x558] sm:$0xff] }
 0xf19   :  { %v10979_v30 = vld [vmem:[#allocation4 + $0x578] sm:$0xff] }
 0xf1a   :  { %18157 = vmatpush1.bf16.msra.mxu0 %v18156_v47  ;;  %v13853_v47 = vld [vmem:[%s24433_s10 + $0xf90] sm:$0xff] }
 0xf1b   :  { %18159 = vmatprep.subr.bf16.mxu0 %v18158_v17  ;;  %v13856_v17 = vld [vmem:[%s24433_s10 + $0xfa8] sm:$0xff]  ;;  %v18203_v41 = vpack.c.bf16 %v13853_v47, %v13851_v14  ;;  %v10974_v14 = vld [vmem:[#allocation4 + $0x550] sm:$0xff] }
 0xf1c   :  { %v18205_v50 = vpack.c.bf16 %v13858_v36, %v13856_v17  ;;  %v10978_v47 = vld [vmem:[#allocation4 + $0x570] sm:$0xff]  ;;  %v10983_v17 = vld [vmem:[#allocation4 + $0x598] sm:$0xff] }
 0xf1d   :  { %v10987_v36 = vld [vmem:[#allocation4 + $0x5b8] sm:$0xff] }
 0xf1e   :  { %18161 = vmatpush1.bf16.msra.mxu0 %v18160_v62  ;;  %v13857_v62 = vld [vmem:[%s24433_s10 + $0xfb0] sm:$0xff] }
 0xf1f   :  { %18163 = vmatprep.subr.bf16.mxu0 %v18162_v58  ;;  %v13860_v58 = vld [vmem:[%s24433_s10 + $0xfc8] sm:$0xff]  ;;  %v18207_v38 = vpack.c.bf16 %v13857_v62, %v13855_v3  ;;  %v10982_v3 = vld [vmem:[#allocation4 + $0x590] sm:$0xff] }
 0xf20   :  { %v18209_v12 = vpack.c.bf16 %v13862_v7, %v13860_v58  ;;  %v10986_v62 = vld [vmem:[#allocation4 + $0x5b0] sm:$0xff]  ;;  %v10991_v58 = vld [vmem:[#allocation4 + $0x5d8] sm:$0xff] }
 0xf21   :  { %v10995_v7 = vld [vmem:[#allocation4 + $0x5f8] sm:$0xff] }
 0xf22   :  { %18165 = vmatpush1.bf16.msra.mxu0 %v18164_v2  ;;  %v13861_v2 = vld [vmem:[%s24433_s10 + $0xfd0] sm:$0xff] }
 0xf23   :  { %18167 = vmatprep.subr.bf16.mxu0 %v18166_v16  ;;  %v13864_v16 = vld [vmem:[%s24433_s10 + $0xfe8] sm:$0xff]  ;;  %v18211_v39 = vpack.c.bf16 %v13861_v2, %v13859_v23  ;;  %v10990_v23 = vld [vmem:[#allocation4 + $0x5d0] sm:$0xff] }
 0xf24   :  { %v18213_v56 = vpack.c.bf16 %v13866_v9, %v13864_v16  ;;  %v10994_v2 = vld [vmem:[#allocation4 + $0x5f0] sm:$0xff]  ;;  %v10999_v16 = vld [vmem:[#allocation4 + $0x618] sm:$0xff] }
 0xf25   :  { %v11003_v9 = vld [vmem:[#allocation4 + $0x638] sm:$0xff] }
 0xf26   :  { %18169 = vmatpush1.bf16.msra.mxu0 %v18168_v52  ;;  %v13865_v52 = vld [vmem:[%s24433_s10 + $0xff0] sm:$0xff] }
 0xf27   :  { %18171 = vmatprep.subr.bf16.mxu0 %v18170_v6  ;;  %v18215_v6 = vpack.c.bf16 %v13865_v52, %v13863_v5  ;;  %v10998_v5 = vld [vmem:[#allocation4 + $0x610] sm:$0xff] }
 0xf28   :  { %v11002_v52 = vld [vmem:[#allocation4 + $0x630] sm:$0xff] }
 0xf29   :  { %v18315_v37 = vpack.c.bf16 %v11002_v52, %v10998_v5  ;;  %v10823_v5 = vld [vmem:[#allocation4 + $0xa0] sm:$0xff]  ;;  %v10828_v52 = vld [vmem:[#allocation4 + $0xc8] sm:$0xff] }
 0xf2a   :  { %18173 = vmatpush1.bf16.msra.mxu0 %v18172_v10  ;;  %v11056_v10 = vld [vmem:[#allocation4 + $0x7e0] sm:$0xff] }
 0xf2b   :  { %18175 = vmatprep.subr.bf16.mxu0 %v18174_v31  ;;  %v18279_v31 = vpack.c.bf16 %v11056_v10, %v11052_v1  ;;  %v11006_v1 = vld [vmem:[#allocation4 + $0x650] sm:$0xff] }
 0xf2c   :  { %v11010_v10 = vld [vmem:[#allocation4 + $0x670] sm:$0xff] }
 0xf2d   :  { %18280 = vmatpush1.bf16.msra.mxu1 %v18279_v31  ;;  %v11015_v31 = vld [vmem:[#allocation4 + $0x698] sm:$0xff]  ;;  %v18319_v8 = vpack.c.bf16 %v11010_v10, %v11006_v1  ;;  %v10831_v1 = vld [vmem:[#allocation4 + $0xe0] sm:$0xff]  ;;  %v10836_v10 = vld [vmem:[#allocation4 + $0x108] sm:$0xff] }
 0xf2e   :  { %18177 = vmatpush1.bf16.msra.mxu0 %v18176_v32  ;;  %18282 = vmatprep.subr.bf16.mxu1 %v18281_v61  ;;  %v10938_v32 = vld [vmem:[#allocation4 + $0x430] sm:$0xff]  ;;  %v18321_v61 = vpack.c.bf16 %v11019_v28, %v11015_v31  ;;  %v10840_v31 = vld [vmem:[#allocation4 + $0x128] sm:$0xff] }
 0xf2f   :  { %18179 = vmatprep.subr.bf16.mxu0 %v18178_v43  ;;  %v18283_v33 = vpack.c.bf16 %v10938_v32, %v10934_v63  ;;  %v11014_v63 = vld [vmem:[#allocation4 + $0x690] sm:$0xff]  ;;  %v18361_v28 = vpack.c.bf16 %v10840_v31, %v10836_v10 }
 0xf30   :  { %v11018_v32 = vld [vmem:[#allocation4 + $0x6b0] sm:$0xff] }
 0xf32   :  { %18181 = vmatpush1.bf16.msra.mxu0 %v18180_v59 }
 0xf33   :  { %18186 = vmatprep.subr.bf16.mxu0 %v18185_v26  ;;  %v18285_v26 = vpack.c.bf16 %v10947_v54, %v10943_v42  ;;  %v11023_v42 = vld [vmem:[#allocation4 + $0x6d8] sm:$0xff] }
 0xf34   :  { %v11027_v54 = vld [vmem:[#allocation4 + $0x6f8] sm:$0xff] }
 0xf35   :  { %10614 = vmatmul.mubr.f32.vlgmr.msra.gmra.mrb[242].mxu0 %v23671_v48  ;;  %v13850_v48 = vld [vmem:[%s24433_s10 + $0xf78] sm:$0xff] }
 0xf36   :  { %18188 = vmatpush1.bf16.msra.mxu0 %v18187_v21  ;;  %10794 = vmatprep.mubr.f32.mxu0 %v24451_v13  ;;  %v18195_v13 = vpack.c.bf16 %v13845_v27, %v13843_v4  ;;  %v18197_v51 = vpack.c.bf16 %v13850_v48, %v13848_v55  ;;  %v18287_v21 = vpack.c.bf16 %v10946_v49, %v10942_v60  ;;  %v10958_v4 = vld [vmem:[#allocation4 + $0x4d0] sm:$0xff]  ;;  %v10967_v55 = vld [vmem:[#allocation4 + $0x518] sm:$0xff] }
 0xf37   :  { %18190 = vmatprep.subr.bf16.mxu0 %v18189_v45  ;;  %v18289_v45 = vpack.c.bf16 %v10955_v11, %v10951_v57  ;;  %v10962_v27 = vld [vmem:[#allocation4 + $0x4f0] sm:$0xff]  ;;  %v10971_v48 = vld [vmem:[#allocation4 + $0x538] sm:$0xff] }
 0xf38   :  { %v11026_v60 = vld [vmem:[#allocation4 + $0x6f0] sm:$0xff]  ;;  %v11031_v49 = vld [vmem:[#allocation4 + $0x718] sm:$0xff] }
 0xf39   :  { %v11035_v57 = vld [vmem:[#allocation4 + $0x738] sm:$0xff] }
 0xf3a   :  { %18192 = vmatpush1.bf16.msra.mxu0 %v18191_v25  ;;  %v18291_v25 = vpack.c.bf16 %v10954_v15, %v10950_v34  ;;  %v11034_v34 = vld [vmem:[#allocation4 + $0x730] sm:$0xff]  ;;  %v11039_v15 = vld [vmem:[#allocation4 + $0x758] sm:$0xff] }
 0xf3b   :  { %18194 = vmatprep.subr.bf16.mxu0 %v18193_v35  ;;  %v18293_v35 = vpack.c.bf16 %v10963_v29, %v10959_v40  ;;  %v11043_v40 = vld [vmem:[#allocation4 + $0x778] sm:$0xff] }
 0xf3e   :  { %18196 = vmatpush1.bf16.msra.mxu0 %v18195_v13  ;;  %v18295_v13 = vpack.c.bf16 %v10962_v27, %v10958_v4  ;;  %v11042_v4 = vld [vmem:[#allocation4 + $0x770] sm:$0xff]  ;;  %v11047_v27 = vld [vmem:[#allocation4 + $0x798] sm:$0xff] }
 0xf3f   :  { %18198 = vmatprep.subr.bf16.mxu0 %v18197_v51  ;;  %v18297_v51 = vpack.c.bf16 %v10971_v48, %v10967_v55  ;;  %v11051_v55 = vld [vmem:[#allocation4 + $0x7b8] sm:$0xff] }
 0xf42   :  { %18200 = vmatpush1.bf16.msra.mxu0 %v18199_v0  ;;  %v18299_v0 = vpack.c.bf16 %v10970_v53, %v10966_v19  ;;  %v11050_v19 = vld [vmem:[#allocation4 + $0x7b0] sm:$0xff]  ;;  %v11055_v53 = vld [vmem:[#allocation4 + $0x7d8] sm:$0xff] }
 0xf43   :  { %18202 = vmatprep.subr.bf16.mxu0 %v18201_v20  ;;  %v18301_v20 = vpack.c.bf16 %v10979_v30, %v10975_v44  ;;  %v11059_v44 = vld [vmem:[#allocation4 + $0x7f8] sm:$0xff] }
 0xf46   :  { %18204 = vmatpush1.bf16.msra.mxu0 %v18203_v41  ;;  %v18303_v41 = vpack.c.bf16 %v10978_v47, %v10974_v14  ;;  %v11058_v14 = vld [vmem:[#allocation4 + $0x7f0] sm:$0xff]  ;;  %v10804_v47 = vld [vmem:[#allocation4 + $0x8] sm:$0xff] }
 0xf47   :  { %18206 = vmatprep.subr.bf16.mxu0 %v18205_v50  ;;  %v18305_v50 = vpack.c.bf16 %v10987_v36, %v10983_v17  ;;  %v10808_v17 = vld [vmem:[#allocation4 + $0x28] sm:$0xff] }
 0xf4a   :  { %18208 = vmatpush1.bf16.msra.mxu0 %v18207_v38  ;;  %v18307_v38 = vpack.c.bf16 %v10986_v62, %v10982_v3  ;;  %v10807_v3 = vld [vmem:[#allocation4 + $0x20] sm:$0xff]  ;;  %v10812_v62 = vld [vmem:[#allocation4 + $0x48] sm:$0xff] }
 0xf4b   :  { %18210 = vmatprep.subr.bf16.mxu0 %v18209_v12  ;;  %v18309_v12 = vpack.c.bf16 %v10995_v7, %v10991_v58  ;;  %v10816_v58 = vld [vmem:[#allocation4 + $0x68] sm:$0xff] }
 0xf4e   :  { %18212 = vmatpush1.bf16.msra.mxu0 %v18211_v39  ;;  %v18311_v39 = vpack.c.bf16 %v10994_v2, %v10990_v23  ;;  %v10815_v23 = vld [vmem:[#allocation4 + $0x60] sm:$0xff]  ;;  %v10820_v2 = vld [vmem:[#allocation4 + $0x88] sm:$0xff] }
 0xf4f   :  { %18214 = vmatprep.subr.bf16.mxu0 %v18213_v56  ;;  %v18313_v56 = vpack.c.bf16 %v11003_v9, %v10999_v16  ;;  %v10824_v16 = vld [vmem:[#allocation4 + $0xa8] sm:$0xff] }
 0xf52   :  { %18216 = vmatpush1.bf16.msra.mxu0 %v18215_v6  ;;  %v11007_v6 = vld [vmem:[#allocation4 + $0x658] sm:$0xff] }
 0xf53   :  { %v18317_v46 = vpack.c.bf16 %v11011_v24, %v11007_v6  ;;  %v10832_v6 = vld [vmem:[#allocation4 + $0xe8] sm:$0xff] }
 0xf55   :  { %10795 = vmatmul.mubr.f32.vlgmr.msra.gmra.mrb[242].mxu0 %v23777_v18 }
0x1028   :  { %v24148_v43 = vpop.f32.mrb[242].mxu0 }
0x1029   :  { %v24150_v22 = vpop.f32.mrb[243].mxu0  ;;  %v11062_v59 = vrot.slane %v24148_v43, 1 }
0x102a   :  { %v11063_v18 = vrot.slane %v24150_v22, 1 }
0x102c   :  { %11130 = vmatprep.mubr.f32.mxu1 %v11063_v18 }
0x102d   :  { %11131 = vmatmul.mubr.f32.vlgmr.msra.gmra.mrb[152].mxu1 %v11062_v59 }
0x102e   :  { %18284 = vmatpush1.bf16.msra.mxu1 %v18283_v33  ;;  %11201 = vmatprep.mubr.f32.mxu1 %v11063_v18  ;;  %v18323_v18 = vpack.c.bf16 %v11018_v32, %v11014_v63  ;;  %v18325_v33 = vpack.c.bf16 %v11027_v54, %v11023_v42  ;;  %v10844_v63 = vld [vmem:[#allocation4 + $0x148] sm:$0xff] }
0x102f   :  { %18286 = vmatprep.subr.bf16.mxu1 %v18285_v26  ;;  %v11022_v26 = vld [vmem:[#allocation4 + $0x6d0] sm:$0xff]  ;;  %v10848_v32 = vld [vmem:[#allocation4 + $0x168] sm:$0xff] }
0x1030   :  { %v18327_v11 = vpack.c.bf16 %v11026_v60, %v11022_v26  ;;  %v18365_v54 = vpack.c.bf16 %v10848_v32, %v10844_v63  ;;  %v10852_v26 = vld [vmem:[#allocation4 + $0x188] sm:$0xff] }
0x1031   :  { %v10856_v60 = vld [vmem:[#allocation4 + $0x1a8] sm:$0xff] }
0x1032   :  { %18288 = vmatpush1.bf16.msra.mxu1 %v18287_v21  ;;  %v18329_v21 = vpack.c.bf16 %v11035_v57, %v11031_v49  ;;  %v18369_v57 = vpack.c.bf16 %v10856_v60, %v10852_v26 }
0x1033   :  { %18290 = vmatprep.subr.bf16.mxu1 %v18289_v45  ;;  %v11030_v45 = vld [vmem:[#allocation4 + $0x710] sm:$0xff] }
0x1034   :  { %v18331_v29 = vpack.c.bf16 %v11034_v34, %v11030_v45  ;;  %v10860_v45 = vld [vmem:[#allocation4 + $0x1c8] sm:$0xff] }
0x1035   :  { %v10864_v34 = vld [vmem:[#allocation4 + $0x1e8] sm:$0xff] }
0x1036   :  { %18292 = vmatpush1.bf16.msra.mxu1 %v18291_v25  ;;  %v18333_v25 = vpack.c.bf16 %v11043_v40, %v11039_v15  ;;  %v18373_v40 = vpack.c.bf16 %v10864_v34, %v10860_v45 }
0x1037   :  { %18294 = vmatprep.subr.bf16.mxu1 %v18293_v35  ;;  %v11038_v35 = vld [vmem:[#allocation4 + $0x750] sm:$0xff] }
0x1038   :  { %v18335_v48 = vpack.c.bf16 %v11042_v4, %v11038_v35  ;;  %v10868_v35 = vld [vmem:[#allocation4 + $0x208] sm:$0xff] }
0x1039   :  { %v10872_v4 = vld [vmem:[#allocation4 + $0x228] sm:$0xff] }
0x103a   :  { %18296 = vmatpush1.bf16.msra.mxu1 %v18295_v13  ;;  %v18337_v13 = vpack.c.bf16 %v11051_v55, %v11047_v27  ;;  %v18377_v55 = vpack.c.bf16 %v10872_v4, %v10868_v35 }
0x103b   :  { %18298 = vmatprep.subr.bf16.mxu1 %v18297_v51  ;;  %v11046_v51 = vld [vmem:[#allocation4 + $0x790] sm:$0xff] }
0x103c   :  { %v18339_v30 = vpack.c.bf16 %v11050_v19, %v11046_v51  ;;  %v10876_v51 = vld [vmem:[#allocation4 + $0x248] sm:$0xff] }
0x103d   :  { %v10880_v19 = vld [vmem:[#allocation4 + $0x268] sm:$0xff] }
0x103e   :  { %18300 = vmatpush1.bf16.msra.mxu1 %v18299_v0  ;;  %v18341_v0 = vpack.c.bf16 %v11059_v44, %v11055_v53  ;;  %v18381_v44 = vpack.c.bf16 %v10880_v19, %v10876_v51 }
0x103f   :  { %18302 = vmatprep.subr.bf16.mxu1 %v18301_v20  ;;  %v11054_v20 = vld [vmem:[#allocation4 + $0x7d0] sm:$0xff] }
0x1040   :  { %v18343_v36 = vpack.c.bf16 %v11058_v14, %v11054_v20  ;;  %v10884_v20 = vld [vmem:[#allocation4 + $0x288] sm:$0xff] }
0x1041   :  { %v10888_v14 = vld [vmem:[#allocation4 + $0x2a8] sm:$0xff] }
0x1042   :  { %18304 = vmatpush1.bf16.msra.mxu1 %v18303_v41  ;;  %v18345_v41 = vpack.c.bf16 %v10808_v17, %v10804_v47  ;;  %v18385_v17 = vpack.c.bf16 %v10888_v14, %v10884_v20 }
0x1043   :  { %18306 = vmatprep.subr.bf16.mxu1 %v18305_v50  ;;  %v10803_v50 = vld [vmem:[#allocation4] sm:$0xff] }
0x1044   :  { %v18347_v7 = vpack.c.bf16 %v10807_v3, %v10803_v50  ;;  %v10892_v50 = vld [vmem:[#allocation4 + $0x2c8] sm:$0xff] }
0x1045   :  { %v10896_v3 = vld [vmem:[#allocation4 + $0x2e8] sm:$0xff] }
0x1046   :  { %18308 = vmatpush1.bf16.msra.mxu1 %v18307_v38  ;;  %v18349_v38 = vpack.c.bf16 %v10816_v58, %v10812_v62  ;;  %v18389_v58 = vpack.c.bf16 %v10896_v3, %v10892_v50 }
0x1047   :  { %18310 = vmatprep.subr.bf16.mxu1 %v18309_v12  ;;  %v10811_v12 = vld [vmem:[#allocation4 + $0x40] sm:$0xff] }
0x1048   :  { %v18351_v9 = vpack.c.bf16 %v10815_v23, %v10811_v12  ;;  %v10900_v12 = vld [vmem:[#allocation4 + $0x308] sm:$0xff] }
0x1049   :  { %v10904_v23 = vld [vmem:[#allocation4 + $0x328] sm:$0xff] }
0x104a   :  { %18312 = vmatpush1.bf16.msra.mxu1 %v18311_v39  ;;  %v18353_v39 = vpack.c.bf16 %v10824_v16, %v10820_v2  ;;  %v18393_v16 = vpack.c.bf16 %v10904_v23, %v10900_v12 }
0x104b   :  { %18314 = vmatprep.subr.bf16.mxu1 %v18313_v56  ;;  %v10819_v56 = vld [vmem:[#allocation4 + $0x80] sm:$0xff] }
0x104c   :  { %v18355_v24 = vpack.c.bf16 %v10823_v5, %v10819_v56  ;;  %v10908_v56 = vld [vmem:[#allocation4 + $0x348] sm:$0xff] }
0x104d   :  { %v10912_v5 = vld [vmem:[#allocation4 + $0x368] sm:$0xff] }
0x104e   :  { %18316 = vmatpush1.bf16.msra.mxu1 %v18315_v37  ;;  %v18357_v37 = vpack.c.bf16 %v10832_v6, %v10828_v52  ;;  %v18397_v6 = vpack.c.bf16 %v10912_v5, %v10908_v56 }
0x104f   :  { %18318 = vmatprep.subr.bf16.mxu1 %v18317_v46  ;;  %v10827_v46 = vld [vmem:[#allocation4 + $0xc0] sm:$0xff] }
0x1052   :  { %18320 = vmatpush1.bf16.msra.mxu1 %v18319_v8  ;;  %v10835_v8 = vld [vmem:[#allocation4 + $0x100] sm:$0xff] }
0x1053   :  { %18322 = vmatprep.subr.bf16.mxu1 %v18321_v61  ;;  %v10839_v61 = vld [vmem:[#allocation4 + $0x120] sm:$0xff] }
0x1054   :  { %v18363_v42 = vpack.c.bf16 %v10839_v61, %v10835_v8  ;;  %v10924_v8 = vld [vmem:[#allocation4 + $0x3c8] sm:$0xff] }
0x1055   :  { %v10928_v61 = vld [vmem:[#allocation4 + $0x3e8] sm:$0xff] }
0x1056   :  { %18324 = vmatpush1.bf16.msra.mxu1 %v18323_v18  ;;  %v10843_v18 = vld [vmem:[#allocation4 + $0x140] sm:$0xff]  ;;  %v18405_v32 = vpack.c.bf16 %v10928_v61, %v10924_v8 }
0x1057   :  { %18326 = vmatprep.subr.bf16.mxu1 %v18325_v33  ;;  %v10847_v33 = vld [vmem:[#allocation4 + $0x160] sm:$0xff] }
0x1058   :  { %v18367_v49 = vpack.c.bf16 %v10847_v33, %v10843_v18  ;;  %v10806_v18 = vld [vmem:[#allocation4 + $0x18] sm:$0xff] }
0x1059   :  { %v10810_v33 = vld [vmem:[#allocation4 + $0x38] sm:$0xff] }
0x105a   :  { %18328 = vmatpush1.bf16.msra.mxu1 %v18327_v11  ;;  %v10851_v11 = vld [vmem:[#allocation4 + $0x180] sm:$0xff]  ;;  %v18409_v60 = vpack.c.bf16 %v10810_v33, %v10806_v18 }
0x105b   :  { %18330 = vmatprep.subr.bf16.mxu1 %v18329_v21  ;;  %v10855_v21 = vld [vmem:[#allocation4 + $0x1a0] sm:$0xff] }
0x105c   :  { %v18371_v15 = vpack.c.bf16 %v10855_v21, %v10851_v11  ;;  %v10814_v11 = vld [vmem:[#allocation4 + $0x58] sm:$0xff] }
0x105d   :  { %v10818_v21 = vld [vmem:[#allocation4 + $0x78] sm:$0xff] }
0x105e   :  { %18332 = vmatpush1.bf16.msra.mxu1 %v18331_v29  ;;  %v10859_v29 = vld [vmem:[#allocation4 + $0x1c0] sm:$0xff]  ;;  %v18413_v34 = vpack.c.bf16 %v10818_v21, %v10814_v11 }
0x105f   :  { %18334 = vmatprep.subr.bf16.mxu1 %v18333_v25  ;;  %v10863_v25 = vld [vmem:[#allocation4 + $0x1e0] sm:$0xff] }
0x1060   :  { %v18375_v27 = vpack.c.bf16 %v10863_v25, %v10859_v29  ;;  %v10822_v29 = vld [vmem:[#allocation4 + $0x98] sm:$0xff] }
0x1061   :  { %v10826_v25 = vld [vmem:[#allocation4 + $0xb8] sm:$0xff] }
0x1062   :  { %18336 = vmatpush1.bf16.msra.mxu1 %v18335_v48  ;;  %v10867_v48 = vld [vmem:[#allocation4 + $0x200] sm:$0xff]  ;;  %v18417_v4 = vpack.c.bf16 %v10826_v25, %v10822_v29 }
0x1063   :  { %18338 = vmatprep.subr.bf16.mxu1 %v18337_v13  ;;  %v10871_v13 = vld [vmem:[#allocation4 + $0x220] sm:$0xff] }
0x1064   :  { %v18379_v53 = vpack.c.bf16 %v10871_v13, %v10867_v48  ;;  %v10830_v48 = vld [vmem:[#allocation4 + $0xd8] sm:$0xff] }
0x1065   :  { %v10834_v13 = vld [vmem:[#allocation4 + $0xf8] sm:$0xff] }
0x1066   :  { %18340 = vmatpush1.bf16.msra.mxu1 %v18339_v30  ;;  %v10875_v30 = vld [vmem:[#allocation4 + $0x240] sm:$0xff]  ;;  %v18421_v19 = vpack.c.bf16 %v10834_v13, %v10830_v48 }
0x1067   :  { %18342 = vmatprep.subr.bf16.mxu1 %v18341_v0  ;;  %v10879_v0 = vld [vmem:[#allocation4 + $0x260] sm:$0xff] }
0x1068   :  { %v18383_v47 = vpack.c.bf16 %v10879_v0, %v10875_v30  ;;  %v10838_v30 = vld [vmem:[#allocation4 + $0x118] sm:$0xff] }
0x1069   :  { %v10842_v0 = vld [vmem:[#allocation4 + $0x138] sm:$0xff] }
0x106a   :  { %18344 = vmatpush1.bf16.msra.mxu1 %v18343_v36  ;;  %v10883_v36 = vld [vmem:[#allocation4 + $0x280] sm:$0xff]  ;;  %v18425_v14 = vpack.c.bf16 %v10842_v0, %v10838_v30 }
0x106b   :  { %18346 = vmatprep.subr.bf16.mxu1 %v18345_v41  ;;  %v10887_v41 = vld [vmem:[#allocation4 + $0x2a0] sm:$0xff] }
0x106c   :  { %v18387_v62 = vpack.c.bf16 %v10887_v41, %v10883_v36  ;;  %v10846_v36 = vld [vmem:[#allocation4 + $0x158] sm:$0xff] }
0x106d   :  { %11202 = vmatmul.mubr.f32.vlgmr.msra.gmra.mrb[154].mxu1 %v11062_v59  ;;  %v18359_v59 = vpack.c.bf16 %v10831_v1, %v10827_v46  ;;  %v10916_v46 = vld [vmem:[#allocation4 + $0x388] sm:$0xff]  ;;  %v10850_v41 = vld [vmem:[#allocation4 + $0x178] sm:$0xff] }
0x106e   :  { %18348 = vmatpush1.bf16.msra.mxu1 %v18347_v7  ;;  %11272 = vmatprep.mubr.f32.mxu1 %v24150_v22  ;;  %v10891_v7 = vld [vmem:[#allocation4 + $0x2c0] sm:$0xff]  ;;  %v10920_v1 = vld [vmem:[#allocation4 + $0x3a8] sm:$0xff]  ;;  %v18429_v3 = vpack.c.bf16 %v10850_v41, %v10846_v36 }
0x106f   :  { %18350 = vmatprep.subr.bf16.mxu1 %v18349_v38  ;;  %v10895_v38 = vld [vmem:[#allocation4 + $0x2e0] sm:$0xff]  ;;  %v18401_v31 = vpack.c.bf16 %v10920_v1, %v10916_v46 }
0x1070   :  { %v18391_v2 = vpack.c.bf16 %v10895_v38, %v10891_v7  ;;  %v10854_v7 = vld [vmem:[#allocation4 + $0x198] sm:$0xff] }
0x1071   :  { %v10858_v38 = vld [vmem:[#allocation4 + $0x1b8] sm:$0xff] }
0x1072   :  { %18352 = vmatpush1.bf16.msra.mxu1 %v18351_v9  ;;  %v10899_v9 = vld [vmem:[#allocation4 + $0x300] sm:$0xff]  ;;  %v18433_v23 = vpack.c.bf16 %v10858_v38, %v10854_v7 }
0x1073   :  { %18354 = vmatprep.subr.bf16.mxu1 %v18353_v39  ;;  %v10903_v39 = vld [vmem:[#allocation4 + $0x320] sm:$0xff] }
0x1074   :  { %v18395_v52 = vpack.c.bf16 %v10903_v39, %v10899_v9  ;;  %v10862_v9 = vld [vmem:[#allocation4 + $0x1d8] sm:$0xff] }
0x1075   :  { %v10866_v39 = vld [vmem:[#allocation4 + $0x1f8] sm:$0xff] }
0x1076   :  { %18356 = vmatpush1.bf16.msra.mxu1 %v18355_v24  ;;  %v10907_v24 = vld [vmem:[#allocation4 + $0x340] sm:$0xff]  ;;  %v18437_v5 = vpack.c.bf16 %v10866_v39, %v10862_v9 }
0x1077   :  { %18358 = vmatprep.subr.bf16.mxu1 %v18357_v37  ;;  %v10911_v37 = vld [vmem:[#allocation4 + $0x360] sm:$0xff] }
0x1078   :  { %v18399_v10 = vpack.c.bf16 %v10911_v37, %v10907_v24  ;;  %v10870_v24 = vld [vmem:[#allocation4 + $0x218] sm:$0xff] }
0x1079   :  { %v10874_v37 = vld [vmem:[#allocation4 + $0x238] sm:$0xff] }
0x107a   :  { %18360 = vmatpush1.bf16.msra.mxu1 %v18359_v59  ;;  %v10915_v59 = vld [vmem:[#allocation4 + $0x380] sm:$0xff]  ;;  %v18441_v1 = vpack.c.bf16 %v10874_v37, %v10870_v24  ;;  %v11372_v24 = vld [vmem:[#allocation4 + $0x8a8] sm:$0xff] }
0x107b   :  { %18362 = vmatprep.subr.bf16.mxu1 %v18361_v28  ;;  %v10919_v28 = vld [vmem:[#allocation4 + $0x3a0] sm:$0xff] }
0x107c   :  { %v18403_v63 = vpack.c.bf16 %v10919_v28, %v10915_v59  ;;  %v10878_v59 = vld [vmem:[#allocation4 + $0x258] sm:$0xff] }
0x107d   :  { %v10882_v28 = vld [vmem:[#allocation4 + $0x278] sm:$0xff] }
0x107e   :  { %18364 = vmatpush1.bf16.msra.mxu1 %v18363_v42  ;;  %v10923_v42 = vld [vmem:[#allocation4 + $0x3c0] sm:$0xff]  ;;  %v18445_v61 = vpack.c.bf16 %v10882_v28, %v10878_v59  ;;  %v11380_v59 = vld [vmem:[#allocation4 + $0x8e8] sm:$0xff] }
0x107f   :  { %18366 = vmatprep.subr.bf16.mxu1 %v18365_v54  ;;  %v10927_v54 = vld [vmem:[#allocation4 + $0x3e0] sm:$0xff] }
0x1080   :  { %v18407_v26 = vpack.c.bf16 %v10927_v54, %v10923_v42  ;;  %v10886_v42 = vld [vmem:[#allocation4 + $0x298] sm:$0xff] }
0x1081   :  { %v10890_v54 = vld [vmem:[#allocation4 + $0x2b8] sm:$0xff] }
0x1082   :  { %18368 = vmatpush1.bf16.msra.mxu1 %v18367_v49  ;;  %v10805_v49 = vld [vmem:[#allocation4 + $0x10] sm:$0xff]  ;;  %v18449_v33 = vpack.c.bf16 %v10890_v54, %v10886_v42  ;;  %v11388_v42 = vld [vmem:[#allocation4 + $0x928] sm:$0xff] }
0x1083   :  { %18370 = vmatprep.subr.bf16.mxu1 %v18369_v57  ;;  %v10809_v57 = vld [vmem:[#allocation4 + $0x30] sm:$0xff] }
0x1084   :  { %v18411_v45 = vpack.c.bf16 %v10809_v57, %v10805_v49  ;;  %v10894_v49 = vld [vmem:[#allocation4 + $0x2d8] sm:$0xff] }
0x1085   :  { %v10898_v57 = vld [vmem:[#allocation4 + $0x2f8] sm:$0xff] }
0x1086   :  { %18372 = vmatpush1.bf16.msra.mxu1 %v18371_v15  ;;  %v10813_v15 = vld [vmem:[#allocation4 + $0x50] sm:$0xff]  ;;  %v18453_v21 = vpack.c.bf16 %v10898_v57, %v10894_v49  ;;  %v11396_v49 = vld [vmem:[#allocation4 + $0x968] sm:$0xff] }
0x1087   :  { %18374 = vmatprep.subr.bf16.mxu1 %v18373_v40  ;;  %v10817_v40 = vld [vmem:[#allocation4 + $0x70] sm:$0xff] }
0x1088   :  { %v18415_v35 = vpack.c.bf16 %v10817_v40, %v10813_v15  ;;  %v10902_v15 = vld [vmem:[#allocation4 + $0x318] sm:$0xff] }
0x1089   :  { %v10906_v40 = vld [vmem:[#allocation4 + $0x338] sm:$0xff] }
0x108a   :  { %18376 = vmatpush1.bf16.msra.mxu1 %v18375_v27  ;;  %v10821_v27 = vld [vmem:[#allocation4 + $0x90] sm:$0xff]  ;;  %v18457_v25 = vpack.c.bf16 %v10906_v40, %v10902_v15  ;;  %v11404_v15 = vld [vmem:[#allocation4 + $0x9a8] sm:$0xff] }
0x108b   :  { %18378 = vmatprep.subr.bf16.mxu1 %v18377_v55  ;;  %v10825_v55 = vld [vmem:[#allocation4 + $0xb0] sm:$0xff] }
0x108c   :  { %v18419_v51 = vpack.c.bf16 %v10825_v55, %v10821_v27  ;;  %v10910_v27 = vld [vmem:[#allocation4 + $0x358] sm:$0xff] }
0x108d   :  { %v10914_v55 = vld [vmem:[#allocation4 + $0x378] sm:$0xff] }
0x108e   :  { %18380 = vmatpush1.bf16.msra.mxu1 %v18379_v53  ;;  %v10829_v53 = vld [vmem:[#allocation4 + $0xd0] sm:$0xff]  ;;  %v18461_v13 = vpack.c.bf16 %v10914_v55, %v10910_v27  ;;  %v11412_v27 = vld [vmem:[#allocation4 + $0x9e8] sm:$0xff] }
0x108f   :  { %18382 = vmatprep.subr.bf16.mxu1 %v18381_v44  ;;  %v10833_v44 = vld [vmem:[#allocation4 + $0xf0] sm:$0xff] }
0x1090   :  { %v18423_v20 = vpack.c.bf16 %v10833_v44, %v10829_v53  ;;  %v10918_v53 = vld [vmem:[#allocation4 + $0x398] sm:$0xff] }
0x1091   :  { %v10922_v44 = vld [vmem:[#allocation4 + $0x3b8] sm:$0xff] }
0x1092   :  { %18384 = vmatpush1.bf16.msra.mxu1 %v18383_v47  ;;  %v10837_v47 = vld [vmem:[#allocation4 + $0x110] sm:$0xff]  ;;  %v18465_v0 = vpack.c.bf16 %v10922_v44, %v10918_v53  ;;  %v11420_v53 = vld [vmem:[#allocation4 + $0xa28] sm:$0xff] }
0x1093   :  { %18386 = vmatprep.subr.bf16.mxu1 %v18385_v17  ;;  %v10841_v17 = vld [vmem:[#allocation4 + $0x130] sm:$0xff] }
0x1094   :  { %v18427_v50 = vpack.c.bf16 %v10841_v17, %v10837_v47  ;;  %v10926_v47 = vld [vmem:[#allocation4 + $0x3d8] sm:$0xff] }
0x1095   :  { %v10930_v17 = vld [vmem:[#allocation4 + $0x3f8] sm:$0xff] }
0x1096   :  { %18388 = vmatpush1.bf16.msra.mxu1 %v18387_v62  ;;  %v10845_v62 = vld [vmem:[#allocation4 + $0x150] sm:$0xff]  ;;  %v18469_v41 = vpack.c.bf16 %v10930_v17, %v10926_v47  ;;  %v11428_v47 = vld [vmem:[#allocation4 + $0xa68] sm:$0xff] }
0x1097   :  { %18390 = vmatprep.subr.bf16.mxu1 %v18389_v58  ;;  %v10849_v58 = vld [vmem:[#allocation4 + $0x170] sm:$0xff] }
0x1098   :  { %v18431_v12 = vpack.c.bf16 %v10849_v58, %v10845_v62  ;;  %v11352_v62 = vld [vmem:[#allocation4 + $0x808] sm:$0xff] }
0x1099   :  { %v11356_v58 = vld [vmem:[#allocation4 + $0x828] sm:$0xff] }
0x109a   :  { %18392 = vmatpush1.bf16.msra.mxu1 %v18391_v2  ;;  %v10853_v2 = vld [vmem:[#allocation4 + $0x190] sm:$0xff]  ;;  %v18473_v38 = vpack.c.bf16 %v11356_v58, %v11352_v62  ;;  %v11436_v62 = vld [vmem:[#allocation4 + $0xaa8] sm:$0xff] }
0x109b   :  { %18394 = vmatprep.subr.bf16.mxu1 %v18393_v16  ;;  %v10857_v16 = vld [vmem:[#allocation4 + $0x1b0] sm:$0xff] }
0x109c   :  { %v18435_v56 = vpack.c.bf16 %v10857_v16, %v10853_v2  ;;  %v11360_v2 = vld [vmem:[#allocation4 + $0x848] sm:$0xff] }
0x109d   :  { %v11364_v16 = vld [vmem:[#allocation4 + $0x868] sm:$0xff] }
0x109e   :  { %18396 = vmatpush1.bf16.msra.mxu1 %v18395_v52  ;;  %v10861_v52 = vld [vmem:[#allocation4 + $0x1d0] sm:$0xff]  ;;  %v18477_v39 = vpack.c.bf16 %v11364_v16, %v11360_v2  ;;  %v11444_v2 = vld [vmem:[#allocation4 + $0xae8] sm:$0xff] }
0x109f   :  { %18398 = vmatprep.subr.bf16.mxu1 %v18397_v6  ;;  %v10865_v6 = vld [vmem:[#allocation4 + $0x1f0] sm:$0xff] }
0x10a0   :  { %v18439_v46 = vpack.c.bf16 %v10865_v6, %v10861_v52  ;;  %v11480_v52 = vrot.slane %v24150_v22, 2  ;;  %v11368_v6 = vld [vmem:[#allocation4 + $0x888] sm:$0xff] }
0x10a2   :  { %18400 = vmatpush1.bf16.msra.mxu1 %v18399_v10  ;;  %v10869_v10 = vld [vmem:[#allocation4 + $0x210] sm:$0xff] }
0x10a3   :  { %18402 = vmatprep.subr.bf16.mxu1 %v18401_v31  ;;  %v10873_v31 = vld [vmem:[#allocation4 + $0x230] sm:$0xff] }
0x10a4   :  { %v18443_v8 = vpack.c.bf16 %v10873_v31, %v10869_v10  ;;  %v11371_v10 = vld [vmem:[#allocation4 + $0x8a0] sm:$0xff]  ;;  %v11376_v31 = vld [vmem:[#allocation4 + $0x8c8] sm:$0xff] }
0x10a6   :  { %18404 = vmatpush1.bf16.msra.mxu1 %v18403_v63  ;;  %v10877_v63 = vld [vmem:[#allocation4 + $0x250] sm:$0xff] }
0x10a7   :  { %18406 = vmatprep.subr.bf16.mxu1 %v18405_v32  ;;  %v10881_v32 = vld [vmem:[#allocation4 + $0x270] sm:$0xff] }
0x10a8   :  { %v18447_v18 = vpack.c.bf16 %v10881_v32, %v10877_v63  ;;  %v11379_v63 = vld [vmem:[#allocation4 + $0x8e0] sm:$0xff]  ;;  %v11384_v32 = vld [vmem:[#allocation4 + $0x908] sm:$0xff] }
0x10aa   :  { %18408 = vmatpush1.bf16.msra.mxu1 %v18407_v26  ;;  %v10885_v26 = vld [vmem:[#allocation4 + $0x290] sm:$0xff] }
0x10ab   :  { %18410 = vmatprep.subr.bf16.mxu1 %v18409_v60  ;;  %v10889_v60 = vld [vmem:[#allocation4 + $0x2b0] sm:$0xff] }
0x10ac   :  { %v18451_v11 = vpack.c.bf16 %v10889_v60, %v10885_v26  ;;  %v11387_v26 = vld [vmem:[#allocation4 + $0x920] sm:$0xff]  ;;  %v11392_v60 = vld [vmem:[#allocation4 + $0x948] sm:$0xff] }
0x10ad   :  { %11273 = vmatmul.mubr.f32.vlgmr.msra.gmra.mrb[152].mxu1 %v24148_v43 }
0x10ae   :  { %18412 = vmatpush1.bf16.msra.mxu1 %v18411_v45  ;;  %11343 = vmatprep.mubr.f32.mxu1 %v24150_v22  ;;  %v10893_v45 = vld [vmem:[#allocation4 + $0x2d0] sm:$0xff] }
0x10af   :  { %18414 = vmatprep.subr.bf16.mxu1 %v18413_v34  ;;  %v10897_v34 = vld [vmem:[#allocation4 + $0x2f0] sm:$0xff] }
0x10b0   :  { %v18455_v29 = vpack.c.bf16 %v10897_v34, %v10893_v45  ;;  %v11395_v45 = vld [vmem:[#allocation4 + $0x960] sm:$0xff]  ;;  %v11400_v34 = vld [vmem:[#allocation4 + $0x988] sm:$0xff] }
0x10b2   :  { %18416 = vmatpush1.bf16.msra.mxu1 %v18415_v35  ;;  %v10901_v35 = vld [vmem:[#allocation4 + $0x310] sm:$0xff] }
0x10b3   :  { %18418 = vmatprep.subr.bf16.mxu1 %v18417_v4  ;;  %v10905_v4 = vld [vmem:[#allocation4 + $0x330] sm:$0xff] }
0x10b4   :  { %v18459_v48 = vpack.c.bf16 %v10905_v4, %v10901_v35  ;;  %v11403_v35 = vld [vmem:[#allocation4 + $0x9a0] sm:$0xff]  ;;  %v11408_v4 = vld [vmem:[#allocation4 + $0x9c8] sm:$0xff] }
0x10b6   :  { %18420 = vmatpush1.bf16.msra.mxu1 %v18419_v51  ;;  %v10909_v51 = vld [vmem:[#allocation4 + $0x350] sm:$0xff] }
0x10b7   :  { %18422 = vmatprep.subr.bf16.mxu1 %v18421_v19  ;;  %v10913_v19 = vld [vmem:[#allocation4 + $0x370] sm:$0xff] }
0x10b8   :  { %v18463_v30 = vpack.c.bf16 %v10913_v19, %v10909_v51  ;;  %v11411_v51 = vld [vmem:[#allocation4 + $0x9e0] sm:$0xff]  ;;  %v11416_v19 = vld [vmem:[#allocation4 + $0xa08] sm:$0xff] }
0x10ba   :  { %18424 = vmatpush1.bf16.msra.mxu1 %v18423_v20  ;;  %v10917_v20 = vld [vmem:[#allocation4 + $0x390] sm:$0xff] }
0x10bb   :  { %18426 = vmatprep.subr.bf16.mxu1 %v18425_v14  ;;  %v10921_v14 = vld [vmem:[#allocation4 + $0x3b0] sm:$0xff] }
0x10bc   :  { %v18467_v36 = vpack.c.bf16 %v10921_v14, %v10917_v20  ;;  %v11419_v20 = vld [vmem:[#allocation4 + $0xa20] sm:$0xff]  ;;  %v11424_v14 = vld [vmem:[#allocation4 + $0xa48] sm:$0xff] }
0x10be   :  { %18428 = vmatpush1.bf16.msra.mxu1 %v18427_v50  ;;  %v10925_v50 = vld [vmem:[#allocation4 + $0x3d0] sm:$0xff] }
0x10bf   :  { %18430 = vmatprep.subr.bf16.mxu1 %v18429_v3  ;;  %v10929_v3 = vld [vmem:[#allocation4 + $0x3f0] sm:$0xff] }
0x10c0   :  { %v18471_v7 = vpack.c.bf16 %v10929_v3, %v10925_v50  ;;  %v11427_v50 = vld [vmem:[#allocation4 + $0xa60] sm:$0xff]  ;;  %v11432_v3 = vld [vmem:[#allocation4 + $0xa88] sm:$0xff] }
0x10c2   :  { %18432 = vmatpush1.bf16.msra.mxu1 %v18431_v12  ;;  %v11351_v12 = vld [vmem:[#allocation4 + $0x800] sm:$0xff] }
0x10c3   :  { %18434 = vmatprep.subr.bf16.mxu1 %v18433_v23  ;;  %v11355_v23 = vld [vmem:[#allocation4 + $0x820] sm:$0xff] }
0x10c4   :  { %v18475_v9 = vpack.c.bf16 %v11355_v23, %v11351_v12  ;;  %v11435_v12 = vld [vmem:[#allocation4 + $0xaa0] sm:$0xff]  ;;  %v11440_v23 = vld [vmem:[#allocation4 + $0xac8] sm:$0xff] }
0x10c6   :  { %18436 = vmatpush1.bf16.msra.mxu1 %v18435_v56  ;;  %v11359_v56 = vld [vmem:[#allocation4 + $0x840] sm:$0xff] }
0x10c7   :  { %18438 = vmatprep.subr.bf16.mxu1 %v18437_v5  ;;  %v11363_v5 = vld [vmem:[#allocation4 + $0x860] sm:$0xff] }
0x10c8   :  { %v18479_v37 = vpack.c.bf16 %v11363_v5, %v11359_v56  ;;  %v11443_v56 = vld [vmem:[#allocation4 + $0xae0] sm:$0xff]  ;;  %v11448_v5 = vld [vmem:[#allocation4 + $0xb08] sm:$0xff] }
0x10ca   :  { %18440 = vmatpush1.bf16.msra.mxu1 %v18439_v46  ;;  %v18481_v46 = vpack.c.bf16 %v11372_v24, %v11368_v6  ;;  %v11452_v6 = vld [vmem:[#allocation4 + $0xb28] sm:$0xff] }
0x10cb   :  { %18442 = vmatprep.subr.bf16.mxu1 %v18441_v1  ;;  %v11367_v1 = vld [vmem:[#allocation4 + $0x880] sm:$0xff] }
0x10cc   :  { %v18483_v28 = vpack.c.bf16 %v11371_v10, %v11367_v1  ;;  %v11451_v1 = vld [vmem:[#allocation4 + $0xb20] sm:$0xff]  ;;  %v11456_v10 = vld [vmem:[#allocation4 + $0xb48] sm:$0xff] }
0x10ce   :  { %18444 = vmatpush1.bf16.msra.mxu1 %v18443_v8  ;;  %v18485_v8 = vpack.c.bf16 %v11380_v59, %v11376_v31  ;;  %v11460_v31 = vld [vmem:[#allocation4 + $0xb68] sm:$0xff] }
0x10cf   :  { %18446 = vmatprep.subr.bf16.mxu1 %v18445_v61  ;;  %v11375_v61 = vld [vmem:[#allocation4 + $0x8c0] sm:$0xff] }
0x10d0   :  { %v18487_v54 = vpack.c.bf16 %v11379_v63, %v11375_v61  ;;  %v11459_v61 = vld [vmem:[#allocation4 + $0xb60] sm:$0xff]  ;;  %v11464_v63 = vld [vmem:[#allocation4 + $0xb88] sm:$0xff] }
0x10d2   :  { %18448 = vmatpush1.bf16.msra.mxu1 %v18447_v18  ;;  %v18489_v18 = vpack.c.bf16 %v11388_v42, %v11384_v32  ;;  %v11468_v32 = vld [vmem:[#allocation4 + $0xba8] sm:$0xff] }
0x10d3   :  { %18450 = vmatprep.subr.bf16.mxu1 %v18449_v33  ;;  %v11383_v33 = vld [vmem:[#allocation4 + $0x900] sm:$0xff] }
0x10d4   :  { %v18491_v57 = vpack.c.bf16 %v11387_v26, %v11383_v33  ;;  %v11467_v33 = vld [vmem:[#allocation4 + $0xba0] sm:$0xff]  ;;  %v11472_v26 = vld [vmem:[#allocation4 + $0xbc8] sm:$0xff] }
0x10d6   :  { %18452 = vmatpush1.bf16.msra.mxu1 %v18451_v11  ;;  %v18493_v11 = vpack.c.bf16 %v11396_v49, %v11392_v60  ;;  %v11476_v60 = vld [vmem:[#allocation4 + $0xbe8] sm:$0xff] }
0x10d7   :  { %18454 = vmatprep.subr.bf16.mxu1 %v18453_v21  ;;  %v11391_v21 = vld [vmem:[#allocation4 + $0x940] sm:$0xff] }
0x10d8   :  { %v18495_v40 = vpack.c.bf16 %v11395_v45, %v11391_v21  ;;  %v11475_v21 = vld [vmem:[#allocation4 + $0xbe0] sm:$0xff]  ;;  %v11354_v45 = vld [vmem:[#allocation4 + $0x818] sm:$0xff] }
0x10da   :  { %18456 = vmatpush1.bf16.msra.mxu1 %v18455_v29  ;;  %v18497_v29 = vpack.c.bf16 %v11404_v15, %v11400_v34  ;;  %v11358_v34 = vld [vmem:[#allocation4 + $0x838] sm:$0xff] }
0x10db   :  { %18458 = vmatprep.subr.bf16.mxu1 %v18457_v25  ;;  %v11399_v25 = vld [vmem:[#allocation4 + $0x980] sm:$0xff] }
0x10dc   :  { %v18499_v55 = vpack.c.bf16 %v11403_v35, %v11399_v25  ;;  %v11357_v25 = vld [vmem:[#allocation4 + $0x830] sm:$0xff]  ;;  %v11362_v35 = vld [vmem:[#allocation4 + $0x858] sm:$0xff] }
0x10de   :  { %18460 = vmatpush1.bf16.msra.mxu1 %v18459_v48  ;;  %v18501_v48 = vpack.c.bf16 %v11412_v27, %v11408_v4  ;;  %v11366_v4 = vld [vmem:[#allocation4 + $0x878] sm:$0xff] }
0x10df   :  { %18462 = vmatprep.subr.bf16.mxu1 %v18461_v13  ;;  %v11407_v13 = vld [vmem:[#allocation4 + $0x9c0] sm:$0xff] }
0x10e0   :  { %v18503_v44 = vpack.c.bf16 %v11411_v51, %v11407_v13  ;;  %v11361_v13 = vld [vmem:[#allocation4 + $0x850] sm:$0xff] }
0x10e1   :  { %v11365_v51 = vld [vmem:[#allocation4 + $0x870] sm:$0xff] }
0x10e2   :  { %18464 = vmatpush1.bf16.msra.mxu1 %v18463_v30  ;;  %v18505_v30 = vpack.c.bf16 %v11420_v53, %v11416_v19  ;;  %v11370_v19 = vld [vmem:[#allocation4 + $0x898] sm:$0xff] }
0x10e3   :  { %18466 = vmatprep.subr.bf16.mxu1 %v18465_v0  ;;  %v11415_v0 = vld [vmem:[#allocation4 + $0xa00] sm:$0xff]  ;;  %v11374_v53 = vld [vmem:[#allocation4 + $0x8b8] sm:$0xff] }
0x10e4   :  { %v18507_v17 = vpack.c.bf16 %v11419_v20, %v11415_v0  ;;  %v11369_v0 = vld [vmem:[#allocation4 + $0x890] sm:$0xff] }
0x10e5   :  { %v11373_v20 = vld [vmem:[#allocation4 + $0x8b0] sm:$0xff] }
0x10e6   :  { %18468 = vmatpush1.bf16.msra.mxu1 %v18467_v36  ;;  %v18509_v36 = vpack.c.bf16 %v11428_v47, %v11424_v14  ;;  %v11378_v14 = vld [vmem:[#allocation4 + $0x8d8] sm:$0xff] }
0x10e7   :  { %18470 = vmatprep.subr.bf16.mxu1 %v18469_v41  ;;  %v11423_v41 = vld [vmem:[#allocation4 + $0xa40] sm:$0xff]  ;;  %v11382_v47 = vld [vmem:[#allocation4 + $0x8f8] sm:$0xff] }
0x10e8   :  { %v18511_v58 = vpack.c.bf16 %v11427_v50, %v11423_v41  ;;  %v11377_v41 = vld [vmem:[#allocation4 + $0x8d0] sm:$0xff] }
0x10e9   :  { %v11381_v50 = vld [vmem:[#allocation4 + $0x8f0] sm:$0xff] }
0x10ea   :  { %18472 = vmatpush1.bf16.msra.mxu1 %v18471_v7  ;;  %v18513_v7 = vpack.c.bf16 %v11436_v62, %v11432_v3  ;;  %v11386_v3 = vld [vmem:[#allocation4 + $0x918] sm:$0xff] }
0x10eb   :  { %18474 = vmatprep.subr.bf16.mxu1 %v18473_v38  ;;  %v11431_v38 = vld [vmem:[#allocation4 + $0xa80] sm:$0xff]  ;;  %v11390_v62 = vld [vmem:[#allocation4 + $0x938] sm:$0xff] }
0x10ec   :  { %v18515_v16 = vpack.c.bf16 %v11435_v12, %v11431_v38  ;;  %v11389_v38 = vld [vmem:[#allocation4 + $0x930] sm:$0xff]  ;;  %v11394_v12 = vld [vmem:[#allocation4 + $0x958] sm:$0xff] }
0x10ed   :  { %11344 = vmatmul.mubr.f32.vlgmr.msra.gmra.mrb[154].mxu1 %v24148_v43 }
0x10ee   :  { %18476 = vmatpush1.bf16.msra.mxu1 %v18475_v9  ;;  %11547 = vmatprep.mubr.f32.mxu1 %v11480_v52  ;;  %v18517_v9 = vpack.c.bf16 %v11444_v2, %v11440_v23  ;;  %v11398_v23 = vld [vmem:[#allocation4 + $0x978] sm:$0xff] }
0x10ef   :  { %18478 = vmatprep.subr.bf16.mxu1 %v18477_v39  ;;  %v11439_v39 = vld [vmem:[#allocation4 + $0xac0] sm:$0xff] }
0x10f0   :  { %v18519_v24 = vpack.c.bf16 %v11443_v56, %v11439_v39  ;;  %v11397_v39 = vld [vmem:[#allocation4 + $0x970] sm:$0xff]  ;;  %v11402_v56 = vld [vmem:[#allocation4 + $0x998] sm:$0xff] }
0x10f2   :  { %18480 = vmatpush1.bf16.msra.mxu1 %v18479_v37  ;;  %v18521_v37 = vpack.c.bf16 %v11452_v6, %v11448_v5  ;;  %v11406_v5 = vld [vmem:[#allocation4 + $0x9b8] sm:$0xff] }
0x10f3   :  { %18482 = vmatprep.subr.bf16.mxu1 %v18481_v46  ;;  %v11447_v46 = vld [vmem:[#allocation4 + $0xb00] sm:$0xff] }
0x10f4   :  { %v18523_v59 = vpack.c.bf16 %v11451_v1, %v11447_v46  ;;  %v11405_v46 = vld [vmem:[#allocation4 + $0x9b0] sm:$0xff]  ;;  %v11410_v1 = vld [vmem:[#allocation4 + $0x9d8] sm:$0xff] }
0x10f6   :  { %18484 = vmatpush1.bf16.msra.mxu1 %v18483_v28  ;;  %v18525_v28 = vpack.c.bf16 %v11460_v31, %v11456_v10  ;;  %v11414_v10 = vld [vmem:[#allocation4 + $0x9f8] sm:$0xff] }
0x10f7   :  { %18486 = vmatprep.subr.bf16.mxu1 %v18485_v8  ;;  %v11455_v8 = vld [vmem:[#allocation4 + $0xb40] sm:$0xff] }
0x10f8   :  { %v18527_v42 = vpack.c.bf16 %v11459_v61, %v11455_v8  ;;  %v11413_v8 = vld [vmem:[#allocation4 + $0x9f0] sm:$0xff]  ;;  %v11418_v61 = vld [vmem:[#allocation4 + $0xa18] sm:$0xff] }
0x10fa   :  { %18488 = vmatpush1.bf16.msra.mxu1 %v18487_v54  ;;  %v18529_v54 = vpack.c.bf16 %v11468_v32, %v11464_v63  ;;  %v11422_v63 = vld [vmem:[#allocation4 + $0xa38] sm:$0xff] }
0x10fb   :  { %18490 = vmatprep.subr.bf16.mxu1 %v18489_v18  ;;  %v11463_v18 = vld [vmem:[#allocation4 + $0xb80] sm:$0xff] }
0x10fc   :  { %v18531_v49 = vpack.c.bf16 %v11467_v33, %v11463_v18  ;;  %v11421_v18 = vld [vmem:[#allocation4 + $0xa30] sm:$0xff]  ;;  %v11426_v33 = vld [vmem:[#allocation4 + $0xa58] sm:$0xff] }
0x10fe   :  { %18492 = vmatpush1.bf16.msra.mxu1 %v18491_v57  ;;  %v18533_v57 = vpack.c.bf16 %v11476_v60, %v11472_v26  ;;  %v11430_v26 = vld [vmem:[#allocation4 + $0xa78] sm:$0xff] }
0x10ff   :  { %18494 = vmatprep.subr.bf16.mxu1 %v18493_v11  ;;  %v11471_v11 = vld [vmem:[#allocation4 + $0xbc0] sm:$0xff] }
0x1100   :  { %v18535_v15 = vpack.c.bf16 %v11475_v21, %v11471_v11  ;;  %v11429_v11 = vld [vmem:[#allocation4 + $0xa70] sm:$0xff]  ;;  %v11434_v21 = vld [vmem:[#allocation4 + $0xa98] sm:$0xff] }
0x1102   :  { %18496 = vmatpush1.bf16.msra.mxu1 %v18495_v40  ;;  %v18537_v40 = vpack.c.bf16 %v11358_v34, %v11354_v45  ;;  %v11438_v45 = vld [vmem:[#allocation4 + $0xab8] sm:$0xff] }
0x1103   :  { %18498 = vmatprep.subr.bf16.mxu1 %v18497_v29  ;;  %v11353_v29 = vld [vmem:[#allocation4 + $0x810] sm:$0xff] }
0x1104   :  { %v18539_v27 = vpack.c.bf16 %v11357_v25, %v11353_v29  ;;  %v11437_v29 = vld [vmem:[#allocation4 + $0xab0] sm:$0xff]  ;;  %v11442_v25 = vld [vmem:[#allocation4 + $0xad8] sm:$0xff] }
0x1106   :  { %18500 = vmatpush1.bf16.msra.mxu1 %v18499_v55  ;;  %v11479_v55 = vrot.slane %v24148_v43, 2 }
0x1107   :  { %18502 = vmatprep.subr.bf16.mxu1 %v18501_v48  ;;  %v18541_v48 = vpack.c.bf16 %v11366_v4, %v11362_v35  ;;  %v11446_v35 = vld [vmem:[#allocation4 + $0xaf8] sm:$0xff] }
0x110a   :  { %18504 = vmatpush1.bf16.msra.mxu1 %v18503_v44  ;;  %v18543_v44 = vpack.c.bf16 %v11365_v51, %v11361_v13  ;;  %v11445_v13 = vld [vmem:[#allocation4 + $0xaf0] sm:$0xff]  ;;  %v11450_v51 = vld [vmem:[#allocation4 + $0xb18] sm:$0xff] }
0x110b   :  { %18506 = vmatprep.subr.bf16.mxu1 %v18505_v30  ;;  %v18545_v30 = vpack.c.bf16 %v11374_v53, %v11370_v19  ;;  %v11454_v19 = vld [vmem:[#allocation4 + $0xb38] sm:$0xff] }
0x110e   :  { %18508 = vmatpush1.bf16.msra.mxu1 %v18507_v17  ;;  %v18547_v17 = vpack.c.bf16 %v11373_v20, %v11369_v0  ;;  %v11453_v0 = vld [vmem:[#allocation4 + $0xb30] sm:$0xff]  ;;  %v11458_v20 = vld [vmem:[#allocation4 + $0xb58] sm:$0xff] }
0x110f   :  { %18510 = vmatprep.subr.bf16.mxu1 %v18509_v36  ;;  %v18549_v36 = vpack.c.bf16 %v11382_v47, %v11378_v14  ;;  %v11462_v14 = vld [vmem:[#allocation4 + $0xb78] sm:$0xff] }
0x1112   :  { %18512 = vmatpush1.bf16.msra.mxu1 %v18511_v58  ;;  %v18551_v58 = vpack.c.bf16 %v11381_v50, %v11377_v41  ;;  %v11461_v41 = vld [vmem:[#allocation4 + $0xb70] sm:$0xff]  ;;  %v11466_v50 = vld [vmem:[#allocation4 + $0xb98] sm:$0xff] }
0x1113   :  { %18514 = vmatprep.subr.bf16.mxu1 %v18513_v7  ;;  %v18553_v7 = vpack.c.bf16 %v11390_v62, %v11386_v3  ;;  %v11470_v3 = vld [vmem:[#allocation4 + $0xbb8] sm:$0xff] }
0x1116   :  { %18516 = vmatpush1.bf16.msra.mxu1 %v18515_v16  ;;  %v18557_v16 = vpack.c.bf16 %v11398_v23, %v11394_v12  ;;  %v11478_v12 = vld [vmem:[#allocation4 + $0xbf8] sm:$0xff] }
0x1117   :  { %18518 = vmatprep.subr.bf16.mxu1 %v18517_v9  ;;  %v11393_v9 = vld [vmem:[#allocation4 + $0x950] sm:$0xff] }
0x1118   :  { %v18559_v6 = vpack.c.bf16 %v11397_v39, %v11393_v9  ;;  %v11477_v9 = vld [vmem:[#allocation4 + $0xbf0] sm:$0xff]  ;;  %v11631_v39 = vld [vmem:[#allocation4 + $0xc08] sm:$0xff] }
0x111a   :  { %18520 = vmatpush1.bf16.msra.mxu1 %v18519_v24  ;;  %v18561_v24 = vpack.c.bf16 %v11406_v5, %v11402_v56  ;;  %v11635_v56 = vld [vmem:[#allocation4 + $0xc28] sm:$0xff] }
0x111b   :  { %18522 = vmatprep.subr.bf16.mxu1 %v18521_v37  ;;  %v11401_v37 = vld [vmem:[#allocation4 + $0x990] sm:$0xff] }
0x111c   :  { %v18563_v31 = vpack.c.bf16 %v11405_v46, %v11401_v37  ;;  %v11634_v37 = vld [vmem:[#allocation4 + $0xc20] sm:$0xff]  ;;  %v11639_v46 = vld [vmem:[#allocation4 + $0xc48] sm:$0xff] }
0x111e   :  { %18524 = vmatpush1.bf16.msra.mxu1 %v18523_v59  ;;  %v18565_v59 = vpack.c.bf16 %v11414_v10, %v11410_v1  ;;  %v11643_v1 = vld [vmem:[#allocation4 + $0xc68] sm:$0xff] }
0x111f   :  { %18526 = vmatprep.subr.bf16.mxu1 %v18525_v28  ;;  %v11409_v28 = vld [vmem:[#allocation4 + $0x9d0] sm:$0xff] }
0x1120   :  { %v18567_v32 = vpack.c.bf16 %v11413_v8, %v11409_v28  ;;  %v11642_v28 = vld [vmem:[#allocation4 + $0xc60] sm:$0xff]  ;;  %v11759_v8 = vrot.slane %v24150_v22, 3 }
0x1122   :  { %18528 = vmatpush1.bf16.msra.mxu1 %v18527_v42  ;;  %v18569_v42 = vpack.c.bf16 %v11422_v63, %v11418_v61  ;;  %v11647_v61 = vld [vmem:[#allocation4 + $0xc88] sm:$0xff] }
0x1123   :  { %18530 = vmatprep.subr.bf16.mxu1 %v18529_v54  ;;  %v11417_v54 = vld [vmem:[#allocation4 + $0xa10] sm:$0xff]  ;;  %v11651_v63 = vld [vmem:[#allocation4 + $0xca8] sm:$0xff] }
0x1124   :  { %v18571_v60 = vpack.c.bf16 %v11421_v18, %v11417_v54 }
0x1126   :  { %18532 = vmatpush1.bf16.msra.mxu1 %v18531_v49  ;;  %v18573_v49 = vpack.c.bf16 %v11430_v26, %v11426_v33  ;;  %v11934_v33 = vld [vmem:[#allocation6] sm:$0xff] }
0x1127   :  { %18534 = vmatprep.subr.bf16.mxu1 %v18533_v57  ;;  %v11425_v57 = vld [vmem:[#allocation4 + $0xa50] sm:$0xff]  ;;  %v11938_v26 = vld [vmem:[#allocation6 + $0x20] sm:$0xff] }
0x1128   :  { %v18575_v34 = vpack.c.bf16 %v11429_v11, %v11425_v57  ;;  %v11650_v57 = vld [vmem:[#allocation4 + $0xca0] sm:$0xff]  ;;  %v18731_v11 = vpack.c.bf16 %v11938_v26, %v11934_v33 }
0x112a   :  { %18536 = vmatpush1.bf16.msra.mxu1 %v18535_v15  ;;  %v18577_v15 = vpack.c.bf16 %v11438_v45, %v11434_v21  ;;  %v11943_v21 = vld [vmem:[#allocation6 + $0x48] sm:$0xff] }
0x112b   :  { %18538 = vmatprep.subr.bf16.mxu1 %v18537_v40  ;;  %v11433_v40 = vld [vmem:[#allocation4 + $0xa90] sm:$0xff]  ;;  %v11655_v45 = vld [vmem:[#allocation4 + $0xcc8] sm:$0xff] }
0x112c   :  { %v18579_v4 = vpack.c.bf16 %v11437_v29, %v11433_v40  ;;  %v11942_v40 = vld [vmem:[#allocation6 + $0x40] sm:$0xff] }
0x112d   :  { %11548 = vmatmul.mubr.f32.vlgmr.msra.gmra.mrb[152].mxu1 %v11479_v55  ;;  %v11946_v29 = vld [vmem:[#allocation6 + $0x60] sm:$0xff] }
0x112e   :  { %18540 = vmatpush1.bf16.msra.mxu1 %v18539_v27  ;;  %11618 = vmatprep.mubr.f32.mxu1 %v11480_v52  ;;  %v11385_v52 = vld [vmem:[#allocation4 + $0x910] sm:$0xff]  ;;  %v18581_v27 = vpack.c.bf16 %v11446_v35, %v11442_v25  ;;  %v18735_v35 = vpack.c.bf16 %v11946_v29, %v11942_v40  ;;  %v11699_v40 = vld [vmem:[#allocation4 + $0xe28] sm:$0xff] }
0x112f   :  { %18542 = vmatprep.subr.bf16.mxu1 %v18541_v48  ;;  %v18555_v2 = vpack.c.bf16 %v11389_v38, %v11385_v52  ;;  %v11441_v48 = vld [vmem:[#allocation4 + $0xad0] sm:$0xff]  ;;  %v11474_v38 = vld [vmem:[#allocation4 + $0xbd8] sm:$0xff] }
0x1130   :  { %v18583_v53 = vpack.c.bf16 %v11445_v13, %v11441_v48  ;;  %v11469_v52 = vld [vmem:[#allocation4 + $0xbb0] sm:$0xff]  ;;  %v11654_v13 = vld [vmem:[#allocation4 + $0xcc0] sm:$0xff] }
0x1132   :  { %18544 = vmatpush1.bf16.msra.mxu1 %v18543_v44  ;;  %v18585_v44 = vpack.c.bf16 %v11454_v19, %v11450_v51  ;;  %v11658_v51 = vld [vmem:[#allocation4 + $0xce0] sm:$0xff] }
0x1133   :  { %18546 = vmatprep.subr.bf16.mxu1 %v18545_v30  ;;  %v11449_v30 = vld [vmem:[#allocation4 + $0xb10] sm:$0xff] }
0x1134   :  { %v18587_v47 = vpack.c.bf16 %v11453_v0, %v11449_v30  ;;  %v11667_v30 = vld [vmem:[#allocation4 + $0xd28] sm:$0xff]  ;;  %v11954_v0 = vld [vmem:[#allocation6 + $0xa0] sm:$0xff] }
0x1136   :  { %18548 = vmatpush1.bf16.msra.mxu1 %v18547_v17  ;;  %v18589_v17 = vpack.c.bf16 %v11462_v14, %v11458_v20  ;;  %v18615_v14 = vpack.c.bf16 %v11658_v51, %v11654_v13  ;;  %v11698_v13 = vld [vmem:[#allocation4 + $0xe20] sm:$0xff] }
0x1137   :  { %18550 = vmatprep.subr.bf16.mxu1 %v18549_v36  ;;  %v11457_v36 = vld [vmem:[#allocation4 + $0xb50] sm:$0xff] }
0x1138   :  { %v18591_v62 = vpack.c.bf16 %v11461_v41, %v11457_v36  ;;  %v11963_v36 = vld [vmem:[#allocation6 + $0xe8] sm:$0xff] }
0x113a   :  { %18552 = vmatpush1.bf16.msra.mxu1 %v18551_v58  ;;  %v18593_v58 = vpack.c.bf16 %v11470_v3, %v11466_v50  ;;  %v11666_v50 = vld [vmem:[#allocation4 + $0xd20] sm:$0xff] }
0x113b   :  { %18554 = vmatprep.subr.bf16.mxu1 %v18553_v7  ;;  %v11465_v7 = vld [vmem:[#allocation4 + $0xb90] sm:$0xff] }
0x113c   :  { %v18595_v23 = vpack.c.bf16 %v11469_v52, %v11465_v7  ;;  %v11671_v7 = vld [vmem:[#allocation4 + $0xd48] sm:$0xff] }
0x113d   :  { %v11675_v52 = vld [vmem:[#allocation4 + $0xd68] sm:$0xff] }
0x113e   :  { %18556 = vmatpush1.bf16.msra.mxu1 %v18555_v2  ;;  %v18597_v2 = vpack.c.bf16 %v11478_v12, %v11474_v38 }
0x113f   :  { %18558 = vmatprep.subr.bf16.mxu1 %v18557_v16  ;;  %v11473_v16 = vld [vmem:[#allocation4 + $0xbd0] sm:$0xff] }
0x1140   :  { %v18599_v5 = vpack.c.bf16 %v11477_v9, %v11473_v16  ;;  %v11971_v16 = vld [vmem:[#allocation6 + $0x128] sm:$0xff]  ;;  %v18621_v9 = vpack.c.bf16 %v11675_v52, %v11671_v7 }
0x1141   :  { %v11715_v7 = vld [vmem:[#allocation4 + $0xea8] sm:$0xff] }
0x1142   :  { %18560 = vmatpush1.bf16.msra.mxu1 %v18559_v6  ;;  %v18601_v6 = vpack.c.bf16 %v11635_v56, %v11631_v39  ;;  %v11674_v39 = vld [vmem:[#allocation4 + $0xd60] sm:$0xff] }
0x1143   :  { %18562 = vmatprep.subr.bf16.mxu1 %v18561_v24  ;;  %v11630_v24 = vld [vmem:[#allocation4 + $0xc00] sm:$0xff] }
0x1144   :  { %v18603_v10 = vpack.c.bf16 %v11634_v37, %v11630_v24  ;;  %v11679_v24 = vld [vmem:[#allocation4 + $0xd88] sm:$0xff] }
0x1145   :  { %v11683_v37 = vld [vmem:[#allocation4 + $0xda8] sm:$0xff] }
0x1146   :  { %18564 = vmatpush1.bf16.msra.mxu1 %v18563_v31  ;;  %v18605_v31 = vpack.c.bf16 %v11643_v1, %v11639_v46 }
0x1147   :  { %18566 = vmatprep.subr.bf16.mxu1 %v18565_v59  ;;  %v11638_v59 = vld [vmem:[#allocation4 + $0xc40] sm:$0xff] }
0x1148   :  { %v18607_v54 = vpack.c.bf16 %v11642_v28, %v11638_v59  ;;  %v11979_v59 = vld [vmem:[#allocation6 + $0x168] sm:$0xff]  ;;  %v18625_v28 = vpack.c.bf16 %v11683_v37, %v11679_v24 }
0x1149   :  { %v11723_v24 = vld [vmem:[#allocation4 + $0xee8] sm:$0xff] }
0x114a   :  { %18568 = vmatpush1.bf16.msra.mxu1 %v18567_v32  ;;  %v11935_v32 = vld [vmem:[#allocation6 + $0x8] sm:$0xff] }
0x114b   :  { %18570 = vmatprep.subr.bf16.mxu1 %v18569_v42  ;;  %v11939_v42 = vld [vmem:[#allocation6 + $0x28] sm:$0xff] }
0x114c   :  { %v18729_v18 = vpack.c.bf16 %v11939_v42, %v11935_v32  ;;  %v11974_v32 = vld [vmem:[#allocation6 + $0x140] sm:$0xff] }
0x114d   :  { %v11978_v42 = vld [vmem:[#allocation6 + $0x160] sm:$0xff] }
0x114e   :  { %18572 = vmatpush1.bf16.msra.mxu1 %v18571_v60  ;;  %v18609_v60 = vpack.c.bf16 %v11651_v63, %v11647_v61  ;;  %18730 = vmatprep.subr.bf16.mxu0 %v18729_v18  ;;  %v11682_v61 = vld [vmem:[#allocation4 + $0xda0] sm:$0xff]  ;;  %v11691_v18 = vld [vmem:[#allocation4 + $0xde8] sm:$0xff]  ;;  %v18751_v33 = vpack.c.bf16 %v11978_v42, %v11974_v32 }
0x114f   :  { %18574 = vmatprep.subr.bf16.mxu1 %v18573_v49  ;;  %v11646_v49 = vld [vmem:[#allocation4 + $0xc80] sm:$0xff]  ;;  %18732 = vmatpush1.bf16.msra.mxu0 %v18731_v11  ;;  %v11727_v42 = vld [vmem:[#allocation4 + $0xf08] sm:$0xff] }
0x1150   :  { %v18611_v25 = vpack.c.bf16 %v11650_v57, %v11646_v49  ;;  %v11983_v49 = vld [vmem:[#allocation6 + $0x188] sm:$0xff]  ;;  %v12018_v32 = vld [vmem:[#allocation6 + $0x2a0] sm:$0xff] }
0x1151   :  { %v11987_v57 = vld [vmem:[#allocation6 + $0x1a8] sm:$0xff] }
0x1152   :  { %18576 = vmatpush1.bf16.msra.mxu1 %v18575_v34  ;;  %v11659_v34 = vld [vmem:[#allocation4 + $0xce8] sm:$0xff] }
0x1153   :  { %18578 = vmatprep.subr.bf16.mxu1 %v18577_v15  ;;  %v18613_v48 = vpack.c.bf16 %v11659_v34, %v11655_v45  ;;  %v18753_v45 = vpack.c.bf16 %v11987_v57, %v11983_v49  ;;  %v11982_v34 = vld [vmem:[#allocation6 + $0x180] sm:$0xff]  ;;  %v12027_v49 = vld [vmem:[#allocation6 + $0x2e8] sm:$0xff] }
0x1156   :  { %18580 = vmatpush1.bf16.msra.mxu1 %v18579_v4  ;;  %v11951_v4 = vld [vmem:[#allocation6 + $0x88] sm:$0xff] }
0x1157   :  { %18582 = vmatprep.subr.bf16.mxu1 %v18581_v27  ;;  %v11955_v27 = vld [vmem:[#allocation6 + $0xa8] sm:$0xff] }
0x1158   :  { %v18737_v19 = vpack.c.bf16 %v11955_v27, %v11951_v4  ;;  %v11991_v4 = vld [vmem:[#allocation6 + $0x1c8] sm:$0xff] }
0x1159   :  { %v11995_v27 = vld [vmem:[#allocation6 + $0x1e8] sm:$0xff] }
0x115a   :  { %18584 = vmatpush1.bf16.msra.mxu1 %v18583_v53  ;;  %v11950_v53 = vld [vmem:[#allocation6 + $0x80] sm:$0xff]  ;;  %v18757_v51 = vpack.c.bf16 %v11995_v27, %v11991_v4  ;;  %v12035_v4 = vld [vmem:[#allocation6 + $0x328] sm:$0xff] }
0x115b   :  { %18586 = vmatprep.subr.bf16.mxu1 %v18585_v44  ;;  %v11663_v44 = vld [vmem:[#allocation4 + $0xd08] sm:$0xff]  ;;  %v18739_v20 = vpack.c.bf16 %v11954_v0, %v11950_v53  ;;  %v11994_v53 = vld [vmem:[#allocation6 + $0x1e0] sm:$0xff] }
0x115c   :  { %v18617_v41 = vpack.c.bf16 %v11667_v30, %v11663_v44  ;;  %v11703_v44 = vld [vmem:[#allocation4 + $0xe48] sm:$0xff] }
0x115d   :  { %v11707_v30 = vld [vmem:[#allocation4 + $0xe68] sm:$0xff] }
0x115e   :  { %18588 = vmatpush1.bf16.msra.mxu1 %v18587_v47  ;;  %v11662_v47 = vld [vmem:[#allocation4 + $0xd00] sm:$0xff] }
0x115f   :  { %18590 = vmatprep.subr.bf16.mxu1 %v18589_v17  ;;  %v11959_v17 = vld [vmem:[#allocation6 + $0xc8] sm:$0xff]  ;;  %v18619_v12 = vpack.c.bf16 %v11666_v50, %v11662_v47 }
0x1160   :  { %v18741_v3 = vpack.c.bf16 %v11963_v36, %v11959_v17  ;;  %v11999_v47 = vld [vmem:[#allocation6 + $0x208] sm:$0xff]  ;;  %v18637_v36 = vpack.c.bf16 %v11707_v30, %v11703_v44 }
0x1161   :  { %v12003_v17 = vld [vmem:[#allocation6 + $0x228] sm:$0xff] }
0x1162   :  { %18592 = vmatpush1.bf16.msra.mxu1 %v18591_v62  ;;  %v11958_v62 = vld [vmem:[#allocation6 + $0xc0] sm:$0xff]  ;;  %v18761_v50 = vpack.c.bf16 %v12003_v17, %v11999_v47  ;;  %v11747_v44 = vld [vmem:[#allocation4 + $0xfa8] sm:$0xff] }
0x1163   :  { %18594 = vmatprep.subr.bf16.mxu1 %v18593_v58  ;;  %v11962_v58 = vld [vmem:[#allocation6 + $0xe0] sm:$0xff]  ;;  %v12043_v47 = vld [vmem:[#allocation6 + $0x368] sm:$0xff] }
0x1164   :  { %v18743_v38 = vpack.c.bf16 %v11962_v58, %v11958_v62  ;;  %v12002_v62 = vld [vmem:[#allocation6 + $0x220] sm:$0xff]  ;;  %v11711_v58 = vld [vmem:[#allocation4 + $0xe88] sm:$0xff] }
0x1166   :  { %18596 = vmatpush1.bf16.msra.mxu1 %v18595_v23  ;;  %v11670_v23 = vld [vmem:[#allocation4 + $0xd40] sm:$0xff] }
0x1167   :  { %18598 = vmatprep.subr.bf16.mxu1 %v18597_v2  ;;  %v11967_v2 = vld [vmem:[#allocation6 + $0x108] sm:$0xff]  ;;  %v18623_v1 = vpack.c.bf16 %v11674_v39, %v11670_v23 }
0x1168   :  { %v18745_v56 = vpack.c.bf16 %v11971_v16, %v11967_v2  ;;  %v12007_v23 = vld [vmem:[#allocation6 + $0x248] sm:$0xff]  ;;  %v18641_v16 = vpack.c.bf16 %v11715_v7, %v11711_v58 }
0x1169   :  { %v12011_v2 = vld [vmem:[#allocation6 + $0x268] sm:$0xff] }
0x116a   :  { %18600 = vmatpush1.bf16.msra.mxu1 %v18599_v5  ;;  %v11966_v5 = vld [vmem:[#allocation6 + $0x100] sm:$0xff]  ;;  %v18765_v39 = vpack.c.bf16 %v12011_v2, %v12007_v23  ;;  %v11755_v58 = vld [vmem:[#allocation4 + $0xfe8] sm:$0xff] }
0x116b   :  { %18602 = vmatprep.subr.bf16.mxu1 %v18601_v6  ;;  %v11970_v6 = vld [vmem:[#allocation6 + $0x120] sm:$0xff]  ;;  %v12051_v23 = vld [vmem:[#allocation6 + $0x3a8] sm:$0xff] }
0x116c   :  { %v18747_v46 = vpack.c.bf16 %v11970_v6, %v11966_v5  ;;  %v12010_v5 = vld [vmem:[#allocation6 + $0x260] sm:$0xff]  ;;  %v11719_v6 = vld [vmem:[#allocation4 + $0xec8] sm:$0xff] }
0x116d   :  { %11619 = vmatmul.mubr.f32.vlgmr.msra.gmra.mrb[154].mxu1 %v11479_v55  ;;  %v11947_v55 = vld [vmem:[#allocation6 + $0x68] sm:$0xff] }
0x116e   :  { %18604 = vmatpush1.bf16.msra.mxu1 %v18603_v10  ;;  %11826 = vmatprep.mubr.f32.mxu1 %v11759_v8  ;;  %v18733_v15 = vpack.c.bf16 %v11947_v55, %v11943_v21  ;;  %v11678_v10 = vld [vmem:[#allocation4 + $0xd80] sm:$0xff] }
0x116f   :  { %18606 = vmatprep.subr.bf16.mxu1 %v18605_v31  ;;  %v11975_v31 = vld [vmem:[#allocation6 + $0x148] sm:$0xff]  ;;  %v18627_v26 = vpack.c.bf16 %v11682_v61, %v11678_v10  ;;  %v11690_v21 = vld [vmem:[#allocation4 + $0xde0] sm:$0xff] }
0x1170   :  { %18734 = vmatprep.subr.bf16.mxu0 %v18733_v15  ;;  %v18749_v63 = vpack.c.bf16 %v11979_v59, %v11975_v31  ;;  %v11986_v55 = vld [vmem:[#allocation6 + $0x1a0] sm:$0xff]  ;;  %v11695_v15 = vld [vmem:[#allocation4 + $0xe08] sm:$0xff]  ;;  %v18645_v59 = vpack.c.bf16 %v11723_v24, %v11719_v6  ;;  %v11637_v6 = vld [vmem:[#allocation4 + $0xc38] sm:$0xff] }
0x1171   :  { %18736 = vmatpush1.bf16.msra.mxu0 %v18735_v35  ;;  %v18755_v29 = vpack.c.bf16 %v11986_v55, %v11982_v34  ;;  %v11694_v35 = vld [vmem:[#allocation4 + $0xe00] sm:$0xff]  ;;  %v12015_v10 = vld [vmem:[#allocation6 + $0x288] sm:$0xff] }
0x1172   :  { %18608 = vmatpush1.bf16.msra.mxu1 %v18607_v54  ;;  %18738 = vmatprep.subr.bf16.mxu0 %v18737_v19  ;;  %v11687_v54 = vld [vmem:[#allocation4 + $0xdc8] sm:$0xff]  ;;  %v11990_v19 = vld [vmem:[#allocation6 + $0x1c0] sm:$0xff] }
0x1173   :  { %18610 = vmatprep.subr.bf16.mxu1 %v18609_v60  ;;  %v11686_v60 = vld [vmem:[#allocation4 + $0xdc0] sm:$0xff]  ;;  %v18629_v11 = vpack.c.bf16 %v11691_v18, %v11687_v54  ;;  %v18759_v0 = vpack.c.bf16 %v11994_v53, %v11990_v19  ;;  %v12019_v31 = vld [vmem:[#allocation6 + $0x2a8] sm:$0xff] }
0x1174   :  { %v18769_v61 = vpack.c.bf16 %v12019_v31, %v12015_v10  ;;  %v11731_v54 = vld [vmem:[#allocation4 + $0xf28] sm:$0xff]  ;;  %v12026_v34 = vld [vmem:[#allocation6 + $0x2e0] sm:$0xff]  ;;  %v11636_v10 = vld [vmem:[#allocation4 + $0xc30] sm:$0xff] }
0x1175   :  { %18740 = vmatpush1.bf16.msra.mxu0 %v18739_v20  ;;  %v18635_v20 = vpack.c.bf16 %v11698_v13, %v11694_v35  ;;  %v18649_v57 = vpack.c.bf16 %v11731_v54, %v11727_v42  ;;  %v11735_v55 = vld [vmem:[#allocation4 + $0xf48] sm:$0xff]  ;;  %v12034_v19 = vld [vmem:[#allocation6 + $0x320] sm:$0xff]  ;;  %v11641_v31 = vld [vmem:[#allocation4 + $0xc58] sm:$0xff] }
0x1176   :  { %18612 = vmatpush1.bf16.msra.mxu1 %v18611_v25  ;;  %18742 = vmatprep.subr.bf16.mxu0 %v18741_v3  ;;  %v18631_v25 = vpack.c.bf16 %v11690_v21, %v11686_v60  ;;  %v11998_v3 = vld [vmem:[#allocation6 + $0x200] sm:$0xff]  ;;  %v12023_v60 = vld [vmem:[#allocation6 + $0x2c8] sm:$0xff]  ;;  %v11644_v42 = vld [vmem:[#allocation4 + $0xc70] sm:$0xff] }
0x1177   :  { %18614 = vmatprep.subr.bf16.mxu1 %v18613_v48  ;;  %v18633_v48 = vpack.c.bf16 %v11699_v40, %v11695_v15  ;;  %v18763_v52 = vpack.c.bf16 %v12002_v62, %v11998_v3  ;;  %v18773_v21 = vpack.c.bf16 %v12027_v49, %v12023_v60  ;;  %v11739_v15 = vld [vmem:[#allocation4 + $0xf68] sm:$0xff]  ;;  %v12042_v3 = vld [vmem:[#allocation6 + $0x360] sm:$0xff]  ;;  %v11649_v54 = vld [vmem:[#allocation4 + $0xc98] sm:$0xff] }
0x1178   :  { %v12031_v35 = vld [vmem:[#allocation6 + $0x308] sm:$0xff]  ;;  %v18653_v27 = vpack.c.bf16 %v11739_v15, %v11735_v55  ;;  %v11648_v60 = vld [vmem:[#allocation4 + $0xc90] sm:$0xff]  ;;  %v11665_v15 = vld [vmem:[#allocation4 + $0xd18] sm:$0xff] }
0x1179   :  { %18744 = vmatpush1.bf16.msra.mxu0 %v18743_v38  ;;  %v18777_v13 = vpack.c.bf16 %v12035_v4, %v12031_v35  ;;  %v11743_v53 = vld [vmem:[#allocation4 + $0xf88] sm:$0xff]  ;;  %v11652_v49 = vld [vmem:[#allocation4 + $0xcb0] sm:$0xff]  ;;  %v11673_v35 = vld [vmem:[#allocation4 + $0xd58] sm:$0xff] }
0x117a   :  { %18616 = vmatpush1.bf16.msra.mxu1 %v18615_v14  ;;  %18746 = vmatprep.subr.bf16.mxu0 %v18745_v56  ;;  %v11702_v14 = vld [vmem:[#allocation4 + $0xe40] sm:$0xff]  ;;  %v18657_v17 = vpack.c.bf16 %v11747_v44, %v11743_v53  ;;  %v11751_v62 = vld [vmem:[#allocation4 + $0xfc8] sm:$0xff]  ;;  %v11660_v55 = vld [vmem:[#allocation4 + $0xcf0] sm:$0xff] }
0x117b   :  { %18618 = vmatprep.subr.bf16.mxu1 %v18617_v41  ;;  %v11706_v41 = vld [vmem:[#allocation4 + $0xe60] sm:$0xff]  ;;  %v18661_v2 = vpack.c.bf16 %v11755_v58, %v11751_v62  ;;  %v11677_v4 = vld [vmem:[#allocation4 + $0xd78] sm:$0xff] }
0x117c   :  { %v18639_v38 = vpack.c.bf16 %v11706_v41, %v11702_v14  ;;  %v12006_v56 = vld [vmem:[#allocation6 + $0x240] sm:$0xff]  ;;  %v12039_v14 = vld [vmem:[#allocation6 + $0x348] sm:$0xff]  ;;  %v11685_v53 = vld [vmem:[#allocation4 + $0xdb8] sm:$0xff] }
0x117d   :  { %18748 = vmatpush1.bf16.msra.mxu0 %v18747_v46  ;;  %v18767_v37 = vpack.c.bf16 %v12010_v5, %v12006_v56  ;;  %v18781_v41 = vpack.c.bf16 %v12043_v47, %v12039_v14  ;;  %v12050_v56 = vld [vmem:[#allocation6 + $0x3a0] sm:$0xff]  ;;  %v11633_v5 = vld [vmem:[#allocation4 + $0xc18] sm:$0xff] }
0x117e   :  { %18620 = vmatpush1.bf16.msra.mxu1 %v18619_v12  ;;  %18750 = vmatprep.subr.bf16.mxu0 %v18749_v63  ;;  %v11710_v12 = vld [vmem:[#allocation4 + $0xe80] sm:$0xff]  ;;  %v11689_v14 = vld [vmem:[#allocation4 + $0xdd8] sm:$0xff] }
0x117f   :  { %18622 = vmatprep.subr.bf16.mxu1 %v18621_v9  ;;  %v11714_v9 = vld [vmem:[#allocation4 + $0xea0] sm:$0xff]  ;;  %v11693_v47 = vld [vmem:[#allocation4 + $0xdf8] sm:$0xff] }
0x1180   :  { %v18643_v46 = vpack.c.bf16 %v11714_v9, %v11710_v12  ;;  %v12014_v63 = vld [vmem:[#allocation6 + $0x280] sm:$0xff]  ;;  %v12047_v12 = vld [vmem:[#allocation6 + $0x388] sm:$0xff]  ;;  %v11701_v62 = vld [vmem:[#allocation4 + $0xe38] sm:$0xff] }
0x1181   :  { %18752 = vmatpush1.bf16.msra.mxu0 %v18751_v33  ;;  %v18771_v18 = vpack.c.bf16 %v12018_v32, %v12014_v63  ;;  %v18785_v9 = vpack.c.bf16 %v12051_v23, %v12047_v12  ;;  %v11640_v32 = vld [vmem:[#allocation4 + $0xc50] sm:$0xff]  ;;  %v11705_v12 = vld [vmem:[#allocation4 + $0xe58] sm:$0xff] }
0x1182   :  { %18624 = vmatpush1.bf16.msra.mxu1 %v18623_v1  ;;  %18754 = vmatprep.subr.bf16.mxu0 %v18753_v45  ;;  %v11718_v1 = vld [vmem:[#allocation4 + $0xec0] sm:$0xff]  ;;  %v11709_v23 = vld [vmem:[#allocation4 + $0xe78] sm:$0xff] }
0x1183   :  { %18626 = vmatprep.subr.bf16.mxu1 %v18625_v28  ;;  %v11722_v28 = vld [vmem:[#allocation4 + $0xee0] sm:$0xff] }
0x1184   :  { %v18647_v33 = vpack.c.bf16 %v11722_v28, %v11718_v1  ;;  %v12022_v45 = vld [vmem:[#allocation6 + $0x2c0] sm:$0xff]  ;;  %v11632_v1 = vld [vmem:[#allocation4 + $0xc10] sm:$0xff] }
0x1185   :  { %18756 = vmatpush1.bf16.msra.mxu0 %v18755_v29  ;;  %v18775_v40 = vpack.c.bf16 %v12026_v34, %v12022_v45  ;;  %v18667_v28 = vpack.c.bf16 %v11636_v10, %v11632_v1  ;;  %v11656_v34 = vld [vmem:[#allocation4 + $0xcd0] sm:$0xff]  ;;  %v11721_v1 = vld [vmem:[#allocation4 + $0xed8] sm:$0xff] }
0x1186   :  { %18628 = vmatpush1.bf16.msra.mxu1 %v18627_v26  ;;  %18758 = vmatprep.subr.bf16.mxu0 %v18757_v51  ;;  %v11726_v26 = vld [vmem:[#allocation4 + $0xf00] sm:$0xff]  ;;  %v11725_v10 = vld [vmem:[#allocation4 + $0xef8] sm:$0xff] }
0x1187   :  { %18630 = vmatprep.subr.bf16.mxu1 %v18629_v11  ;;  %v11730_v11 = vld [vmem:[#allocation4 + $0xf20] sm:$0xff] }
0x1188   :  { %v18651_v29 = vpack.c.bf16 %v11730_v11, %v11726_v26  ;;  %v12030_v51 = vld [vmem:[#allocation6 + $0x300] sm:$0xff]  ;;  %v11661_v11 = vld [vmem:[#allocation4 + $0xcf8] sm:$0xff] }
0x1189   :  { %18760 = vmatpush1.bf16.msra.mxu0 %v18759_v0  ;;  %v18779_v30 = vpack.c.bf16 %v12034_v19, %v12030_v51  ;;  %v11676_v51 = vld [vmem:[#allocation4 + $0xd70] sm:$0xff]  ;;  %v11681_v19 = vld [vmem:[#allocation4 + $0xd98] sm:$0xff] }
0x118a   :  { %18632 = vmatpush1.bf16.msra.mxu1 %v18631_v25  ;;  %18762 = vmatprep.subr.bf16.mxu0 %v18761_v50  ;;  %v11734_v25 = vld [vmem:[#allocation4 + $0xf40] sm:$0xff] }
0x118b   :  { %18634 = vmatprep.subr.bf16.mxu1 %v18633_v48  ;;  %v11738_v48 = vld [vmem:[#allocation4 + $0xf60] sm:$0xff] }
0x118c   :  { %v18655_v0 = vpack.c.bf16 %v11738_v48, %v11734_v25  ;;  %v12038_v50 = vld [vmem:[#allocation6 + $0x340] sm:$0xff]  ;;  %v11668_v25 = vld [vmem:[#allocation4 + $0xd30] sm:$0xff]  ;;  %v18685_v48 = vpack.c.bf16 %v11677_v4, %v11673_v35 }
0x118d   :  { %18764 = vmatpush1.bf16.msra.mxu0 %v18763_v52  ;;  %v18783_v7 = vpack.c.bf16 %v12042_v3, %v12038_v50  ;;  %v11692_v50 = vld [vmem:[#allocation4 + $0xdf0] sm:$0xff]  ;;  %v11697_v3 = vld [vmem:[#allocation4 + $0xe18] sm:$0xff] }
0x118e   :  { %18636 = vmatpush1.bf16.msra.mxu1 %v18635_v20  ;;  %18766 = vmatprep.subr.bf16.mxu0 %v18765_v39  ;;  %v11742_v20 = vld [vmem:[#allocation4 + $0xf80] sm:$0xff] }
0x118f   :  { %18638 = vmatprep.subr.bf16.mxu1 %v18637_v36  ;;  %v11746_v36 = vld [vmem:[#allocation4 + $0xfa0] sm:$0xff] }
0x1190   :  { %v18659_v52 = vpack.c.bf16 %v11746_v36, %v11742_v20  ;;  %v12046_v39 = vld [vmem:[#allocation6 + $0x380] sm:$0xff]  ;;  %v11684_v20 = vld [vmem:[#allocation4 + $0xdb0] sm:$0xff]  ;;  %v18693_v36 = vpack.c.bf16 %v11693_v47, %v11689_v14 }
0x1191   :  { %18768 = vmatpush1.bf16.msra.mxu0 %v18767_v37  ;;  %v18787_v24 = vpack.c.bf16 %v12050_v56, %v12046_v39  ;;  %v11708_v39 = vld [vmem:[#allocation4 + $0xe70] sm:$0xff]  ;;  %v11713_v56 = vld [vmem:[#allocation4 + $0xe98] sm:$0xff] }
0x1192   :  { %18640 = vmatpush1.bf16.msra.mxu1 %v18639_v38  ;;  %18770 = vmatprep.subr.bf16.mxu0 %v18769_v61  ;;  %v11750_v38 = vld [vmem:[#allocation4 + $0xfc0] sm:$0xff]  ;;  %v11758_v61 = vrot.slane %v24148_v43, 3 }
0x1193   :  { %18642 = vmatprep.subr.bf16.mxu1 %v18641_v16  ;;  %v11754_v16 = vld [vmem:[#allocation4 + $0xfe0] sm:$0xff] }
0x1194   :  { %v18663_v37 = vpack.c.bf16 %v11754_v16, %v11750_v38  ;;  %v11700_v38 = vld [vmem:[#allocation4 + $0xe30] sm:$0xff]  ;;  %v18701_v16 = vpack.c.bf16 %v11709_v23, %v11705_v12 }
0x1195   :  { %18772 = vmatpush1.bf16.msra.mxu0 %v18771_v18  ;;  %v11653_v18 = vld [vmem:[#allocation4 + $0xcb8] sm:$0xff] }
0x1196   :  { %18644 = vmatpush1.bf16.msra.mxu1 %v18643_v46  ;;  %18774 = vmatprep.subr.bf16.mxu0 %v18773_v21  ;;  %v18665_v46 = vpack.c.bf16 %v11637_v6, %v11633_v5  ;;  %v18673_v26 = vpack.c.bf16 %v11653_v18, %v11649_v54  ;;  %v18675_v21 = vpack.c.bf16 %v11652_v49, %v11648_v60  ;;  %v11717_v5 = vld [vmem:[#allocation4 + $0xeb8] sm:$0xff] }
0x1197   :  { %18646 = vmatprep.subr.bf16.mxu1 %v18645_v59  ;;  %v11645_v59 = vld [vmem:[#allocation4 + $0xc78] sm:$0xff] }
0x1198   :  { %v18669_v63 = vpack.c.bf16 %v11645_v59, %v11641_v31  ;;  %v18709_v59 = vpack.c.bf16 %v11725_v10, %v11721_v1  ;;  %v11737_v60 = vld [vmem:[#allocation4 + $0xf58] sm:$0xff]  ;;  %v11976_v1 = vld [vmem:[#allocation6 + $0x150] sm:$0xff] }
0x1199   :  { %18776 = vmatpush1.bf16.msra.mxu0 %v18775_v40  ;;  %v11669_v40 = vld [vmem:[#allocation4 + $0xd38] sm:$0xff]  ;;  %v11980_v10 = vld [vmem:[#allocation6 + $0x170] sm:$0xff] }
0x119a   :  { %18648 = vmatpush1.bf16.msra.mxu1 %v18647_v33  ;;  %18778 = vmatprep.subr.bf16.mxu0 %v18777_v13  ;;  %v18671_v33 = vpack.c.bf16 %v11644_v42, %v11640_v32  ;;  %v18681_v22 = vpack.c.bf16 %v11669_v40, %v11665_v15  ;;  %v11672_v13 = vld [vmem:[#allocation4 + $0xd50] sm:$0xff]  ;;  %v11729_v32 = vld [vmem:[#allocation4 + $0xf18] sm:$0xff] }
0x119b   :  { %18650 = vmatprep.subr.bf16.mxu1 %v18649_v57  ;;  %v11657_v57 = vld [vmem:[#allocation4 + $0xcd8] sm:$0xff]  ;;  %v18687_v44 = vpack.c.bf16 %v11676_v51, %v11672_v13 }
0x119c   :  { %v18677_v45 = vpack.c.bf16 %v11661_v11, %v11657_v57  ;;  %v11733_v42 = vld [vmem:[#allocation4 + $0xf38] sm:$0xff] }
0x119d   :  { %18780 = vmatpush1.bf16.msra.mxu0 %v18779_v30  ;;  %v18689_v30 = vpack.c.bf16 %v11685_v53, %v11681_v19  ;;  %v18713_v18 = vpack.c.bf16 %v11733_v42, %v11729_v32  ;;  %v11741_v49 = vld [vmem:[#allocation4 + $0xf78] sm:$0xff]  ;;  %v12059_v32 = vld [vmem:[#allocation6 + $0x3e8] sm:$0xff] }
0x119e   :  { %18652 = vmatpush1.bf16.msra.mxu1 %v18651_v29  ;;  %18782 = vmatprep.subr.bf16.mxu0 %v18781_v41  ;;  %v18679_v29 = vpack.c.bf16 %v11660_v55, %v11656_v34  ;;  %v11688_v41 = vld [vmem:[#allocation4 + $0xdd0] sm:$0xff]  ;;  %v18717_v11 = vpack.c.bf16 %v11741_v49, %v11737_v60  ;;  %v11745_v34 = vld [vmem:[#allocation4 + $0xf98] sm:$0xff] }
0x119f   :  { %18654 = vmatprep.subr.bf16.mxu1 %v18653_v27  ;;  %v18695_v58 = vpack.c.bf16 %v11692_v50, %v11688_v41  ;;  %v11749_v55 = vld [vmem:[#allocation4 + $0xfb8] sm:$0xff] }
0x11a0   :  { %v18721_v40 = vpack.c.bf16 %v11749_v55, %v11745_v34  ;;  %v11937_v13 = vld [vmem:[#allocation6 + $0x18] sm:$0xff]  ;;  %v12067_v34 = vld [vmem:[#allocation6 + $0x428] sm:$0xff] }
0x11a1   :  { %18784 = vmatpush1.bf16.msra.mxu0 %v18783_v7  ;;  %v18697_v7 = vpack.c.bf16 %v11701_v62, %v11697_v3  ;;  %v11941_v51 = vld [vmem:[#allocation6 + $0x38] sm:$0xff] }
0x11a2   :  { %18656 = vmatpush1.bf16.msra.mxu1 %v18655_v0  ;;  %18786 = vmatprep.subr.bf16.mxu0 %v18785_v9  ;;  %v11680_v0 = vld [vmem:[#allocation4 + $0xd90] sm:$0xff]  ;;  %v18857_v53 = vpack.c.bf16 %v11941_v51, %v11937_v13  ;;  %v11953_v41 = vld [vmem:[#allocation6 + $0x98] sm:$0xff] }
0x11a3   :  { %18658 = vmatprep.subr.bf16.mxu1 %v18657_v17  ;;  %v18691_v17 = vpack.c.bf16 %v11684_v20, %v11680_v0  ;;  %v11704_v9 = vld [vmem:[#allocation4 + $0xe50] sm:$0xff]  ;;  %v11945_v0 = vld [vmem:[#allocation6 + $0x58] sm:$0xff] }
0x11a4   :  { %v18703_v6 = vpack.c.bf16 %v11708_v39, %v11704_v9  ;;  %v11949_v20 = vld [vmem:[#allocation6 + $0x78] sm:$0xff] }
0x11a5   :  { %18788 = vmatpush1.bf16.msra.mxu0 %v18787_v24  ;;  %v18705_v24 = vpack.c.bf16 %v11717_v5, %v11713_v56  ;;  %v18861_v47 = vpack.c.bf16 %v11949_v20, %v11945_v0  ;;  %v11957_v50 = vld [vmem:[#allocation6 + $0xb8] sm:$0xff]  ;;  %v11972_v5 = vld [vmem:[#allocation6 + $0x130] sm:$0xff] }
0x11a6   :  { %18660 = vmatpush1.bf16.msra.mxu1 %v18659_v52  ;;  %v11696_v52 = vld [vmem:[#allocation4 + $0xe10] sm:$0xff]  ;;  %v18865_v62 = vpack.c.bf16 %v11957_v50, %v11953_v41  ;;  %v11969_v9 = vld [vmem:[#allocation6 + $0x118] sm:$0xff] }
0x11a7   :  { %18662 = vmatprep.subr.bf16.mxu1 %v18661_v2  ;;  %v18699_v2 = vpack.c.bf16 %v11700_v38, %v11696_v52  ;;  %v11961_v52 = vld [vmem:[#allocation6 + $0xd8] sm:$0xff] }
0x11a8   :  { %v11965_v38 = vld [vmem:[#allocation6 + $0xf8] sm:$0xff] }
0x11a9   :  { %v18869_v23 = vpack.c.bf16 %v11965_v38, %v11961_v52  ;;  %v11973_v39 = vld [vmem:[#allocation6 + $0x138] sm:$0xff] }
0x11aa   :  { %18664 = vmatpush1.bf16.msra.mxu1 %v18663_v37  ;;  %v11712_v37 = vld [vmem:[#allocation4 + $0xe90] sm:$0xff]  ;;  %v18873_v43 = vpack.c.bf16 %v11973_v39, %v11969_v9  ;;  %v11993_v60 = vld [vmem:[#allocation6 + $0x1d8] sm:$0xff] }
0x11ab   :  { %18666 = vmatprep.subr.bf16.mxu1 %v18665_v46  ;;  %v11716_v46 = vld [vmem:[#allocation4 + $0xeb0] sm:$0xff]  ;;  %v11997_v49 = vld [vmem:[#allocation6 + $0x1f8] sm:$0xff] }
0x11ac   :  { %v18707_v31 = vpack.c.bf16 %v11716_v46, %v11712_v37  ;;  %v18885_v55 = vpack.c.bf16 %v11997_v49, %v11993_v60  ;;  %v12013_v13 = vld [vmem:[#allocation6 + $0x278] sm:$0xff] }
0x11ad   :  { %11827 = vmatmul.mubr.f32.vlgmr.msra.gmra.mrb[152].mxu1 %v11758_v61  ;;  %v12021_v0 = vld [vmem:[#allocation6 + $0x2b8] sm:$0xff] }
0x11ae   :  { %18668 = vmatpush1.bf16.msra.mxu1 %v18667_v28  ;;  %11897 = vmatprep.mubr.f32.mxu1 %v11759_v8  ;;  %v11664_v8 = vld [vmem:[#allocation4 + $0xd10] sm:$0xff]  ;;  %v12029_v41 = vld [vmem:[#allocation6 + $0x2f8] sm:$0xff] }
0x11af   :  { %18670 = vmatprep.subr.bf16.mxu1 %v18669_v63  ;;  %v18683_v27 = vpack.c.bf16 %v11668_v25, %v11664_v8  ;;  %v11720_v28 = vld [vmem:[#allocation4 + $0xed0] sm:$0xff]  ;;  %v11753_v8 = vld [vmem:[#allocation4 + $0xfd8] sm:$0xff] }
0x11b0   :  { %v11724_v63 = vld [vmem:[#allocation4 + $0xef0] sm:$0xff]  ;;  %v11757_v25 = vld [vmem:[#allocation4 + $0xff8] sm:$0xff] }
0x11b1   :  { %v18711_v54 = vpack.c.bf16 %v11724_v63, %v11720_v28  ;;  %v18725_v4 = vpack.c.bf16 %v11757_v25, %v11753_v8  ;;  %v18879_v28 = vpack.c.bf16 %v11980_v10, %v11976_v1  ;;  %v12055_v63 = vld [vmem:[#allocation6 + $0x3c8] sm:$0xff]  ;;  %v12005_v8 = vld [vmem:[#allocation6 + $0x238] sm:$0xff]  ;;  %v12052_v1 = vld [vmem:[#allocation6 + $0x3b0] sm:$0xff] }
0x11b2   :  { %18672 = vmatpush1.bf16.msra.mxu1 %v18671_v33  ;;  %v11728_v33 = vld [vmem:[#allocation4 + $0xf10] sm:$0xff]  ;;  %v12037_v52 = vld [vmem:[#allocation6 + $0x338] sm:$0xff] }
0x11b3   :  { %18674 = vmatprep.subr.bf16.mxu1 %v18673_v26  ;;  %v11732_v26 = vld [vmem:[#allocation4 + $0xf30] sm:$0xff]  ;;  %v12045_v9 = vld [vmem:[#allocation6 + $0x378] sm:$0xff] }
0x11b4   :  { %v18715_v57 = vpack.c.bf16 %v11732_v26, %v11728_v33  ;;  %v18789_v33 = vpack.c.bf16 %v12059_v32, %v12055_v63  ;;  %v12054_v26 = vld [vmem:[#allocation6 + $0x3c0] sm:$0xff]  ;;  %v12057_v10 = vld [vmem:[#allocation6 + $0x3d8] sm:$0xff]  ;;  %v12056_v63 = vld [vmem:[#allocation6 + $0x3d0] sm:$0xff] }
0x11b5   :  { %v12060_v32 = vld [vmem:[#allocation6 + $0x3f0] sm:$0xff] }
0x11b6   :  { %18676 = vmatpush1.bf16.msra.mxu1 %v18675_v21  ;;  %v11736_v21 = vld [vmem:[#allocation4 + $0xf50] sm:$0xff]  ;;  %18790 = vmatprep.subr.bf16.mxu0 %v18789_v33 }
0x11b7   :  { %18678 = vmatprep.subr.bf16.mxu1 %v18677_v45  ;;  %v11740_v45 = vld [vmem:[#allocation4 + $0xf70] sm:$0xff] }
0x11b8   :  { %v18719_v15 = vpack.c.bf16 %v11740_v45, %v11736_v21  ;;  %v12063_v45 = vld [vmem:[#allocation6 + $0x408] sm:$0xff] }
0x11ba   :  { %18680 = vmatpush1.bf16.msra.mxu1 %v18679_v29  ;;  %v11744_v29 = vld [vmem:[#allocation4 + $0xf90] sm:$0xff] }
0x11bb   :  { %18682 = vmatprep.subr.bf16.mxu1 %v18681_v22  ;;  %v11748_v22 = vld [vmem:[#allocation4 + $0xfb0] sm:$0xff] }
0x11bc   :  { %v18723_v35 = vpack.c.bf16 %v11748_v22, %v11744_v29  ;;  %v18793_v29 = vpack.c.bf16 %v12067_v34, %v12063_v45  ;;  %v12001_v22 = vld [vmem:[#allocation6 + $0x218] sm:$0xff]  ;;  %v12062_v45 = vld [vmem:[#allocation6 + $0x400] sm:$0xff] }
0x11bd   :  { %v12066_v34 = vld [vmem:[#allocation6 + $0x420] sm:$0xff] }
0x11be   :  { %18684 = vmatpush1.bf16.msra.mxu1 %v18683_v27  ;;  %v11752_v27 = vld [vmem:[#allocation4 + $0xfd0] sm:$0xff] }
0x11bf   :  { %18686 = vmatprep.subr.bf16.mxu1 %v18685_v48  ;;  %v11756_v48 = vld [vmem:[#allocation4 + $0xff0] sm:$0xff] }
0x11c0   :  { %v18727_v19 = vpack.c.bf16 %v11756_v48, %v11752_v27  ;;  %v12004_v27 = vld [vmem:[#allocation6 + $0x230] sm:$0xff]  ;;  %v12009_v48 = vld [vmem:[#allocation6 + $0x258] sm:$0xff] }
0x11c2   :  { %18688 = vmatpush1.bf16.msra.mxu1 %v18687_v44  ;;  %v11936_v44 = vld [vmem:[#allocation6 + $0x10] sm:$0xff] }
0x11c3   :  { %18690 = vmatprep.subr.bf16.mxu1 %v18689_v30  ;;  %v11940_v30 = vld [vmem:[#allocation6 + $0x30] sm:$0xff] }
0x11c4   :  { %v18859_v14 = vpack.c.bf16 %v11940_v30, %v11936_v44  ;;  %v12012_v44 = vld [vmem:[#allocation6 + $0x270] sm:$0xff]  ;;  %v12017_v30 = vld [vmem:[#allocation6 + $0x298] sm:$0xff] }
0x11c6   :  { %18692 = vmatpush1.bf16.msra.mxu1 %v18691_v17  ;;  %v11944_v17 = vld [vmem:[#allocation6 + $0x50] sm:$0xff] }
0x11c7   :  { %18694 = vmatprep.subr.bf16.mxu1 %v18693_v36  ;;  %v11948_v36 = vld [vmem:[#allocation6 + $0x70] sm:$0xff] }
0x11c8   :  { %v18863_v3 = vpack.c.bf16 %v11948_v36, %v11944_v17  ;;  %v12020_v17 = vld [vmem:[#allocation6 + $0x2b0] sm:$0xff]  ;;  %v12025_v36 = vld [vmem:[#allocation6 + $0x2d8] sm:$0xff] }
0x11ca   :  { %18696 = vmatpush1.bf16.msra.mxu1 %v18695_v58  ;;  %v11952_v58 = vld [vmem:[#allocation6 + $0x90] sm:$0xff] }
0x11cb   :  { %18698 = vmatprep.subr.bf16.mxu1 %v18697_v7  ;;  %v11956_v7 = vld [vmem:[#allocation6 + $0xb0] sm:$0xff] }
0x11cc   :  { %v18867_v12 = vpack.c.bf16 %v11956_v7, %v11952_v58  ;;  %v12028_v58 = vld [vmem:[#allocation6 + $0x2f0] sm:$0xff]  ;;  %v12033_v7 = vld [vmem:[#allocation6 + $0x318] sm:$0xff] }
0x11ce   :  { %18700 = vmatpush1.bf16.msra.mxu1 %v18699_v2  ;;  %v11960_v2 = vld [vmem:[#allocation6 + $0xd0] sm:$0xff] }
0x11cf   :  { %18702 = vmatprep.subr.bf16.mxu1 %v18701_v16  ;;  %v11964_v16 = vld [vmem:[#allocation6 + $0xf0] sm:$0xff] }
0x11d0   :  { %v18871_v56 = vpack.c.bf16 %v11964_v16, %v11960_v2  ;;  %v12036_v2 = vld [vmem:[#allocation6 + $0x330] sm:$0xff]  ;;  %v12041_v16 = vld [vmem:[#allocation6 + $0x358] sm:$0xff] }
0x11d2   :  { %18704 = vmatpush1.bf16.msra.mxu1 %v18703_v6  ;;  %v11977_v6 = vld [vmem:[#allocation6 + $0x158] sm:$0xff] }
0x11d3   :  { %18706 = vmatprep.subr.bf16.mxu1 %v18705_v24  ;;  %v11981_v24 = vld [vmem:[#allocation6 + $0x178] sm:$0xff] }
0x11d4   :  { %v18877_v46 = vpack.c.bf16 %v11981_v24, %v11977_v6  ;;  %v12053_v6 = vld [vmem:[#allocation6 + $0x3b8] sm:$0xff] }
0x11d6   :  { %18708 = vmatpush1.bf16.msra.mxu1 %v18707_v31  ;;  %v11985_v31 = vld [vmem:[#allocation6 + $0x198] sm:$0xff] }
0x11d7   :  { %18710 = vmatprep.subr.bf16.mxu1 %v18709_v59  ;;  %v11989_v59 = vld [vmem:[#allocation6 + $0x1b8] sm:$0xff] }
0x11d8   :  { %v18881_v42 = vpack.c.bf16 %v11989_v59, %v11985_v31  ;;  %v12061_v31 = vld [vmem:[#allocation6 + $0x3f8] sm:$0xff] }
0x11da   :  { %18712 = vmatpush1.bf16.msra.mxu1 %v18711_v54  ;;  %v11984_v54 = vld [vmem:[#allocation6 + $0x190] sm:$0xff] }
0x11db   :  { %18714 = vmatprep.subr.bf16.mxu1 %v18713_v18  ;;  %v11988_v18 = vld [vmem:[#allocation6 + $0x1b0] sm:$0xff] }
0x11dc   :  { %v18883_v21 = vpack.c.bf16 %v11988_v18, %v11984_v54  ;;  %v12069_v54 = vld [vmem:[#allocation6 + $0x438] sm:$0xff]  ;;  %v18919_v18 = vpack.c.bf16 %v12060_v32, %v12056_v63  ;;  %v12098_v63 = vld [vmem:[#allocation6 + $0x520] sm:$0xff] }
0x11de   :  { %18716 = vmatpush1.bf16.msra.mxu1 %v18715_v57  ;;  %v12058_v57 = vld [vmem:[#allocation6 + $0x3e0] sm:$0xff] }
0x11df   :  { %18718 = vmatprep.subr.bf16.mxu1 %v18717_v11  ;;  %v18791_v11 = vpack.c.bf16 %v12058_v57, %v12054_v26  ;;  %v11910_v26 = vlaneseq  ;;  %v24188_v57 = vld [vmem:[%s24435_s12] sm:$0xf] }
0x11e1   :  { %18792 = vmatpush1.bf16.msra.mxu0 %v18791_v11  ;;  %v24182_v60 = vshrl.u32 %v11910_v26, 7  ;;  %v12107_v26 = vld [vmem:[#allocation6 + $0x568] sm:$0xff] }
0x11e2   :  { %18720 = vmatpush1.bf16.msra.mxu1 %v18719_v15  ;;  %v11992_v15 = vld [vmem:[#allocation6 + $0x1d0] sm:$0xff]  ;;  %18794 = vmatprep.subr.bf16.mxu0 %v18793_v29  ;;  %v12071_v29 = vld [vmem:[#allocation6 + $0x448] sm:$0xff] }
0x11e3   :  { %18722 = vmatprep.subr.bf16.mxu1 %v18721_v40  ;;  %v11996_v40 = vld [vmem:[#allocation6 + $0x1f0] sm:$0xff]  ;;  %v11916_v49 = vsub.s32 1, %v24182_v60  ;;  %v11912_v11 = vsub.s32 0, %v24182_v60 }
0x11e4   :  { %v18887_v25 = vpack.c.bf16 %v11996_v40, %v11992_v15  ;;  %v12064_v15 = vld [vmem:[#allocation6 + $0x410] sm:$0xff] }
0x11e5   :  { %v12068_v40 = vld [vmem:[#allocation6 + $0x430] sm:$0xff] }
0x11e6   :  { %18724 = vmatpush1.bf16.msra.mxu1 %v18723_v35  ;;  %v18889_v35 = vpack.c.bf16 %v12005_v8, %v12001_v22  ;;  %v12075_v8 = vld [vmem:[#allocation6 + $0x468] sm:$0xff] }
0x11e7   :  { %18726 = vmatprep.subr.bf16.mxu1 %v18725_v4  ;;  %v12000_v4 = vld [vmem:[#allocation6 + $0x210] sm:$0xff] }
0x11e8   :  { %v18891_v51 = vpack.c.bf16 %v12004_v27, %v12000_v4 }
0x11ea   :  { %18728 = vmatpush1.bf16.msra.mxu1 %v18727_v19  ;;  %v18893_v19 = vpack.c.bf16 %v12013_v13, %v12009_v48  ;;  %v18795_v48 = vpack.c.bf16 %v12066_v34, %v12062_v45  ;;  %v18923_v13 = vpack.c.bf16 %v12068_v40, %v12064_v15  ;;  %v12109_v45 = vld [vmem:[#allocation6 + $0x578] sm:$0xff]  ;;  %v12102_v15 = vld [vmem:[#allocation6 + $0x540] sm:$0xff] }
0x11eb   :  { %18858 = vmatprep.subr.bf16.mxu1 %v18857_v53  ;;  %v12008_v53 = vld [vmem:[#allocation6 + $0x250] sm:$0xff]  ;;  %v12106_v40 = vld [vmem:[#allocation6 + $0x560] sm:$0xff] }
0x11ec   :  { %v18895_v20 = vpack.c.bf16 %v12012_v44, %v12008_v53  ;;  %v18797_v44 = vpack.c.bf16 %v12075_v8, %v12071_v29  ;;  %v12104_v8 = vld [vmem:[#allocation6 + $0x550] sm:$0xff] }
0x11ed   :  { %11898 = vmatmul.mubr.f32.vlgmr.msra.gmra.mrb[154].mxu1 %v11758_v61  ;;  %v11968_v61 = vld [vmem:[#allocation6 + $0x110] sm:$0xff] }
0x11ee   :  { %18860 = vmatpush1.bf16.msra.mxu1 %v18859_v14  ;;  %v18875_v37 = vpack.c.bf16 %v11972_v5, %v11968_v61  ;;  %v18897_v14 = vpack.c.bf16 %v12021_v0, %v12017_v30  ;;  %v12044_v61 = vld [vmem:[#allocation6 + $0x370] sm:$0xff]  ;;  %v12049_v5 = vld [vmem:[#allocation6 + $0x398] sm:$0xff] }
0x11ef   :  { %18862 = vmatprep.subr.bf16.mxu1 %v18861_v47  ;;  %v12016_v47 = vld [vmem:[#allocation6 + $0x290] sm:$0xff] }
0x11f0   :  { %v18899_v50 = vpack.c.bf16 %v12020_v17, %v12016_v47  ;;  %v12072_v0 = vld [vmem:[#allocation6 + $0x450] sm:$0xff]  ;;  %v12083_v47 = vld [vmem:[#allocation6 + $0x4a8] sm:$0xff]  ;;  %v12081_v17 = vld [vmem:[#allocation6 + $0x498] sm:$0xff] }
0x11f2   :  { %18864 = vmatpush1.bf16.msra.mxu1 %v18863_v3  ;;  %v18901_v3 = vpack.c.bf16 %v12029_v41, %v12025_v36  ;;  %v12085_v36 = vld [vmem:[#allocation6 + $0x4b8] sm:$0xff] }
0x11f3   :  { %18866 = vmatprep.subr.bf16.mxu1 %v18865_v62  ;;  %v12024_v62 = vld [vmem:[#allocation6 + $0x2d0] sm:$0xff] }
0x11f4   :  { %v18903_v38 = vpack.c.bf16 %v12028_v58, %v12024_v62  ;;  %v12082_v62 = vld [vmem:[#allocation6 + $0x4a0] sm:$0xff] }
0x11f6   :  { %18868 = vmatpush1.bf16.msra.mxu1 %v18867_v12  ;;  %v18905_v12 = vpack.c.bf16 %v12037_v52, %v12033_v7  ;;  %v18929_v7 = vpack.c.bf16 %v12085_v36, %v12081_v17  ;;  %v12080_v52 = vld [vmem:[#allocation6 + $0x490] sm:$0xff]  ;;  %v12121_v17 = vld [vmem:[#allocation6 + $0x5d8] sm:$0xff] }
0x11f7   :  { %18870 = vmatprep.subr.bf16.mxu1 %v18869_v23  ;;  %v12032_v23 = vld [vmem:[#allocation6 + $0x310] sm:$0xff]  ;;  %v12125_v36 = vld [vmem:[#allocation6 + $0x5f8] sm:$0xff] }
0x11f8   :  { %v18907_v39 = vpack.c.bf16 %v12036_v2, %v12032_v23  ;;  %v12091_v23 = vld [vmem:[#allocation6 + $0x4e8] sm:$0xff]  ;;  %v12089_v2 = vld [vmem:[#allocation6 + $0x4d8] sm:$0xff] }
0x11fa   :  { %18872 = vmatpush1.bf16.msra.mxu1 %v18871_v56  ;;  %v18909_v56 = vpack.c.bf16 %v12045_v9, %v12041_v16  ;;  %v12093_v16 = vld [vmem:[#allocation6 + $0x4f8] sm:$0xff] }
0x11fb   :  { %18874 = vmatprep.subr.bf16.mxu1 %v18873_v43  ;;  %v12040_v43 = vld [vmem:[#allocation6 + $0x350] sm:$0xff] }
0x11fc   :  { %v18911_v24 = vpack.c.bf16 %v12044_v61, %v12040_v43  ;;  %v12090_v43 = vld [vmem:[#allocation6 + $0x4e0] sm:$0xff] }
0x11fe   :  { %18876 = vmatpush1.bf16.msra.mxu1 %v18875_v37  ;;  %v18913_v37 = vpack.c.bf16 %v12053_v6, %v12049_v5  ;;  %v18933_v5 = vpack.c.bf16 %v12093_v16, %v12089_v2  ;;  %v12088_v6 = vld [vmem:[#allocation6 + $0x4d0] sm:$0xff]  ;;  %v12129_v2 = vld [vmem:[#allocation6 + $0x618] sm:$0xff] }
0x11ff   :  { %18878 = vmatprep.subr.bf16.mxu1 %v18877_v46  ;;  %v12048_v46 = vld [vmem:[#allocation6 + $0x390] sm:$0xff]  ;;  %v12133_v16 = vld [vmem:[#allocation6 + $0x638] sm:$0xff] }
0x1200   :  { %v18915_v59 = vpack.c.bf16 %v12052_v1, %v12048_v46  ;;  %v12099_v46 = vld [vmem:[#allocation6 + $0x528] sm:$0xff]  ;;  %v12097_v1 = vld [vmem:[#allocation6 + $0x518] sm:$0xff] }
0x1202   :  { %18880 = vmatpush1.bf16.msra.mxu1 %v18879_v28  ;;  %v18917_v28 = vpack.c.bf16 %v12061_v31, %v12057_v10  ;;  %v12101_v10 = vld [vmem:[#allocation6 + $0x538] sm:$0xff] }
0x1203   :  { %18882 = vmatprep.subr.bf16.mxu1 %v18881_v42  ;;  %v12065_v42 = vld [vmem:[#allocation6 + $0x418] sm:$0xff] }
0x1204   :  { %v18921_v33 = vpack.c.bf16 %v12069_v54, %v12065_v42  ;;  %v18937_v42 = vpack.c.bf16 %v12101_v10, %v12097_v1  ;;  %v12096_v54 = vld [vmem:[#allocation6 + $0x510] sm:$0xff]  ;;  %v12137_v1 = vld [vmem:[#allocation6 + $0x658] sm:$0xff] }
0x1205   :  { %v12141_v10 = vld [vmem:[#allocation6 + $0x678] sm:$0xff] }
0x1206   :  { %18884 = vmatpush1.bf16.msra.mxu1 %v18883_v21  ;;  %v11917_v21 = vrot.slane %v24188_v57, %v11916_v49 }
0x1207   :  { %18886 = vmatprep.subr.bf16.mxu1 %v18885_v55  ;;  %v11913_v55 = vrot.slane %v24188_v57, %v11912_v11 }
0x120a   :  { %18888 = vmatpush1.bf16.msra.mxu1 %v18887_v25  ;;  %v12073_v25 = vld [vmem:[#allocation6 + $0x458] sm:$0xff] }
0x120b   :  { %18890 = vmatprep.subr.bf16.mxu1 %v18889_v35  ;;  %v12077_v35 = vld [vmem:[#allocation6 + $0x478] sm:$0xff] }
0x120c   :  { %v18925_v30 = vpack.c.bf16 %v12077_v35, %v12073_v25  ;;  %v12108_v25 = vld [vmem:[#allocation6 + $0x570] sm:$0xff]  ;;  %v12111_v35 = vld [vmem:[#allocation6 + $0x588] sm:$0xff] }
0x120e   :  { %18892 = vmatpush1.bf16.msra.mxu1 %v18891_v51  ;;  %v12070_v51 = vld [vmem:[#allocation6 + $0x440] sm:$0xff] }
0x120f   :  { %18894 = vmatprep.subr.bf16.mxu1 %v18893_v19  ;;  %v12074_v19 = vld [vmem:[#allocation6 + $0x460] sm:$0xff] }
0x1210   :  { %v18799_v41 = vpack.c.bf16 %v12074_v19, %v12070_v51  ;;  %v18943_v51 = vpack.c.bf16 %v12108_v25, %v12104_v8  ;;  %v12110_v19 = vld [vmem:[#allocation6 + $0x580] sm:$0xff]  ;;  %v12144_v8 = vld [vmem:[#allocation6 + $0x690] sm:$0xff] }
0x1211   :  { %v12148_v25 = vld [vmem:[#allocation6 + $0x6b0] sm:$0xff] }
0x1212   :  { %18896 = vmatpush1.bf16.msra.mxu1 %v18895_v20  ;;  %v12076_v20 = vld [vmem:[#allocation6 + $0x470] sm:$0xff] }
0x1213   :  { %18898 = vmatprep.subr.bf16.mxu1 %v18897_v14  ;;  %v12079_v14 = vld [vmem:[#allocation6 + $0x488] sm:$0xff] }
0x1214   :  { %v18801_v58 = vpack.c.bf16 %v12083_v47, %v12079_v14  ;;  %v12119_v14 = vld [vmem:[#allocation6 + $0x5c8] sm:$0xff] }
0x1215   :  { %v12123_v47 = vld [vmem:[#allocation6 + $0x5e8] sm:$0xff] }
0x1216   :  { %18900 = vmatpush1.bf16.msra.mxu1 %v18899_v50  ;;  %v18927_v50 = vpack.c.bf16 %v12076_v20, %v12072_v0  ;;  %v12112_v0 = vld [vmem:[#allocation6 + $0x590] sm:$0xff] }
0x1217   :  { %18902 = vmatprep.subr.bf16.mxu1 %v18901_v3  ;;  %v12078_v3 = vld [vmem:[#allocation6 + $0x480] sm:$0xff]  ;;  %v12116_v20 = vld [vmem:[#allocation6 + $0x5b0] sm:$0xff] }
0x1218   :  { %v18803_v9 = vpack.c.bf16 %v12082_v62, %v12078_v3  ;;  %v12118_v3 = vld [vmem:[#allocation6 + $0x5c0] sm:$0xff] }
0x1219   :  { %v12122_v62 = vld [vmem:[#allocation6 + $0x5e0] sm:$0xff] }
0x121a   :  { %18904 = vmatpush1.bf16.msra.mxu1 %v18903_v38  ;;  %v12084_v38 = vld [vmem:[#allocation6 + $0x4b0] sm:$0xff] }
0x121b   :  { %18906 = vmatprep.subr.bf16.mxu1 %v18905_v12  ;;  %v12087_v12 = vld [vmem:[#allocation6 + $0x4c8] sm:$0xff] }
0x121c   :  { %v18805_v61 = vpack.c.bf16 %v12091_v23, %v12087_v12  ;;  %v12127_v12 = vld [vmem:[#allocation6 + $0x608] sm:$0xff] }
0x121d   :  { %v12131_v23 = vld [vmem:[#allocation6 + $0x628] sm:$0xff] }
0x121e   :  { %18908 = vmatpush1.bf16.msra.mxu1 %v18907_v39  ;;  %v18931_v39 = vpack.c.bf16 %v12084_v38, %v12080_v52  ;;  %v12120_v52 = vld [vmem:[#allocation6 + $0x5d0] sm:$0xff] }
0x121f   :  { %18910 = vmatprep.subr.bf16.mxu1 %v18909_v56  ;;  %v12086_v56 = vld [vmem:[#allocation6 + $0x4c0] sm:$0xff]  ;;  %v12124_v38 = vld [vmem:[#allocation6 + $0x5f0] sm:$0xff] }
0x1220   :  { %v18807_v31 = vpack.c.bf16 %v12090_v43, %v12086_v56  ;;  %v12126_v56 = vld [vmem:[#allocation6 + $0x600] sm:$0xff] }
0x1221   :  { %v12130_v43 = vld [vmem:[#allocation6 + $0x620] sm:$0xff] }
0x1222   :  { %18912 = vmatpush1.bf16.msra.mxu1 %v18911_v24  ;;  %v12092_v24 = vld [vmem:[#allocation6 + $0x4f0] sm:$0xff] }
0x1223   :  { %18914 = vmatprep.subr.bf16.mxu1 %v18913_v37  ;;  %v12095_v37 = vld [vmem:[#allocation6 + $0x508] sm:$0xff] }
0x1224   :  { %v18809_v32 = vpack.c.bf16 %v12099_v46, %v12095_v37  ;;  %v12135_v37 = vld [vmem:[#allocation6 + $0x648] sm:$0xff] }
0x1225   :  { %v12139_v46 = vld [vmem:[#allocation6 + $0x668] sm:$0xff] }
0x1226   :  { %18916 = vmatpush1.bf16.msra.mxu1 %v18915_v59  ;;  %v18935_v59 = vpack.c.bf16 %v12092_v24, %v12088_v6  ;;  %v12128_v6 = vld [vmem:[#allocation6 + $0x610] sm:$0xff] }
0x1227   :  { %18918 = vmatprep.subr.bf16.mxu1 %v18917_v28  ;;  %v12094_v28 = vld [vmem:[#allocation6 + $0x500] sm:$0xff]  ;;  %v12132_v24 = vld [vmem:[#allocation6 + $0x630] sm:$0xff] }
0x1228   :  { %v18811_v34 = vpack.c.bf16 %v12098_v63, %v12094_v28  ;;  %v12134_v28 = vld [vmem:[#allocation6 + $0x640] sm:$0xff] }
0x1229   :  { %v12138_v63 = vld [vmem:[#allocation6 + $0x660] sm:$0xff] }
0x122a   :  { %18920 = vmatpush1.bf16.msra.mxu1 %v18919_v18  ;;  %v12100_v18 = vld [vmem:[#allocation6 + $0x530] sm:$0xff] }
0x122b   :  { %18922 = vmatprep.subr.bf16.mxu1 %v18921_v33  ;;  %v12103_v33 = vld [vmem:[#allocation6 + $0x548] sm:$0xff] }
0x122c   :  { %v18813_v29 = vpack.c.bf16 %v12107_v26, %v12103_v33  ;;  %v12143_v33 = vld [vmem:[#allocation6 + $0x688] sm:$0xff] }
0x122d   :  { %v12147_v26 = vld [vmem:[#allocation6 + $0x6a8] sm:$0xff] }
0x1280   :  { %v11828_v22 = vpop.f32.mrb[152].mxu1 }
0x1281   :  { %v11830_v4 = vpop.f32.mrb[153].mxu1  ;;  %v11930_v53 = vadd.f32 %v11913_v55, %v11828_v22  ;;  %v18939_v55 = vpack.c.bf16 %v12100_v18, %v12096_v54  ;;  %v12136_v54 = vld [vmem:[#allocation6 + $0x650] sm:$0xff] }
0x1282   :  { %v11931_v27 = vadd.f32 %v11917_v21, %v11830_v4  ;;  %v12105_v21 = vld [vmem:[#allocation6 + $0x558] sm:$0xff]  ;;  %v12115_v4 = vld [vmem:[#allocation6 + $0x5a8] sm:$0xff]  ;;  %v12140_v18 = vld [vmem:[#allocation6 + $0x670] sm:$0xff] }
0x1283   :  { %v18941_v22 = vpack.c.bf16 %v12109_v45, %v12105_v21  ;;  %v12145_v21 = vld [vmem:[#allocation6 + $0x698] sm:$0xff] }
0x1284   :  { %12276 = vmatprep.mubr.f32.mxu0 %v11931_v27  ;;  %12418 = vmatprep.mubr.f32.mxu1 %v11931_v27  ;;  %v12113_v27 = vld [vmem:[#allocation6 + $0x598] sm:$0xff] }
0x1285   :  { %12277 = vmatmul.mubr.f32.vlgmr.msra.gmra.mrb[244].mxu0 %v11930_v53  ;;  %12419 = vmatmul.mubr.f32.vlgmr.msra.gmra.mrb[156].mxu1 %v11930_v53  ;;  %v12114_v53 = vld [vmem:[#allocation6 + $0x5a0] sm:$0xff]  ;;  %v12149_v45 = vld [vmem:[#allocation6 + $0x6b8] sm:$0xff] }
0x1286   :  { %18796 = vmatpush1.bf16.msra.mxu0 %v18795_v48  ;;  %18924 = vmatpush1.bf16.msra.mxu1 %v18923_v13  ;;  %v12117_v48 = vld [vmem:[#allocation6 + $0x5b8] sm:$0xff]  ;;  %v18815_v13 = vpack.c.bf16 %v12106_v40, %v12102_v15  ;;  %v12142_v15 = vld [vmem:[#allocation6 + $0x680] sm:$0xff] }
0x1287   :  { %18798 = vmatprep.subr.bf16.mxu0 %v18797_v44  ;;  %18926 = vmatprep.subr.bf16.mxu1 %v18925_v30  ;;  %v18817_v44 = vpack.c.bf16 %v12115_v4, %v12111_v35  ;;  %v18945_v30 = vpack.c.bf16 %v12117_v48, %v12113_v27  ;;  %v12146_v40 = vld [vmem:[#allocation6 + $0x6a0] sm:$0xff]  ;;  %v12151_v35 = vld [vmem:[#allocation6 + $0x6c8] sm:$0xff]  ;;  %v12153_v27 = vld [vmem:[#allocation6 + $0x6d8] sm:$0xff] }
0x1288   :  { %v12155_v4 = vld [vmem:[#allocation6 + $0x6e8] sm:$0xff]  ;;  %v12157_v48 = vld [vmem:[#allocation6 + $0x6f8] sm:$0xff] }
0x128a   :  { %18800 = vmatpush1.bf16.msra.mxu0 %v18799_v41  ;;  %18928 = vmatpush1.bf16.msra.mxu1 %v18927_v50  ;;  %v18819_v41 = vpack.c.bf16 %v12114_v53, %v12110_v19  ;;  %v18947_v50 = vpack.c.bf16 %v12116_v20, %v12112_v0  ;;  %v12150_v19 = vld [vmem:[#allocation6 + $0x6c0] sm:$0xff]  ;;  %v12152_v0 = vld [vmem:[#allocation6 + $0x6d0] sm:$0xff] }
0x128b   :  { %18802 = vmatprep.subr.bf16.mxu0 %v18801_v58  ;;  %18930 = vmatprep.subr.bf16.mxu1 %v18929_v7  ;;  %v18821_v58 = vpack.c.bf16 %v12123_v47, %v12119_v14  ;;  %v18949_v7 = vpack.c.bf16 %v12125_v36, %v12121_v17  ;;  %v12154_v53 = vld [vmem:[#allocation6 + $0x6e0] sm:$0xff]  ;;  %v12156_v20 = vld [vmem:[#allocation6 + $0x6f0] sm:$0xff]  ;;  %v12159_v14 = vld [vmem:[#allocation6 + $0x708] sm:$0xff] }
0x128c   :  { %v12163_v47 = vld [vmem:[#allocation6 + $0x728] sm:$0xff]  ;;  %v12161_v17 = vld [vmem:[#allocation6 + $0x718] sm:$0xff] }
0x128d   :  { %v12165_v36 = vld [vmem:[#allocation6 + $0x738] sm:$0xff] }
0x128e   :  { %18804 = vmatpush1.bf16.msra.mxu0 %v18803_v9  ;;  %18932 = vmatpush1.bf16.msra.mxu1 %v18931_v39  ;;  %v18823_v9 = vpack.c.bf16 %v12122_v62, %v12118_v3  ;;  %v18951_v39 = vpack.c.bf16 %v12124_v38, %v12120_v52  ;;  %v12158_v3 = vld [vmem:[#allocation6 + $0x700] sm:$0xff]  ;;  %v12160_v52 = vld [vmem:[#allocation6 + $0x710] sm:$0xff] }
0x128f   :  { %18806 = vmatprep.subr.bf16.mxu0 %v18805_v61  ;;  %18934 = vmatprep.subr.bf16.mxu1 %v18933_v5  ;;  %v18825_v61 = vpack.c.bf16 %v12131_v23, %v12127_v12  ;;  %v18953_v5 = vpack.c.bf16 %v12133_v16, %v12129_v2  ;;  %v12162_v62 = vld [vmem:[#allocation6 + $0x720] sm:$0xff]  ;;  %v12164_v38 = vld [vmem:[#allocation6 + $0x730] sm:$0xff]  ;;  %v12167_v12 = vld [vmem:[#allocation6 + $0x748] sm:$0xff] }
0x1290   :  { %v12171_v23 = vld [vmem:[#allocation6 + $0x768] sm:$0xff]  ;;  %v12169_v2 = vld [vmem:[#allocation6 + $0x758] sm:$0xff] }
0x1291   :  { %v12173_v16 = vld [vmem:[#allocation6 + $0x778] sm:$0xff] }
0x1292   :  { %18808 = vmatpush1.bf16.msra.mxu0 %v18807_v31  ;;  %18936 = vmatpush1.bf16.msra.mxu1 %v18935_v59  ;;  %v18827_v31 = vpack.c.bf16 %v12130_v43, %v12126_v56  ;;  %v18955_v59 = vpack.c.bf16 %v12132_v24, %v12128_v6  ;;  %v12166_v56 = vld [vmem:[#allocation6 + $0x740] sm:$0xff]  ;;  %v12168_v6 = vld [vmem:[#allocation6 + $0x750] sm:$0xff] }
0x1293   :  { %18810 = vmatprep.subr.bf16.mxu0 %v18809_v32  ;;  %18938 = vmatprep.subr.bf16.mxu1 %v18937_v42  ;;  %v18829_v32 = vpack.c.bf16 %v12139_v46, %v12135_v37  ;;  %v18957_v42 = vpack.c.bf16 %v12141_v10, %v12137_v1  ;;  %v12170_v43 = vld [vmem:[#allocation6 + $0x760] sm:$0xff]  ;;  %v12172_v24 = vld [vmem:[#allocation6 + $0x770] sm:$0xff]  ;;  %v12175_v37 = vld [vmem:[#allocation6 + $0x788] sm:$0xff] }
0x1294   :  { %v12179_v46 = vld [vmem:[#allocation6 + $0x7a8] sm:$0xff]  ;;  %v12177_v1 = vld [vmem:[#allocation6 + $0x798] sm:$0xff] }
0x1295   :  { %v12181_v10 = vld [vmem:[#allocation6 + $0x7b8] sm:$0xff] }
0x1296   :  { %18812 = vmatpush1.bf16.msra.mxu0 %v18811_v34  ;;  %18940 = vmatpush1.bf16.msra.mxu1 %v18939_v55  ;;  %v18831_v34 = vpack.c.bf16 %v12138_v63, %v12134_v28  ;;  %v18959_v55 = vpack.c.bf16 %v12140_v18, %v12136_v54  ;;  %v12174_v28 = vld [vmem:[#allocation6 + $0x780] sm:$0xff]  ;;  %v12176_v54 = vld [vmem:[#allocation6 + $0x790] sm:$0xff] }
0x1297   :  { %18814 = vmatprep.subr.bf16.mxu0 %v18813_v29  ;;  %18942 = vmatprep.subr.bf16.mxu1 %v18941_v22  ;;  %v18833_v29 = vpack.c.bf16 %v12147_v26, %v12143_v33  ;;  %v18961_v22 = vpack.c.bf16 %v12149_v45, %v12145_v21  ;;  %v12178_v63 = vld [vmem:[#allocation6 + $0x7a0] sm:$0xff]  ;;  %v12180_v18 = vld [vmem:[#allocation6 + $0x7b0] sm:$0xff]  ;;  %v12183_v33 = vld [vmem:[#allocation6 + $0x7c8] sm:$0xff] }
0x1298   :  { %v12187_v26 = vld [vmem:[#allocation6 + $0x7e8] sm:$0xff]  ;;  %v12185_v21 = vld [vmem:[#allocation6 + $0x7d8] sm:$0xff] }
0x1299   :  { %v12189_v45 = vld [vmem:[#allocation6 + $0x7f8] sm:$0xff] }
0x129a   :  { %18816 = vmatpush1.bf16.msra.mxu0 %v18815_v13  ;;  %18944 = vmatpush1.bf16.msra.mxu1 %v18943_v51  ;;  %v18835_v13 = vpack.c.bf16 %v12146_v40, %v12142_v15  ;;  %v18963_v51 = vpack.c.bf16 %v12148_v25, %v12144_v8  ;;  %v11924_v15 = vsub.s32 3, %v24182_v60  ;;  %v12182_v40 = vld [vmem:[#allocation6 + $0x7c0] sm:$0xff]  ;;  %v18981_v8 = vpack.c.bf16 %v12189_v45, %v12185_v21  ;;  %v12526_v45 = vld [vmem:[%s24438_s15 + $0xf0] sm:$0xff] }
0x129b   :  { %18818 = vmatprep.subr.bf16.mxu0 %v18817_v44  ;;  %18946 = vmatprep.subr.bf16.mxu1 %v18945_v30  ;;  %v18837_v44 = vpack.c.bf16 %v12155_v4, %v12151_v35  ;;  %v18965_v30 = vpack.c.bf16 %v12157_v48, %v12153_v27  ;;  %v12186_v25 = vld [vmem:[#allocation6 + $0x7e0] sm:$0xff]  ;;  %v12184_v35 = vld [vmem:[#allocation6 + $0x7d0] sm:$0xff]  ;;  %v12513_v48 = vld [vmem:[%s24438_s15 + $0x88] sm:$0xff] }
0x129c   :  { %v12188_v4 = vld [vmem:[#allocation6 + $0x7f0] sm:$0xff]  ;;  %v12512_v27 = vld [vmem:[%s24438_s15 + $0x80] sm:$0xff] }
0x129e   :  { %18820 = vmatpush1.bf16.msra.mxu0 %v18819_v41  ;;  %18948 = vmatpush1.bf16.msra.mxu1 %v18947_v50  ;;  %v18839_v41 = vpack.c.bf16 %v12154_v53, %v12150_v19  ;;  %v18967_v50 = vpack.c.bf16 %v12156_v20, %v12152_v0  ;;  %v18983_v19 = vpack.c.bf16 %v12188_v4, %v12184_v35  ;;  %v12497_v0 = vld [vmem:[%s24438_s15 + $0x8] sm:$0xff] }
0x129f   :  { %18822 = vmatprep.subr.bf16.mxu0 %v18821_v58  ;;  %18950 = vmatprep.subr.bf16.mxu1 %v18949_v7  ;;  %v18841_v58 = vpack.c.bf16 %v12163_v47, %v12159_v14  ;;  %v18969_v7 = vpack.c.bf16 %v12165_v36, %v12161_v17  ;;  %v12514_v14 = vld [vmem:[%s24438_s15 + $0x90] sm:$0xff]  ;;  %v12545_v35 = vld [vmem:[%s24438_s15 + $0x188] sm:$0xff] }
0x12a2   :  { %18824 = vmatpush1.bf16.msra.mxu0 %v18823_v9  ;;  %18952 = vmatpush1.bf16.msra.mxu1 %v18951_v39  ;;  %v18843_v9 = vpack.c.bf16 %v12162_v62, %v12158_v3  ;;  %v18971_v39 = vpack.c.bf16 %v12164_v38, %v12160_v52  ;;  %v12498_v3 = vld [vmem:[%s24438_s15 + $0x10] sm:$0xff]  ;;  %v12499_v62 = vld [vmem:[%s24438_s15 + $0x18] sm:$0xff] }
0x12a3   :  { %18826 = vmatprep.subr.bf16.mxu0 %v18825_v61  ;;  %18954 = vmatprep.subr.bf16.mxu1 %v18953_v5  ;;  %v18845_v61 = vpack.c.bf16 %v12171_v23, %v12167_v12  ;;  %v18973_v5 = vpack.c.bf16 %v12173_v16, %v12169_v2  ;;  %v18991_v52 = vpack.c.bf16 %v12499_v62, %v12498_v3  ;;  %v12500_v12 = vld [vmem:[%s24438_s15 + $0x20] sm:$0xff]  ;;  %v12501_v23 = vld [vmem:[%s24438_s15 + $0x28] sm:$0xff]  ;;  %v12518_v2 = vld [vmem:[%s24438_s15 + $0xb0] sm:$0xff] }
0x12a4   :  { %v12519_v16 = vld [vmem:[%s24438_s15 + $0xb8] sm:$0xff]  ;;  %v12549_v3 = vld [vmem:[%s24438_s15 + $0x1a8] sm:$0xff] }
0x12a6   :  { %18828 = vmatpush1.bf16.msra.mxu0 %v18827_v31  ;;  %18956 = vmatpush1.bf16.msra.mxu1 %v18955_v59  ;;  %v18847_v31 = vpack.c.bf16 %v12170_v43, %v12166_v56  ;;  %v18975_v59 = vpack.c.bf16 %v12172_v24, %v12168_v6  ;;  %v12502_v56 = vld [vmem:[%s24438_s15 + $0x30] sm:$0xff]  ;;  %v12503_v43 = vld [vmem:[%s24438_s15 + $0x38] sm:$0xff] }
0x12a7   :  { %18830 = vmatprep.subr.bf16.mxu0 %v18829_v32  ;;  %18958 = vmatprep.subr.bf16.mxu1 %v18957_v42  ;;  %v18849_v32 = vpack.c.bf16 %v12179_v46, %v12175_v37  ;;  %v18977_v42 = vpack.c.bf16 %v12181_v10, %v12177_v1  ;;  %v18999_v6 = vpack.c.bf16 %v12503_v43, %v12502_v56  ;;  %v12504_v37 = vld [vmem:[%s24438_s15 + $0x40] sm:$0xff]  ;;  %v12505_v46 = vld [vmem:[%s24438_s15 + $0x48] sm:$0xff]  ;;  %v12522_v1 = vld [vmem:[%s24438_s15 + $0xd0] sm:$0xff] }
0x12a8   :  { %v12523_v10 = vld [vmem:[%s24438_s15 + $0xd8] sm:$0xff]  ;;  %v12553_v56 = vld [vmem:[%s24438_s15 + $0x1c8] sm:$0xff] }
0x12aa   :  { %18832 = vmatpush1.bf16.msra.mxu0 %v18831_v34  ;;  %18960 = vmatpush1.bf16.msra.mxu1 %v18959_v55  ;;  %v18851_v34 = vpack.c.bf16 %v12178_v63, %v12174_v28  ;;  %v18979_v55 = vpack.c.bf16 %v12180_v18, %v12176_v54  ;;  %v12506_v28 = vld [vmem:[%s24438_s15 + $0x50] sm:$0xff]  ;;  %v12507_v63 = vld [vmem:[%s24438_s15 + $0x58] sm:$0xff] }
0x12ab   :  { %18834 = vmatprep.subr.bf16.mxu0 %v18833_v29  ;;  %18962 = vmatprep.subr.bf16.mxu1 %v18961_v22  ;;  %v11920_v29 = vsub.s32 2, %v24182_v60  ;;  %v18853_v22 = vpack.c.bf16 %v12187_v26, %v12183_v33  ;;  %v19007_v54 = vpack.c.bf16 %v12507_v63, %v12506_v28  ;;  %v12508_v33 = vld [vmem:[%s24438_s15 + $0x60] sm:$0xff]  ;;  %v12509_v26 = vld [vmem:[%s24438_s15 + $0x68] sm:$0xff] }
0x12ac   :  { %v19011_v21 = vpack.c.bf16 %v12509_v26, %v12508_v33  ;;  %v12557_v28 = vld [vmem:[%s24438_s15 + $0x1e8] sm:$0xff]  ;;  %v12559_v33 = vld [vmem:[%s24438_s15 + $0x1f8] sm:$0xff] }
0x12ad   :  { %v11921_v53 = vrot.slane %v24188_v57, %v11920_v29 }
0x12ae   :  { %18836 = vmatpush1.bf16.msra.mxu0 %v18835_v13  ;;  %18964 = vmatpush1.bf16.msra.mxu1 %v18963_v51  ;;  %v11925_v13 = vrot.slane %v24188_v57, %v11924_v15  ;;  %v18855_v51 = vpack.c.bf16 %v12186_v25, %v12182_v40  ;;  %v12515_v57 = vld [vmem:[%s24438_s15 + $0x98] sm:$0xff]  ;;  %v12510_v40 = vld [vmem:[%s24438_s15 + $0x70] sm:$0xff]  ;;  %v12544_v25 = vld [vmem:[%s24438_s15 + $0x180] sm:$0xff] }
0x12af   :  { %18838 = vmatprep.subr.bf16.mxu0 %v18837_v44  ;;  %18966 = vmatprep.subr.bf16.mxu1 %v18965_v30  ;;  %v18985_v44 = vpack.c.bf16 %v12513_v48, %v12512_v27  ;;  %v12496_v30 = vld [vmem:[%s24438_s15] sm:$0xff]  ;;  %v19017_v4 = vpack.c.bf16 %v12545_v35, %v12544_v25 }
0x12b0   :  { %v18987_v36 = vpack.c.bf16 %v12497_v0, %v12496_v30  ;;  %v24310_v27 = vld [vmem:[%s24437_s14] sm:$0xf] }
0x12b1   :  { %v12199_v48 = vrot.slane %v24310_v27, %v11916_v49  ;;  %v12207_v30 = vrot.slane %v24310_v27, %v11924_v15  ;;  %v12546_v49 = vld [vmem:[%s24438_s15 + $0x190] sm:$0xff]  ;;  %v12531_v15 = vld [vmem:[%s24438_s15 + $0x118] sm:$0xff] }
0x12b2   :  { %18840 = vmatpush1.bf16.msra.mxu0 %v18839_v41  ;;  %18968 = vmatpush1.bf16.msra.mxu1 %v18967_v50  ;;  %v18989_v50 = vpack.c.bf16 %v12515_v57, %v12514_v14 }
0x12b3   :  { %18842 = vmatprep.subr.bf16.mxu0 %v18841_v58  ;;  %18970 = vmatprep.subr.bf16.mxu1 %v18969_v7  ;;  %v12516_v58 = vld [vmem:[%s24438_s15 + $0xa0] sm:$0xff]  ;;  %v12517_v7 = vld [vmem:[%s24438_s15 + $0xa8] sm:$0xff] }
0x12b4   :  { %v18993_v38 = vpack.c.bf16 %v12517_v7, %v12516_v58  ;;  %v12532_v7 = vld [vmem:[%s24438_s15 + $0x120] sm:$0xff] }
0x12b6   :  { %18844 = vmatpush1.bf16.msra.mxu0 %v18843_v9  ;;  %18972 = vmatpush1.bf16.msra.mxu1 %v18971_v39  ;;  %v18995_v9 = vpack.c.bf16 %v12501_v23, %v12500_v12  ;;  %v18997_v39 = vpack.c.bf16 %v12519_v16, %v12518_v2  ;;  %v12551_v12 = vld [vmem:[%s24438_s15 + $0x1b8] sm:$0xff]  ;;  %v12534_v16 = vld [vmem:[%s24438_s15 + $0x130] sm:$0xff] }
0x12b7   :  { %18846 = vmatprep.subr.bf16.mxu0 %v18845_v61  ;;  %18974 = vmatprep.subr.bf16.mxu1 %v18973_v5  ;;  %v12520_v61 = vld [vmem:[%s24438_s15 + $0xc0] sm:$0xff]  ;;  %v12521_v5 = vld [vmem:[%s24438_s15 + $0xc8] sm:$0xff] }
0x12b8   :  { %v19001_v24 = vpack.c.bf16 %v12521_v5, %v12520_v61  ;;  %v12536_v5 = vld [vmem:[%s24438_s15 + $0x140] sm:$0xff] }
0x12ba   :  { %18848 = vmatpush1.bf16.msra.mxu0 %v18847_v31  ;;  %18976 = vmatpush1.bf16.msra.mxu1 %v18975_v59  ;;  %v19003_v31 = vpack.c.bf16 %v12505_v46, %v12504_v37  ;;  %v19005_v59 = vpack.c.bf16 %v12523_v10, %v12522_v1  ;;  %v12555_v37 = vld [vmem:[%s24438_s15 + $0x1d8] sm:$0xff]  ;;  %v12538_v10 = vld [vmem:[%s24438_s15 + $0x150] sm:$0xff] }
0x12bb   :  { %18850 = vmatprep.subr.bf16.mxu0 %v18849_v32  ;;  %18978 = vmatprep.subr.bf16.mxu1 %v18977_v42  ;;  %v12524_v32 = vld [vmem:[%s24438_s15 + $0xe0] sm:$0xff]  ;;  %v12525_v42 = vld [vmem:[%s24438_s15 + $0xe8] sm:$0xff] }
0x12bc   :  { %v19009_v18 = vpack.c.bf16 %v12525_v42, %v12524_v32  ;;  %v12540_v42 = vld [vmem:[%s24438_s15 + $0x160] sm:$0xff] }
0x12be   :  { %18852 = vmatpush1.bf16.msra.mxu0 %v18851_v34  ;;  %18980 = vmatpush1.bf16.msra.mxu1 %v18979_v55  ;;  %v12527_v34 = vld [vmem:[%s24438_s15 + $0xf8] sm:$0xff] }
0x12bf   :  { %18854 = vmatprep.subr.bf16.mxu0 %v18853_v22  ;;  %18982 = vmatprep.subr.bf16.mxu1 %v18981_v8  ;;  %v19013_v55 = vpack.c.bf16 %v12527_v34, %v12526_v45  ;;  %v12511_v22 = vld [vmem:[%s24438_s15 + $0x78] sm:$0xff]  ;;  %v12542_v45 = vld [vmem:[%s24438_s15 + $0x170] sm:$0xff] }
0x12c0   :  { %v11899_v20 = vpop.f32.mrb[154].mxu1  ;;  %v19015_v8 = vpack.c.bf16 %v12511_v22, %v12510_v40  ;;  %v12543_v34 = vld [vmem:[%s24438_s15 + $0x178] sm:$0xff]  ;;  %v12203_v40 = vrot.slane %v24310_v27, %v11920_v29 }
0x12c1   :  { %v11901_v47 = vpop.f32.mrb[155].mxu1  ;;  %v11932_v41 = vadd.f32 %v11921_v53, %v11899_v20 }
0x12c2   :  { %v11933_v17 = vadd.f32 %v11925_v13, %v11901_v47  ;;  %18856 = vmatpush1.bf16.msra.mxu0 %v18855_v51  ;;  %18984 = vmatpush1.bf16.msra.mxu1 %v18983_v19  ;;  %v12195_v13 = vrot.slane %v24310_v27, %v11912_v11  ;;  %v12528_v51 = vld [vmem:[%s24438_s15 + $0x100] sm:$0xff]  ;;  %v12529_v19 = vld [vmem:[%s24438_s15 + $0x108] sm:$0xff]  ;;  %v12547_v11 = vld [vmem:[%s24438_s15 + $0x198] sm:$0xff] }
0x12c3   :  { %18986 = vmatprep.subr.bf16.mxu0 %v18985_v44  ;;  %v19019_v57 = vpack.c.bf16 %v12529_v19, %v12528_v51 }
0x12c4   :  { %12347 = vmatprep.mubr.f32.mxu0 %v11933_v17  ;;  %12489 = vmatprep.mubr.f32.mxu1 %v11933_v17  ;;  %v19021_v17 = vpack.c.bf16 %v12547_v11, %v12546_v49 }
0x12c5   :  { %12348 = vmatmul.mubr.f32.vlgmr.msra.gmra.mrb[244].mxu0 %v11932_v41  ;;  %12490 = vmatmul.mubr.f32.vlgmr.msra.gmra.mrb[156].mxu1 %v11932_v41 }
0x12c6   :  { %18988 = vmatpush3.bf16.msra.mxu0 %v18987_v36  ;;  %v12530_v36 = vld [vmem:[%s24438_s15 + $0x110] sm:$0xff] }
0x12c7   :  { %18990 = vmatprep.subr.bf16.mxu0 %v18989_v50  ;;  %v12548_v50 = vld [vmem:[%s24438_s15 + $0x1a0] sm:$0xff]  ;;  %v19023_v62 = vpack.c.bf16 %v12531_v15, %v12530_v36 }
0x12c8   :  { %v19025_v58 = vpack.c.bf16 %v12549_v3, %v12548_v50 }
0x12ca   :  { %18992 = vmatpush3.bf16.msra.mxu0 %v18991_v52  ;;  %v12533_v52 = vld [vmem:[%s24438_s15 + $0x128] sm:$0xff] }
0x12cb   :  { %18994 = vmatprep.subr.bf16.mxu0 %v18993_v38  ;;  %v12550_v38 = vld [vmem:[%s24438_s15 + $0x1b0] sm:$0xff]  ;;  %v19027_v23 = vpack.c.bf16 %v12533_v52, %v12532_v7 }
0x12cc   :  { %v19029_v2 = vpack.c.bf16 %v12551_v12, %v12550_v38 }
0x12ce   :  { %18996 = vmatpush3.bf16.msra.mxu0 %v18995_v9  ;;  %v12535_v9 = vld [vmem:[%s24438_s15 + $0x138] sm:$0xff] }
0x12cf   :  { %18998 = vmatprep.subr.bf16.mxu0 %v18997_v39  ;;  %v12552_v39 = vld [vmem:[%s24438_s15 + $0x1c0] sm:$0xff]  ;;  %v19031_v43 = vpack.c.bf16 %v12535_v9, %v12534_v16 }
0x12d0   :  { %v19033_v61 = vpack.c.bf16 %v12553_v56, %v12552_v39 }
0x12d2   :  { %19000 = vmatpush3.bf16.msra.mxu0 %v18999_v6  ;;  %v12537_v6 = vld [vmem:[%s24438_s15 + $0x148] sm:$0xff] }
0x12d3   :  { %19002 = vmatprep.subr.bf16.mxu0 %v19001_v24  ;;  %v12554_v24 = vld [vmem:[%s24438_s15 + $0x1d0] sm:$0xff]  ;;  %v19035_v46 = vpack.c.bf16 %v12537_v6, %v12536_v5 }
0x12d4   :  { %v19037_v1 = vpack.c.bf16 %v12555_v37, %v12554_v24 }
0x12d6   :  { %19004 = vmatpush3.bf16.msra.mxu0 %v19003_v31  ;;  %v12539_v31 = vld [vmem:[%s24438_s15 + $0x158] sm:$0xff] }
0x12d7   :  { %19006 = vmatprep.subr.bf16.mxu0 %v19005_v59  ;;  %v12556_v59 = vld [vmem:[%s24438_s15 + $0x1e0] sm:$0xff]  ;;  %v19039_v63 = vpack.c.bf16 %v12539_v31, %v12538_v10 }
0x12d8   :  { %v19041_v32 = vpack.c.bf16 %v12557_v28, %v12556_v59 }
0x12da   :  { %19008 = vmatpush3.bf16.msra.mxu0 %v19007_v54  ;;  %v12541_v54 = vld [vmem:[%s24438_s15 + $0x168] sm:$0xff] }
0x12db   :  { %19010 = vmatprep.subr.bf16.mxu0 %v19009_v18  ;;  %v12558_v18 = vld [vmem:[%s24438_s15 + $0x1f0] sm:$0xff]  ;;  %v19043_v26 = vpack.c.bf16 %v12541_v54, %v12540_v42 }
0x12de   :  { %19012 = vmatpush3.bf16.msra.mxu0 %v19011_v21  ;;  %v19045_v21 = vpack.c.bf16 %v12559_v33, %v12558_v18 }
0x12df   :  { %19014 = vmatprep.subr.bf16.mxu0 %v19013_v55  ;;  %v19047_v55 = vpack.c.bf16 %v12543_v34, %v12542_v45 }
0x12e2   :  { %19016 = vmatpush3.bf16.msra.mxu0 %v19015_v8 }
0x12e3   :  { %19018 = vmatprep.subr.bf16.mxu0 %v19017_v4  ;;  %v12560_v4 = vld [vmem:[%s24439_s16] sm:$0x1] }
0x1398   :  { %v12349_v53 = vpop.f32.mrb[244].mxu0  ;;  %v24324_v44 = vpop.f32.mrb[156].mxu1 }
0x1399   :  { %v12351_v0 = vpop.f32.mrb[245].mxu0  ;;  %v12493_v20 = vpop.f32.mrb[157].mxu1  ;;  %v19081_v47 = vadd.f32 %v12349_v53, %v12195_v13  ;;  %v19083_v22 = vadd.f32 %v24324_v44, %v12203_v40 }
0x139a   :  { %v19082_v14 = vadd.f32 %v12351_v0, %v12199_v48  ;;  %v19084_v41 = vadd.f32 %v12493_v20, %v12207_v30 }
0x139c   :  { %12625 = vmatprep.mubr.f32.mxu0 %v19082_v14 }
0x139d   :  { %12626 = vmatmul.mubr.f32.vlgmr.msra.gmra.mrb[246].mxu0 %v19081_v47 }
0x139e   :  { %19020 = vmatpush3.bf16.msra.mxu0 %v19019_v57  ;;  %12695 = vmatprep.mubr.f32.mxu0 %v19084_v41 }
0x139f   :  { %19022 = vmatprep.subr.bf16.mxu0 %v19021_v17 }
0x13a2   :  { %19024 = vmatpush3.bf16.msra.mxu0 %v19023_v62 }
0x13a3   :  { %19026 = vmatprep.subr.bf16.mxu0 %v19025_v58 }
0x13a6   :  { %19028 = vmatpush3.bf16.msra.mxu0 %v19027_v23 }
0x13a7   :  { %19030 = vmatprep.subr.bf16.mxu0 %v19029_v2 }
0x13aa   :  { %19032 = vmatpush3.bf16.msra.mxu0 %v19031_v43 }
0x13ab   :  { %19034 = vmatprep.subr.bf16.mxu0 %v19033_v61 }
0x13ae   :  { %19036 = vmatpush3.bf16.msra.mxu0 %v19035_v46 }
0x13af   :  { %19038 = vmatprep.subr.bf16.mxu0 %v19037_v1 }
0x13b2   :  { %19040 = vmatpush3.bf16.msra.mxu0 %v19039_v63 }
0x13b3   :  { %19042 = vmatprep.subr.bf16.mxu0 %v19041_v32 }
0x13b6   :  { %19044 = vmatpush3.bf16.msra.mxu0 %v19043_v26 }
0x13b7   :  { %19046 = vmatprep.subr.bf16.mxu0 %v19045_v21 }
0x13ba   :  { %19048 = vmatpush3.bf16.msra.mxu0 %v19047_v55 }
0x13bd   :  { %12696 = vmatmul.mubr.f32.vlgmr.msra.gmra.mrb[248].mxu0 %v19083_v22 }
0x1470   :  { %v15355_v8 = vpop.f32.mrb[246].mxu0 }
0x1471   :  { %v15356_v25 = vpop.f32.mrb[247].mxu0 }
0x1472   :  { %v15357_v35 = vadd.f32 %v15356_v25, %v15355_v8 }
0x1474   :  { %v12628_v51 = vadd.f32 %v15357_v35, %v12560_v4 }
0x1490   :  { %v15390_v48 = vpop.f32.mrb[248].mxu0 }
0x1491   :  { %v15391_v13 = vpop.f32.mrb[249].mxu0 }
0x1492   :  { %v15392_v19 = vadd.f32 %v15391_v13, %v15390_v48 }
0x1494   :  { %v12698_v60 = vadd.f32 %v15392_v19, %v12628_v51 }
0x1496   :  { %12702 = vst.msk [vmem:[%s24440_s17] sm:$0x1] %vm12701_vm5, %v12698_v60 }
0x1497   :  { %12707 = vsyncpa [#allocation3], 1 }
0x1498   :  { %12708 = vsyncpa [#allocation5], 1 }

</bundles_post_ra>
